<compile_context>
chip_gen: v5e
topology: v5e:2x2
jax: 0.10.0
libtpu: 0.0.40
codegen_flags: <defaults>
</compile_context>

<pallas_src>
import math
from functools import partial

import jax
import jax.numpy as jnp
from jax.experimental import pallas as pl
from jax.experimental.pallas import tpu as pltpu

EMB = 256            # embedding_dim
HID = 256            # hidden_dim
HALF = EMB // 2      # 128
SQRT2 = math.sqrt(2.0)
LANE = 128           # lane width; batch tiles are multiples of this
MAX_TB = 2048        # max batch rows per grid step (working set ~6-9 MiB VMEM)
SPLIT_B = 1024       # above this batch size force >= 2 grid steps (v7x megacore)


def _cdiv(a, b):
    return -(-a // b)


def _round_up(n, m):
    return _cdiv(n, m) * m


def _elementwise_dtype():
    """bf16 elementwise (trig/SiLU) on v6e/v7x; f32 on v5x (no bf16 VPU/EUP)."""
    try:
        kind = jax.devices()[0].device_kind.lower()
    except Exception:
        kind = ""
    return jnp.float32 if "v5" in kind else jnp.bfloat16


def _net_kernel(x_ref, t_ref, freqs_ref,
                w1x_ref, w1t_ref, b1_ref,
                w2_ref, b2_ref,
                w3_ref, b3_ref,
                wlv_ref,
                out_ref, *, ew_dtype):
    f32 = jnp.float32
    bf16 = jnp.bfloat16

    # --- PositionalEmbedding: y = t outer freqs; sqrt(2) scale is folded into
    # w1t / wlv at init.  Trig (EUP) runs in ew_dtype (bf16 on v6e/v7x).
    y = (t_ref[...] * freqs_ref[...]).astype(ew_dtype)           # (TB, HALF)
    trig = jnp.concatenate([jnp.sin(y), jnp.cos(y)], axis=-1)    # (TB, EMB)
    trig_bf = trig.astype(bf16)                                  # MXU operand

    # --- pred_net layer 1: Linear(EMB + 1, HID) = x-column (VPU broadcast mul)
    # + one fused K=256 bf16 MXU dot with f32 accumulation.
    xw = x_ref[...].astype(ew_dtype) * w1x_ref[...].astype(ew_dtype)  # (TB, HID)
    h1 = (xw
          + jnp.dot(trig_bf, w1t_ref[...], preferred_element_type=f32)
          + b1_ref[...])                                          # (TB, HID) f32
    a1 = h1.astype(ew_dtype)
    a1 = a1 * jax.nn.sigmoid(a1)                                  # SiLU

    # --- pred_net layer 2: Linear(HID, HID)
    h2 = jnp.dot(a1.astype(bf16), w2_ref[...],
                 preferred_element_type=f32) + b2_ref[...]        # (TB, HID) f32
    a2 = h2.astype(ew_dtype)
    a2 = a2 * jax.nn.sigmoid(a2)                                  # SiLU

    # --- Heads as NT matmuls: (1, F) x (TB, F)^T -> (1, TB), i.e. the batch
    # lands on lanes, so the (2, TB) output block is stored with unmasked
    # full-width vst and no transpose/relayout is needed.
    nt = (((1,), (1,)), ((), ()))
    preds_row = jax.lax.dot_general(
        w3_ref[...].astype(bf16), a2.astype(bf16),
        dimension_numbers=nt, preferred_element_type=f32) + b3_ref[0]   # (1, TB)
    logvar_row = jax.lax.dot_general(
        wlv_ref[...].astype(bf16), trig_bf,
        dimension_numbers=nt, preferred_element_type=f32)               # (1, TB)

    out_ref[0:1, :] = preds_row
    out_ref[1:2, :] = logvar_row


def net_forward(params, x, t, return_logvar=False, ew_dtype=None):
    if ew_dtype is None:
        ew_dtype = _elementwise_dtype()
    B = x.shape[0]

    # Adaptive tiling: lane-aligned tile, small padding, >= 2 steps for big B.
    n_tiles = max(1, _cdiv(B, MAX_TB))
    if n_tiles == 1 and B > SPLIT_B:
        n_tiles = 2                      # keep both v7x TensorCores busy
    tb = _round_up(_cdiv(B, n_tiles), LANE)
    b_pad = n_tiles * tb

    xf = jnp.pad(x.astype(jnp.float32).reshape(B, 1), ((0, b_pad - B), (0, 0)))
    tf = jnp.pad(t.astype(jnp.float32).reshape(B, 1), ((0, b_pad - B), (0, 0)))

    def _batch(last):
        return pl.BlockSpec((tb, last), lambda i: (i, 0))

    def _resident(shape):                # same block every step -> stays in VMEM
        return pl.BlockSpec(shape, lambda i: (0, 0))

    in_specs = [
        _batch(1),                                            # x
        _batch(1),                                            # t
        _resident((1, HALF)),                                 # freqs
        _resident((1, HID)),                                  # w1x
        _resident((EMB, HID)),                                # w1t (bf16, fused)
        _resident((1, HID)),                                  # b1
        _resident((HID, HID)),                                # w2 (bf16)
        _resident((1, HID)),                                  # b2
        _resident((1, HID)),                                  # w3
        pl.BlockSpec(memory_space=pltpu.MemorySpace.SMEM),    # b3 scalar
        _resident((1, EMB)),                                  # wlv (fused)
    ]

    out = pl.pallas_call(
        partial(_net_kernel, ew_dtype=ew_dtype),
        out_shape=jax.ShapeDtypeStruct((2, b_pad), jnp.float32),
        grid=(n_tiles,),
        in_specs=in_specs,
        out_specs=pl.BlockSpec((2, tb), lambda i: (0, i)),
        compiler_params=pltpu.CompilerParams(
            dimension_semantics=("parallel",),
            vmem_limit_bytes=32 * 1024 * 1024),
    )(xf, tf,
      params["freqs"],
      params["w1x"], params["w1t"], params["b1"],
      params["w2"], params["b2"],
      params["w3"], params["b3"],
      params["wlv"])

    preds = out[0, :B]
    if return_logvar:
        return preds, out[1, :B]
    return preds


def init_params(key):
    ks = jax.random.split(key, 8)

    def uniform(k, shape, fan_in):
        bound = 1.0 / math.sqrt(fan_in)
        return jax.random.uniform(k, shape, jnp.float32, -bound, bound)

    emb = math.log(10.0) / (HALF - 1)
    freqs = jnp.exp(jnp.arange(HALF, dtype=jnp.float32) * -emb).reshape(1, HALF)

    # Linear(EMB+1, HID) stored as (in, out); the x column is split out and the
    # t-embedding block keeps the sqrt(2) embedding scale folded in.  MXU
    # weights are pre-quantized to bf16 (the f32 reference sees the same
    # quantized values).  TODO(synk): store f32 and cast in-kernel if exact
    # fidelity to an f32/PyTorch checkpoint is required.
    w1 = uniform(ks[0], (EMB + 1, HID), EMB + 1)
    params = {
        "freqs": freqs,
        "w1x": w1[0:1, :],                                     # (1, HID) f32
        "w1t": (SQRT2 * w1[1:, :]).astype(jnp.bfloat16),       # (EMB, HID) bf16
        "b1": uniform(ks[1], (1, HID), EMB + 1),
        "w2": uniform(ks[2], (HID, HID), HID).astype(jnp.bfloat16),
        "b2": uniform(ks[3], (1, HID), HID),
        "w3": uniform(ks[4], (1, HID), HID),                   # Linear(HID,1) row
        "b3": uniform(ks[5], (1,), HID),                       # scalar bias (SMEM)
        "wlv": SQRT2 * uniform(ks[6], (1, EMB), EMB),          # logvar head, f32
    }
    return params


def net_reference(params, x, t):
    """Pure-JAX f32 reference mirroring the PyTorch forward."""
    y = t.astype(jnp.float32)[:, None] * params["freqs"]
    trig = jnp.concatenate([jnp.sin(y), jnp.cos(y)], axis=-1)
    h1 = (x.astype(jnp.float32)[:, None] * params["w1x"]
          + trig @ params["w1t"].astype(jnp.float32)
          + params["b1"])
    h1 = jax.nn.silu(h1)
    h2 = jax.nn.silu(h1 @ params["w2"].astype(jnp.float32) + params["b2"])
    preds = (h2 * params["w3"]).sum(-1) + params["b3"][0]
    logvar = (trig * params["wlv"]).sum(-1)
    return preds, logvar


if __name__ == "__main__":
    key = jax.random.PRNGKey(0)
    kp, kx, kt = jax.random.split(key, 3)

    params = init_params(kp)

    # Small batch (single grid step, tile padded to 128 rows).
    B = 8
    x = jax.random.normal(kx, (B,), jnp.float32)
    t = jax.random.uniform(kt, (B,), jnp.float32)

    preds, logvar = net_forward(params, x, t, return_logvar=True)
    preds, logvar = jax.block_until_ready((preds, logvar))

    ref_preds, ref_logvar = net_reference(params, x, t)
    assert preds.shape == (B,) and logvar.shape == (B,)
    # bf16 MXU operands + bf16 trig/SiLU (on v6e/v7x) vs f32 reference.
    assert jnp.allclose(preds, ref_preds, atol=2e-2, rtol=2e-2)
    assert jnp.allclose(logvar, ref_logvar, atol=2e-2, rtol=2e-2)

    # Larger batch not a multiple of 128 (exercises adaptive tiling + padding).
    B2 = 600
    x2 = jax.random.normal(jax.random.PRNGKey(1), (B2,), jnp.float32)
    t2 = jax.random.uniform(jax.random.PRNGKey(2), (B2,), jnp.float32)
    p2 = jax.block_until_ready(net_forward(params, x2, t2))
    rp2, _ = net_reference(params, x2, t2)
    assert p2.shape == (B2,)
    assert jnp.allclose(p2, rp2, atol=2e-2, rtol=2e-2)

    print("KERNEL_OK")
</pallas_src>

<mosaic_0001>
module attributes {stable_mosaic.version = 11 : i64} {
  func.func @_net_kernel(%arg0: i32, %arg1: memref<128x1xf32, #tpu.memory_space<vmem>>, %arg2: memref<128x1xf32, #tpu.memory_space<vmem>>, %arg3: memref<1x128xf32, #tpu.memory_space<vmem>>, %arg4: memref<1x256xf32, #tpu.memory_space<vmem>>, %arg5: memref<256x256xbf16, #tpu.memory_space<vmem>>, %arg6: memref<1x256xf32, #tpu.memory_space<vmem>>, %arg7: memref<256x256xbf16, #tpu.memory_space<vmem>>, %arg8: memref<1x256xf32, #tpu.memory_space<vmem>>, %arg9: memref<1x256xf32, #tpu.memory_space<vmem>>, %arg10: memref<1xf32, #tpu.memory_space<smem>>, %arg11: memref<1x256xf32, #tpu.memory_space<vmem>>, %arg12: memref<2x128xf32, #tpu.memory_space<vmem>>) attributes {dimension_semantics = [#tpu.dimension_semantics<parallel>], iteration_bounds = array<i64: 1>, scalar_prefetch = 0 : i64, scratch_operands = 0 : i64, tpu.core_type = #tpu.core_type<tc>, window_params = [{transform_indices = @transform_0, window_bounds = array<i64: 128, 1>}, {transform_indices = @transform_1, window_bounds = array<i64: 128, 1>}, {pipeline_mode = #tpu.pipeline_mode<synchronous>, transform_indices = @transform_2, window_bounds = array<i64: 1, 128>}, {pipeline_mode = #tpu.pipeline_mode<synchronous>, transform_indices = @transform_3, window_bounds = array<i64: 1, 256>}, {pipeline_mode = #tpu.pipeline_mode<synchronous>, transform_indices = @transform_4, window_bounds = array<i64: 256, 256>}, {pipeline_mode = #tpu.pipeline_mode<synchronous>, transform_indices = @transform_5, window_bounds = array<i64: 1, 256>}, {pipeline_mode = #tpu.pipeline_mode<synchronous>, transform_indices = @transform_6, window_bounds = array<i64: 256, 256>}, {pipeline_mode = #tpu.pipeline_mode<synchronous>, transform_indices = @transform_7, window_bounds = array<i64: 1, 256>}, {pipeline_mode = #tpu.pipeline_mode<synchronous>, transform_indices = @transform_8, window_bounds = array<i64: 1, 256>}, {transform_indices = @transform_9, window_bounds = array<i64: 1>}, {pipeline_mode = #tpu.pipeline_mode<synchronous>, transform_indices = @transform_10, window_bounds = array<i64: 1, 256>}, {transform_indices = @transform_11, window_bounds = array<i64: 2, 128>}]} {
    %c0 = arith.constant 0 : index
    %c0_0 = arith.constant 0 : index
    %0 = vector.load %arg2[%c0, %c0_0] : memref<128x1xf32, #tpu.memory_space<vmem>>, vector<128x1xf32>
    %c0_1 = arith.constant 0 : index
    %c0_2 = arith.constant 0 : index
    %1 = vector.load %arg3[%c0_1, %c0_2] : memref<1x128xf32, #tpu.memory_space<vmem>>, vector<1x128xf32>
    %2 = vector.broadcast %0 : vector<128x1xf32> to vector<128x128xf32>
    %3 = vector.broadcast %1 : vector<1x128xf32> to vector<128x128xf32>
    %4 = arith.mulf %2, %3 : vector<128x128xf32>
    %5 = arith.truncf %4 : vector<128x128xf32> to vector<128x128xbf16>
    %6 = math.sin %5 : vector<128x128xbf16>
    %7 = math.cos %5 : vector<128x128xbf16>
    %8 = tpu.concatenate %6, %7 in 1 : vector<128x128xbf16>, vector<128x128xbf16> -> vector<128x256xbf16>
    %c0_3 = arith.constant 0 : index
    %c0_4 = arith.constant 0 : index
    %9 = vector.load %arg1[%c0_3, %c0_4] : memref<128x1xf32, #tpu.memory_space<vmem>>, vector<128x1xf32>
    %10 = arith.truncf %9 : vector<128x1xf32> to vector<128x1xbf16>
    %c0_5 = arith.constant 0 : index
    %c0_6 = arith.constant 0 : index
    %11 = vector.load %arg4[%c0_5, %c0_6] : memref<1x256xf32, #tpu.memory_space<vmem>>, vector<1x256xf32>
    %12 = arith.truncf %11 : vector<1x256xf32> to vector<1x256xbf16>
    %13 = vector.broadcast %10 : vector<128x1xbf16> to vector<128x256xbf16>
    %14 = vector.broadcast %12 : vector<1x256xbf16> to vector<128x256xbf16>
    %15 = arith.mulf %13, %14 : vector<128x256xbf16>
    %c0_7 = arith.constant 0 : index
    %c0_8 = arith.constant 0 : index
    %16 = vector.load %arg5[%c0_7, %c0_8] : memref<256x256xbf16, #tpu.memory_space<vmem>>, vector<256x256xbf16>
    %cst = arith.constant dense<0.000000e+00> : vector<128x256xf32>
    %17 = tpu.matmul %8, %16, %cst {dimension_numbers = #tpu.dot_dimension_numbers<[1], [0], [0], [1], [0, 0, 1, 1], [], []>} : vector<128x256xbf16>, vector<256x256xbf16>, vector<128x256xf32> -> vector<128x256xf32>
    %18 = arith.extf %15 : vector<128x256xbf16> to vector<128x256xf32>
    %19 = arith.addf %18, %17 : vector<128x256xf32>
    %c0_9 = arith.constant 0 : index
    %c0_10 = arith.constant 0 : index
    %20 = vector.load %arg6[%c0_9, %c0_10] : memref<1x256xf32, #tpu.memory_space<vmem>>, vector<1x256xf32>
    %21 = vector.broadcast %20 : vector<1x256xf32> to vector<128x256xf32>
    %22 = arith.addf %19, %21 : vector<128x256xf32>
    %23 = arith.truncf %22 : vector<128x256xf32> to vector<128x256xbf16>
    %24 = arith.negf %23 : vector<128x256xbf16>
    %25 = math.exp %24 : vector<128x256xbf16>
    %cst_11 = arith.constant 1.000000e+00 : bf16
    %26 = vector.broadcast %cst_11 : bf16 to vector<128x256xbf16>
    %27 = arith.addf %26, %25 : vector<128x256xbf16>
    %28 = arith.divf %26, %27 : vector<128x256xbf16>
    %29 = arith.mulf %23, %28 : vector<128x256xbf16>
    %c0_12 = arith.constant 0 : index
    %c0_13 = arith.constant 0 : index
    %30 = vector.load %arg7[%c0_12, %c0_13] : memref<256x256xbf16, #tpu.memory_space<vmem>>, vector<256x256xbf16>
    %cst_14 = arith.constant dense<0.000000e+00> : vector<128x256xf32>
    %31 = tpu.matmul %29, %30, %cst_14 {dimension_numbers = #tpu.dot_dimension_numbers<[1], [0], [0], [1], [0, 0, 1, 1], [], []>} : vector<128x256xbf16>, vector<256x256xbf16>, vector<128x256xf32> -> vector<128x256xf32>
    %c0_15 = arith.constant 0 : index
    %c0_16 = arith.constant 0 : index
    %32 = vector.load %arg8[%c0_15, %c0_16] : memref<1x256xf32, #tpu.memory_space<vmem>>, vector<1x256xf32>
    %33 = vector.broadcast %32 : vector<1x256xf32> to vector<128x256xf32>
    %34 = arith.addf %31, %33 : vector<128x256xf32>
    %35 = arith.truncf %34 : vector<128x256xf32> to vector<128x256xbf16>
    %36 = arith.negf %35 : vector<128x256xbf16>
    %37 = math.exp %36 : vector<128x256xbf16>
    %cst_17 = arith.constant 1.000000e+00 : bf16
    %38 = vector.broadcast %cst_17 : bf16 to vector<128x256xbf16>
    %39 = arith.addf %38, %37 : vector<128x256xbf16>
    %40 = arith.divf %38, %39 : vector<128x256xbf16>
    %41 = arith.mulf %35, %40 : vector<128x256xbf16>
    %c0_18 = arith.constant 0 : index
    %c0_19 = arith.constant 0 : index
    %42 = vector.load %arg9[%c0_18, %c0_19] : memref<1x256xf32, #tpu.memory_space<vmem>>, vector<1x256xf32>
    %43 = arith.truncf %42 : vector<1x256xf32> to vector<1x256xbf16>
    %cst_20 = arith.constant dense<0.000000e+00> : vector<1x128xf32>
    %44 = tpu.matmul %43, %41, %cst_20 {dimension_numbers = #tpu.dot_dimension_numbers<[1], [1], [0], [0], [0, 0, 1, 0], [], []>} : vector<1x256xbf16>, vector<128x256xbf16>, vector<1x128xf32> -> vector<1x128xf32>
    %c0_21 = arith.constant 0 : index
    %45 = memref.load %arg10[%c0_21] : memref<1xf32, #tpu.memory_space<smem>>
    %46 = vector.broadcast %45 : f32 to vector<1x128xf32>
    %47 = arith.addf %44, %46 : vector<1x128xf32>
    %c0_22 = arith.constant 0 : index
    %c0_23 = arith.constant 0 : index
    %48 = vector.load %arg11[%c0_22, %c0_23] : memref<1x256xf32, #tpu.memory_space<vmem>>, vector<1x256xf32>
    %49 = arith.truncf %48 : vector<1x256xf32> to vector<1x256xbf16>
    %cst_24 = arith.constant dense<0.000000e+00> : vector<1x128xf32>
    %50 = tpu.matmul %49, %8, %cst_24 {dimension_numbers = #tpu.dot_dimension_numbers<[1], [1], [0], [0], [0, 0, 1, 0], [], []>} : vector<1x256xbf16>, vector<128x256xbf16>, vector<1x128xf32> -> vector<1x128xf32>
    %c0_25 = arith.constant 0 : index
    %c0_26 = arith.constant 0 : index
    %51 = vector.load %arg12[%c0_25, %c0_26] : memref<2x128xf32, #tpu.memory_space<vmem>>, vector<1x128xf32>
    tpu.vector_store %arg12[%c0_25, %c0_26], %47 {strides = array<i32>} : memref<2x128xf32, #tpu.memory_space<vmem>>, vector<1x128xf32>,
    %c1 = arith.constant 1 : index
    %c0_27 = arith.constant 0 : index
    %52 = vector.load %arg12[%c1, %c0_27] : memref<2x128xf32, #tpu.memory_space<vmem>>, vector<1x128xf32>
    tpu.vector_store %arg12[%c1, %c0_27], %50 {strides = array<i32>} : memref<2x128xf32, #tpu.memory_space<vmem>>, vector<1x128xf32>,
    return
  }
  func.func @transform_0(%arg0: i32) -> (i32, i32) {
    %c0_i32 = arith.constant 0 : i32
    %c0_i32_0 = arith.constant 0 : i32
    return %arg0, %c0_i32 : i32, i32
  }
  func.func @transform_1(%arg0: i32) -> (i32, i32) {
    %c0_i32 = arith.constant 0 : i32
    %c0_i32_0 = arith.constant 0 : i32
    return %arg0, %c0_i32 : i32, i32
  }
  func.func @transform_2(%arg0: i32) -> (i32, i32) {
    %c0_i32 = arith.constant 0 : i32
    %c0_i32_0 = arith.constant 0 : i32
    %c0_i32_1 = arith.constant 0 : i32
    return %c0_i32, %c0_i32_0 : i32, i32
  }
  func.func @transform_3(%arg0: i32) -> (i32, i32) {
    %c0_i32 = arith.constant 0 : i32
    %c0_i32_0 = arith.constant 0 : i32
    %c0_i32_1 = arith.constant 0 : i32
    return %c0_i32, %c0_i32_0 : i32, i32
  }
  func.func @transform_4(%arg0: i32) -> (i32, i32) {
    %c0_i32 = arith.constant 0 : i32
    %c0_i32_0 = arith.constant 0 : i32
    %c0_i32_1 = arith.constant 0 : i32
    return %c0_i32, %c0_i32_0 : i32, i32
  }
  func.func @transform_5(%arg0: i32) -> (i32, i32) {
    %c0_i32 = arith.constant 0 : i32
    %c0_i32_0 = arith.constant 0 : i32
    %c0_i32_1 = arith.constant 0 : i32
    return %c0_i32, %c0_i32_0 : i32, i32
  }
  func.func @transform_6(%arg0: i32) -> (i32, i32) {
    %c0_i32 = arith.constant 0 : i32
    %c0_i32_0 = arith.constant 0 : i32
    %c0_i32_1 = arith.constant 0 : i32
    return %c0_i32, %c0_i32_0 : i32, i32
  }
  func.func @transform_7(%arg0: i32) -> (i32, i32) {
    %c0_i32 = arith.constant 0 : i32
    %c0_i32_0 = arith.constant 0 : i32
    %c0_i32_1 = arith.constant 0 : i32
    return %c0_i32, %c0_i32_0 : i32, i32
  }
  func.func @transform_8(%arg0: i32) -> (i32, i32) {
    %c0_i32 = arith.constant 0 : i32
    %c0_i32_0 = arith.constant 0 : i32
    %c0_i32_1 = arith.constant 0 : i32
    return %c0_i32, %c0_i32_0 : i32, i32
  }
  func.func @transform_9(%arg0: i32) -> i32 {
    %c0_i32 = arith.constant 0 : i32
    %c0_i32_0 = arith.constant 0 : i32
    return %c0_i32 : i32
  }
  func.func @transform_10(%arg0: i32) -> (i32, i32) {
    %c0_i32 = arith.constant 0 : i32
    %c0_i32_0 = arith.constant 0 : i32
    %c0_i32_1 = arith.constant 0 : i32
    return %c0_i32, %c0_i32_0 : i32, i32
  }
  func.func @transform_11(%arg0: i32) -> (i32, i32) {
    %c0_i32 = arith.constant 0 : i32
    %c0_i32_0 = arith.constant 0 : i32
    return %c0_i32, %arg0 : i32, i32
  }
}

</mosaic_0001>

<bundles_post_ra>
// kernel: tpu_custom_call.1
= control target key start
LH: loop header
LB: loop body
LE: loop exit
PB: predicated region body
PF: predicated region fallthrough
CT: control target
= control target key end

     0   :  { %17 = vsyncpa [#allocation4], 0  ;;  %s21234_s0 = inlined_call_operand.vmem [shape: f32[128,1], index: 0, kind: input, shape index: {}]   ;;  %s21235_s1 = inlined_call_operand.vmem [shape: f32[128,1], index: 1, kind: input, shape index: {}]   ;;  %s21236_s2 = inlined_call_operand.vmem [shape: f32[1,128], index: 2, kind: input, shape index: {}]   ;;  %s21237_s3 = inlined_call_operand.hbm [shape: f32[1,256], index: 3, kind: input, shape index: {}]   ;;  %s21238_s4 = inlined_call_operand.vmem [shape: bf16[256,256], index: 4, kind: input, shape index: {}]   ;;  %s21239_s5 = inlined_call_operand.vmem [shape: f32[1,256], index: 5, kind: input, shape index: {}]   ;;  %s21240_s6 = inlined_call_operand.hbm [shape: bf16[256,256], index: 6, kind: input, shape index: {}]   ;;  %s21241_s7 = inlined_call_operand.vmem [shape: f32[1,256], index: 7, kind: input, shape index: {}]   ;;  %s21242_s8 = inlined_call_operand.vmem [shape: f32[1,256], index: 8, kind: input, shape index: {}]   ;;  %s21243_s9 = inlined_call_operand.<no memory space> [shape: f32[1], index: 9, kind: input, shape index: {}]   ;;  %s21244_s10 = inlined_call_operand.hbm [shape: f32[1,256], index: 10, kind: input, shape index: {}]   ;;  %s21245_s11 = inlined_call_operand.hbm [shape: f32[2,128], index: 11, kind: output, shape index: {}]  }
   0x1   :  { %18 = vsyncpa [#allocation7], 0  ;;  %s45_s19 = sshll.u32 %s21240_s6, 4  ;;  %s46_s19 = int_to_ptr.hbm [resolvable:$true] %s45_s19 }
   0x2   :  { %19 = vsyncpa [#allocation5], 0  ;;  %s13388_s20 = smov [#allocation6]   ;;  %s31_s24 = sshll.u32 %s21237_s3, 4  ;;  %s32_s24 = int_to_ptr.hbm [resolvable:$true] %s31_s24 }
   0x3   :  { %s47_s21 = sshll.u32 %s13388_s20, 4  ;;  %s13389_s25 = smov 128   ;;  %s48_s21 = int_to_ptr.vmem [resolvable:$true] %s47_s21 }
   0x4   :  { %s13390_s26 = smov 8   ;;  %s13391_s27 = smov [#allocation3]  }
   0x5   :  { %53 = dma.hbm_to_vmem [thread:$0]  %s46_s19, 4096, %s48_s21, [#allocation7], %s13389_s25, %s13389_s25, %s13390_s26  }
   0x6   :  { %s33_s28 = sshll.u32 %s13391_s27, 4  ;;  %s65_s12 = sshll.u32 %s21244_s10, 4  ;;  %s34_s28 = int_to_ptr.vmem [resolvable:$true] %s33_s28  ;;  %s66_s12 = int_to_ptr.hbm [resolvable:$true] %s65_s12 }
   0x7   :  { %36 = dma.hbm_to_vmem [thread:$0]  %s32_s24, 32, %s34_s28, [#allocation4]  }
   0x8   :  { %s13392_s6 = smov [#allocation8]  }
   0x9   :  { %s67_s13 = sshll.u32 %s13392_s6, 4  ;;  %s68_s13 = int_to_ptr.vmem [resolvable:$true] %s67_s13 }
   0xa   :  { %70 = dma.hbm_to_vmem [thread:$0]  %s66_s12, 32, %s68_s13, [#allocation7]  }
   0xb   :  { %13382 = dma.done.wait [#allocation4], 32  }
   0xc   :  { %13383 = vsyncadd [#allocation4], 4294967264 }
   0xd   :  { %13384 = dma.done.wait [#allocation7], 4128  }
   0xe   :  { %13385 = vsyncadd [#allocation7], 4294963168  ;;  %v21250_v0 = vmov 0   ;;  %v88_v1 = vld [vmem:[%s21235_s1 + $0x20] sm:$0xff]  ;;  %v86_v2 = vld [vmem:[%s21235_s1 + $0x10] sm:$0xff]  ;;  %s13402_s25 = smov [#allocation9]  }
   0xf   :  { %13023 = vset.pattern.permute.xlu2 %v21250_v0  ;;  %13022 = vset.pattern.permute.xlu1 %v21250_v0  ;;  %v84_v3 = vld [vmem:[%s21235_s1] sm:$0xff]  ;;  %v89_v4 = vld [vmem:[%s21235_s1 + $0x28] sm:$0xff]  ;;  %v87_v5 = vld [vmem:[%s21235_s1 + $0x18] sm:$0xff]  ;;  %s12481_s26 = sshll.u32 %s13402_s25, 4  ;;  %s12483_s29 = sshll.u32 %s21245_s11, 4  ;;  %s12482_s26 = int_to_ptr.vmem [resolvable:$true] %s12481_s26  ;;  %s12484_s29 = int_to_ptr.hbm [resolvable:$true] %s12483_s29 }
  0x10   :  { %13021 = vset.pattern.permute.xlu0 %v21250_v0  ;;  %123 = vperm.xlu2 %13023, %v88_v1   ;;  %v85_v6 = vld [vmem:[%s21235_s1 + $0x8] sm:$0xff]  ;;  %v92_v7 = vld [vmem:[%s21235_s1 + $0x40] sm:$0xff]  ;;  %v91_v8 = vld [vmem:[%s21235_s1 + $0x38] sm:$0xff]  ;;  %v21254_v1 = vmov 2102212464  }
  0x11   :  { %113 = vperm.xlu1 %13022, %v86_v2   ;;  %103 = vperm.xlu0 %13021, %v84_v3   ;;  %v90_v9 = vld [vmem:[%s21235_s1 + $0x30] sm:$0xff]  ;;  %v95_v10 = vld [vmem:[%s21235_s1 + $0x58] sm:$0xff]  ;;  %v93_v12 = vld [vmem:[%s21235_s1 + $0x48] sm:$0xff]  ;;  %v21260_v3 = vmov 920167782  }
  0x12   :  { %v94_v11 = vld [vmem:[%s21235_s1 + $0x50] sm:$0xff]  ;;  %v97_v14 = vld [vmem:[%s21235_s1 + $0x68] sm:$0xff]  ;;  %v96_v15 = vld [vmem:[%s21235_s1 + $0x60] sm:$0xff] }
  0x13   :  { %v98_v13 = vld [vmem:[%s21235_s1 + $0x70] sm:$0xff]  ;;  %v10361_v16 = vld [vmem:[%s21234_s0 + $0x8] sm:$0xff]  ;;  %v10360_v17 = vld [vmem:[%s21234_s0] sm:$0xff] }
  0x14   :  { %v10377_v18 = vpack.c.bf16 %v10361_v16, %v10361_v16  ;;  %v10376_v19 = vpack.c.bf16 %v10360_v17, %v10360_v17  ;;  %v99_v20 = vld [vmem:[%s21235_s1 + $0x78] sm:$0xff]  ;;  %v10364_v21 = vld [vmem:[%s21234_s0 + $0x20] sm:$0xff]  ;;  %v10362_v23 = vld [vmem:[%s21234_s0 + $0x10] sm:$0xff] }
  0x15   :  { %v10363_v22 = vld [vmem:[%s21234_s0 + $0x18] sm:$0xff]  ;;  %v10380_v24 = vpack.c.bf16 %v10364_v21, %v10364_v21  ;;  %v10378_v26 = vpack.c.bf16 %v10362_v23, %v10362_v23  ;;  %v10366_v28 = vld [vmem:[%s21234_s0 + $0x30] sm:$0xff]  ;;  %v10365_v29 = vld [vmem:[%s21234_s0 + $0x28] sm:$0xff] }
  0x16   :  { %v10379_v25 = vpack.c.bf16 %v10363_v22, %v10363_v22  ;;  %v10367_v27 = vld [vmem:[%s21234_s0 + $0x38] sm:$0xff]  ;;  %v10382_v31 = vpack.c.bf16 %v10366_v28, %v10366_v28  ;;  %v10381_v32 = vpack.c.bf16 %v10365_v29, %v10365_v29  ;;  %v10370_v33 = vld [vmem:[%s21234_s0 + $0x50] sm:$0xff]  ;;  %v10369_v34 = vld [vmem:[%s21234_s0 + $0x48] sm:$0xff] }
  0x17   :  { %v10383_v30 = vpack.c.bf16 %v10367_v27, %v10367_v27  ;;  %v10368_v35 = vld [vmem:[%s21234_s0 + $0x40] sm:$0xff]  ;;  %v10386_v36 = vpack.c.bf16 %v10370_v33, %v10370_v33  ;;  %v10385_v37 = vpack.c.bf16 %v10369_v34, %v10369_v34  ;;  %v10373_v39 = vld [vmem:[%s21234_s0 + $0x68] sm:$0xff]  ;;  %v10371_v41 = vld [vmem:[%s21234_s0 + $0x58] sm:$0xff] }
  0x18   :  { %128 = vperm.xlu2 %13023, %v89_v4   ;;  %v10384_v38 = vpack.c.bf16 %v10368_v35, %v10368_v35  ;;  %v10372_v40 = vld [vmem:[%s21234_s0 + $0x60] sm:$0xff]  ;;  %v10389_v42 = vpack.c.bf16 %v10373_v39, %v10373_v39  ;;  %v10387_v44 = vpack.c.bf16 %v10371_v41, %v10371_v41  ;;  %v10375_v45 = vld [vmem:[%s21234_s0 + $0x78] sm:$0xff]  ;;  %v10374_v46 = vld [vmem:[%s21234_s0 + $0x70] sm:$0xff] }
  0x19   :  { %118 = vperm.xlu1 %13022, %v87_v5   ;;  %108 = vperm.xlu0 %13021, %v85_v6   ;;  %v10388_v43 = vpack.c.bf16 %v10372_v40, %v10372_v40  ;;  %v10391_v47 = vpack.c.bf16 %v10375_v45, %v10375_v45  ;;  %v10390_v48 = vpack.c.bf16 %v10374_v46, %v10374_v46  ;;  %v13574_v49 = vld [vmem:[%s21236_s2] ss:$0 sm:$0xff] }
  0x20   :  { %143 = vperm.xlu2 %13023, %v92_v7   ;;  %v21258_v7 = vmov 1326507024  }
  0x21   :  { %138 = vperm.xlu1 %13022, %v91_v8   ;;  %133 = vperm.xlu0 %13021, %v90_v9  }
  0x28   :  { %158 = vperm.xlu2 %13023, %v95_v10   ;;  %v21262_v10 = vmov 683565275  }
  0x29   :  { %153 = vperm.xlu1 %13022, %v94_v11   ;;  %148 = vperm.xlu0 %13021, %v93_v12   ;;  %v21264_v12 = vmov 2475754826  }
  0x30   :  { %173 = vperm.xlu2 %13023, %v98_v13  }
  0x31   :  { %168 = vperm.xlu1 %13022, %v97_v14   ;;  %163 = vperm.xlu0 %13021, %v96_v15   ;;  %v21252_v15 = vmov 2131351028  }
  0x38   :  { %10410 = vperm.xlu2 %13023, %v10377_v18  }
  0x39   :  { %10401 = vperm.xlu1 %13022, %v10376_v19   ;;  %178 = vperm.xlu0 %13021, %v99_v20  }
  0x40   :  { %10437 = vperm.xlu2 %13023, %v10380_v24  }
  0x41   :  { %10428 = vperm.xlu1 %13022, %v10379_v25   ;;  %10419 = vperm.xlu0 %13021, %v10378_v26  }
  0x48   :  { %10464 = vperm.xlu2 %13023, %v10383_v30  }
  0x49   :  { %10455 = vperm.xlu1 %13022, %v10382_v31   ;;  %10446 = vperm.xlu0 %13021, %v10381_v32  }
  0x50   :  { %10491 = vperm.xlu2 %13023, %v10386_v36  }
  0x51   :  { %10482 = vperm.xlu1 %13022, %v10385_v37   ;;  %10473 = vperm.xlu0 %13021, %v10384_v38  }
  0x58   :  { %10518 = vperm.xlu2 %13023, %v10389_v42  }
  0x59   :  { %10509 = vperm.xlu1 %13022, %v10388_v43   ;;  %10500 = vperm.xlu0 %13021, %v10387_v44  }
  0x61   :  { %10536 = vperm.xlu1 %13022, %v10391_v47   ;;  %10527 = vperm.xlu0 %13021, %v10390_v48  }
  0x6a   :  { %v124_v50 = vpop.permute.xlu2 %123 }
  0x6b   :  { %v188_v51 = vmul.f32 %v13574_v49, %v124_v50 }
  0x6d   :  { %v204_v52 = vpack.c.bf16 %v188_v51, %v188_v51 }
  0x6f   :  { %v13577_v53 = vunpack.i.l.bf16 %v204_v52  ;;  %v13580_v60 = vunpack.i.h.bf16 %v204_v52 }
  0x71   :  { %21687 = vst [vmem:[#allocation13_spill] sm:$0xff] %v13577_v53  ;;  %v1483_v54 = vand.u32 2139095040, %v13577_v53  ;;  %v1611_v62 = vand.u32 2139095040, %v13580_v60  ;;  %v21249_v63 = vand.u32 2147483647, %v13577_v53 }
  0x72   :  { %21688 = vst [vmem:[#allocation14_spill] sm:$0xff] %v13580_v60  ;;  %v129_v36 = vpop.permute.xlu2 %128  ;;  %v21248_v47 = vand.u32 2147483647, %v13580_v60 }
  0x73   :  { %v1484_v55 = vshrl.u32 %v1483_v54, 23  ;;  %v1612_v9 = vshrl.u32 %v1611_v62, 23  ;;  %v1487_v20 = vand.u32 8388607, %v21249_v63  ;;  %v189_v41 = vmul.f32 %v13574_v49, %v129_v36 }
  0x75   :  { %v12518_v56 = vadd.s32 4294967169, %v1484_v55  ;;  %v12521_v22 = vadd.s32 4294967169, %v1612_v9  ;;  %v1488_v27 = vor.u32 8388608, %v1487_v20  ;;  %v13644_v48 = vpack.c.bf16 %v189_v41, %v189_v41 }
  0x77   :  { %v1490_v57 = vadd.s32 1, %v12518_v56  ;;  %v1618_v29 = vadd.s32 1, %v12521_v22  ;;  %v13632_v34 = vshll.u32 %v1488_v27, 8 }
  0x79   :  { %vm1491_vm0 = vcmp.gt.s32.totalorder %v1490_v57, 0  ;;  %vm1619_vm5 = vcmp.gt.s32.totalorder %v1618_v29, 0  ;;  %v1529_v39 = vand.u32 65535, %v13632_v34  ;;  %v1530_v44 = vshrl.u32 %v13632_v34, 16 }
  0x7a   :  { %v1492_v58 = vsel %vm1491_vm0, %v1490_v57, 0  ;;  %v1620_v38 = vsel %vm1619_vm5, %v1618_v29, 0  ;;  %v1615_v57 = vand.u32 8388607, %v21248_v47 }
  0x7b   :  { %v1494_v59 = vand.u32 31, %v1492_v58  ;;  %v13589_v5 = vshrl.u32 %v1492_v58, 5  ;;  %v1622_v43 = vand.u32 31, %v1620_v38  ;;  %v13656_v58 = vunpack.i.l.bf16 %v13644_v48 }
  0x7d   :  { %v13582_v61 = vsub.s32 32, %v1494_v59  ;;  %v1506_v2 = vshll.u32 %v21254_v1, %v1494_v59  ;;  %v1509_v6 = vshll.u32 %v21260_v3, %v1494_v59  ;;  %v1497_v11 = vshll.u32 %v21262_v10, %v1494_v59  ;;  %21689 = vst [vmem:[#allocation15_spill] sm:$0xff] %v13656_v58 }
  0x7e   :  { %v1500_v13 = vshll.u32 %v21264_v12, %v1494_v59  ;;  %v1503_v17 = vshll.u32 %v21252_v15, %v1494_v59  ;;  %vm1515_vm1 = vcmp.lt.s32.totalorder %v13589_v5, 4  ;;  %vm1512_vm2 = vcmp.lt.s32.totalorder %v13589_v5, 1 }
  0x7f   :  { %v1507_v4 = vshrl.u32 %v21260_v3, %v13582_v61  ;;  %v1510_v8 = vshrl.u32 %v21258_v7, %v13582_v61  ;;  %v1498_v14 = vshrl.u32 %v21264_v12, %v13582_v61  ;;  %v1501_v16 = vshrl.u32 %v21252_v15, %v13582_v61 }
  0x80   :  { %v1504_v18 = vshrl.u32 %v21254_v1, %v13582_v61  ;;  %vm1514_vm3 = vcmp.lt.s32.totalorder %v13589_v5, 3  ;;  %vm1513_vm4 = vcmp.lt.s32.totalorder %v13589_v5, 2  ;;  %v13648_v52 = vsub.s32 32, %v1622_v43 }
  0x81   :  { %v1508_v19 = vor.u32 %v1507_v4, %v1506_v2  ;;  %v1511_v21 = vor.u32 %v1510_v8, %v1509_v6  ;;  %v13606_v23 = vor.u32 %v1498_v14, %v1497_v11  ;;  %v13608_v24 = vor.u32 %v1501_v16, %v1500_v13 }
  0x82   :  { %v13610_v25 = vor.u32 %v1504_v18, %v1503_v17  ;;  %v13661_v4 = vshrl.u32 %v1620_v38, 5  ;;  %v1625_v6 = vshll.u32 %v21262_v10, %v1622_v43  ;;  %v1628_v8 = vshll.u32 %v21264_v12, %v1622_v43 }
  0x83   :  { %v1521_v26 = vsel %vm1515_vm1, %v1508_v19, 920167782  ;;  %v1525_v28 = vsel %vm1515_vm1, %v1511_v21, 1326507024  ;;  %v1520_v30 = vsel %vm1512_vm2, %v13606_v23, %v13608_v24  ;;  %v1634_v9 = vshll.u32 %v21254_v1, %v1622_v43 }
  0x84   :  { %v1522_v31 = vsel %vm1514_vm3, %v13610_v25, %v1521_v26  ;;  %v1524_v32 = vsel %vm1512_vm2, %v13608_v24, %v13610_v25  ;;  %v1526_v33 = vsel %vm1514_vm3, %v1508_v19, %v1525_v28  ;;  %v1635_v11 = vshrl.u32 %v21260_v3, %v13648_v52 }
  0x85   :  { %v1523_v35 = vsel %vm1513_vm4, %v1520_v30, %v1522_v31  ;;  %v1527_v37 = vsel %vm1513_vm4, %v1524_v32, %v1526_v33  ;;  %v1626_v14 = vshrl.u32 %v21264_v12, %v13648_v52  ;;  %v1629_v16 = vshrl.u32 %v21252_v15, %v13648_v52 }
  0x86   :  { %v1554_v40 = vshrl.u32 %v1523_v35, 16  ;;  %v1532_v42 = vshrl.u32 %v1527_v37, 16  ;;  %v1553_v45 = vand.u32 65535, %v1523_v35  ;;  %v1531_v50 = vand.u32 65535, %v1527_v37 }
  0x87   :  { %v1631_v17 = vshll.u32 %v21252_v15, %v1622_v43  ;;  %v1637_v19 = vshll.u32 %v21260_v3, %v1622_v43  ;;  %v1638_v20 = vshrl.u32 %v21258_v7, %v13648_v52  ;;  %v1632_v26 = vshrl.u32 %v21254_v1, %v13648_v52 }
  0x88   :  { %v13641_v46 = vmul.u32 %v1554_v40, %v1529_v39  ;;  %v13646_v51 = vmul.u32 %v1532_v42, %v1529_v39  ;;  %v13650_v54 = vmul.u32 %v1553_v45, %v1530_v44  ;;  %v1555_v55 = vmul.u32 %v1553_v45, %v1529_v39 }
  0x89   :  { %v1533_v59 = vmul.u32 %v1531_v50, %v1529_v39  ;;  %v13658_v62 = vmul.u32 %v1531_v50, %v1530_v44  ;;  %v1558_v27 = vmul.u32 %v1554_v40, %v1530_v44  ;;  %v1636_v28 = vor.u32 %v1635_v11, %v1634_v9 }
  0x8a   :  { %v1559_v56 = vshll.u32 %v13641_v46, 16  ;;  %v1537_v2 = vshll.u32 %v13646_v51, 16  ;;  %v1561_v13 = vshll.u32 %v13650_v54, 16  ;;  %v1536_v29 = vmul.u32 %v1532_v42, %v1530_v44 }
  0x8b   :  { %v1539_v21 = vshll.u32 %v13658_v62, 16  ;;  %v1616_v31 = vor.u32 8388608, %v1615_v57  ;;  %vm1643_vm8 = vcmp.lt.s32.totalorder %v13661_v4, 4  ;;  %v1639_v33 = vor.u32 %v1638_v20, %v1637_v19 }
  0x8c   :  { %vm1563_vm6 = vc.u32 %v1555_v55, %v1559_v56  ;;  %v1565_v18 = vadd.s32 %v1559_v56, %v1555_v55  ;;  %vm1541_vm7 = vc.u32 %v1533_v59, %v1537_v2  ;;  %v1543_v22 = vadd.s32 %v1537_v2, %v1533_v59 }
  0x8d   :  { %v1564_v30 = vsel %vm1563_vm6, 1, %v21250_v0  ;;  %v1542_v32 = vsel %vm1541_vm7, 1, %v21250_v0  ;;  %v1798_v35 = vand.u32 2139095040, %v13656_v58  ;;  %v13686_v36 = vor.u32 %v1626_v14, %v1625_v6 }
  0x8e   :  { %vm1567_vm9 = vc.u32 %v1565_v18, %v1561_v13  ;;  %vm1545_vm10 = vc.u32 %v1543_v22, %v1539_v21  ;;  %v13688_v37 = vor.u32 %v1629_v16, %v1628_v8  ;;  %v13690_v38 = vor.u32 %v1632_v26, %v1631_v17 }
  0x8f   :  { %v1566_v39 = vadd.s32 %v1564_v30, %v1558_v27  ;;  %vm1640_vm11 = vcmp.lt.s32.totalorder %v13661_v4, 1  ;;  %vm1642_vm12 = vcmp.lt.s32.totalorder %v13661_v4, 3  ;;  %v1649_v40 = vsel %vm1643_vm8, %v1636_v28, 920167782 }
  0x90   :  { %v1544_v41 = vadd.s32 %v1542_v32, %v1536_v29  ;;  %v1568_v42 = vsel %vm1567_vm9, 1, %v21250_v0  ;;  %v1546_v43 = vsel %vm1545_vm10, 1, %v21250_v0  ;;  %v1653_v44 = vsel %vm1643_vm8, %v1639_v33, 1326507024 }
  0x91   :  { %v13700_v45 = vshll.u32 %v1616_v31, 8  ;;  %vm1641_vm13 = vcmp.lt.s32.totalorder %v13661_v4, 2  ;;  %v1648_v50 = vsel %vm1640_vm11, %v13686_v36, %v13688_v37  ;;  %v1650_v55 = vsel %vm1642_vm12, %v13690_v38, %v1649_v40 }
  0x92   :  { %v1799_v56 = vshrl.u32 %v1798_v35, 23  ;;  %v1560_v57 = vshrl.u32 %v13641_v46, 16  ;;  %v1570_v59 = vadd.s32 %v1568_v42, %v1566_v39  ;;  %v1538_v2 = vshrl.u32 %v13646_v51, 16 }
  0x93   :  { %v1548_v6 = vadd.s32 %v1546_v43, %v1544_v41  ;;  %v1652_v8 = vsel %vm1640_vm11, %v13688_v37, %v13690_v38  ;;  %v1654_v9 = vsel %vm1642_vm12, %v1636_v28, %v1653_v44  ;;  %v1651_v11 = vsel %vm1641_vm13, %v1648_v50, %v1650_v55 }
  0x94   :  { %v1657_v14 = vand.u32 65535, %v13700_v45  ;;  %v12524_v16 = vadd.s32 4294967169, %v1799_v56  ;;  %v1496_v46 = vshrl.u32 %v21262_v10, %v13582_v61  ;;  %v1562_v51 = vshrl.u32 %v13650_v54, 16 }
  0x95   :  { %v1571_v17 = vadd.s32 %v1570_v59, %v1560_v57  ;;  %v1655_v19 = vsel %vm1641_vm13, %v1652_v8, %v1654_v9  ;;  %v1517_v20 = vsel %vm1515_vm1, %v13610_v25, 2102212464  ;;  %v1540_v21 = vshrl.u32 %v13658_v62, 16 }
  0x96   :  { %v1549_v22 = vadd.s32 %v1548_v6, %v1538_v2  ;;  %v1682_v26 = vshrl.u32 %v1651_v11, 16  ;;  %v1660_v27 = vshrl.u32 %v1655_v19, 16  ;;  %v1805_v28 = vadd.s32 1, %v12524_v16 }
  0x97   :  { %v1516_v61 = vsel %vm1512_vm2, %v1496_v46, %v13606_v23  ;;  %v1518_v29 = vsel %vm1514_vm3, %v13608_v24, %v1517_v20  ;;  %v1572_v30 = vadd.s32 %v1571_v17, %v1562_v51  ;;  %v1658_v31 = vshrl.u32 %v13700_v45, 16 }
  0x98   :  { %v13737_v32 = vadd.s32 %v1549_v22, %v1540_v21  ;;  %v13741_v25 = vadd.s32 %v1565_v18, %v1561_v13  ;;  %v1681_v62 = vand.u32 65535, %v1651_v11  ;;  %v13743_v33 = vmul.u32 %v1682_v26, %v1657_v14 }
  0x99   :  { %v1659_v35 = vand.u32 65535, %v1655_v19  ;;  %v13745_v39 = vmul.u32 %v1660_v27, %v1657_v14  ;;  %v13748_v23 = vunpack.i.h.bf16 %v13644_v48  ;;  %vm1806_vm14 = vcmp.gt.s32.totalorder %v1805_v28, 0 }
  0x9a   :  { %v1519_v24 = vsel %vm1513_vm4, %v1516_v61, %v1518_v29  ;;  %v1576_v40 = vadd.s32 1, %v1572_v30  ;;  %vm1575_vm15 = vc.u32 %v13737_v32, %v13741_v25  ;;  %v1683_v54 = vmul.u32 %v1681_v62, %v1657_v14 }
  0x9b   :  { %21690 = vst [vmem:[#allocation16_spill] sm:$0xff] %v13748_v23  ;;  %v13754_v13 = vmul.u32 %v1681_v62, %v1658_v31  ;;  %v1687_v18 = vshll.u32 %v13743_v33, 16  ;;  %v1807_v41 = vsel %vm1806_vm14, %v1805_v28, 0  ;;  %v1661_v42 = vmul.u32 %v1659_v35, %v1657_v14 }
  0x9c   :  { %v13757_v43 = vmul.u32 %v1659_v35, %v1658_v31  ;;  %v1665_v48 = vshll.u32 %v13745_v39, 16  ;;  %v1926_v44 = vand.u32 2139095040, %v13748_v23  ;;  %v1573_v5 = vmul.u32 %v13632_v34, %v1519_v24 }
  0x9d   :  { %v1577_v50 = vsel %vm1575_vm15, %v1576_v40, %v1572_v30  ;;  %v1689_v55 = vshll.u32 %v13754_v13, 16  ;;  %vm1691_vm0 = vc.u32 %v1683_v54, %v1687_v18  ;;  %v1693_v56 = vadd.s32 %v1687_v18, %v1683_v54 }
  0x9e   :  { %v1809_v57 = vand.u32 31, %v1807_v41  ;;  %v1686_v59 = vmul.u32 %v1682_v26, %v1658_v31  ;;  %v1667_v2 = vshll.u32 %v13757_v43, 16  ;;  %vm1669_vm1 = vc.u32 %v1661_v42, %v1665_v48 }
  0x9f   :  { %v1671_v6 = vadd.s32 %v1665_v48, %v1661_v42  ;;  %v1927_v8 = vshrl.u32 %v1926_v44, 23  ;;  %v13764_v9 = vadd.s32 %v1577_v50, %v1573_v5  ;;  %v1692_v11 = vsel %vm1691_vm0, 1, %v21250_v0 }
  0xa0   :  { %v1664_v14 = vmul.u32 %v1660_v27, %v1658_v31  ;;  %vm1695_vm2 = vc.u32 %v1693_v56, %v1689_v55  ;;  %v13769_v34 = vsub.s32 32, %v1809_v57  ;;  %v1670_v16 = vsel %vm1669_vm1, 1, %v21250_v0 }
  0xa1   :  { %vm1673_vm3 = vc.u32 %v1671_v6, %v1667_v2  ;;  %v1694_v46 = vadd.s32 %v1692_v11, %v1686_v59  ;;  %v12527_v51 = vadd.s32 4294967169, %v1927_v8  ;;  %v1579_v17 = vadd.s32 536870912, %v13764_v9 }
  0xa2   :  { %v1696_v19 = vsel %vm1695_vm2, 1, %v21250_v0  ;;  %v21247_v20 = vand.u32 2147483647, %v13656_v58  ;;  %v1672_v21 = vadd.s32 %v1670_v16, %v1664_v14  ;;  %v1688_v22 = vshrl.u32 %v13743_v33, 16 }
  0xa3   :  { %v1821_v26 = vshll.u32 %v21254_v1, %v1809_v57  ;;  %v1822_v27 = vshrl.u32 %v21260_v3, %v13769_v34  ;;  %v1674_v28 = vsel %vm1673_vm3, 1, %v21250_v0  ;;  %v13780_v61 = vshrl.u32 %v1807_v41, 5 }
  0xa4   :  { %v1824_v29 = vshll.u32 %v21260_v3, %v1809_v57  ;;  %v1825_v30 = vshrl.u32 %v21258_v7, %v13769_v34  ;;  %v1698_v31 = vadd.s32 %v1696_v19, %v1694_v46  ;;  %v1812_v62 = vshll.u32 %v21262_v10, %v1809_v57 }
  0xa5   :  { %v1815_v35 = vshll.u32 %v21264_v12, %v1809_v57  ;;  %v1933_v33 = vadd.s32 1, %v12527_v51  ;;  %v1813_v24 = vshrl.u32 %v21264_v12, %v13769_v34  ;;  %v1816_v40 = vshrl.u32 %v21252_v15, %v13769_v34 }
  0xa6   :  { %v1818_v54 = vshll.u32 %v21252_v15, %v1809_v57  ;;  %v1819_v18 = vshrl.u32 %v21254_v1, %v13769_v34  ;;  %v1624_v41 = vshrl.u32 %v21262_v10, %v13648_v52  ;;  %v1666_v42 = vshrl.u32 %v13745_v39, 16 }
  0xa7   :  { %v1676_v48 = vadd.s32 %v1674_v28, %v1672_v21  ;;  %v1823_v44 = vor.u32 %v1822_v27, %v1821_v26  ;;  %v1645_v5 = vsel %vm1643_vm8, %v13690_v38, 2102212464  ;;  %v1802_v50 = vand.u32 8388607, %v21247_v20  ;;  %v144_v28 = vpop.permute.xlu2 %143 }
  0xa8   :  { %v1826_v59 = vor.u32 %v1825_v30, %v1824_v29  ;;  %vm1830_vm4 = vcmp.lt.s32.totalorder %v13780_v61, 4  ;;  %v13803_v57 = vshrl.u32 %v1579_v17, 30  ;;  %v1668_v2 = vshrl.u32 %v13757_v43, 16 }
  0xa9   :  { %v1690_v52 = vshrl.u32 %v13754_v13, 16  ;;  %vm1934_vm5 = vcmp.gt.s32.totalorder %v1933_v33, 0  ;;  %v1699_v39 = vadd.s32 %v1698_v31, %v1688_v22  ;;  %v13807_v6 = vor.u32 %v1813_v24, %v1812_v62 }
  0xaa   :  { %21691 = vst [vmem:[#allocation17_spill] sm:$0xff] %v13803_v57  ;;  %v13809_v8 = vor.u32 %v1816_v40, %v1815_v35  ;;  %v13811_v11 = vor.u32 %v1819_v18, %v1818_v54  ;;  %v1677_v38 = vadd.s32 %v1676_v48, %v1666_v42  ;;  %vm1827_vm6 = vcmp.lt.s32.totalorder %v13780_v61, 1 }
  0xab   :  { %vm1829_vm7 = vcmp.lt.s32.totalorder %v13780_v61, 3  ;;  %v1836_v14 = vsel %vm1830_vm4, %v1823_v44, 920167782  ;;  %v1803_v16 = vor.u32 8388608, %v1802_v50  ;;  %v1840_v43 = vsel %vm1830_vm4, %v1826_v59, 1326507024 }
  0xac   :  { %v1935_v46 = vsel %vm1934_vm5, %v1933_v33, 0  ;;  %v1581_v51 = vshll.u32 %v13803_v57, 30  ;;  %v1644_v17 = vsel %vm1640_vm11, %v1624_v41, %v13686_v36  ;;  %v1646_v19 = vsel %vm1642_vm12, %v13688_v37, %v1645_v5 }
  0xad   :  { %v13828_v21 = vadd.s32 %v1693_v56, %v1689_v55  ;;  %v1700_v22 = vadd.s32 %v1699_v39, %v1690_v52  ;;  %vm1828_vm8 = vcmp.lt.s32.totalorder %v13780_v61, 2  ;;  %v1835_v26 = vsel %vm1827_vm6, %v13807_v6, %v13809_v8 }
  0xae   :  { %v1837_v36 = vsel %vm1829_vm7, %v13811_v11, %v1836_v14  ;;  %v13838_v27 = vadd.s32 %v1677_v38, %v1668_v2  ;;  %v1839_v37 = vsel %vm1827_vm6, %v13809_v8, %v13811_v11  ;;  %v1841_v13 = vsel %vm1829_vm7, %v1823_v44, %v1840_v43 }
  0xaf   :  { %v1937_v55 = vand.u32 31, %v1935_v46  ;;  %v13846_v56 = vshll.u32 %v1803_v16, 8  ;;  %v13849_v29 = vsub.s32 %v13764_v9, %v1581_v51  ;;  %v1838_v30 = vsel %vm1828_vm8, %v1835_v26, %v1837_v36 }
  0xb0   :  { %v1647_v31 = vsel %vm1641_vm13, %v1644_v17, %v1646_v19  ;;  %v1704_v62 = vadd.s32 1, %v1700_v22  ;;  %v1842_v35 = vsel %vm1828_vm8, %v1839_v37, %v1841_v13  ;;  %v21246_v33 = vand.u32 2147483647, %v13748_v23 }
  0xb1   :  { %vm1703_vm9 = vc.u32 %v13838_v27, %v13828_v21  ;;  %v13860_v24 = vsub.s32 32, %v1937_v55  ;;  %v192_v9 = vmul.f32 %v13574_v49, %v144_v28  ;;  %v1844_v40 = vand.u32 65535, %v13846_v56 }
  0xb2   :  { %v1869_v54 = vshrl.u32 %v1838_v30, 16  ;;  %vm1583_vm10 = vcmp.lt.s32.totalorder %v13849_v29, 0  ;;  %v1701_v4 = vmul.u32 %v13700_v45, %v1647_v31  ;;  %v1847_v18 = vshrl.u32 %v1842_v35, 16 }
  0xb3   :  { %v1584_v41 = vsub.s32 0, %v13849_v29  ;;  %v1705_v42 = vsel %vm1703_vm9, %v1704_v62, %v1700_v22  ;;  %v1845_v48 = vshrl.u32 %v13846_v56, 16  ;;  %v1930_v44 = vand.u32 8388607, %v21246_v33 }
  0xb4   :  { %v1868_v5 = vand.u32 65535, %v1838_v30  ;;  %v1949_v50 = vshll.u32 %v21254_v1, %v1937_v55  ;;  %v1950_v59 = vshrl.u32 %v21260_v3, %v13860_v24  ;;  %v13873_v2 = vpack.c.bf16 %v192_v9, %v192_v9 }
  0xb5   :  { %v13875_v52 = vmul.u32 %v1869_v54, %v1844_v40  ;;  %v13877_v45 = vshrl.u32 %v1935_v46, 5  ;;  %v1952_v39 = vshll.u32 %v21260_v3, %v1937_v55  ;;  %v1953_v38 = vshrl.u32 %v21258_v7, %v13860_v24 }
  0xb6   :  { %v1846_v14 = vand.u32 65535, %v1842_v35  ;;  %v13882_v16 = vmul.u32 %v1847_v18, %v1844_v40  ;;  %v1940_v43 = vshll.u32 %v21262_v10, %v1937_v55  ;;  %v1943_v51 = vshll.u32 %v21264_v12, %v1937_v55 }
  0xb7   :  { %v1941_v17 = vshrl.u32 %v21264_v12, %v13860_v24  ;;  %v1944_v19 = vshrl.u32 %v21252_v15, %v13860_v24  ;;  %v1946_v46 = vshll.u32 %v21252_v15, %v1937_v55  ;;  %v1947_v22 = vshrl.u32 %v21254_v1, %v13860_v24 }
  0xb8   :  { %v1585_v26 = vsel %vm1583_vm10, %v1584_v41, %v13849_v29  ;;  %v1870_v36 = vmul.u32 %v1868_v5, %v1844_v40  ;;  %v1951_v37 = vor.u32 %v1950_v59, %v1949_v50  ;;  %v13897_v13 = vunpack.i.l.bf16 %v13873_v2 }
  0xb9   :  { %v13899_v28 = vmul.u32 %v1868_v5, %v1845_v48  ;;  %v1874_v30 = vshll.u32 %v13875_v52, 16  ;;  %v1954_v31 = vor.u32 %v1953_v38, %v1952_v39  ;;  %vm1958_vm11 = vcmp.lt.s32.totalorder %v13877_v45, 4 }
  0xba   :  { %21692 = vst [vmem:[#allocation18_spill] sm:$0xff] %v13897_v13  ;;  %v13903_v55 = vadd.s32 %v1705_v42, %v1701_v4  ;;  %v1848_v62 = vmul.u32 %v1846_v14, %v1844_v40  ;;  %v13905_v35 = vmul.u32 %v1846_v14, %v1845_v48  ;;  %v1852_v9 = vshll.u32 %v13882_v16, 16 }
  0xbb   :  { %v1931_v41 = vor.u32 8388608, %v1930_v44  ;;  %v13908_v33 = vor.u32 %v1941_v17, %v1940_v43  ;;  %v13910_v50 = vor.u32 %v1944_v19, %v1943_v51  ;;  %v13912_v59 = vor.u32 %v1947_v22, %v1946_v46 }
  0xbc   :  { %vm1955_vm12 = vcmp.lt.s32.totalorder %v13877_v45, 1  ;;  %vm1957_vm13 = vcmp.lt.s32.totalorder %v13877_v45, 3  ;;  %v1964_v4 = vsel %vm1958_vm11, %v1951_v37, 920167782  ;;  %v2743_v40 = vand.u32 2139095040, %v13897_v13 }
  0xbd   :  { %v1876_v42 = vshll.u32 %v13899_v28, 16  ;;  %vm1878_vm14 = vc.u32 %v1870_v36, %v1874_v30  ;;  %v13920_v5 = vadd.s32 %v1874_v30, %v1870_v36  ;;  %v1968_v44 = vsel %vm1958_vm11, %v1954_v31, 1326507024 }
  0xbe   :  { %v1851_v39 = vmul.u32 %v1847_v18, %v1845_v48  ;;  %v1854_v38 = vshll.u32 %v13905_v35, 16  ;;  %vm1856_vm15 = vc.u32 %v1848_v62, %v1852_v9  ;;  %v1858_v14 = vadd.s32 %v1852_v9, %v1848_v62 }
  0xbf   :  { %v1873_v43 = vmul.u32 %v1869_v54, %v1845_v48  ;;  %vm1956_vm0 = vcmp.lt.s32.totalorder %v13877_v45, 2  ;;  %v1963_v51 = vsel %vm1955_vm12, %v13908_v33, %v13910_v50  ;;  %v1965_v17 = vsel %vm1957_vm13, %v13912_v59, %v1964_v4 }
  0xc0   :  { %v1879_v19 = vsel %vm1878_vm14, 1, %v21250_v0  ;;  %v1967_v18 = vsel %vm1955_vm12, %v13910_v50, %v13912_v59  ;;  %v1969_v54 = vsel %vm1957_vm13, %v1951_v37, %v1968_v44  ;;  %v2744_v48 = vshrl.u32 %v2743_v40, 23 }
  0xc1   :  { %v1857_v46 = vsel %vm1856_vm15, 1, %v21250_v0  ;;  %vm1882_vm1 = vc.u32 %v13920_v5, %v1876_v42  ;;  %v13944_v22 = vshll.u32 %v1931_v41, 8  ;;  %vm1860_vm2 = vc.u32 %v1858_v14, %v1854_v38 }
  0xc2   :  { %v1966_v36 = vsel %vm1956_vm0, %v1963_v51, %v1965_v17  ;;  %v1586_v30 = vclz %v1585_v26  ;;  %v1881_v31 = vadd.s32 %v1879_v19, %v1873_v43  ;;  %v1970_v62 = vsel %vm1956_vm0, %v1967_v18, %v1969_v54 }
  0xc3   :  { %v1707_v37 = vadd.s32 536870912, %v13903_v55  ;;  %v1859_v9 = vadd.s32 %v1857_v46, %v1851_v39  ;;  %v1883_v4 = vsel %vm1882_vm1, 1, %v21250_v0  ;;  %v12542_v40 = vadd.s32 4294967169, %v2744_v48 }
  0xc4   :  { %v1861_v44 = vsel %vm1860_vm2, 1, %v21250_v0  ;;  %v1972_v41 = vand.u32 65535, %v13944_v22  ;;  %v1997_v20 = vshrl.u32 %v1966_v36, 16  ;;  %v1975_v38 = vshrl.u32 %v1970_v62, 16 }
  0xc5   :  { %v12519_v14 = vadd.s32 4294967294, %v1586_v30  ;;  %v1875_v51 = vshrl.u32 %v13875_v52, 16  ;;  %v1885_v26 = vadd.s32 %v1883_v4, %v1881_v31  ;;  %v13955_v43 = vshrl.u32 %v1707_v37, 30 }
  0xc6   :  { %v1853_v17 = vshrl.u32 %v13882_v16, 16  ;;  %v1863_v19 = vadd.s32 %v1861_v44, %v1859_v9  ;;  %v2750_v18 = vadd.s32 1, %v12542_v40  ;;  %v1973_v39 = vshrl.u32 %v13944_v22, 16 }
  0xc7   :  { %21693 = vst [vmem:[#allocation19_spill] sm:$0xff] %v13955_v43  ;;  %v1996_v54 = vand.u32 65535, %v1966_v36  ;;  %v13959_v48 = vmul.u32 %v1997_v20, %v1972_v41  ;;  %v1974_v46 = vand.u32 65535, %v1970_v62  ;;  %v13961_v47 = vmul.u32 %v1975_v38, %v1972_v41 }
  0xc8   :  { %vm12520_vm3 = vcmp.lt.s32.totalorder %v12519_v14, 0  ;;  %v1811_v30 = vshrl.u32 %v21262_v10, %v13769_v34  ;;  %v1877_v52 = vshrl.u32 %v13899_v28, 16  ;;  %v1886_v31 = vadd.s32 %v1885_v26, %v1875_v51 }
  0xc9   :  { %v1709_v37 = vshll.u32 %v13955_v43, 30  ;;  %v1855_v16 = vshrl.u32 %v13905_v35, 16  ;;  %v1864_v9 = vadd.s32 %v1863_v19, %v1853_v17  ;;  %vm2751_vm5 = vcmp.gt.s32.totalorder %v2750_v18, 0 }
  0xca   :  { %v1832_v36 = vsel %vm1830_vm4, %v13811_v11, 2102212464  ;;  %v1998_v62 = vmul.u32 %v1996_v54, %v1972_v41  ;;  %v13971_v4 = vmul.u32 %v1996_v54, %v1973_v39  ;;  %v2002_v40 = vshll.u32 %v13959_v48, 16 }
  0xcb   :  { %v1976_v44 = vmul.u32 %v1974_v46, %v1972_v41  ;;  %v13974_v34 = vmul.u32 %v1974_v46, %v1973_v39  ;;  %v1980_v51 = vshll.u32 %v13961_v47, 16  ;;  %v13977_v26 = vsel %vm12520_vm3, 0, %v12519_v14 }
  0xcc   :  { %v1831_v35 = vsel %vm1827_vm6, %v1811_v30, %v13807_v6  ;;  %v1887_v17 = vadd.s32 %v1886_v31, %v1877_v52  ;;  %v2752_v19 = vsel %vm2751_vm5, %v2750_v18, 0  ;;  %v13983_v11 = vsub.s32 %v13903_v55, %v1709_v37 }
  0xcd   :  { %v1833_v54 = vsel %vm1829_vm7, %v13809_v8, %v1832_v36  ;;  %v13988_v41 = vadd.s32 %v1864_v9, %v1855_v16  ;;  %v13993_v14 = vadd.s32 %v13920_v5, %v1876_v42  ;;  %v2004_v46 = vshll.u32 %v13971_v4, 16 }
  0xce   :  { %vm2006_vm4 = vc.u32 %v1998_v62, %v2002_v40  ;;  %v13996_v6 = vadd.s32 %v2002_v40, %v1998_v62  ;;  %v13999_v18 = vunpack.i.h.bf16 %v13873_v2  ;;  %v1982_v55 = vshll.u32 %v13974_v34, 16 }
  0xcf   :  { %vm1984_vm6 = vc.u32 %v1976_v44, %v1980_v51  ;;  %v1986_v30 = vadd.s32 %v1980_v51, %v1976_v44  ;;  %v2754_v8 = vand.u32 31, %v2752_v19  ;;  %v1834_v52 = vsel %vm1828_vm8, %v1831_v35, %v1833_v54 }
  0xd0   :  { %21694 = vst [vmem:[#allocation20_spill] sm:$0xff] %v13999_v18  ;;  %v1891_v28 = vadd.s32 1, %v1887_v17  ;;  %v2001_v31 = vmul.u32 %v1997_v20, %v1973_v39  ;;  %v1594_v42 = vsub.s32 4294967266, %v13977_v26  ;;  %vm1890_vm7 = vc.u32 %v13988_v41, %v13993_v14 }
  0xd1   :  { %v1979_v5 = vmul.u32 %v1975_v38, %v1973_v39  ;;  %v2007_v37 = vsel %vm2006_vm4, 1, %v21250_v0  ;;  %v1712_v2 = vsub.s32 0, %v13983_v11  ;;  %v1985_v16 = vsel %vm1984_vm6, 1, %v21250_v0 }
  0xd2   :  { %vm2010_vm9 = vc.u32 %v13996_v6, %v2004_v46  ;;  %v2871_v61 = vand.u32 2139095040, %v13999_v18  ;;  %vm1711_vm8 = vcmp.lt.s32.totalorder %v13983_v11, 0  ;;  %v1888_v20 = vmul.u32 %v13846_v56, %v1834_v52 }
  0xd3   :  { %vm1988_vm10 = vc.u32 %v1986_v30, %v1982_v55  ;;  %v14016_v9 = vsub.s32 32, %v2754_v8  ;;  %v14020_v38 = vadd.s32 %v13741_v25, %v13737_v32  ;;  %v1892_v39 = vsel %vm1890_vm7, %v1891_v28, %v1887_v17 }
  0xd4   :  { %v2009_v36 = vadd.s32 %v2007_v37, %v2001_v31  ;;  %v1590_v62 = vsub.s32 32, %v13977_v26  ;;  %v14023_v40 = vadd.s32 127, %v1594_v42  ;;  %v1987_v44 = vadd.s32 %v1985_v16, %v1979_v5 }
  0xd5   :  { %v2011_v51 = vsel %vm2010_vm9, 1, %v21250_v0  ;;  %v14027_v35 = vsel %vm1711_vm8, %v1712_v2, %v13983_v11  ;;  %v1939_v56 = vshrl.u32 %v21262_v10, %v13860_v24  ;;  %v1989_v54 = vsel %vm1988_vm10, 1, %v21250_v0 }
  0xd6   :  { %v2872_v55 = vshrl.u32 %v2871_v61, 23  ;;  %v14032_v32 = vadd.s32 %v1892_v39, %v1888_v20  ;;  %v21256_v25 = vand.u32 2147483647, %v13897_v13  ;;  %v2769_v17 = vshll.u32 %v21260_v3, %v2754_v8 }
  0xd7   :  { %v2770_v30 = vshrl.u32 %v21258_v7, %v14016_v9  ;;  %v1981_v52 = vshrl.u32 %v13961_v47, 16  ;;  %v2003_v28 = vshrl.u32 %v13959_v48, 16  ;;  %v2013_v31 = vadd.s32 %v2011_v51, %v2009_v36 }
  0xd8   :  { %v14040_v42 = vshrl.u32 %v2752_v19, 5  ;;  %v1991_v24 = vadd.s32 %v1989_v54, %v1987_v44  ;;  %v2760_v5 = vshll.u32 %v21264_v12, %v2754_v8  ;;  %v2766_v37 = vshll.u32 %v21254_v1, %v2754_v8 }
  0xd9   :  { %v2767_v2 = vshrl.u32 %v21260_v3, %v14016_v9  ;;  %v2761_v16 = vshrl.u32 %v21252_v15, %v14016_v9  ;;  %v2763_v61 = vshll.u32 %v21252_v15, %v2754_v8  ;;  %v2764_v47 = vshrl.u32 %v21254_v1, %v14016_v9 }
  0xda   :  { %v12545_v48 = vadd.s32 4294967169, %v2872_v55  ;;  %v1960_v19 = vsel %vm1958_vm11, %v13912_v59, 2102212464  ;;  %v2005_v20 = vshrl.u32 %v13971_v4, 16  ;;  %v2747_v39 = vand.u32 8388607, %v21256_v25 }
  0xdb   :  { %v2771_v36 = vor.u32 %v2770_v30, %v2769_v17  ;;  %v2014_v44 = vadd.s32 %v2013_v31, %v2003_v28  ;;  %v2757_v51 = vshll.u32 %v21262_v10, %v2754_v8  ;;  %v2758_v54 = vshrl.u32 %v21264_v12, %v14016_v9 }
  0xdc   :  { %vm2775_vm14 = vcmp.lt.s32.totalorder %v14040_v42, 4  ;;  %v1894_v55 = vadd.s32 536870912, %v14032_v32  ;;  %v1983_v63 = vshrl.u32 %v13974_v34, 16  ;;  %v1992_v0 = vadd.s32 %v1991_v24, %v1981_v52 }
  0xdd   :  { %v2768_v59 = vor.u32 %v2767_v2, %v2766_v37  ;;  %v1714_v15 = vclz %v14027_v35  ;;  %v14064_v1 = vor.u32 %v2761_v16, %v2760_v5  ;;  %v14066_v25 = vor.u32 %v2764_v47, %v2763_v61  ;;  %v159_v16 = vpop.permute.xlu2 %158 }
  0xde   :  { %v2878_v17 = vadd.s32 1, %v12545_v48  ;;  %v2748_v30 = vor.u32 8388608, %v2747_v39  ;;  %vm2772_vm11 = vcmp.lt.s32.totalorder %v14040_v42, 1  ;;  %vm2774_vm15 = vcmp.lt.s32.totalorder %v14040_v42, 3 }
  0xdf   :  { %v2785_v8 = vsel %vm2775_vm14, %v2771_v36, 1326507024  ;;  %v1959_v34 = vsel %vm1955_vm12, %v1939_v56, %v13908_v33  ;;  %v1961_v35 = vsel %vm1957_vm13, %v13910_v50, %v1960_v19  ;;  %v2015_v52 = vadd.s32 %v2014_v44, %v2005_v20 }
  0xe0   :  { %v14078_v28 = vor.u32 %v2758_v54, %v2757_v51  ;;  %v14080_v31 = vshrl.u32 %v1894_v55, 30  ;;  %v14082_v24 = vadd.s32 %v1992_v0, %v1983_v63  ;;  %v14087_v5 = vadd.s32 %v13996_v6, %v2004_v46 }
  0xe1   :  { %v2781_v37 = vsel %vm2775_vm14, %v2768_v59, 920167782  ;;  %vm2773_vm12 = vcmp.lt.s32.totalorder %v14040_v42, 2  ;;  %v2784_v33 = vsel %vm2772_vm11, %v14064_v1, %v14066_v25  ;;  %v2786_v50 = vsel %vm2774_vm15, %v2768_v59, %v2785_v8 }
  0xe2   :  { %21695 = vst [vmem:[#allocation21_spill] sm:$0xff] %v14080_v31  ;;  %vm2879_vm13 = vcmp.gt.s32.totalorder %v2878_v17, 0  ;;  %v1591_v0 = vshll.u32 %v13849_v29, %v13977_v26  ;;  %v14100_v63 = vshll.u32 %v2748_v30, 8  ;;  %v1962_v4 = vsel %vm1956_vm0, %v1959_v34, %v1961_v35 }
  0xe3   :  { %v2019_v46 = vadd.s32 1, %v2015_v52  ;;  %v2780_v6 = vsel %vm2772_vm11, %v14078_v28, %v14064_v1  ;;  %v2782_v56 = vsel %vm2774_vm15, %v14066_v25, %v2781_v37  ;;  %v1592_v2 = vshrl.u32 %v14020_v38, %v1590_v62 }
  0xe4   :  { %vm2018_vm1 = vc.u32 %v14082_v24, %v14087_v5  ;;  %v2787_v29 = vsel %vm2773_vm12, %v2784_v33, %v2786_v50  ;;  %v2880_v45 = vsel %vm2879_vm13, %v2878_v17, 0  ;;  %v1596_v61 = vshll.u32 %v14023_v40, 23 }
  0xe5   :  { %v12522_v47 = vadd.s32 4294967294, %v1714_v15  ;;  %v1896_v48 = vshll.u32 %v14080_v31, 30  ;;  %v2016_v19 = vmul.u32 %v13944_v22, %v1962_v4  ;;  %v2783_v26 = vsel %vm2773_vm12, %v2780_v6, %v2782_v56 }
  0xe6   :  { %v2789_v38 = vand.u32 65535, %v14100_v63  ;;  %v2020_v62 = vsel %vm2018_vm1, %v2019_v46, %v2015_v52  ;;  %v2792_v20 = vshrl.u32 %v2787_v29, 16  ;;  %v2882_v39 = vand.u32 31, %v2880_v45 }
  0xe7   :  { %v195_v36 = vmul.f32 %v13574_v49, %v159_v16  ;;  %v14125_v44 = vor.u32 %v1592_v2, %v1591_v0  ;;  %v14127_v51 = vor.u32 4788187, %v1596_v61  ;;  %vm12523_vm0 = vcmp.lt.s32.totalorder %v12522_v47, 0 }
  0xe8   :  { %v14130_v15 = vsub.s32 %v14032_v32, %v1896_v48  ;;  %v2814_v40 = vshrl.u32 %v2783_v26, 16  ;;  %v14132_v22 = vadd.s32 %v2020_v62, %v2016_v19  ;;  %v2791_v54 = vand.u32 65535, %v2787_v29 }
  0xe9   :  { %v2813_v55 = vand.u32 65535, %v2783_v26  ;;  %v21257_v59 = vand.u32 2147483647, %v13999_v18  ;;  %v14135_v17 = vmul.u32 %v2792_v20, %v2789_v38  ;;  %v14137_v30 = vsub.s32 32, %v2882_v39 }
  0xea   :  { %v14139_v49 = vpack.c.bf16 %v195_v36, %v195_v36  ;;  %v14144_v34 = vadd.s32 %v13828_v21, %v13838_v27  ;;  %v2790_v32 = vshrl.u32 %v14100_v63, 16  ;;  %v1598_v35 = vand.u32 2147483647, %v14127_v51 }
  0xeb   :  { %v14148_v52 = vsel %vm12523_vm0, 0, %v12522_v47  ;;  %v1899_v37 = vsub.s32 0, %v14130_v15  ;;  %v14151_v33 = vmul.u32 %v2814_v40, %v2789_v38  ;;  %vm1898_vm2 = vcmp.lt.s32.totalorder %v14130_v15, 0 }
  0xec   :  { %v2022_v50 = vadd.s32 536870912, %v14132_v22  ;;  %v2793_v0 = vmul.u32 %v2791_v54, %v2789_v38  ;;  %v2815_v4 = vmul.u32 %v2813_v55, %v2789_v38  ;;  %v2875_v21 = vand.u32 8388607, %v21257_v59 }
  0xed   :  { %v2797_v27 = vshll.u32 %v14135_v17, 16  ;;  %v2897_v46 = vshll.u32 %v21260_v3, %v2882_v39  ;;  %v2898_v6 = vshrl.u32 %v21258_v7, %v14137_v30  ;;  %v14162_v56 = vunpack.i.l.bf16 %v14139_v49 }
  0xee   :  { %v14164_v2 = vmul.u32 %v2813_v55, %v2790_v32  ;;  %v14166_v29 = vshrl.u32 %v2880_v45, 5  ;;  %v21697_v16 = vmov 2102212464   ;;  %v2895_v47 = vshrl.u32 %v21260_v3, %v14137_v30 }
  0xef   :  { %21696 = vst [vmem:[#allocation22_spill] sm:$0xff] %v14162_v56  ;;  %v2894_v61 = vshll.u32 %v21697_v16, %v2882_v39  ;;  %v14171_v48 = vmul.u32 %v2791_v54, %v2790_v32  ;;  %v2819_v19 = vshll.u32 %v14151_v33, 16  ;;  %v2885_v26 = vshll.u32 %v21262_v10, %v2882_v39 }
  0xf0   :  { %v2888_v38 = vshll.u32 %v21264_v12, %v2882_v39  ;;  %v2886_v62 = vshrl.u32 %v21264_v12, %v14137_v30  ;;  %v21698_v36 = vmov 2131351028   ;;  %v2892_v55 = vshrl.u32 %v21697_v16, %v14137_v30 }
  0xf1   :  { %v2889_v45 = vshrl.u32 %v21698_v36, %v14137_v30  ;;  %v2891_v51 = vshll.u32 %v21698_v36, %v2882_v39  ;;  %vm2801_vm3 = vc.u32 %v2793_v0, %v2797_v27  ;;  %v2818_v54 = vmul.u32 %v2814_v40, %v2790_v32 }
  0xf2   :  { %v2899_v59 = vor.u32 %v2898_v6, %v2897_v46  ;;  %v3688_v7 = vand.u32 2139095040, %v14162_v56  ;;  %v2796_v3 = vmul.u32 %v2792_v20, %v2790_v32  ;;  %v2821_v10 = vshll.u32 %v14164_v2, 16 }
  0xf3   :  { %v2896_v8 = vor.u32 %v2895_v47, %v2894_v61  ;;  %vm2903_vm5 = vcmp.lt.s32.totalorder %v14166_v29, 4  ;;  %v2799_v12 = vshll.u32 %v14171_v48, 16  ;;  %v2803_v31 = vadd.s32 %v2797_v27, %v2793_v0 }
  0xf4   :  { %vm2823_vm4 = vc.u32 %v2815_v4, %v2819_v19  ;;  %v14187_v43 = vadd.s32 %v2819_v19, %v2815_v4  ;;  %v21699_v39 = vmov 0   ;;  %v14190_v18 = vor.u32 %v2886_v62, %v2885_v26 }
  0xf5   :  { %v2802_v57 = vsel %vm2801_vm3, 1, %v21699_v39  ;;  %v14192_v40 = vor.u32 %v2889_v45, %v2888_v38  ;;  %v14194_v46 = vor.u32 %v2892_v55, %v2891_v51  ;;  %vm2900_vm6 = vcmp.lt.s32.totalorder %v14166_v29, 1 }
  0xf6   :  { %vm2902_vm7 = vcmp.lt.s32.totalorder %v14166_v29, 3  ;;  %v2913_v20 = vsel %vm2903_vm5, %v2899_v59, 1326507024  ;;  %v3689_v32 = vshrl.u32 %v3688_v7, 23  ;;  %v1722_v0 = vsub.s32 4294967266, %v14148_v52 }
  0xf7   :  { %v2824_v4 = vsel %vm2823_vm4, 1, %v21699_v39  ;;  %v2876_v27 = vor.u32 8388608, %v2875_v21  ;;  %v2909_v6 = vsel %vm2903_vm5, %v2896_v8, 920167782  ;;  %v1900_v61 = vsel %vm1898_vm2, %v1899_v37, %v14130_v15 }
  0xf8   :  { %v14207_v47 = vshrl.u32 %v2022_v50, 30  ;;  %vm2805_vm9 = vc.u32 %v2803_v31, %v2799_v12  ;;  %vm2827_vm8 = vc.u32 %v14187_v43, %v2821_v10  ;;  %v2804_v7 = vadd.s32 %v2802_v57, %v2796_v3 }
  0xf9   :  { %vm2901_vm10 = vcmp.lt.s32.totalorder %v14166_v29, 2  ;;  %v2912_v59 = vsel %vm2900_vm6, %v14192_v40, %v14194_v46  ;;  %v2914_v21 = vsel %vm2902_vm7, %v2896_v8, %v2913_v20  ;;  %v2826_v19 = vadd.s32 %v2824_v4, %v2818_v54 }
  0xfa   :  { %21700 = vst [vmem:[#allocation23_spill] sm:$0xff] %v14207_v47  ;;  %v2908_v12 = vsel %vm2900_vm6, %v14190_v18, %v14192_v40  ;;  %v2910_v3 = vsel %vm2902_vm7, %v14194_v46, %v2909_v6  ;;  %v12560_v57 = vadd.s32 4294967169, %v3689_v32  ;;  %v21701_v31 = vcvt.s32.f32 %v14125_v44 }
  0xfb   :  { %v2806_v50 = vsel %vm2805_vm9, 1, %v21699_v39  ;;  %v2828_v26 = vsel %vm2827_vm8, 1, %v21699_v39  ;;  %v14230_v38 = vshll.u32 %v2876_v27, 8  ;;  %v1718_v8 = vsub.s32 32, %v14148_v52 }
  0xfc   :  { %v1601_v37 = vmul.f32 %v21701_v31, %v1598_v35  ;;  %v1723_v62 = vadd.s32 127, %v1722_v0  ;;  %v1901_v45 = vclz %v1900_v61  ;;  %v14235_v51 = vsel %vm2901_vm10, %v2912_v59, %v2914_v21 }
  0xfd   :  { %v2024_v55 = vshll.u32 %v14207_v47, 30  ;;  %v2820_v54 = vshrl.u32 %v14151_v33, 16  ;;  %v14241_v44 = vsel %vm2901_vm10, %v2908_v12, %v2910_v3  ;;  %v2798_v35 = vshrl.u32 %v14135_v17, 16 }
  0xfe   :  { %v2808_v20 = vadd.s32 %v2806_v50, %v2804_v7  ;;  %v2830_v32 = vadd.s32 %v2828_v26, %v2826_v19  ;;  %v3695_v4 = vadd.s32 1, %v12560_v57  ;;  %v1602_v27 = vxor.u32 2147483648, %v1601_v37 }
  0xff   :  { %v1719_v0 = vshll.u32 %v13983_v11, %v14148_v52  ;;  %v2917_v6 = vand.u32 65535, %v14230_v38  ;;  %v2920_v61 = vshrl.u32 %v14235_v51, 16  ;;  %v1720_v59 = vshrl.u32 %v14144_v34, %v1718_v8 }
 0x100   :  { %v1724_v33 = vshll.u32 %v1723_v62, 23  ;;  %v12525_v21 = vadd.s32 4294967294, %v1901_v45  ;;  %v2942_v12 = vshrl.u32 %v14241_v44, 16  ;;  %v14251_v3 = vsub.s32 %v14132_v22, %v2024_v55 }
 0x101   :  { %v21702_v17 = vmov 683565275   ;;  %v2777_v11 = vsel %vm2775_vm14, %v14066_v25, 2102212464  ;;  %v2800_v52 = vshrl.u32 %v14171_v48, 16  ;;  %v2809_v19 = vadd.s32 %v2808_v20, %v2798_v35 }
 0x102   :  { %v2756_v7 = vshrl.u32 %v21702_v17, %v14016_v9  ;;  %v2822_v57 = vshrl.u32 %v14164_v2, 16  ;;  %v2831_v34 = vadd.s32 %v2830_v32, %v2820_v54  ;;  %vm3696_vm13 = vcmp.gt.s32.totalorder %v3695_v4, 0 }
 0x103   :  { %v2918_v31 = vshrl.u32 %v14230_v38, 16  ;;  %v2919_v50 = vand.u32 65535, %v14235_v51  ;;  %v14262_v22 = vmul.u32 %v2920_v61, %v2917_v6  ;;  %v2941_v26 = vand.u32 65535, %v14241_v44 }
 0x104   :  { %v1721_v9 = vor.u32 %v1720_v59, %v1719_v0  ;;  %v1725_v8 = vor.u32 4788187, %v1724_v33  ;;  %vm12526_vm1 = vcmp.lt.s32.totalorder %v12525_v21, 0  ;;  %v14265_v62 = vmul.u32 %v2942_v12, %v2917_v6 }
 0x105   :  { %vm2026_vm14 = vcmp.lt.s32.totalorder %v14251_v3, 0  ;;  %v2776_v25 = vsel %vm2772_vm11, %v2756_v7, %v14078_v28  ;;  %v2778_v48 = vsel %vm2774_vm15, %v14064_v1, %v2777_v11  ;;  %v3697_v45 = vsel %vm3696_vm13, %v3695_v4, 0 }
 0x106   :  { %v2027_v51 = vsub.s32 0, %v14251_v3  ;;  %v14275_v55 = vadd.s32 %v2809_v19, %v2800_v52  ;;  %v14280_v54 = vadd.s32 %v14187_v43, %v2821_v10  ;;  %v2832_v44 = vadd.s32 %v2831_v34, %v2822_v57 }
 0x107   :  { %v2921_v35 = vmul.u32 %v2919_v50, %v2917_v6  ;;  %v14282_v20 = vmul.u32 %v2919_v50, %v2918_v31  ;;  %v2925_v28 = vshll.u32 %v14262_v22, 16  ;;  %v14285_v32 = vmul.u32 %v2941_v26, %v2918_v31 }
 0x108   :  { %vm21346_vm11 = vcmp.lt.s32.totalorder %v13577_v53, 0  ;;  %v2943_v1 = vmul.u32 %v2941_v26, %v2917_v6  ;;  %v2947_v4 = vshll.u32 %v14265_v62, 16  ;;  %v3699_v0 = vand.u32 31, %v3697_v45 }
 0x109   :  { %v14291_v2 = vsel %vm21346_vm11, %v1602_v27, %v1601_v37  ;;  %v1726_v10 = vand.u32 2147483647, %v1725_v8  ;;  %v1728_v43 = vcvt.s32.f32 %v1721_v9  ;;  %v14294_v59 = vsel %vm12526_vm1, 0, %v12525_v21 }
 0x10a   :  { %v2028_v33 = vsel %vm2026_vm14, %v2027_v51, %v14251_v3  ;;  %v2779_v7 = vsel %vm2773_vm12, %v2776_v25, %v2778_v48  ;;  %vm2835_vm15 = vc.u32 %v14275_v55, %v14280_v54  ;;  %v2836_v6 = vadd.s32 1, %v2832_v44 }
 0x10b   :  { %v2927_v11 = vshll.u32 %v14282_v20, 16  ;;  %v2931_v37 = vadd.s32 %v2925_v28, %v2921_v35  ;;  %v21274_v27 = vshll.u32 %v14285_v32, 16  ;;  %vm2929_vm0 = vc.u32 %v2921_v35, %v2925_v28 }
 0x10c   :  { %vm2951_vm2 = vc.u32 %v2943_v1, %v2947_v4  ;;  %v14305_v21 = vadd.s32 %v2947_v4, %v2943_v1  ;;  %v14307_v52 = vsub.s32 32, %v3699_v0  ;;  %v14309_v19 = vmul.f32 %v1728_v43, %v1726_v10 }
 0x10d   :  { %v14313_v42 = vadd.s32 %v13993_v14, %v13988_v41  ;;  %v14317_v34 = vunpack.i.h.bf16 %v14139_v49  ;;  %v2029_v50 = vclz %v2028_v33  ;;  %v2833_v26 = vmul.u32 %v14100_v63, %v2779_v7 }
 0x10e   :  { %v2924_v9 = vmul.u32 %v2920_v61, %v2918_v31  ;;  %v2946_v8 = vmul.u32 %v2942_v12, %v2918_v31  ;;  %v2837_v25 = vsel %vm2835_vm15, %v2836_v6, %v2832_v44  ;;  %v2930_v48 = vsel %vm2929_vm0, 1, %v21699_v39 }
 0x10f   :  { %21703 = vst [vmem:[#allocation24_spill] sm:$0xff] %v14317_v34  ;;  %vm2933_vm12 = vc.u32 %v2931_v37, %v2927_v11  ;;  %v2952_v41 = vsel %vm2951_vm2, 1, %v21699_v39  ;;  %vm14328_vm3 = vc.u32 %v14305_v21, %v21274_v27  ;;  %v21281_v63 = vand.u32 2147483647, %v14162_v56 }
 0x110   :  { %v21706_v49 = vmov 920167782   ;;  %v21707_v12 = vmov 1326507024   ;;  %v14336_v51 = vshrl.u32 %v3697_v45, 5  ;;  %v3711_v44 = vshll.u32 %v21697_v16, %v3699_v0 }
 0x111   :  { %v3714_v61 = vshll.u32 %v21706_v49, %v3699_v0  ;;  %v3715_v31 = vshrl.u32 %v21707_v12, %v14307_v52  ;;  %v3712_v35 = vshrl.u32 %v21706_v49, %v14307_v52  ;;  %v3816_v28 = vand.u32 2139095040, %v14317_v34 }
 0x112   :  { %v14342_v1 = vadd.s32 %v2837_v25, %v2833_v26  ;;  %v2932_v4 = vadd.s32 %v2930_v48, %v2924_v9  ;;  %v2934_v10 = vsel %vm2933_vm12, 1, %v21699_v39  ;;  %v2954_v43 = vadd.s32 %v2952_v41, %v2946_v8 }
 0x113   :  { %v21708_v33 = vmov 2475754826   ;;  %v3706_v6 = vshrl.u32 %v21698_v36, %v14307_v52  ;;  %v3708_v45 = vshll.u32 %v21698_v36, %v3699_v0  ;;  %v3709_v11 = vshrl.u32 %v21697_v16, %v14307_v52 }
 0x114   :  { %v3705_v7 = vshll.u32 %v21708_v33, %v3699_v0  ;;  %v2956_v37 = vsel %vm14328_vm3, 1, %v21699_v39  ;;  %v3702_v26 = vshll.u32 %v21702_v17, %v3699_v0  ;;  %v3703_v9 = vshrl.u32 %v21708_v33, %v14307_v52 }
 0x115   :  { %v3716_v8 = vor.u32 %v3715_v31, %v3714_v61  ;;  %v3692_v25 = vand.u32 8388607, %v21281_v63  ;;  %v3713_v48 = vor.u32 %v3712_v35, %v3711_v44  ;;  %vm3720_vm4 = vcmp.lt.s32.totalorder %v14336_v51, 4 }
 0x116   :  { %v3817_v41 = vshrl.u32 %v3816_v28, 23  ;;  %v1909_v27 = vsub.s32 4294967266, %v14294_v59  ;;  %v2839_v57 = vadd.s32 536870912, %v14342_v1  ;;  %v2926_v14 = vshrl.u32 %v14262_v22, 16 }
 0x117   :  { %v2948_v47 = vshrl.u32 %v14265_v62, 16  ;;  %v2936_v0 = vadd.s32 %v2934_v10, %v2932_v4  ;;  %v2958_v13 = vadd.s32 %v2956_v37, %v2954_v43  ;;  %v14364_v23 = vor.u32 %v3706_v6, %v3705_v7 }
 0x118   :  { %v14366_v61 = vor.u32 %v3709_v11, %v3708_v45  ;;  %v21709_v31 = vand.u32 2147483647, %v13577_v53  ;;  %v21710_v44 = vmov 0  ;;  %v14374_v35 = vor.u32 %v3703_v9, %v3702_v26  ;;  %v114_v26 = vpop.permute.xlu1 %113 }
 0x119   :  { %vm3717_vm8 = vcmp.lt.s32.totalorder %v14336_v51, 1  ;;  %vm3719_vm13 = vcmp.lt.s32.totalorder %v14336_v51, 3  ;;  %v3730_v22 = vsel %vm3720_vm4, %v3716_v8, 1326507024  ;;  %vm21345_vm1 = vcmp.lt.s32.totalorder %v13580_v60, 0 }
 0x11a   :  { %vm14370_vm9 = vcmp.le.f32.partialorder %v21709_v31, 0.7853982  ;;  %v12528_v62 = vadd.s32 4294967294, %v2029_v50  ;;  %v3693_v28 = vor.u32 8388608, %v3692_v25  ;;  %v3726_v4 = vsel %vm3720_vm4, %v3713_v48, 920167782 }
 0x11b   :  { %v21711_v44 = vsel %vm14370_vm9, 4294967295, %v21710_v44  ;;  %v12563_v10 = vadd.s32 4294967169, %v3817_v41  ;;  %v14383_v43 = vshrl.u32 %v2839_v57, 30  ;;  %v2884_v7 = vshrl.u32 %v21702_v17, %v14137_v30 }
 0x11c   :  { %21712 = vst [vmem:[#allocation25_spill] sm:$0xff] %v21711_v44  ;;  %v2905_v6 = vsel %vm2903_vm5, %v14194_v46, 2102212464  ;;  %v2928_v45 = vshrl.u32 %v14282_v20, 16  ;;  %v2950_v11 = vshrl.u32 %v14285_v32, 16  ;;  %vm3718_vm14 = vcmp.lt.s32.totalorder %v14336_v51, 2 }
 0x11d   :  { %21713 = vst [vmem:[#allocation26_spill] sm:$0xff] %v14383_v43  ;;  %v3729_v50 = vsel %vm3717_vm8, %v14364_v23, %v14366_v61  ;;  %v3731_v57 = vsel %vm3719_vm13, %v3713_v48, %v3730_v22  ;;  %v2937_v37 = vadd.s32 %v2936_v0, %v2926_v14  ;;  %v2959_v30 = vadd.s32 %v2958_v13, %v2948_v47 }
 0x11e   :  { %v3725_v46 = vsel %vm3717_vm8, %v14374_v35, %v14364_v23  ;;  %v3727_v20 = vsel %vm3719_vm13, %v14366_v61, %v3726_v4  ;;  %v1730_v9 = vxor.u32 2147483648, %v14309_v19  ;;  %v1906_v8 = vshll.u32 %v14130_v15, %v14294_v59 }
 0x11f   :  { %v14409_v25 = vshll.u32 %v3693_v28, 8  ;;  %v3823_v48 = vadd.s32 1, %v12563_v10  ;;  %v21714_v13 = vsub.s32 32, %v14294_v59  ;;  %v1910_v41 = vadd.s32 127, %v1909_v27  ;;  %v14431_v59 = vld [vmem:[%s21236_s2] ss:$0 sm:$0xff] }
 0x120   :  { %vm12529_vm5 = vcmp.lt.s32.totalorder %v12528_v62, 0  ;;  %v14416_v14 = vsel %vm3718_vm14, %v3729_v50, %v3731_v57  ;;  %v2904_v0 = vsel %vm2900_vm6, %v2884_v7, %v14190_v18  ;;  %v2906_v15 = vsel %vm2902_vm7, %v14192_v40, %v2905_v6 }
 0x121   :  { %v1907_v47 = vshrl.u32 %v14313_v42, %v21714_v13  ;;  %v14426_v31 = vsel %vm3718_vm14, %v3725_v46, %v3727_v20  ;;  %v186_v27 = vmul.f32 %v14431_v59, %v114_v26  ;;  %v2841_v42 = vshll.u32 %v14383_v43, 30 }
 0x122   :  { %v14435_v22 = vadd.s32 %v2937_v37, %v2928_v45  ;;  %v21716_v18 = vshll.u32 %v14285_v32, 16  ;;  %v2960_v40 = vadd.s32 %v2959_v30, %v2950_v11  ;;  %v14446_v4 = vsel %vm14370_vm9, %v13577_v53, %v14291_v2 }
 0x123   :  { %21718 = vst [vmem:[#allocation29_spill] sm:$0xff] %v14446_v4  ;;  %v3734_v10 = vand.u32 65535, %v14409_v25  ;;  %v3737_v7 = vshrl.u32 %v14416_v14, 16  ;;  %vm3824_vm6 = vcmp.gt.s32.totalorder %v3823_v48, 0  ;;  %v14453_v6 = vsel %vm21345_vm1, %v1730_v9, %v14309_v19 }
 0x124   :  { %21715 = vst [vmem:[#allocation27_spill] sm:$0xff] %v14435_v22  ;;  %v14440_v28 = vadd.s32 %v14305_v21, %v21716_v18  ;;  %v14455_v32 = vor.u32 %v1907_v47, %v1906_v8  ;;  %v1911_v21 = vshll.u32 %v1910_v41, 23  ;;  %v3759_v45 = vshrl.u32 %v14426_v31, 16 }
 0x125   :  { %v2017_v11 = vadd.s32 %v14087_v5, %v14082_v24  ;;  %v14461_v2 = vsel %vm12529_vm5, 0, %v12528_v62  ;;  %v2907_v50 = vsel %vm2901_vm10, %v2904_v0, %v2906_v15  ;;  %v14465_v57 = vpack.c.bf16 %v186_v27, %v186_v27 }
 0x126   :  { %21717 = vst [vmem:[#allocation28_spill] sm:$0xff] %v14440_v28  ;;  %v14468_v37 = vsub.s32 %v14342_v1, %v2841_v42  ;;  %vm2963_vm7 = vc.u32 %v14435_v22, %v14440_v28  ;;  %v2964_v19 = vadd.s32 1, %v2960_v40  ;;  %v3825_v30 = vsel %vm3824_vm6, %v3823_v48, 0 }
 0x127   :  { %v3735_v46 = vshrl.u32 %v14409_v25, 16  ;;  %v3736_v24 = vand.u32 65535, %v14416_v14  ;;  %v14474_v5 = vmul.u32 %v3737_v7, %v3734_v10  ;;  %v3758_v62 = vand.u32 65535, %v14426_v31 }
 0x128   :  { %v14477_v29 = vor.u32 4788187, %v1911_v21  ;;  %v2033_v1 = vsub.s32 32, %v14461_v2  ;;  %v14481_v26 = vmul.u32 %v3759_v45, %v3734_v10  ;;  %v2037_v9 = vsub.s32 4294967266, %v14461_v2 }
 0x129   :  { %v2961_v8 = vmul.u32 %v14230_v38, %v2907_v50  ;;  %v3827_v48 = vand.u32 31, %v3825_v30  ;;  %v14486_v13 = vunpack.i.l.bf16 %v14465_v57  ;;  %vm2843_vm10 = vcmp.lt.s32.totalorder %v14468_v37, 0 }
 0x12a   :  { %v2844_v47 = vsub.s32 0, %v14468_v37  ;;  %v2965_v41 = vsel %vm2963_vm7, %v2964_v19, %v2960_v40  ;;  %v21282_v14 = vand.u32 2147483647, %v14317_v34  ;;  %v3738_v0 = vmul.u32 %v3736_v24, %v3734_v10 }
 0x12b   :  { %21719 = vst [vmem:[#allocation30_spill] sm:$0xff] %v14486_v13  ;;  %v14494_v15 = vmul.u32 %v3736_v24, %v3735_v46  ;;  %v3742_v31 = vshll.u32 %v14474_v5, 16  ;;  %v14497_v38 = vmul.u32 %v3758_v62, %v3735_v46  ;;  %v3760_v18 = vmul.u32 %v3758_v62, %v3734_v10 }
 0x12c   :  { %v3764_v21 = vshll.u32 %v14481_v26, 16  ;;  %v14503_v50 = vshrl.u32 %v2017_v11, %v2033_v1  ;;  %v14505_v40 = vadd.s32 127, %v2037_v9  ;;  %v14507_v19 = vsub.s32 32, %v3827_v48 }
 0x12d   :  { %v853_v24 = vand.u32 2139095040, %v14486_v13  ;;  %v14513_v63 = vsel %vm2843_vm10, %v2844_v47, %v14468_v37  ;;  %v14515_v20 = vadd.s32 %v2965_v41, %v2961_v8  ;;  %v3820_v10 = vand.u32 8388607, %v21282_v14 }
 0x12e   :  { %v14519_v62 = vshrl.u32 %v3825_v30, 5  ;;  %v3744_v11 = vshll.u32 %v14494_v15, 16  ;;  %vm3746_vm15 = vc.u32 %v3738_v0, %v3742_v31  ;;  %v3748_v42 = vadd.s32 %v3742_v31, %v3738_v0 }
 0x12f   :  { %v854_v9 = vshrl.u32 %v853_v24, 23  ;;  %vm14523_vm0 = vc.u32 %v3760_v18, %v3764_v21  ;;  %v14527_v47 = vadd.s32 %v3764_v21, %v3760_v18  ;;  %v3839_v8 = vshll.u32 %v21697_v16, %v3827_v48 }
 0x130   :  { %v3840_v41 = vshrl.u32 %v21706_v49, %v14507_v19  ;;  %v3842_v30 = vshll.u32 %v21706_v49, %v3827_v48  ;;  %v3843_v14 = vshrl.u32 %v21707_v12, %v14507_v19  ;;  %v3741_v1 = vmul.u32 %v3737_v7, %v3735_v46 }
 0x131   :  { %v12506_v43 = vadd.s32 4294967169, %v854_v9  ;;  %v3747_v0 = vsel %vm3746_vm15, 1, %v21699_v39  ;;  %v3763_v31 = vmul.u32 %v3759_v45, %v3735_v46  ;;  %v3830_v24 = vshll.u32 %v21702_v17, %v3827_v48 }
 0x132   :  { %v3831_v18 = vshrl.u32 %v21708_v33, %v14507_v19  ;;  %v3833_v21 = vshll.u32 %v21708_v33, %v3827_v48  ;;  %v3834_v44 = vshrl.u32 %v21698_v36, %v14507_v19  ;;  %vm14542_vm2 = vc.u32 %v3748_v42, %v3744_v11 }
 0x133   :  { %v860_v53 = vadd.s32 1, %v12506_v43  ;;  %v3769_v7 = vsel %vm14523_vm0, 1, %v21699_v39  ;;  %v3836_v45 = vshll.u32 %v21698_v36, %v3827_v48  ;;  %v3837_v46 = vshrl.u32 %v21697_v16, %v14507_v19 }
 0x134   :  { %v21724_v9 = vshll.u32 %v14497_v38, 16  ;;  %v3841_v56 = vor.u32 %v3840_v41, %v3839_v8  ;;  %v3844_v28 = vor.u32 %v3843_v14, %v3842_v30  ;;  %v2967_v43 = vadd.s32 536870912, %v14515_v20 }
 0x135   :  { %vm861_vm3 = vcmp.gt.s32.totalorder %v860_v53, 0  ;;  %v3821_v42 = vor.u32 8388608, %v3820_v10  ;;  %vm3848_vm5 = vcmp.lt.s32.totalorder %v14519_v62, 4  ;;  %v3749_v27 = vadd.s32 %v3747_v0, %v3741_v1 }
 0x136   :  { %vm3772_vm12 = vc.u32 %v14527_v47, %v21724_v9  ;;  %v862_v11 = vsel %vm861_vm3, %v860_v53, 0  ;;  %v3771_v22 = vadd.s32 %v3769_v7, %v3763_v31  ;;  %v14557_v4 = vor.u32 %v3831_v18, %v3830_v24 }
 0x137   :  { %v14559_v48 = vor.u32 %v3834_v44, %v3833_v21  ;;  %v3751_v58 = vsel %vm14542_vm2, 1, %v21699_v39  ;;  %v3773_v8 = vsel %vm3772_vm12, 1, %v21699_v39  ;;  %v14565_v14 = vor.u32 %v3837_v46, %v3836_v45 }
 0x138   :  { %vm3845_vm6 = vcmp.lt.s32.totalorder %v14519_v62, 1  ;;  %vm3847_vm7 = vcmp.lt.s32.totalorder %v14519_v62, 3  ;;  %v3854_v53 = vsel %vm3848_vm5, %v3841_v56, 920167782  ;;  %v3858_v10 = vsel %vm3848_vm5, %v3844_v28, 1326507024 }
 0x139   :  { %v864_v44 = vand.u32 31, %v862_v11  ;;  %v3701_v1 = vshrl.u32 %v21702_v17, %v14307_v52  ;;  %v3722_v34 = vsel %vm3720_vm4, %v14366_v61, 2102212464  ;;  %v3743_v41 = vshrl.u32 %v14474_v5, 16 }
 0x13a   :  { %v3765_v30 = vshrl.u32 %v14481_v26, 16  ;;  %v3753_v0 = vadd.s32 %v3751_v58, %v3749_v27  ;;  %v3775_v31 = vadd.s32 %v3773_v8, %v3771_v22  ;;  %vm3846_vm10 = vcmp.lt.s32.totalorder %v14519_v62, 2 }
 0x13b   :  { %v3853_v28 = vsel %vm3845_vm6, %v14557_v4, %v14559_v48  ;;  %v3855_v52 = vsel %vm3847_vm7, %v14565_v14, %v3854_v53  ;;  %v3857_v61 = vsel %vm3845_vm6, %v14559_v48, %v14565_v14  ;;  %v3859_v58 = vsel %vm3847_vm7, %v3841_v56, %v3858_v10 }
 0x13c   :  { %v14594_v22 = vshll.u32 %v3821_v42, 8  ;;  %v21725_v5 = vand.u32 2147483647, %v14477_v29  ;;  %v21726_v26 = vcvt.s32.f32 %v14455_v32  ;;  %v21727_v18 = vshll.u32 %v14251_v3, %v14461_v2 }
 0x13d   :  { %v14609_v45 = vsub.s32 32, %v864_v44  ;;  %v2846_v56 = vclz %v14513_v63  ;;  %v14612_v46 = vshrl.u32 %v2967_v43, 30  ;;  %v3721_v32 = vsel %vm3717_vm8, %v3701_v1, %v14374_v35 }
 0x13e   :  { %v14600_v24 = vmul.f32 %v21726_v26, %v21725_v5  ;;  %v14606_v21 = vor.u32 %v14503_v50, %v21727_v18  ;;  %v3723_v29 = vsel %vm3719_vm13, %v14364_v23, %v3722_v34  ;;  %v3745_v3 = vshrl.u32 %v14494_v15, 16 }
 0x13f   :  { %21728 = vst [vmem:[#allocation31_spill] sm:$0xff] %v14612_v46  ;;  %v3767_v2 = vshrl.u32 %v14497_v38, 16  ;;  %v14624_v50 = vsel %vm3846_vm10, %v3853_v28, %v3855_v52  ;;  %v14628_v63 = vsel %vm3846_vm10, %v3857_v61, %v3859_v58  ;;  %v3754_v9 = vadd.s32 %v3753_v0, %v3743_v41 }
 0x140   :  { %v3776_v43 = vadd.s32 %v3775_v31, %v3765_v30  ;;  %v3862_v35 = vand.u32 65535, %v14594_v22  ;;  %v14632_v42 = vshrl.u32 %v14594_v22, 16  ;;  %v876_v23 = vshll.u32 %v21697_v16, %v864_v44 }
 0x141   :  { %v877_v15 = vshrl.u32 %v21706_v49, %v14609_v45  ;;  %v879_v27 = vshll.u32 %v21706_v49, %v864_v44  ;;  %v880_v8 = vshrl.u32 %v21707_v12, %v14609_v45  ;;  %v21298_v53 = vshrl.u32 %v14628_v63, 16 }
 0x142   :  { %v3887_v10 = vshrl.u32 %v14624_v50, 16  ;;  %v14643_v34 = vshrl.u32 %v862_v11, 5  ;;  %v3864_v41 = vand.u32 65535, %v14628_v63  ;;  %v3886_v30 = vand.u32 65535, %v14624_v50 }
 0x143   :  { %v867_v0 = vshll.u32 %v21702_v17, %v864_v44  ;;  %v870_v31 = vshll.u32 %v21708_v33, %v864_v44  ;;  %v868_v28 = vshrl.u32 %v21708_v33, %v14609_v45  ;;  %v871_v52 = vshrl.u32 %v21698_v36, %v14609_v45 }
 0x144   :  { %v873_v61 = vshll.u32 %v21698_v36, %v864_v44  ;;  %v874_v11 = vshrl.u32 %v21697_v16, %v14609_v45  ;;  %v14656_v58 = vadd.s32 %v3754_v9, %v3745_v3  ;;  %v21730_v5 = vshll.u32 %v14497_v38, 16 }
 0x145   :  { %v878_v18 = vor.u32 %v877_v15, %v876_v23  ;;  %v881_v50 = vor.u32 %v880_v8, %v879_v27  ;;  %v14665_v7 = vmul.u32 %v21298_v53, %v3862_v35  ;;  %v14667_v1 = vmul.u32 %v3887_v10, %v3862_v35 }
 0x146   :  { %21729 = vst [vmem:[#allocation32_spill] sm:$0xff] %v14656_v58  ;;  %v14661_v26 = vadd.s32 %v14527_v47, %v21730_v5  ;;  %v21732_v44 = vand.u32 2147483647, %v14486_v13  ;;  %vm885_vm4 = vcmp.lt.s32.totalorder %v14643_v34, 4  ;;  %v3777_v3 = vadd.s32 %v3776_v43, %v3767_v2 }
 0x147   :  { %v3888_v9 = vmul.u32 %v3886_v30, %v3862_v35  ;;  %v14673_v38 = vmul.u32 %v3886_v30, %v14632_v42  ;;  %v14676_v47 = vunpack.i.h.bf16 %v14465_v57  ;;  %v3866_v23 = vmul.u32 %v3864_v41, %v3862_v35 }
 0x148   :  { %21731 = vst [vmem:[#allocation33_spill] sm:$0xff] %v14661_v26  ;;  %v857_v36 = vand.u32 8388607, %v21732_v44  ;;  %v14678_v15 = vor.u32 %v868_v28, %v867_v0  ;;  %v14680_v27 = vor.u32 %v871_v52, %v870_v31  ;;  %v14682_v8 = vor.u32 %v874_v11, %v873_v61 }
 0x149   :  { %21733 = vst [vmem:[#allocation34_spill] sm:$0xff] %v14676_v47  ;;  %vm882_vm8 = vcmp.lt.s32.totalorder %v14643_v34, 1  ;;  %vm884_vm13 = vcmp.lt.s32.totalorder %v14643_v34, 3  ;;  %v891_v2 = vsel %vm885_vm4, %v878_v18, 920167782  ;;  %v14691_v57 = vmul.u32 %v3864_v41, %v14632_v42 }
 0x14a   :  { %v895_v43 = vsel %vm885_vm4, %v881_v50, 1326507024  ;;  %v3870_v35 = vshll.u32 %v14665_v7, 16  ;;  %v3892_v30 = vshll.u32 %v14667_v1, 16  ;;  %v858_v0 = vor.u32 8388608, %v857_v36 }
 0x14b   :  { %v12543_v31 = vadd.s32 4294967294, %v2846_v56  ;;  %v2969_v28 = vshll.u32 %v14612_v46, 30  ;;  %vm883_vm15 = vcmp.lt.s32.totalorder %v14643_v34, 2  ;;  %v981_v52 = vand.u32 2139095040, %v14676_v47 }
 0x14c   :  { %v890_v61 = vsel %vm882_vm8, %v14678_v15, %v14680_v27  ;;  %v892_v41 = vsel %vm884_vm13, %v14682_v8, %v891_v2  ;;  %v894_v36 = vsel %vm882_vm8, %v14680_v27, %v14682_v8  ;;  %v896_v56 = vsel %vm884_vm13, %v878_v18, %v895_v43 }
 0x14d   :  { %v3724_v11 = vsel %vm3718_vm14, %v3721_v32, %v3723_v29  ;;  %vm3780_vm0 = vc.u32 %v14656_v58, %v14661_v26  ;;  %v3781_v5 = vadd.s32 1, %v3777_v3  ;;  %v3872_v44 = vshll.u32 %v14691_v57, 16 }
 0x14e   :  { %vm3874_vm2 = vc.u32 %v3866_v23, %v3870_v35  ;;  %vm3896_vm12 = vc.u32 %v3888_v9, %v3892_v30  ;;  %v14717_v2 = vshll.u32 %v858_v0, 8  ;;  %v3876_v53 = vadd.s32 %v3870_v35, %v3866_v23 }
 0x14f   :  { %v14719_v46 = vadd.s32 %v3892_v30, %v3888_v9  ;;  %v14723_v18 = vsel %vm883_vm15, %v890_v61, %v892_v41  ;;  %v14727_v51 = vsel %vm883_vm15, %v894_v36, %v896_v56  ;;  %v21735_v32 = vshll.u32 %v14505_v40, 23 }
 0x150   :  { %21734 = vst [vmem:[#allocation35_spill] sm:$0xff] %v14717_v2  ;;  %v3778_v43 = vmul.u32 %v14409_v25, %v3724_v11  ;;  %v3891_v0 = vmul.u32 %v3887_v10, %v14632_v42  ;;  %v982_v50 = vshrl.u32 %v981_v52, 23  ;;  %vm12544_vm14 = vcmp.lt.s32.totalorder %v12543_v31, 0 }
 0x151   :  { %v14731_v29 = vor.u32 4788187, %v21735_v32  ;;  %v3782_v9 = vsel %vm3780_vm0, %v3781_v5, %v3777_v3  ;;  %v21736_v23 = vshrl.u32 %v14628_v63, 16  ;;  %v3897_v30 = vsel %vm3896_vm12, 1, %v21699_v39 }
 0x152   :  { %v3875_v40 = vsel %vm3874_vm2, 1, %v21699_v39  ;;  %v899_v61 = vand.u32 65535, %v14717_v2  ;;  %v902_v25 = vshrl.u32 %v14727_v51, 16  ;;  %v924_v10 = vshrl.u32 %v14723_v18, 16 }
 0x153   :  { %v3869_v35 = vmul.u32 %v21736_v23, %v14632_v42  ;;  %v14748_v41 = vsub.s32 %v14515_v20, %v2969_v28  ;;  %vm3878_vm3 = vc.u32 %v3876_v53, %v3872_v44  ;;  %v21737_v3 = vshll.u32 %v14673_v38, 16 }
 0x154   :  { %v14753_v63 = vsel %vm12544_vm14, 0, %v12543_v31  ;;  %v14755_v42 = vadd.s32 %v3782_v9, %v3778_v43  ;;  %v3899_v36 = vadd.s32 %v3897_v30, %v3891_v0  ;;  %v12509_v56 = vadd.s32 4294967169, %v982_v50 }
 0x155   :  { %vm3900_vm0 = vc.u32 %v14719_v46, %v21737_v3  ;;  %v3877_v11 = vadd.s32 %v3875_v40, %v3869_v35  ;;  %v900_v5 = vshrl.u32 %v14717_v2, 16  ;;  %v901_v32 = vand.u32 65535, %v14727_v51 }
 0x156   :  { %v923_v23 = vand.u32 65535, %v14723_v18  ;;  %v3879_v20 = vsel %vm3878_vm3, 1, %v21699_v39  ;;  %v3901_v53 = vsel %vm3900_vm0, 1, %v21699_v39  ;;  %v14762_v28 = vmul.u32 %v902_v25, %v899_v61 }
 0x157   :  { %v14764_v44 = vmul.u32 %v924_v10, %v899_v61  ;;  %v2854_v43 = vsub.s32 4294967266, %v14753_v63  ;;  %vm2971_vm2 = vcmp.lt.s32.totalorder %v14748_v41, 0  ;;  %v2972_v50 = vsub.s32 0, %v14748_v41 }
 0x158   :  { %v3784_v51 = vadd.s32 536870912, %v14755_v42  ;;  %v3871_v18 = vshrl.u32 %v14665_v7, 16  ;;  %v3893_v0 = vshrl.u32 %v14667_v1, 16  ;;  %v988_v9 = vadd.s32 1, %v12509_v56 }
 0x159   :  { %v3881_v35 = vadd.s32 %v3879_v20, %v3877_v11  ;;  %v3903_v30 = vadd.s32 %v3901_v53, %v3899_v36  ;;  %v14773_v40 = vmul.u32 %v901_v32, %v900_v5  ;;  %v14775_v3 = vmul.u32 %v923_v23, %v900_v5 }
 0x15a   :  { %v903_v52 = vmul.u32 %v901_v32, %v899_v61  ;;  %v907_v31 = vshll.u32 %v14762_v28, 16  ;;  %v925_v13 = vmul.u32 %v923_v23, %v899_v61  ;;  %v929_v26 = vshll.u32 %v14764_v44, 16 }
 0x15b   :  { %v2855_v58 = vadd.s32 127, %v2854_v43  ;;  %v2973_v2 = vsel %vm2971_vm2, %v2972_v50, %v14748_v41  ;;  %v3829_v7 = vshrl.u32 %v21702_v17, %v14507_v19  ;;  %v3850_v1 = vsel %vm3848_vm5, %v14565_v14, 2102212464  ;;  %v104_v14 = vpop.permute.xlu0 %103 }
 0x15c   :  { %v14785_v36 = vshrl.u32 %v3784_v51, 30  ;;  %v3873_v56 = vshrl.u32 %v14691_v57, 16  ;;  %v3895_v11 = vshrl.u32 %v14673_v38, 16  ;;  %vm989_vm12 = vcmp.gt.s32.totalorder %v988_v9, 0 }
 0x15d   :  { %v21739_v61 = vand.u32 2147483647, %v13580_v60  ;;  %v21740_v32 = vmov 0  ;;  %v3882_v23 = vadd.s32 %v3881_v35, %v3871_v18  ;;  %v3904_v20 = vadd.s32 %v3903_v30, %v3893_v0 }
 0x15e   :  { %21738 = vst [vmem:[#allocation36_spill] sm:$0xff] %v14785_v36  ;;  %v909_v19 = vshll.u32 %v14773_v40, 16  ;;  %vm911_vm5 = vc.u32 %v903_v52, %v907_v31  ;;  %v913_v43 = vadd.s32 %v907_v31, %v903_v52  ;;  %vm933_vm3 = vc.u32 %v925_v13, %v929_v26 }
 0x15f   :  { %vm14791_vm14 = vcmp.le.f32.partialorder %v21739_v61, 0.7853982  ;;  %v14797_v57 = vadd.s32 %v929_v26, %v925_v13  ;;  %v2974_v50 = vclz %v2973_v2  ;;  %v3849_v51 = vsel %vm3845_vm6, %v3829_v7, %v14557_v4 }
 0x160   :  { %v21741_v32 = vsel %vm14791_vm14, 4294967295, %v21740_v32  ;;  %v3851_v18 = vsel %vm3847_vm7, %v14559_v48, %v3850_v1  ;;  %v990_v0 = vsel %vm989_vm12, %v988_v9, 0  ;;  %v3786_v35 = vshll.u32 %v14785_v36, 30 }
 0x161   :  { %21742 = vst [vmem:[#allocation37_spill] sm:$0xff] %v21741_v32  ;;  %v906_v30 = vmul.u32 %v902_v25, %v900_v5  ;;  %v928_v61 = vmul.u32 %v924_v10, %v900_v5  ;;  %v184_v53 = vmul.f32 %v14431_v59, %v104_v14  ;;  %v21743_v52 = vshll.u32 %v14673_v38, 16 }
 0x162   :  { %v3905_v26 = vadd.s32 %v3904_v20, %v3895_v11  ;;  %v912_v2 = vsel %vm911_vm5, 1, %v21699_v39  ;;  %v934_v4 = vsel %vm933_vm3, 1, %v21699_v39  ;;  %v14814_v31 = vadd.s32 %v3882_v23, %v3873_v56 }
 0x163   :  { %v14810_v13 = vadd.s32 %v14719_v46, %v21743_v52  ;;  %vm915_vm6 = vc.u32 %v913_v43, %v909_v19  ;;  %v21744_v48 = vshll.u32 %v14775_v3, 16  ;;  %v992_v25 = vand.u32 31, %v990_v0 }
 0x164   :  { %v2834_v10 = vadd.s32 %v14280_v54, %v14275_v55  ;;  %v2850_v38 = vsub.s32 32, %v14753_v63  ;;  %v2856_v46 = vshll.u32 %v2855_v58, 23  ;;  %v14822_v5 = vadd.s32 4294967294, %v2974_v50 }
 0x165   :  { %vm937_vm7 = vc.u32 %v14797_v57, %v21744_v48  ;;  %v3852_v9 = vsel %vm3846_vm10, %v3849_v51, %v3851_v18  ;;  %v914_v7 = vadd.s32 %v912_v2, %v906_v30  ;;  %v936_v1 = vadd.s32 %v934_v4, %v928_v61 }
 0x166   :  { %v14826_v56 = vpack.c.bf16 %v184_v53, %v184_v53  ;;  %v14829_v11 = vsub.s32 %v14755_v42, %v3786_v35  ;;  %v3909_v23 = vadd.s32 1, %v3905_v26  ;;  %v916_v20 = vsel %vm915_vm6, 1, %v21699_v39 }
 0x167   :  { %v938_v55 = vsel %vm937_vm7, 1, %v21699_v39  ;;  %v14837_v54 = vsel %vm14791_vm14, %v13580_v60, %v14453_v6  ;;  %vm3908_vm10 = vc.u32 %v14814_v31, %v14810_v13  ;;  %v14842_v58 = vsub.s32 32, %v992_v25  ;;  %v174_v60 = vpop.permute.xlu2 %173 }
 0x168   :  { %21745 = vst [vmem:[#allocation38_spill] sm:$0xff] %v14837_v54  ;;  %v21746_v42 = vand.u32 2147483647, %v14731_v29  ;;  %v21747_v19 = vcvt.s32.f32 %v14606_v21  ;;  %v2851_v14 = vshll.u32 %v14468_v37, %v14753_v63  ;;  %v14852_v43 = vshrl.u32 %v2834_v10, %v2850_v38 }
 0x169   :  { %v21306_v6 = vand.u32 2147483647, %v14676_v47  ;;  %v3906_v50 = vmul.u32 %v14594_v22, %v3852_v9  ;;  %v918_v51 = vadd.s32 %v916_v20, %v914_v7  ;;  %v940_v18 = vadd.s32 %v938_v55, %v936_v1 }
 0x16a   :  { %v14848_v53 = vmul.f32 %v21747_v19, %v21746_v42  ;;  %v14857_v35 = vunpack.i.l.bf16 %v14826_v56  ;;  %v14859_v30 = vor.u32 4788187, %v2856_v46  ;;  %vm12547_vm0 = vcmp.lt.s32.totalorder %v14822_v5, 0 }
 0x16b   :  { %v3789_v21 = vsub.s32 0, %v14829_v11  ;;  %v3910_v29 = vsel %vm3908_vm10, %v3909_v23, %v3905_v26  ;;  %v908_v61 = vshrl.u32 %v14762_v28, 16  ;;  %v930_v52 = vshrl.u32 %v14764_v44, 16 }
 0x16c   :  { %21748 = vst [vmem:[#allocation39_spill] sm:$0xff] %v14857_v35  ;;  %v1007_v2 = vshll.u32 %v21706_v49, %v992_v25  ;;  %v1008_v22 = vshrl.u32 %v21707_v12, %v14842_v58  ;;  %v985_v4 = vand.u32 8388607, %v21306_v6  ;;  %v14870_v48 = vshrl.u32 %v990_v0, 5 }
 0x16d   :  { %v1004_v10 = vshll.u32 %v21697_v16, %v992_v25  ;;  %v1005_v38 = vshrl.u32 %v21706_v49, %v14842_v58  ;;  %v14875_v26 = vadd.s32 %v3910_v29, %v3906_v50  ;;  %v919_v28 = vadd.s32 %v918_v51, %v908_v61 }
 0x16e   :  { %v941_v46 = vadd.s32 %v940_v18, %v930_v52  ;;  %v223_v44 = vand.u32 2139095040, %v14857_v35  ;;  %v998_v9 = vshll.u32 %v21708_v33, %v992_v25  ;;  %v21749_v7 = vmov 2131351028  }
 0x16f   :  { %v999_v1 = vshrl.u32 %v21749_v7, %v14842_v58  ;;  %v1001_v23 = vshll.u32 %v21749_v7, %v992_v25  ;;  %v1002_v0 = vshrl.u32 %v21697_v16, %v14842_v58  ;;  %v932_v20 = vshrl.u32 %v14775_v3, 16 }
 0x170   :  { %v995_v55 = vshll.u32 %v21702_v17, %v992_v25  ;;  %v996_v42 = vshrl.u32 %v21708_v33, %v14842_v58  ;;  %v1009_v19 = vor.u32 %v1008_v22, %v1007_v2  ;;  %v866_v50 = vshrl.u32 %v21702_v17, %v14609_v45 }
 0x171   :  { %v910_v51 = vshrl.u32 %v14773_v40, 16  ;;  %v1006_v18 = vor.u32 %v1005_v38, %v1004_v10  ;;  %vm1013_vm2 = vcmp.lt.s32.totalorder %v14870_v48, 4  ;;  %v887_v29 = vsel %vm885_vm4, %v14682_v8, 2102212464  ;;  %v21751_v40 = vld [vmem:[#allocation15_spill] sm:$0xff] }
 0x172   :  { %v942_v61 = vadd.s32 %v941_v46, %v932_v20  ;;  %v986_v52 = vor.u32 8388608, %v985_v4  ;;  %v224_v6 = vshrl.u32 %v223_v44, 23  ;;  %v3912_v25 = vadd.s32 536870912, %v14875_v26  ;;  %v21754_v44 = vld [vmem:[#allocation16_spill] sm:$0xff] }
 0x173   :  { %v14896_v62 = vadd.s32 %v919_v28, %v910_v51  ;;  %v14898_v2 = vor.u32 %v999_v1, %v998_v9  ;;  %v14900_v22 = vor.u32 %v1002_v0, %v1001_v23  ;;  %v14902_v45 = vor.u32 %v996_v42, %v995_v55 }
 0x174   :  { %vm1010_vm12 = vcmp.lt.s32.totalorder %v14870_v48, 1  ;;  %vm1012_vm5 = vcmp.lt.s32.totalorder %v14870_v48, 3  ;;  %v1023_v8 = vsel %vm1013_vm2, %v1009_v19, 1326507024  ;;  %vm21334_vm4 = vcmp.lt.s32.totalorder %v21751_v40, 0 }
 0x175   :  { %21750 = vst [vmem:[#allocation40_spill] sm:$0xff] %v14896_v62  ;;  %v886_v4 = vsel %vm882_vm8, %v866_v50, %v14678_v15  ;;  %v888_v10 = vsel %vm884_vm13, %v14680_v27, %v887_v29  ;;  %v21752_v38 = vshll.u32 %v14775_v3, 16  ;;  %v1019_v46 = vsel %vm1013_vm2, %v1006_v18, 920167782 }
 0x176   :  { %vm21333_vm3 = vcmp.lt.s32.totalorder %v21754_v44, 0  ;;  %v2977_v9 = vsel %vm12547_vm0, 0, %v14822_v5  ;;  %vm3788_vm8 = vcmp.lt.s32.totalorder %v14829_v11, 0  ;;  %v946_v15 = vadd.s32 1, %v942_v61 }
 0x177   :  { %v14918_v28 = vadd.s32 %v14797_v57, %v21752_v38  ;;  %v12494_v1 = vadd.s32 4294967169, %v224_v6  ;;  %vm1011_vm6 = vcmp.lt.s32.totalorder %v14870_v48, 2  ;;  %v1022_v27 = vsel %vm1010_vm12, %v14898_v2, %v14900_v22 }
 0x178   :  { %v1024_v3 = vsel %vm1012_vm5, %v1006_v18, %v1023_v8  ;;  %v14936_v57 = vshrl.u32 %v3912_v25, 30  ;;  %v889_v5 = vsel %vm883_vm15, %v886_v4, %v888_v10  ;;  %v1018_v6 = vsel %vm1010_vm12, %v14902_v45, %v14898_v2  ;;  %v21765_v8 = vld [vmem:[#allocation29_spill] sm:$0xff]  ;;  %v21767_v10 = vld [vmem:[#allocation27_spill] sm:$0xff] }
 0x179   :  { %21753 = vst [vmem:[#allocation41_spill] sm:$0xff] %v14918_v28  ;;  %vm945_vm13 = vc.u32 %v14896_v62, %v14918_v28  ;;  %v1020_v23 = vsel %vm1012_vm5, %v14900_v22, %v1019_v46  ;;  %v21756_v0 = vand.u32 2147483647, %v21751_v40  ;;  %v21757_v20 = vmov 0 }
 0x17a   :  { %21755 = vst [vmem:[#allocation42_spill] sm:$0xff] %v14936_v57  ;;  %v2045_v55 = vxor.u32 2147483648, %v14848_v53  ;;  %v2853_v34 = vor.u32 %v14852_v43, %v2851_v14  ;;  %v3790_v42 = vsel %vm3788_vm8, %v3789_v21, %v14829_v11  ;;  %v14959_v19 = vshll.u32 %v986_v52, 8  ;;  %v21764_v43 = vld [vmem:[#allocation35_spill] sm:$0xff] }
 0x17b   :  { %vm14949_vm7 = vcmp.le.f32.partialorder %v21756_v0, 0.7853982  ;;  %v21760_v50 = vand.u32 2147483647, %v21754_v44  ;;  %v21761_v51 = vmov 0  ;;  %v947_v29 = vsel %vm945_vm13, %v946_v15, %v942_v61 }
 0x17c   :  { %v21758_v20 = vsel %vm14949_vm7, 4294967295, %v21757_v20  ;;  %v2858_v18 = vand.u32 2147483647, %v14859_v30  ;;  %v14970_v25 = vsel %vm1011_vm6, %v1022_v27, %v1024_v3  ;;  %v230_v37 = vadd.s32 1, %v12494_v1  ;;  %v21768_v30 = vld [vmem:[#allocation28_spill] sm:$0xff] }
 0x17d   :  { %21759 = vst [vmem:[#allocation43_spill] sm:$0xff] %v21758_v20  ;;  %vm14963_vm15 = vcmp.le.f32.partialorder %v21760_v50, 0.7853982  ;;  %v2978_v63 = vsub.s32 32, %v2977_v9  ;;  %v2982_v14 = vsub.s32 4294967266, %v2977_v9  ;;  %v943_v21 = vmul.u32 %v21764_v43, %v889_v5 }
 0x17e   :  { %v21762_v51 = vsel %vm14963_vm15, 4294967295, %v21761_v51  ;;  %v14975_v52 = vsel %vm1011_vm6, %v1018_v6, %v1020_v23  ;;  %v14979_v4 = vmul.f32 %v21765_v8, %v21765_v8  ;;  %v2962_v61 = vadd.s32 %v21768_v30, %v21767_v10 }
 0x17f   :  { %21763 = vst [vmem:[#allocation44_spill] sm:$0xff] %v21762_v51  ;;  %v3791_v38 = vclz %v3790_v42  ;;  %v3914_v46 = vshll.u32 %v14936_v57, 30  ;;  %v2860_v15 = vcvt.s32.f32 %v2853_v34  ;;  %v14984_v1 = vadd.s32 %v947_v29, %v943_v21  ;;  %v21782_v51 = vld [vmem:[#allocation32_spill] sm:$0xff] }
 0x180   :  { %21766 = vst [vmem:[#allocation35_spill] sm:$0xff] %v14979_v4  ;;  %v1027_v27 = vand.u32 65535, %v14959_v19  ;;  %v1030_v3 = vshrl.u32 %v14970_v25, 16  ;;  %v14990_v5 = vmul.f32 %v14837_v54, %v14837_v54  ;;  %v21770_v6 = vxor.u32 2147483648, %v14600_v24 }
 0x181   :  { %v1052_v0 = vshrl.u32 %v14975_v52, 16  ;;  %vm231_vm10 = vcmp.gt.s32.totalorder %v230_v37, 0  ;;  %v2046_v34 = vsel %vm21333_vm3, %v2045_v55, %v14848_v53  ;;  %v2861_v42 = vmul.f32 %v2860_v15, %v2858_v18  ;;  %v21773_v55 = vld [vmem:[#allocation18_spill] sm:$0xff] }
 0x182   :  { %21769 = vst [vmem:[#allocation27_spill] sm:$0xff] %v14990_v5  ;;  %v1918_v23 = vsel %vm21334_vm4, %v21770_v6, %v14600_v24  ;;  %v2980_v50 = vshrl.u32 %v2962_v61, %v2978_v63  ;;  %v2983_v29 = vadd.s32 127, %v2982_v14  ;;  %v2979_v43 = vshll.u32 %v14748_v41, %v2977_v9 }
 0x183   :  { %v12561_v21 = vadd.s32 4294967294, %v3791_v38  ;;  %v15003_v10 = vsub.s32 %v14875_v26, %v3914_v46  ;;  %v1028_v30 = vshrl.u32 %v14959_v19, 16  ;;  %v949_v24 = vadd.s32 536870912, %v14984_v1 }
 0x184   :  { %v1029_v6 = vand.u32 65535, %v14970_v25  ;;  %v15008_v57 = vmul.u32 %v1030_v3, %v1027_v27  ;;  %v232_v36 = vsel %vm231_vm10, %v230_v37, 0  ;;  %v15013_v53 = vsel %vm14949_vm7, %v21751_v40, %v1918_v23 }
 0x185   :  { %21771 = vst [vmem:[#allocation28_spill] sm:$0xff] %v15003_v10  ;;  %vm21318_vm0 = vcmp.lt.s32.totalorder %v21773_v55, 0  ;;  %v1051_v41 = vand.u32 65535, %v14975_v52  ;;  %v15017_v26 = vmul.u32 %v1052_v0, %v1027_v27  ;;  %v15022_v9 = vsel %vm14963_vm15, %v21754_v44, %v2046_v34 }
 0x186   :  { %21772 = vst [vmem:[#allocation45_spill] sm:$0xff] %v15013_v53  ;;  %v2862_v18 = vxor.u32 2147483648, %v2861_v42  ;;  %v15024_v25 = vor.u32 %v2980_v50, %v2979_v43  ;;  %v2984_v37 = vshll.u32 %v2983_v29, 23  ;;  %vm12562_vm8 = vcmp.lt.s32.totalorder %v12561_v21, 0 }
 0x187   :  { %21774 = vst [vmem:[#allocation46_spill] sm:$0xff] %v15022_v9  ;;  %vm3916_vm13 = vcmp.lt.s32.totalorder %v15003_v10, 0  ;;  %v3917_v63 = vsub.s32 0, %v15003_v10  ;;  %v234_v14 = vand.u32 31, %v232_v36  ;;  %v15028_v61 = vshrl.u32 %v949_v24, 30 }
 0x188   :  { %21775 = vst [vmem:[#allocation47_spill] sm:$0xff] %v15024_v25  ;;  %v1031_v52 = vmul.u32 %v1029_v6, %v1027_v27  ;;  %v15030_v38 = vmul.u32 %v1029_v6, %v1028_v30  ;;  %v1035_v46 = vshll.u32 %v15008_v57, 16  ;;  %v15035_v15 = vmul.f32 %v15013_v53, %v15013_v53 }
 0x189   :  { %21776 = vst [vmem:[#allocation48_spill] sm:$0xff] %v15028_v61  ;;  %v1053_v23 = vmul.u32 %v1051_v41, %v1027_v27  ;;  %v15037_v34 = vmul.u32 %v1051_v41, %v1028_v30  ;;  %v1057_v50 = vshll.u32 %v15017_v26, 16  ;;  %v15042_v29 = vmul.f32 %v15022_v9, %v15022_v9 }
 0x18a   :  { %21777 = vst [vmem:[#allocation49_spill] sm:$0xff] %v15035_v15  ;;  %v15046_v43 = vsel %vm21318_vm0, %v2862_v18, %v2861_v42  ;;  %v15048_v24 = vor.u32 4788187, %v2984_v37  ;;  %v15051_v6 = vunpack.i.h.bf16 %v14826_v56  ;;  %v15055_v27 = vsel %vm12562_vm8, 0, %v12561_v21  ;;  %v21783_v42 = vld [vmem:[#allocation33_spill] sm:$0xff] }
 0x18b   :  { %21778 = vst [vmem:[#allocation50_spill] sm:$0xff] %v15042_v29  ;;  %v15060_v41 = vsel %vm3916_vm13, %v3917_v63, %v15003_v10  ;;  %v15062_v9 = vsub.s32 32, %v234_v14  ;;  %v15066_v18 = vadd.s32 %v21783_v42, %v21782_v51  ;;  %v951_v37 = vshll.u32 %v15028_v61, 30 }
 0x18c   :  { %21779 = vst [vmem:[#allocation51_spill] sm:$0xff] %v15046_v43  ;;  %v1037_v56 = vshll.u32 %v15030_v38, 16  ;;  %v1041_v20 = vadd.s32 %v1035_v46, %v1031_v52  ;;  %vm1039_vm10 = vc.u32 %v1031_v52, %v1035_v46  ;;  %v21319_v21 = vshll.u32 %v15037_v34, 16 }
 0x18d   :  { %21780 = vst [vmem:[#allocation52_spill] sm:$0xff] %v15048_v24  ;;  %vm1061_vm8 = vc.u32 %v1053_v23, %v1057_v50  ;;  %v15071_v53 = vadd.s32 %v1057_v50, %v1053_v23  ;;  %v3799_v54 = vsub.s32 4294967266, %v15055_v27  ;;  %v3919_v29 = vclz %v15060_v41 }
 0x18e   :  { %21781 = vst [vmem:[#allocation53_spill] sm:$0xff] %v15051_v6  ;;  %v351_v51 = vand.u32 2139095040, %v15051_v6  ;;  %v1034_v42 = vmul.u32 %v1030_v3, %v1028_v30  ;;  %v1056_v15 = vmul.u32 %v1052_v0, %v1028_v30  ;;  %v247_v52 = vshrl.u32 %v21706_v49, %v15062_v9 }
 0x18f   :  { %v15081_v46 = vsub.s32 %v14984_v1, %v951_v37  ;;  %v1040_v23 = vsel %vm1039_vm10, 1, %v21699_v39  ;;  %vm15084_vm13 = vc.u32 %v1041_v20, %v1037_v56  ;;  %v1062_v41 = vsel %vm1061_vm8, 1, %v21699_v39 }
 0x190   :  { %vm1065_vm0 = vc.u32 %v15071_v53, %v21319_v21  ;;  %v246_v3 = vshll.u32 %v21697_v16, %v234_v14  ;;  %v250_v0 = vshrl.u32 %v21707_v12, %v15062_v9  ;;  %v352_v30 = vshrl.u32 %v351_v51, 23 }
 0x191   :  { %21784 = vst [vmem:[#allocation32_spill] sm:$0xff] %v15081_v46  ;;  %v15095_v1 = vshrl.u32 %v232_v36, 5  ;;  %v238_v20 = vshrl.u32 %v21708_v33, %v15062_v9  ;;  %v241_v37 = vshrl.u32 %v21749_v7, %v15062_v9  ;;  %v244_v56 = vshrl.u32 %v21697_v16, %v15062_v9 }
 0x192   :  { %v1042_v63 = vadd.s32 %v1040_v23, %v1034_v42  ;;  %v1064_v8 = vadd.s32 %v1062_v41, %v1056_v15  ;;  %v248_v21 = vor.u32 %v247_v52, %v246_v3  ;;  %v249_v44 = vshll.u32 %v21706_v49, %v234_v14 }
 0x193   :  { %v1066_v40 = vsel %vm1065_vm0, 1, %v21699_v39  ;;  %v237_v51 = vshll.u32 %v21702_v17, %v234_v14  ;;  %v240_v36 = vshll.u32 %v21708_v33, %v234_v14  ;;  %v243_v32 = vshll.u32 %v21749_v7, %v234_v14 }
 0x194   :  { %v1044_v5 = vsel %vm15084_vm13, 1, %v21699_v39  ;;  %v21787_v4 = vand.u32 2147483647, %v14857_v35  ;;  %v251_v15 = vor.u32 %v250_v0, %v249_v44  ;;  %v12497_v52 = vadd.s32 4294967169, %v352_v30 }
 0x195   :  { %v15113_v23 = vor.u32 %v238_v20, %v237_v51  ;;  %v15115_v41 = vor.u32 %v241_v37, %v240_v36  ;;  %v15117_v3 = vor.u32 %v244_v56, %v243_v32  ;;  %vm255_vm0 = vcmp.lt.s32.totalorder %v15095_v1, 4 }
 0x196   :  { %v227_v42 = vand.u32 8388607, %v21787_v4  ;;  %v954_v14 = vsub.s32 0, %v15081_v46  ;;  %v1068_v61 = vadd.s32 %v1066_v40, %v1064_v8  ;;  %v261_v50 = vsel %vm255_vm0, %v248_v21, 920167782 }
 0x197   :  { %v198_v47 = vmul.f32 %v14431_v59, %v174_v60  ;;  %v3800_v35 = vadd.s32 127, %v3799_v54  ;;  %vm953_vm10 = vcmp.lt.s32.totalorder %v15081_v46, 0  ;;  %v1046_v44 = vadd.s32 %v1044_v5, %v1042_v63 }
 0x198   :  { %v1058_v4 = vshrl.u32 %v15017_v26, 16  ;;  %vm252_vm8 = vcmp.lt.s32.totalorder %v15095_v1, 1  ;;  %vm254_vm13 = vcmp.lt.s32.totalorder %v15095_v1, 3  ;;  %v265_v32 = vsel %vm255_vm0, %v251_v15, 1326507024 }
 0x199   :  { %v358_v0 = vadd.s32 1, %v12497_v52  ;;  %v1036_v40 = vshrl.u32 %v15008_v57, 16  ;;  %v228_v8 = vor.u32 8388608, %v227_v42  ;;  %v260_v60 = vsel %vm252_vm8, %v15113_v23, %v15115_v41 }
 0x19a   :  { %v262_v59 = vsel %vm254_vm13, %v15117_v3, %v261_v50  ;;  %v12564_v54 = vadd.s32 4294967294, %v3919_v29  ;;  %v955_v5 = vsel %vm953_vm10, %v954_v14, %v15081_v46  ;;  %v1069_v26 = vadd.s32 %v1068_v61, %v1058_v4 }
 0x19b   :  { %v15139_v63 = vpack.c.bf16 %v198_v47, %v198_v47  ;;  %v1047_v30 = vadd.s32 %v1046_v44, %v1036_v40  ;;  %vm253_vm3 = vcmp.lt.s32.totalorder %v15095_v1, 2  ;;  %v264_v57 = vsel %vm252_vm8, %v15115_v41, %v15117_v3 }
 0x19c   :  { %v266_v20 = vsel %vm254_vm13, %v248_v21, %v265_v32  ;;  %v994_v37 = vshrl.u32 %v21702_v17, %v14842_v58  ;;  %v1060_v29 = vshrl.u32 %v15037_v34, 16  ;;  %v263_v47 = vsel %vm253_vm3, %v260_v60, %v262_v59 }
 0x19d   :  { %vm359_vm10 = vcmp.gt.s32.totalorder %v358_v0, 0  ;;  %v956_v61 = vclz %v955_v5  ;;  %v1015_v56 = vsel %vm1013_vm2, %v14900_v22, 2102212464  ;;  %v1038_v51 = vshrl.u32 %v15030_v38, 16 }
 0x19e   :  { %v15157_v36 = vshll.u32 %v228_v8, 8  ;;  %v3796_v21 = vshll.u32 %v14829_v11, %v15055_v27  ;;  %v1070_v42 = vadd.s32 %v1069_v26, %v1060_v29  ;;  %v267_v58 = vsel %vm253_vm3, %v264_v57, %v266_v20 }
 0x19f   :  { %v15164_v15 = vunpack.i.l.bf16 %v15139_v63  ;;  %vm12565_vm4 = vcmp.lt.s32.totalorder %v12564_v54, 0  ;;  %v15166_v52 = vadd.s32 %v1047_v30, %v1038_v51  ;;  %v294_v14 = vshrl.u32 %v263_v47, 16 }
 0x1a0   :  { %v360_v50 = vsel %vm359_vm10, %v358_v0, 0  ;;  %v21790_v22 = vsub.s32 32, %v15055_v27  ;;  %v3801_v44 = vshll.u32 %v3800_v35, 23  ;;  %v1014_v11 = vsel %vm1010_vm12, %v994_v37, %v14902_v45 }
 0x1a1   :  { %21788 = vst [vmem:[#allocation33_spill] sm:$0xff] %v15164_v15  ;;  %v1016_v4 = vsel %vm1012_vm5, %v14898_v2, %v1015_v56  ;;  %v12507_v32 = vadd.s32 4294967294, %v956_v61  ;;  %v21791_v40 = vshll.u32 %v15037_v34, 16  ;;  %v269_v0 = vand.u32 65535, %v15157_v36 }
 0x1a2   :  { %21789 = vst [vmem:[#allocation54_spill] sm:$0xff] %v15166_v52  ;;  %v3797_v38 = vshrl.u32 %v15066_v18, %v21790_v22  ;;  %v272_v27 = vshrl.u32 %v267_v58, 16  ;;  %v15183_v60 = vsel %vm12565_vm4, 0, %v12564_v54  ;;  %v1074_v35 = vadd.s32 1, %v1070_v42 }
 0x1a3   :  { %v15180_v8 = vadd.s32 %v15071_v53, %v21791_v40  ;;  %v362_v18 = vand.u32 31, %v360_v50  ;;  %v4633_v59 = vand.u32 2139095040, %v15164_v15  ;;  %v271_v45 = vand.u32 65535, %v267_v58 }
 0x1a4   :  { %v293_v2 = vand.u32 65535, %v263_v47  ;;  %v15188_v5 = vmul.u32 %v294_v14, %v269_v0  ;;  %v15191_v53 = vor.u32 %v3797_v38, %v3796_v21  ;;  %v15195_v26 = vadd.s32 %v14810_v13, %v14814_v31 }
 0x1a5   :  { %21792 = vst [vmem:[#allocation55_spill] sm:$0xff] %v15180_v8  ;;  %vm1073_vm2 = vc.u32 %v15166_v52, %v15180_v8  ;;  %v1017_v54 = vsel %vm1011_vm6, %v1014_v11, %v1016_v4  ;;  %v15199_v30 = vor.u32 4788187, %v3801_v44  ;;  %vm12508_vm12 = vcmp.lt.s32.totalorder %v12507_v32, 0 }
 0x1a6   :  { %21793 = vst [vmem:[#allocation56_spill] sm:$0xff] %v15191_v53  ;;  %v270_v57 = vshrl.u32 %v15157_v36, 16  ;;  %v15202_v20 = vmul.u32 %v272_v27, %v269_v0  ;;  %v1075_v29 = vsel %vm1073_vm2, %v1074_v35, %v1070_v42  ;;  %v15205_v47 = vsub.s32 32, %v362_v18 }
 0x1a7   :  { %21794 = vst [vmem:[#allocation57_spill] sm:$0xff] %v15195_v26  ;;  %v4634_v61 = vshrl.u32 %v4633_v59, 23  ;;  %v1071_v56 = vmul.u32 %v14959_v19, %v1017_v54  ;;  %v299_v48 = vshll.u32 %v15188_v5, 16  ;;  %v15214_v21 = vsel %vm12508_vm12, 0, %v12507_v32 }
 0x1a8   :  { %21795 = vst [vmem:[#allocation58_spill] sm:$0xff] %v15199_v30  ;;  %v15208_v13 = vmul.u32 %v271_v45, %v270_v57  ;;  %v15210_v31 = vmul.u32 %v293_v2, %v270_v57  ;;  %v15218_v58 = vshrl.u32 %v21702_v17, %v15062_v9  ;;  %v21338_v42 = vand.u32 2147483647, %v15051_v6 }
 0x1a9   :  { %21796 = vst [vmem:[#allocation59_spill] sm:$0xff] %v15214_v21  ;;  %v15221_v22 = vadd.s32 %v1075_v29, %v1071_v56  ;;  %v15226_v19 = vsel %vm255_vm0, %v15117_v3, 2102212464  ;;  %v277_v38 = vshll.u32 %v15202_v20, 16  ;;  %v295_v44 = vmul.u32 %v293_v2, %v269_v0 }
 0x1aa   :  { %v273_v11 = vmul.u32 %v271_v45, %v269_v0  ;;  %v298_v4 = vmul.u32 %v294_v14, %v270_v57  ;;  %v378_v32 = vshrl.u32 %v21707_v12, %v15205_v47  ;;  %v12578_v40 = vadd.s32 4294967169, %v4634_v61 }
 0x1ab   :  { %21797 = vst [vmem:[#allocation60_spill] sm:$0xff] %v15221_v22  ;;  %v15231_v9 = vmul.u32 %v272_v27, %v270_v57  ;;  %vm303_vm5 = vc.u32 %v295_v44, %v299_v48  ;;  %v366_v3 = vshrl.u32 %v21708_v33, %v15205_v47  ;;  %v369_v54 = vshrl.u32 %v21749_v7, %v15205_v47 }
 0x1ac   :  { %v375_v14 = vshrl.u32 %v21706_v49, %v15205_v47  ;;  %v377_v0 = vshll.u32 %v21706_v49, %v362_v18  ;;  %vm15242_vm4 = vc.u32 %v273_v11, %v277_v38  ;;  %v15246_v27 = vshrl.u32 %v360_v50, 5 }
 0x1ad   :  { %v365_v2 = vshll.u32 %v21702_v17, %v362_v18  ;;  %v372_v57 = vshrl.u32 %v21697_v16, %v15205_v47  ;;  %v368_v29 = vshll.u32 %v21708_v33, %v362_v18  ;;  %v374_v61 = vshll.u32 %v21697_v16, %v362_v18 }
 0x1ae   :  { %v379_v56 = vor.u32 %v378_v32, %v377_v0  ;;  %v4640_v34 = vadd.s32 1, %v12578_v40  ;;  %v304_v37 = vsel %vm303_vm5, 1, %v21699_v39  ;;  %v355_v51 = vand.u32 8388607, %v21338_v42 }
 0x1af   :  { %v371_v59 = vshll.u32 %v21749_v7, %v362_v18  ;;  %v21339_v50 = vand.u32 2147483647, %v15164_v15  ;;  %v15258_v35 = vor.u32 %v366_v3, %v365_v2  ;;  %v15260_v8 = vor.u32 %v369_v54, %v368_v29 }
 0x1b0   :  { %v376_v52 = vor.u32 %v375_v14, %v374_v61  ;;  %vm4641_vm6 = vcmp.gt.s32.totalorder %v4640_v34, 0  ;;  %v283_v43 = vadd.s32 %v277_v38, %v273_v11  ;;  %vm383_vm0 = vcmp.lt.s32.totalorder %v15246_v27, 4 }
 0x1b1   :  { %v15262_v46 = vor.u32 %v372_v57, %v371_v59  ;;  %v4642_v32 = vsel %vm4641_vm6, %v4640_v34, 0  ;;  %v282_v40 = vsel %vm15242_vm4, 1, %v21699_v39  ;;  %v15268_v0 = vadd.s32 %v299_v48, %v295_v44 }
 0x1b2   :  { %v393_v18 = vsel %vm383_vm0, %v379_v56, 1326507024  ;;  %v4644_v3 = vand.u32 31, %v4642_v32  ;;  %v306_v54 = vadd.s32 %v304_v37, %v298_v4  ;;  %v356_v2 = vor.u32 8388608, %v355_v51 }
 0x1b3   :  { %vm380_vm10 = vcmp.lt.s32.totalorder %v15246_v27, 1  ;;  %v4637_v38 = vand.u32 8388607, %v21339_v50  ;;  %vm382_vm2 = vcmp.lt.s32.totalorder %v15246_v27, 3  ;;  %v389_v48 = vsel %vm383_vm0, %v376_v52, 920167782 }
 0x1b4   :  { %v388_v34 = vsel %vm380_vm10, %v15258_v35, %v15260_v8  ;;  %v15282_v44 = vsub.s32 32, %v4644_v3  ;;  %v392_v37 = vsel %vm380_vm10, %v15260_v8, %v15262_v46  ;;  %v394_v51 = vsel %vm382_vm2, %v376_v52, %v393_v18 }
 0x1b5   :  { %v4650_v11 = vshll.u32 %v21708_v33, %v4644_v3  ;;  %v4653_v4 = vshll.u32 %v21749_v7, %v4644_v3  ;;  %v15292_v59 = vshrl.u32 %v4642_v32, 5  ;;  %v4647_v14 = vshll.u32 %v21702_v17, %v4644_v3 }
 0x1b6   :  { %v4648_v45 = vshrl.u32 %v21708_v33, %v15282_v44  ;;  %v4651_v57 = vshrl.u32 %v21749_v7, %v15282_v44  ;;  %v390_v29 = vsel %vm382_vm2, %v15262_v46, %v389_v48  ;;  %v4654_v52 = vshrl.u32 %v21697_v16, %v15282_v44 }
 0x1b7   :  { %v4656_v61 = vshll.u32 %v21697_v16, %v4644_v3  ;;  %v4657_v56 = vshrl.u32 %v21706_v49, %v15282_v44  ;;  %vm21347_vm12 = vcmp.lt.s32.totalorder %v15246_v27, 2  ;;  %v15308_v32 = vshll.u32 %v356_v2, 8 }
 0x1b8   :  { %v15311_v18 = vunpack.i.h.bf16 %v15139_v63  ;;  %v4659_v42 = vshll.u32 %v21706_v49, %v4644_v3  ;;  %v15316_v48 = vsel %vm21347_vm12, %v392_v37, %v394_v51  ;;  %v15318_v50 = vor.u32 %v4651_v57, %v4650_v11 }
 0x1b9   :  { %21800 = vst [vmem:[#allocation61_spill] sm:$0xff] %v15308_v32  ;;  %v15320_v6 = vor.u32 %v4654_v52, %v4653_v4  ;;  %v4658_v15 = vor.u32 %v4657_v56, %v4656_v61  ;;  %v15324_v25 = vsel %vm21347_vm12, %v388_v34, %v390_v29  ;;  %v15326_v2 = vor.u32 %v4648_v45, %v4647_v14 }
 0x1ba   :  { %21801 = vst [vmem:[#allocation62_spill] sm:$0xff] %v15311_v18  ;;  %v4660_v63 = vshrl.u32 %v21707_v12, %v15282_v44  ;;  %vm4662_vm5 = vcmp.lt.s32.totalorder %v15292_v59, 1  ;;  %v21802_v3 = vshll.u32 %v15208_v13, 16  ;;  %v4638_v51 = vor.u32 8388608, %v4637_v38 }
 0x1bb   :  { %vm21367_vm6 = vcmp.lt.s32.totalorder %v15292_v59, 3  ;;  %vm4665_vm1 = vcmp.lt.s32.totalorder %v15292_v59, 4  ;;  %v21805_v34 = vshll.u32 %v15210_v31, 16  ;;  %v397_v11 = vand.u32 65535, %v15308_v32 }
 0x1bc   :  { %vm15333_vm4 = vc.u32 %v283_v43, %v21802_v3  ;;  %v21348_v4 = vshrl.u32 %v15316_v48, 16  ;;  %v4661_v14 = vor.u32 %v4660_v63, %v4659_v42  ;;  %v422_v45 = vshrl.u32 %v15324_v25, 16 }
 0x1bd   :  { %vm307_vm11 = vc.u32 %v15268_v0, %v21805_v34  ;;  %vm21366_vm12 = vcmp.lt.s32.totalorder %v15292_v59, 2  ;;  %v4671_v43 = vsel %vm4665_vm1, %v4658_v15, 920167782  ;;  %v4674_v38 = vsel %vm4662_vm5, %v15318_v50, %v15320_v6 }
 0x1be   :  { %v4670_v57 = vsel %vm4662_vm5, %v15326_v2, %v15318_v50  ;;  %v4672_v42 = vsel %vm21367_vm6, %v15320_v6, %v4671_v43  ;;  %v4675_v29 = vsel %vm4665_vm1, %v4661_v14, 1326507024  ;;  %v4761_v52 = vand.u32 2139095040, %v15311_v18 }
 0x1bf   :  { %v256_v61 = vsel %vm252_vm8, %v15218_v58, %v15113_v23  ;;  %v308_v56 = vsel %vm307_vm11, 1, %v21699_v39  ;;  %v4676_v63 = vsel %vm21367_vm6, %v4658_v15, %v4675_v29  ;;  %v15369_v3 = vshll.u32 %v4638_v51, 8 }
 0x1c0   :  { %v258_v34 = vsel %vm254_vm13, %v15115_v41, %v15226_v19  ;;  %v284_v14 = vadd.s32 %v282_v40, %v15231_v9  ;;  %v15378_v43 = vmul.u32 %v21348_v4, %v397_v11  ;;  %v15382_v23 = vsel %vm21366_vm12, %v4674_v38, %v4676_v63 }
 0x1c1   :  { %21806 = vst [vmem:[#allocation63_spill] sm:$0xff] %v15369_v3  ;;  %v15385_v58 = vadd.s32 536870912, %v15221_v22  ;;  %v286_v15 = vsel %vm15333_vm4, 1, %v21699_v39  ;;  %v15390_v51 = vmul.u32 %v422_v45, %v397_v11  ;;  %v15394_v41 = vsel %vm21366_vm12, %v4670_v57, %v4672_v42 }
 0x1c2   :  { %v310_v19 = vadd.s32 %v308_v56, %v306_v54  ;;  %v399_v9 = vand.u32 65535, %v15316_v48  ;;  %v421_v40 = vand.u32 65535, %v15324_v25  ;;  %v4762_v38 = vshrl.u32 %v4761_v52, 23 }
 0x1c3   :  { %v15400_v29 = vsel %vm253_vm3, %v256_v61, %v258_v34  ;;  %v300_v63 = vshrl.u32 %v15188_v5, 16  ;;  %v4679_v37 = vand.u32 65535, %v15369_v3  ;;  %v4682_v4 = vshrl.u32 %v15382_v23, 16 }
 0x1c4   :  { %v288_v24 = vadd.s32 %v286_v15, %v284_v14  ;;  %v398_v57 = vshrl.u32 %v15308_v32, 16  ;;  %v405_v54 = vshll.u32 %v15378_v43, 16  ;;  %v4704_v42 = vshrl.u32 %v15394_v41, 16 }
 0x1c5   :  { %v278_v25 = vshrl.u32 %v15202_v20, 16  ;;  %v280_v52 = vshrl.u32 %v15208_v13, 16  ;;  %v302_v1 = vshrl.u32 %v15210_v31, 16  ;;  %v427_v61 = vshll.u32 %v15390_v51, 16 }
 0x1c6   :  { %v311_v5 = vadd.s32 %v310_v19, %v300_v63  ;;  %v401_v56 = vmul.u32 %v399_v9, %v397_v11  ;;  %v15412_v34 = vmul.u32 %v421_v40, %v398_v57  ;;  %v12581_v55 = vadd.s32 4294967169, %v4762_v38 }
 0x1c7   :  { %v21807_v14 = vshll.u32 %v15210_v31, 16  ;;  %v423_v28 = vmul.u32 %v421_v40, %v397_v11  ;;  %v4681_v62 = vand.u32 65535, %v15382_v23  ;;  %v15420_v20 = vmul.u32 %v4682_v4, %v4679_v37 }
 0x1c8   :  { %v289_v13 = vadd.s32 %v288_v24, %v278_v25  ;;  %vm409_vm11 = vc.u32 %v401_v56, %v405_v54  ;;  %v4703_v30 = vand.u32 65535, %v15394_v41  ;;  %v15423_v10 = vmul.u32 %v4704_v42, %v4679_v37 }
 0x1c9   :  { %v15417_v15 = vadd.s32 %v15268_v0, %v21807_v14  ;;  %v15425_v19 = vmul.u32 %v399_v9, %v398_v57  ;;  %vm431_vm3 = vc.u32 %v423_v28, %v427_v61  ;;  %v15427_v38 = vadd.s32 %v427_v61, %v423_v28 }
 0x1ca   :  { %v4680_v31 = vshrl.u32 %v15369_v3, 16  ;;  %v15430_v0 = vadd.s32 %v311_v5, %v302_v1  ;;  %v426_v11 = vmul.u32 %v422_v45, %v398_v57  ;;  %v21354_v23 = vshll.u32 %v15412_v34, 16 }
 0x1cb   :  { %v4768_v40 = vadd.s32 1, %v12581_v55  ;;  %v410_v24 = vsel %vm409_vm11, 1, %v21699_v39  ;;  %v411_v63 = vadd.s32 %v405_v54, %v401_v56  ;;  %v4683_v25 = vmul.u32 %v4681_v62, %v4679_v37 }
 0x1cc   :  { %v4687_v41 = vshll.u32 %v15420_v20, 16  ;;  %v432_v9 = vsel %vm431_vm3, 1, %v21699_v39  ;;  %v4705_v14 = vmul.u32 %v4703_v30, %v4679_v37  ;;  %v4709_v28 = vshll.u32 %v15423_v10, 16 }
 0x1cd   :  { %vm4769_vm8 = vcmp.gt.s32.totalorder %v4768_v40, 0  ;;  %v21808_v61 = vshrl.u32 %v15316_v48, 16  ;;  %v407_v45 = vshll.u32 %v15425_v19, 16  ;;  %vm435_vm13 = vc.u32 %v15427_v38, %v21354_v23 }
 0x1ce   :  { %v15443_v55 = vmul.u32 %v4703_v30, %v4680_v31  ;;  %v15445_v54 = vadd.s32 %v289_v13, %v280_v52  ;;  %v15448_v5 = vadd.s32 1, %v15430_v0  ;;  %v15450_v37 = vmul.u32 %v4681_v62, %v4680_v31 }
 0x1cf   :  { %v404_v1 = vmul.u32 %v21808_v61, %v398_v57  ;;  %v4770_v56 = vsel %vm4769_vm8, %v4768_v40, 0  ;;  %vm15452_vm4 = vc.u32 %v411_v63, %v407_v45  ;;  %v434_v57 = vadd.s32 %v432_v9, %v426_v11 }
 0x1d0   :  { %vm4691_vm11 = vc.u32 %v4683_v25, %v4687_v41  ;;  %v436_v61 = vsel %vm435_vm13, 1, %v21699_v39  ;;  %vm4713_vm3 = vc.u32 %v4705_v14, %v4709_v28  ;;  %v21363_v30 = vand.u32 2147483647, %v15311_v18 }
 0x1d1   :  { %v412_v26 = vadd.s32 %v410_v24, %v404_v1  ;;  %v4772_v52 = vand.u32 31, %v4770_v56  ;;  %v4686_v13 = vmul.u32 %v4682_v4, %v4680_v31  ;;  %v4708_v23 = vmul.u32 %v4704_v42, %v4680_v31 }
 0x1d2   :  { %v21360_v53 = vshll.u32 %v15443_v55, 16  ;;  %v15459_v62 = vadd.s32 %v4709_v28, %v4705_v14  ;;  %v4689_v40 = vshll.u32 %v15450_v37, 16  ;;  %v4692_v24 = vsel %vm4691_vm11, 1, %v21699_v39 }
 0x1d3   :  { %v4693_v63 = vadd.s32 %v4687_v41, %v4683_v25  ;;  %v15463_v1 = vsub.s32 32, %v4772_v52  ;;  %vm315_vm8 = vc.u32 %v15445_v54, %v15417_v15  ;;  %v4714_v11 = vsel %vm4713_vm3, 1, %v21699_v39 }
 0x1d4   :  { %v4775_v9 = vshll.u32 %v21702_v17, %v4772_v52  ;;  %v4778_v4 = vshll.u32 %v21708_v33, %v4772_v52  ;;  %v4784_v42 = vshll.u32 %v21697_v16, %v4772_v52  ;;  %v15471_v31 = vshrl.u32 %v4770_v56, 5 }
 0x1d5   :  { %v4776_v14 = vshrl.u32 %v21708_v33, %v15463_v1  ;;  %v4779_v25 = vshrl.u32 %v21749_v7, %v15463_v1  ;;  %v4781_v41 = vshll.u32 %v21749_v7, %v4772_v52  ;;  %vm4717_vm13 = vc.u32 %v15459_v62, %v21360_v53 }
 0x1d6   :  { %v4765_v28 = vand.u32 8388607, %v21363_v30  ;;  %v4782_v45 = vshrl.u32 %v21697_v16, %v15463_v1  ;;  %v4785_v56 = vshrl.u32 %v21706_v49, %v15463_v1  ;;  %v4694_v3 = vadd.s32 %v4692_v24, %v4686_v13 }
 0x1d7   :  { %vm4695_vm11 = vc.u32 %v4693_v63, %v4689_v40  ;;  %v4787_v33 = vshll.u32 %v21706_v49, %v4772_v52  ;;  %v4788_v7 = vshrl.u32 %v21707_v12, %v15463_v1  ;;  %v4716_v32 = vadd.s32 %v4714_v11, %v4708_v23 }
 0x1d8   :  { %v15490_v21 = vor.u32 %v4776_v14, %v4775_v9  ;;  %v15492_v53 = vor.u32 %v4779_v25, %v4778_v4  ;;  %v4786_v18 = vor.u32 %v4785_v56, %v4784_v42  ;;  %v4718_v30 = vsel %vm4717_vm13, 1, %v21699_v39  ;;  %v119_v25 = vpop.permute.xlu1 %118 }
 0x1d9   :  { %v15495_v22 = vor.u32 %v4782_v45, %v4781_v41  ;;  %v4789_v16 = vor.u32 %v4788_v7, %v4787_v33  ;;  %vm4790_vm3 = vcmp.lt.s32.totalorder %v15471_v31, 1  ;;  %v4696_v13 = vsel %vm4695_vm11, 1, %v21699_v39 }
 0x1da   :  { %v4766_v40 = vor.u32 8388608, %v4765_v28  ;;  %vm4792_vm12 = vcmp.lt.s32.totalorder %v15471_v31, 3  ;;  %vm4793_vm6 = vcmp.lt.s32.totalorder %v15471_v31, 4  ;;  %v414_v23 = vsel %vm15452_vm4, 1, %v21699_v39 }
 0x1db   :  { %v438_v52 = vadd.s32 %v436_v61, %v434_v57  ;;  %v4688_v24 = vshrl.u32 %v15420_v20, 16  ;;  %v4799_v63 = vsel %vm4793_vm6, %v4786_v18, 920167782  ;;  %v4710_v33 = vshrl.u32 %v15423_v10, 16 }
 0x1dc   :  { %v4720_v7 = vadd.s32 %v4718_v30, %v4716_v32  ;;  %vm4791_vm13 = vcmp.lt.s32.totalorder %v15471_v31, 2  ;;  %v4798_v11 = vsel %vm4790_vm3, %v15490_v21, %v15492_v53  ;;  %v4698_v9 = vadd.s32 %v4696_v13, %v4694_v3 }
 0x1dd   :  { %v4800_v48 = vsel %vm4792_vm12, %v15495_v22, %v4799_v63  ;;  %v4802_v20 = vsel %vm4790_vm3, %v15492_v53, %v15495_v22  ;;  %v4803_v10 = vsel %vm4793_vm6, %v4789_v16, 1326507024  ;;  %v15523_v32 = vshrl.u32 %v15385_v58, 30 }
 0x1de   :  { %v313_v57 = vmul.u32 %v15157_v36, %v15400_v29  ;;  %v416_v61 = vadd.s32 %v414_v23, %v412_v26  ;;  %v15527_v3 = vshll.u32 %v4766_v40, 8  ;;  %v317_v30 = vsel %vm315_vm8, %v15448_v5, %v15430_v0  ;;  %v15569_v23 = vld [vmem:[%s21236_s2] ss:$0 sm:$0xff] }
 0x1df   :  { %21811 = vst [vmem:[#allocation64_spill] sm:$0xff] %v15523_v32  ;;  %v428_v4 = vshrl.u32 %v15390_v51, 16  ;;  %v15537_v16 = vsel %vm4791_vm13, %v4798_v11, %v4800_v48  ;;  %v4804_v58 = vsel %vm4792_vm12, %v4786_v18, %v4803_v10  ;;  %v406_v36 = vshrl.u32 %v15378_v43, 16 }
 0x1e0   :  { %v4712_v26 = vshrl.u32 %v15443_v55, 16  ;;  %v4721_v29 = vadd.s32 %v4720_v7, %v4710_v33  ;;  %v15545_v42 = vsel %vm4791_vm13, %v4802_v20, %v4804_v58  ;;  %v364_v0 = vshrl.u32 %v21702_v17, %v15205_v47 }
 0x1e1   :  { %v439_v51 = vadd.s32 %v438_v52, %v428_v4  ;;  %v4690_v5 = vshrl.u32 %v15450_v37, 16  ;;  %v4699_v14 = vadd.s32 %v4698_v9, %v4688_v24  ;;  %v385_v18 = vsel %vm383_vm0, %v15262_v46, 2102212464 }
 0x1e2   :  { %v417_v43 = vadd.s32 %v416_v61, %v406_v36  ;;  %v4807_v41 = vand.u32 65535, %v15527_v3  ;;  %v4832_v28 = vshrl.u32 %v15537_v16, 16  ;;  %v384_v45 = vsel %vm380_vm10, %v364_v0, %v15258_v35 }
 0x1e3   :  { %v430_v47 = vshrl.u32 %v15412_v34, 16  ;;  %v4646_v37 = vshrl.u32 %v21702_v17, %v15282_v44  ;;  %v4810_v56 = vshrl.u32 %v15545_v42, 16  ;;  %v408_v13 = vshrl.u32 %v15425_v19, 16 }
 0x1e4   :  { %v4667_v46 = vsel %vm4665_vm1, %v15320_v6, 2102212464  ;;  %v4722_v40 = vadd.s32 %v4721_v29, %v4712_v26  ;;  %v187_v35 = vmul.f32 %v15569_v23, %v119_v25  ;;  %v386_v44 = vsel %vm382_vm2, %v15260_v8, %v385_v18  ;;  %v21821_v18 = vld [vmem:[#allocation61_spill] sm:$0xff] }
 0x1e5   :  { %v440_v52 = vadd.s32 %v439_v51, %v430_v47  ;;  %v15575_v24 = vadd.s32 %v4699_v14, %v4690_v5  ;;  %v21812_v19 = vshll.u32 %v15443_v55, 16  ;;  %v15582_v6 = vadd.s32 %v417_v43, %v408_v13  ;;  %v21820_v5 = vld [vmem:[#allocation59_spill] sm:$0xff] }
 0x1e6   :  { %v4808_v33 = vshrl.u32 %v15527_v3, 16  ;;  %v4831_v7 = vand.u32 65535, %v15537_v16  ;;  %v15586_v11 = vmul.u32 %v4832_v28, %v4807_v41  ;;  %v4666_v8 = vsel %vm4662_vm5, %v4646_v37, %v15326_v2 }
 0x1e7   :  { %v15580_v63 = vadd.s32 %v15459_v62, %v21812_v19  ;;  %vm21813_vm1 = vcmp.lt.s32.totalorder %v15292_v59, 3  ;;  %v4809_v55 = vand.u32 65535, %v15545_v42  ;;  %v15595_v62 = vmul.u32 %v4810_v56, %v4807_v41  ;;  %v21818_v42 = vld [vmem:[#allocation60_spill] sm:$0xff] }
 0x1e8   :  { %v4668_v9 = vsel %vm21813_vm1, %v15318_v50, %v4667_v46  ;;  %v1079_v48 = vshll.u32 %v15523_v32, 30  ;;  %v15598_v20 = vadd.s32 %v317_v30, %v313_v57  ;;  %v4726_v10 = vadd.s32 1, %v4722_v40 }
 0x1e9   :  { %v15600_v61 = vpack.c.bf16 %v187_v35, %v187_v35  ;;  %vm21814_vm0 = vcmp.lt.s32.totalorder %v15246_v27, 2  ;;  %v21815_v2 = vshll.u32 %v15412_v34, 16  ;;  %v444_v50 = vadd.s32 1, %v440_v52 }
 0x1ea   :  { %v387_v4 = vsel %vm21814_vm0, %v384_v45, %v386_v44  ;;  %vm4725_vm10 = vc.u32 %v15575_v24, %v15580_v63  ;;  %vm21816_vm2 = vcmp.lt.s32.totalorder %v15292_v59, 2  ;;  %v4833_v57 = vmul.u32 %v4831_v7, %v4807_v41 }
 0x1eb   :  { %v15607_v16 = vadd.s32 %v15427_v38, %v21815_v2  ;;  %v4669_v58 = vsel %vm21816_vm2, %v4666_v8, %v4668_v9  ;;  %v15613_v30 = vmul.u32 %v4831_v7, %v4808_v33  ;;  %v4837_v36 = vshll.u32 %v15586_v11, 16 }
 0x1ec   :  { %v4811_v27 = vmul.u32 %v4809_v55, %v4807_v41  ;;  %v15618_v34 = vmul.u32 %v4809_v55, %v4808_v33  ;;  %v4815_v38 = vshll.u32 %v15595_v62, 16  ;;  %v21817_v26 = vsub.s32 4294967266, %v15183_v60  ;;  %v21822_v41 = vld [vmem:[#allocation63_spill] sm:$0xff] }
 0x1ed   :  { %vm443_vm5 = vc.u32 %v15582_v6, %v15607_v16  ;;  %v15624_v0 = vsub.s32 %v21818_v42, %v1079_v48  ;;  %v4727_v59 = vsel %vm4725_vm10, %v4726_v10, %v4722_v40  ;;  %v15627_v51 = vunpack.i.l.bf16 %v15600_v61  ;;  %v21824_v48 = vld [vmem:[#allocation56_spill] sm:$0xff] }
 0x1ee   :  { %v3928_v29 = vadd.s32 127, %v21817_v26  ;;  %v964_v14 = vsub.s32 4294967266, %v21820_v5  ;;  %v319_v25 = vadd.s32 536870912, %v15598_v20  ;;  %v441_v43 = vmul.u32 %v21821_v18, %v387_v4 }
 0x1ef   :  { %21819 = vst [vmem:[#allocation60_spill] sm:$0xff] %v15627_v51  ;;  %v4723_v45 = vmul.u32 %v21822_v41, %v4669_v58  ;;  %v445_v47 = vsel %vm443_vm5, %v444_v50, %v440_v52  ;;  %v21368_v37 = vshll.u32 %v15613_v30, 16  ;;  %vm4841_vm4 = vc.u32 %v4833_v57, %v4837_v36  ;;  %v21826_v50 = vld [vmem:[#allocation57_spill] sm:$0xff] }
 0x1f0   :  { %v15634_v13 = vadd.s32 %v4837_v36, %v4833_v57  ;;  %v4817_v40 = vshll.u32 %v15618_v34, 16  ;;  %vm4819_vm8 = vc.u32 %v4811_v27, %v4815_v38  ;;  %v4821_v35 = vadd.s32 %v4815_v38, %v4811_v27 }
 0x1f1   :  { %v15636_v46 = vadd.s32 %v4727_v59, %v4723_v45  ;;  %vm1081_vm11 = vcmp.lt.s32.totalorder %v15624_v0, 0  ;;  %v1082_v44 = vsub.s32 0, %v15624_v0  ;;  %v4836_v19 = vmul.u32 %v4832_v28, %v4808_v33 }
 0x1f2   :  { %v1168_v7 = vand.u32 2139095040, %v15627_v51  ;;  %v15642_v8 = vshrl.u32 %v319_v25, 30  ;;  %v15644_v52 = vadd.s32 %v445_v47, %v441_v43  ;;  %v4814_v9 = vmul.u32 %v4810_v56, %v4808_v33  ;;  %v21827_v56 = vld [vmem:[#allocation28_spill] sm:$0xff] }
 0x1f3   :  { %v4842_v55 = vsel %vm4841_vm4, 1, %v21699_v39  ;;  %v3805_v10 = vcvt.s32.f32 %v21824_v48  ;;  %v3929_v4 = vshll.u32 %v3928_v29, 23  ;;  %v4820_v2 = vsel %vm4819_vm8, 1, %v21699_v39  ;;  %v21829_v47 = vld [vmem:[#allocation40_spill] sm:$0xff] }
 0x1f4   :  { %21823 = vst [vmem:[#allocation59_spill] sm:$0xff] %v15642_v8  ;;  %vm4845_vm1 = vc.u32 %v15634_v13, %v21368_v37  ;;  %v21825_v28 = vsub.s32 32, %v15183_v60  ;;  %v965_v57 = vadd.s32 127, %v964_v14  ;;  %v4729_v36 = vadd.s32 536870912, %v15636_v46  ;;  %v21828_v14 = vld [vmem:[#allocation58_spill] sm:$0xff] }
 0x1f5   :  { %vm4823_vm0 = vc.u32 %v4821_v35, %v4817_v40  ;;  %v3924_v33 = vshll.u32 %v21827_v56, %v15183_v60  ;;  %v1083_v27 = vsel %vm1081_vm11, %v1082_v44, %v15624_v0  ;;  %v4844_v38 = vadd.s32 %v4842_v55, %v4836_v19  ;;  %v21830_v40 = vld [vmem:[#allocation41_spill] sm:$0xff] }
 0x1f6   :  { %v3925_v58 = vshrl.u32 %v21826_v50, %v21825_v28  ;;  %v1169_v26 = vshrl.u32 %v1168_v7, 23  ;;  %v321_v29 = vshll.u32 %v15642_v8, 30  ;;  %v447_v42 = vadd.s32 536870912, %v15644_v52  ;;  %v21836_v50 = vld [vmem:[#allocation20_spill] sm:$0xff] }
 0x1f7   :  { %v4822_v59 = vadd.s32 %v4820_v2, %v4814_v9  ;;  %v4846_v25 = vsel %vm4845_vm1, 1, %v21699_v39  ;;  %v3803_v18 = vand.u32 2147483647, %v21828_v14  ;;  %v3930_v43 = vor.u32 4788187, %v3929_v4  ;;  %v21831_v2 = vld [vmem:[#allocation18_spill] sm:$0xff] }
 0x1f8   :  { %v960_v41 = vsub.s32 32, %v21820_v5  ;;  %v4824_v60 = vsel %vm4823_vm0, 1, %v21699_v39  ;;  %v3926_v45 = vor.u32 %v3925_v58, %v3924_v33  ;;  %v944_v35 = vadd.s32 %v21830_v40, %v21829_v47  ;;  %v21838_v33 = vld [vmem:[#allocation52_spill] sm:$0xff] }
 0x1f9   :  { %v966_v44 = vshll.u32 %v965_v57, 23  ;;  %v15669_v19 = vshrl.u32 %v4729_v36, 30  ;;  %v1084_v7 = vclz %v1083_v27  ;;  %v4838_v55 = vshrl.u32 %v15586_v11, 16  ;;  %v21840_v27 = vld [vmem:[#allocation47_spill] sm:$0xff] }
 0x1fa   :  { %v4848_v9 = vadd.s32 %v4846_v25, %v4844_v38  ;;  %v12512_v48 = vadd.s32 4294967169, %v1169_v26  ;;  %v21832_v28 = vand.u32 2147483647, %v21831_v2  ;;  %v21833_v4 = vmov 0 }
 0x1fb   :  { %vm21381_vm2 = vcmp.lt.s32.totalorder %v21836_v50, 0  ;;  %v15680_v58 = vsub.s32 %v15598_v20, %v321_v29  ;;  %v15682_v56 = vshrl.u32 %v447_v42, 30  ;;  %v4816_v57 = vshrl.u32 %v15595_v62, 16  ;;  %v21843_v29 = vld [vmem:[#allocation22_spill] sm:$0xff] }
 0x1fc   :  { %vm15674_vm10 = vcmp.le.f32.partialorder %v21832_v28, 0.7853982  ;;  %v4826_v36 = vadd.s32 %v4824_v60, %v4822_v59  ;;  %v21839_v11 = vand.u32 2147483647, %v21838_v33  ;;  %v21841_v38 = vcvt.s32.f32 %v21840_v27  ;;  %v21842_v28 = vld [vmem:[#allocation32_spill] sm:$0xff] }
 0x1fd   :  { %v21834_v4 = vsel %vm15674_vm10, 4294967295, %v21833_v4  ;;  %21837 = vst [vmem:[#allocation63_spill] sm:$0xff] %v15682_v56  ;;  %v3806_v25 = vmul.f32 %v3805_v10, %v3803_v18  ;;  %v3931_v14 = vand.u32 2147483647, %v3930_v43  ;;  %v962_v47 = vshrl.u32 %v944_v35, %v960_v41 }
 0x1fe   :  { %21835 = vst [vmem:[#allocation61_spill] sm:$0xff] %v21834_v4  ;;  %v2989_v26 = vmul.f32 %v21841_v38, %v21839_v11  ;;  %v3933_v40 = vcvt.s32.f32 %v3926_v45  ;;  %v961_v37 = vshll.u32 %v21842_v28, %v21820_v5  ;;  %v967_v32 = vor.u32 4788187, %v966_v44  ;;  %v21844_v45 = vld [vmem:[#allocation24_spill] sm:$0xff] }
 0x1ff   :  { %v4731_v20 = vshll.u32 %v15669_v19, 30  ;;  %vm21383_vm5 = vcmp.lt.s32.totalorder %v21843_v29, 0  ;;  %v12510_v42 = vadd.s32 4294967294, %v1084_v7  ;;  %v4840_v62 = vshrl.u32 %v15613_v30, 16 }
 0x200   :  { %v4849_v59 = vadd.s32 %v4848_v9, %v4838_v55  ;;  %v1175_v60 = vadd.s32 1, %v12512_v48  ;;  %v324_v33 = vsub.s32 0, %v15680_v58  ;;  %v449_v10 = vshll.u32 %v15682_v56, 30 }
 0x201   :  { %v4818_v18 = vshrl.u32 %v15618_v34, 16  ;;  %v4827_v43 = vadd.s32 %v4826_v36, %v4816_v57  ;;  %v2990_v41 = vxor.u32 2147483648, %v2989_v26  ;;  %v3934_v5 = vmul.f32 %v3933_v40, %v3931_v14 }
 0x202   :  { %v963_v35 = vor.u32 %v962_v47, %v961_v37  ;;  %vm323_vm8 = vcmp.lt.s32.totalorder %v15680_v58, 0  ;;  %v21845_v44 = vand.u32 2147483647, %v21836_v50  ;;  %v21846_v7 = vmov 0 }
 0x203   :  { %v21849_v55 = vand.u32 2147483647, %v21843_v29  ;;  %v21850_v9 = vmov 0  ;;  %v3807_v34 = vxor.u32 2147483648, %v3806_v25  ;;  %v968_v48 = vand.u32 2147483647, %v967_v32 }
 0x204   :  { %vm15701_vm11 = vcmp.le.f32.partialorder %v21845_v44, 0.7853982  ;;  %v15712_v57 = vsub.s32 %v15636_v46, %v4731_v20  ;;  %v4774_v37 = vshrl.u32 %v21702_v17, %v15463_v1  ;;  %vm12511_vm0 = vcmp.lt.s32.totalorder %v12510_v42, 0  ;;  %v21854_v1 = vld [vmem:[#allocation51_spill] sm:$0xff] }
 0x205   :  { %v21847_v7 = vsel %vm15701_vm11, 4294967295, %v21846_v7  ;;  %vm15707_vm1 = vcmp.le.f32.partialorder %v21849_v55, 0.7853982  ;;  %v4795_v36 = vsel %vm4793_vm6, %v15495_v22, 2102212464  ;;  %v4850_v11 = vadd.s32 %v4849_v59, %v4840_v62 }
 0x206   :  { %21848 = vst [vmem:[#allocation56_spill] sm:$0xff] %v21847_v7  ;;  %v21851_v9 = vsel %vm15707_vm1, 4294967295, %v21850_v9  ;;  %vm1176_vm4 = vcmp.gt.s32.totalorder %v1175_v60, 0  ;;  %v325_v27 = vsel %vm323_vm8, %v324_v33, %v15680_v58  ;;  %v15721_v38 = vsub.s32 %v15644_v52, %v449_v10 }
 0x207   :  { %21852 = vst [vmem:[#allocation57_spill] sm:$0xff] %v21851_v9  ;;  %v15723_v14 = vadd.s32 %v4827_v43, %v4818_v18  ;;  %v21853_v32 = vshll.u32 %v15613_v30, 16  ;;  %v15734_v47 = vsel %vm15674_vm10, %v21831_v2, %v21854_v1  ;;  %v2991_v22 = vsel %vm21381_vm2, %v2990_v41, %v2989_v26 }
 0x208   :  { %21855 = vst [vmem:[#allocation28_spill] sm:$0xff] %v15734_v47  ;;  %v3935_v40 = vxor.u32 2147483648, %v3934_v5  ;;  %v970_v28 = vcvt.s32.f32 %v963_v35  ;;  %v4734_v52 = vsub.s32 0, %v15712_v57  ;;  %v4794_v30 = vsel %vm4790_vm3, %v4774_v37, %v15490_v21 }
 0x209   :  { %v15728_v46 = vadd.s32 %v15634_v13, %v21853_v32  ;;  %v4796_v13 = vsel %vm4792_vm12, %v15492_v53, %v4795_v36  ;;  %v1177_v20 = vsel %vm1176_vm4, %v1175_v60, 0  ;;  %v15746_v62 = vsel %vm12511_vm0, 0, %v12510_v42 }
 0x20a   :  { %v326_v59 = vclz %v325_v27  ;;  %vm4733_vm6 = vcmp.lt.s32.totalorder %v15712_v57, 0  ;;  %v4854_v26 = vadd.s32 1, %v4850_v11  ;;  %v3808_v33 = vsel %vm21383_vm5, %v3807_v34, %v3806_v25 }
 0x20b   :  { %v971_v10 = vmul.f32 %v970_v28, %v968_v48  ;;  %v452_v18 = vsub.s32 0, %v15721_v38  ;;  %vm4853_vm3 = vc.u32 %v15723_v14, %v15728_v46  ;;  %v21856_v21 = vand.u32 2147483647, %v21844_v45  ;;  %v21868_v28 = vld [vmem:[#allocation55_spill] sm:$0xff] }
 0x20c   :  { %v21857_v53 = vmov 0  ;;  %vm451_vm4 = vcmp.lt.s32.totalorder %v15721_v38, 0  ;;  %v4797_v42 = vsel %vm4791_vm13, %v4794_v30, %v4796_v13  ;;  %v1179_v60 = vand.u32 31, %v1177_v20 }
 0x20d   :  { %vm15756_vm12 = vcmp.le.f32.partialorder %v21856_v21, 0.7853982  ;;  %v15765_v25 = vmul.f32 %v15734_v47, %v15734_v47  ;;  %vm21861_vm8 = vcmp.lt.s32.totalorder %v21844_v45, 0  ;;  %v1092_v41 = vsub.s32 4294967266, %v15746_v62 }
 0x20e   :  { %v21858_v53 = vsel %vm15756_vm12, 4294967295, %v21857_v53  ;;  %v3936_v43 = vsel %vm21861_vm8, %v3935_v40, %v3934_v5  ;;  %v4735_v35 = vsel %vm4733_vm6, %v4734_v52, %v15712_v57  ;;  %v15774_v44 = vsel %vm15701_vm11, %v21836_v50, %v2991_v22  ;;  %v21867_v40 = vld [vmem:[#allocation54_spill] sm:$0xff] }
 0x20f   :  { %21859 = vst [vmem:[#allocation58_spill] sm:$0xff] %v21858_v53  ;;  %v15779_v31 = vsel %vm15707_vm1, %v21843_v29, %v3808_v33  ;;  %v12495_v55 = vadd.s32 4294967294, %v326_v59  ;;  %v4855_v34 = vsel %vm4853_vm3, %v4854_v26, %v4850_v11  ;;  %v972_v48 = vxor.u32 2147483648, %v971_v10  ;;  %v21870_v59 = vld [vmem:[#allocation30_spill] sm:$0xff] }
 0x210   :  { %21860 = vst [vmem:[#allocation40_spill] sm:$0xff] %v15765_v25  ;;  %v1088_v37 = vsub.s32 32, %v15746_v62  ;;  %v453_v5 = vsel %vm451_vm4, %v452_v18, %v15721_v38  ;;  %v4851_v36 = vmul.u32 %v15527_v3, %v4797_v42  ;;  %v15787_v27 = vsel %vm15756_vm12, %v21844_v45, %v3936_v43 }
 0x211   :  { %21862 = vst [vmem:[#allocation41_spill] sm:$0xff] %v15774_v44  ;;  %v4736_v32 = vclz %v4735_v35  ;;  %v15790_v1 = vunpack.i.h.bf16 %v15600_v61  ;;  %v15792_v22 = vsub.s32 32, %v1179_v60  ;;  %v15796_v11 = vmul.f32 %v15774_v44, %v15774_v44 }
 0x212   :  { %21863 = vst [vmem:[#allocation52_spill] sm:$0xff] %v15779_v31  ;;  %v1072_v52 = vadd.s32 %v21868_v28, %v21867_v40  ;;  %v1093_v30 = vadd.s32 127, %v1092_v41  ;;  %v15800_v3 = vadd.s32 %v4855_v34, %v4851_v36  ;;  %v15804_v13 = vmul.f32 %v15779_v31, %v15779_v31 }
 0x213   :  { %21864 = vst [vmem:[#allocation47_spill] sm:$0xff] %v15787_v27  ;;  %vm21384_vm13 = vcmp.lt.s32.totalorder %v21870_v59, 0  ;;  %vm12496_vm0 = vcmp.lt.s32.totalorder %v12495_v55, 0  ;;  %v454_v61 = vclz %v453_v5  ;;  %v15809_v26 = vmul.f32 %v15787_v27, %v15787_v27 }
 0x214   :  { %21865 = vst [vmem:[#allocation32_spill] sm:$0xff] %v15790_v1  ;;  %v973_v33 = vsel %vm21384_vm13, %v972_v48, %v971_v10  ;;  %v1089_v18 = vshll.u32 %v15624_v0, %v15746_v62  ;;  %v1090_v21 = vshrl.u32 %v1072_v52, %v1088_v37  ;;  %v12579_v42 = vadd.s32 4294967294, %v4736_v32 }
 0x215   :  { %21866 = vst [vmem:[#allocation51_spill] sm:$0xff] %v15796_v11  ;;  %v1194_v43 = vshll.u32 %v21706_v49, %v1179_v60  ;;  %v1195_v41 = vshrl.u32 %v21707_v12, %v15792_v22  ;;  %v1296_v35 = vand.u32 2139095040, %v15790_v1  ;;  %v1094_v34 = vshll.u32 %v1093_v30, 23 }
 0x216   :  { %21869 = vst [vmem:[#allocation54_spill] sm:$0xff] %v15804_v13  ;;  %v15819_v5 = vsel %vm12496_vm0, 0, %v12495_v55  ;;  %v4857_v36 = vadd.s32 536870912, %v15800_v3  ;;  %v15822_v40 = vshrl.u32 %v1177_v20, 5  ;;  %v12498_v10 = vadd.s32 4294967294, %v454_v61 }
 0x217   :  { %21871 = vst [vmem:[#allocation55_spill] sm:$0xff] %v15809_v26  ;;  %v21872_v0 = vmov 2102212464   ;;  %v1192_v37 = vshrl.u32 %v21706_v49, %v15792_v22  ;;  %v21873_v32 = vand.u32 2147483647, %v21870_v59  ;;  %v21874_v28 = vmov 0 }
 0x218   :  { %v1191_v62 = vshll.u32 %v21872_v0, %v1179_v60  ;;  %v21877_v55 = vmov 2475754826   ;;  %v21878_v30 = vmov 2131351028   ;;  %v1189_v48 = vshrl.u32 %v21872_v0, %v15792_v22 }
 0x219   :  { %vm15830_vm6 = vcmp.le.f32.partialorder %v21873_v32, 0.7853982  ;;  %v1185_v52 = vshll.u32 %v21877_v55, %v1179_v60  ;;  %v1186_v20 = vshrl.u32 %v21878_v30, %v15792_v22  ;;  %v1188_v61 = vshll.u32 %v21878_v30, %v1179_v60 }
 0x21a   :  { %v21875_v28 = vsel %vm15830_vm6, 4294967295, %v21874_v28  ;;  %v334_v44 = vsub.s32 4294967266, %v15819_v5  ;;  %vm12580_vm3 = vcmp.lt.s32.totalorder %v12579_v42, 0  ;;  %v1196_v47 = vor.u32 %v1195_v41, %v1194_v43 }
 0x21b   :  { %21876 = vst [vmem:[#allocation65_spill] sm:$0xff] %v21875_v28  ;;  %v1297_v7 = vshrl.u32 %v1296_v35, 23  ;;  %v15841_v50 = vshrl.u32 %v4857_v36, 30  ;;  %v1182_v32 = vshll.u32 %v21702_v17, %v1179_v60  ;;  %v1183_v4 = vshrl.u32 %v21877_v55, %v15792_v22 }
 0x21c   :  { %vm21406_vm4 = vcmp.lt.s32.totalorder %v15822_v40, 4  ;;  %v1095_v2 = vor.u32 4788187, %v1094_v34  ;;  %v330_v11 = vsub.s32 32, %v15819_v5  ;;  %vm12499_vm8 = vcmp.lt.s32.totalorder %v12498_v10, 0 }
 0x21d   :  { %v1193_v25 = vor.u32 %v1192_v37, %v1191_v62  ;;  %v15848_v27 = vsel %vm12580_vm3, 0, %v12579_v42  ;;  %v21879_v31 = vand.u32 2147483647, %v15627_v51  ;;  %v15852_v41 = vor.u32 %v1186_v20, %v1185_v52 }
 0x21e   :  { %v15854_v35 = vor.u32 %v1189_v48, %v1188_v61  ;;  %vm21405_vm0 = vcmp.lt.s32.totalorder %v15822_v40, 1  ;;  %vm21404_vm2 = vcmp.lt.s32.totalorder %v15822_v40, 3  ;;  %v1210_v60 = vsel %vm21406_vm4, %v1196_v47, 1326507024 }
 0x21f   :  { %v1172_v43 = vand.u32 8388607, %v21879_v31  ;;  %v12515_v34 = vadd.s32 4294967169, %v1297_v7  ;;  %v1091_v36 = vor.u32 %v1090_v21, %v1089_v18  ;;  %v335_v53 = vadd.s32 127, %v334_v44 }
 0x220   :  { %v4859_v42 = vshll.u32 %v15841_v50, 30  ;;  %v15861_v62 = vor.u32 %v1183_v4, %v1182_v32  ;;  %v314_v31 = vadd.s32 %v15417_v15, %v15445_v54  ;;  %v457_v37 = vsel %vm12499_vm8, 0, %v12498_v10 }
 0x221   :  { %v4744_v48 = vsub.s32 4294967266, %v15848_v27  ;;  %v1206_v52 = vsel %vm21406_vm4, %v1193_v25, 920167782  ;;  %v1173_v20 = vor.u32 8388608, %v1172_v43  ;;  %vm21401_vm3 = vcmp.lt.s32.totalorder %v15822_v40, 2 }
 0x222   :  { %v1209_v7 = vsel %vm21405_vm0, %v15852_v41, %v15854_v35  ;;  %v1211_v4 = vsel %vm21404_vm2, %v1193_v25, %v1210_v60  ;;  %v15878_v15 = vsel %vm15830_vm6, %v21870_v59, %v973_v33  ;;  %v1096_v54 = vand.u32 2147483647, %v1095_v2  ;;  %v21882_v60 = vld [vmem:[#allocation34_spill] sm:$0xff] }
 0x223   :  { %21880 = vst [vmem:[#allocation66_spill] sm:$0xff] %v15878_v15  ;;  %v332_v47 = vshrl.u32 %v314_v31, %v330_v11  ;;  %v1303_v44 = vadd.s32 1, %v12515_v34  ;;  %v336_v18 = vshll.u32 %v335_v53, 23  ;;  %v15881_v21 = vsub.s32 %v15800_v3, %v4859_v42 }
 0x224   :  { %v1205_v10 = vsel %vm21405_vm0, %v15861_v62, %v15852_v41  ;;  %v1207_v25 = vsel %vm21404_vm2, %v15854_v35, %v1206_v52  ;;  %v1098_v61 = vcvt.s32.f32 %v1091_v36  ;;  %v458_v32 = vsub.s32 32, %v457_v37 }
 0x225   :  { %v462_v33 = vsub.s32 4294967266, %v457_v37  ;;  %v15892_v2 = vsel %vm21401_vm3, %v1209_v7, %v1211_v4  ;;  %v15896_v53 = vmul.f32 %v15878_v15, %v15878_v15  ;;  %v331_v11 = vshll.u32 %v15680_v58, %v15819_v5  ;;  %v109_v5 = vpop.permute.xlu0 %108 }
 0x226   :  { %v4745_v3 = vadd.s32 127, %v4744_v48  ;;  %v15900_v43 = vshll.u32 %v1173_v20, 8  ;;  %vm21400_vm8 = vcmp.lt.s32.totalorder %v21882_v60, 0  ;;  %v1099_v34 = vmul.f32 %v1098_v61, %v1096_v54 }
 0x227   :  { %21881 = vst [vmem:[#allocation67_spill] sm:$0xff] %v15896_v53  ;;  %v442_v36 = vadd.s32 %v15607_v16, %v15582_v6  ;;  %v15907_v42 = vsel %vm21401_vm3, %v1205_v10, %v1207_v25  ;;  %vm1304_vm5 = vcmp.gt.s32.totalorder %v1303_v44, 0  ;;  %v333_v31 = vor.u32 %v332_v47, %v331_v11 }
 0x228   :  { %v337_v52 = vor.u32 4788187, %v336_v18  ;;  %v4862_v7 = vsub.s32 0, %v15881_v21  ;;  %v21388_v58 = vshrl.u32 %v15892_v2, 16  ;;  %v463_v20 = vadd.s32 127, %v462_v33 }
 0x229   :  { %v460_v48 = vshrl.u32 %v442_v36, %v458_v32  ;;  %v4740_v4 = vsub.s32 32, %v15848_v27  ;;  %vm4861_vm13 = vcmp.lt.s32.totalorder %v15881_v21, 0  ;;  %v4746_v54 = vshll.u32 %v4745_v3, 23 }
 0x22a   :  { %v1214_v6 = vand.u32 65535, %v15900_v43  ;;  %v1239_v16 = vshrl.u32 %v15907_v42, 16  ;;  %v1305_v10 = vsel %vm1304_vm5, %v1303_v44, 0  ;;  %v459_v47 = vshll.u32 %v15721_v38, %v457_v37 }
 0x22b   :  { %v4724_v18 = vadd.s32 %v15580_v63, %v15575_v24  ;;  %v21387_v25 = vand.u32 2147483647, %v15790_v1  ;;  %v185_v61 = vmul.f32 %v15569_v23, %v109_v5  ;;  %v1100_v32 = vxor.u32 2147483648, %v1099_v34 }
 0x22c   :  { %v338_v33 = vand.u32 2147483647, %v337_v52  ;;  %v4863_v11 = vsel %vm4861_vm13, %v4862_v7, %v15881_v21  ;;  %v15923_v3 = vmul.u32 %v21388_v58, %v1214_v6  ;;  %v15925_v36 = vor.u32 %v460_v48, %v459_v47 }
 0x22d   :  { %v464_v44 = vshll.u32 %v463_v20, 23  ;;  %v4742_v9 = vshrl.u32 %v4724_v18, %v4740_v4  ;;  %v1307_v38 = vand.u32 31, %v1305_v10  ;;  %v340_v37 = vcvt.s32.f32 %v333_v31 }
 0x22e   :  { %v15927_v26 = vor.u32 4788187, %v4746_v54  ;;  %v1216_v24 = vand.u32 65535, %v15892_v2  ;;  %v15930_v63 = vmul.u32 %v1239_v16, %v1214_v6  ;;  %v4741_v23 = vshll.u32 %v15712_v57, %v15848_v27 }
 0x22f   :  { %v4864_v52 = vclz %v4863_v11  ;;  %v15936_v7 = vand.u32 8388607, %v21387_v25  ;;  %v15938_v5 = vpack.c.bf16 %v185_v61, %v185_v61  ;;  %v15942_v48 = vsel %vm21400_vm8, %v1100_v32, %v1099_v34 }
 0x230   :  { %v15944_v31 = vmul.f32 %v340_v37, %v338_v33  ;;  %v1222_v20 = vshll.u32 %v15923_v3, 16  ;;  %v1238_v4 = vand.u32 65535, %v15907_v42  ;;  %v15948_v54 = vor.u32 4788187, %v464_v44 }
 0x231   :  { %v15951_v27 = vor.u32 %v4742_v9, %v4741_v23  ;;  %v15953_v47 = vsub.s32 32, %v1307_v38  ;;  %v1215_v61 = vshrl.u32 %v15900_v43, 16  ;;  %v1218_v34 = vmul.u32 %v1216_v24, %v1214_v6 }
 0x232   :  { %v1244_v32 = vshll.u32 %v15930_v63, 16  ;;  %v12582_v33 = vadd.s32 4294967294, %v4864_v52  ;;  %v1181_v11 = vshrl.u32 %v21702_v17, %v15792_v22  ;;  %v15962_v44 = vunpack.i.l.bf16 %v15938_v5 }
 0x233   :  { %v15964_v9 = vmul.u32 %v1216_v24, %v1215_v61  ;;  %vm15966_vm5 = vc.u32 %v1218_v34, %v1222_v20  ;;  %v1240_v23 = vmul.u32 %v1238_v4, %v1214_v6  ;;  %v15970_v25 = vmul.u32 %v1238_v4, %v1215_v61 }
 0x234   :  { %21883 = vst [vmem:[#allocation68_spill] sm:$0xff] %v15962_v44  ;;  %v1228_v57 = vadd.s32 %v1222_v20, %v1218_v34  ;;  %v1319_v52 = vshll.u32 %v21872_v0, %v1307_v38  ;;  %v1320_v22 = vshrl.u32 %v21706_v49, %v15953_v47  ;;  %v538_v18 = vand.u32 2139095040, %v15962_v44 }
 0x235   :  { %vm15976_vm13 = vc.u32 %v1240_v23, %v1244_v32  ;;  %v15980_v24 = vshrl.u32 %v1305_v10, 5  ;;  %v1322_v58 = vshll.u32 %v21706_v49, %v1307_v38  ;;  %v1323_v6 = vshrl.u32 %v21707_v12, %v15953_v47 }
 0x236   :  { %v15985_v4 = vadd.s32 %v1244_v32, %v1240_v23  ;;  %v1310_v20 = vshll.u32 %v21702_v17, %v1307_v38  ;;  %v1313_v34 = vshll.u32 %v21877_v55, %v1307_v38  ;;  %v539_v45 = vshrl.u32 %v538_v18, 23 }
 0x237   :  { %v1311_v29 = vshrl.u32 %v21877_v55, %v15953_v47  ;;  %v1314_v13 = vshrl.u32 %v21878_v30, %v15953_v47  ;;  %v1316_v10 = vshll.u32 %v21878_v30, %v1307_v38  ;;  %v1317_v15 = vshrl.u32 %v21872_v0, %v15953_v47 }
 0x238   :  { %v21888_v28 = vshrl.u32 %v15892_v2, 16  ;;  %v1224_v23 = vshll.u32 %v15964_v9, 16  ;;  %v1321_v53 = vor.u32 %v1320_v22, %v1319_v52  ;;  %v12500_v59 = vadd.s32 4294967169, %v539_v45 }
 0x239   :  { %v1243_v56 = vmul.u32 %v1239_v16, %v1215_v61  ;;  %v21409_v18 = vshll.u32 %v15970_v25, 16  ;;  %v1324_v8 = vor.u32 %v1323_v6, %v1322_v58  ;;  %vm1328_vm8 = vcmp.lt.s32.totalorder %v15980_v24, 4 }
 0x23a   :  { %v1221_v32 = vmul.u32 %v21888_v28, %v1215_v61  ;;  %v1227_v38 = vsel %vm15966_vm5, 1, %v21699_v39  ;;  %vm16004_vm3 = vc.u32 %v1228_v57, %v1224_v23  ;;  %v1249_v28 = vsel %vm15976_vm13, 1, %v21699_v39 }
 0x23b   :  { %v545_v2 = vadd.s32 1, %v12500_v59  ;;  %vm16014_vm2 = vc.u32 %v15985_v4, %v21409_v18  ;;  %v16018_v58 = vor.u32 %v1311_v29, %v1310_v20  ;;  %v16020_v16 = vor.u32 %v1314_v13, %v1313_v34 }
 0x23c   :  { %v16022_v57 = vor.u32 %v1317_v15, %v1316_v10  ;;  %vm1325_vm5 = vcmp.lt.s32.totalorder %v15980_v24, 1  ;;  %vm21416_vm0 = vcmp.lt.s32.totalorder %v15980_v24, 3  ;;  %v1334_v59 = vsel %vm1328_vm8, %v1321_v53, 920167782 }
 0x23d   :  { %vm546_vm13 = vcmp.gt.s32.totalorder %v545_v2, 0  ;;  %vm21893_vm11 = vcmp.lt.s32.totalorder %v15822_v40, 4  ;;  %v1338_v29 = vsel %vm1328_vm8, %v1324_v8, 1326507024  ;;  %v1229_v42 = vadd.s32 %v1227_v38, %v1221_v32 }
 0x23e   :  { %v1202_v61 = vsel %vm21893_vm11, %v15854_v35, 2102212464  ;;  %v547_v13 = vsel %vm546_vm13, %v545_v2, 0  ;;  %v1231_v15 = vsel %vm16004_vm3, 1, %v21699_v39  ;;  %v1251_v37 = vadd.s32 %v1249_v28, %v1243_v56 }
 0x23f   :  { %v549_v52 = vand.u32 31, %v547_v13  ;;  %v1253_v22 = vsel %vm16014_vm2, 1, %v21699_v39  ;;  %vm21415_vm4 = vcmp.lt.s32.totalorder %v15980_v24, 2  ;;  %v1333_v35 = vsel %vm1325_vm5, %v16018_v58, %v16020_v16 }
 0x240   :  { %v1335_v8 = vsel %vm21416_vm0, %v16022_v57, %v1334_v59  ;;  %vm21894_vm11 = vcmp.lt.s32.totalorder %v15822_v40, 1  ;;  %vm21895_vm3 = vcmp.lt.s32.totalorder %v15822_v40, 3  ;;  %v1337_v6 = vsel %vm1325_vm5, %v16020_v16, %v16022_v57 }
 0x241   :  { %v1201_v56 = vsel %vm21894_vm11, %v1181_v11, %v15861_v62  ;;  %v1203_v1 = vsel %vm21895_vm3, %v15852_v41, %v1202_v61  ;;  %v1339_v20 = vsel %vm21416_vm0, %v1321_v53, %v1338_v29  ;;  %v4750_v10 = vcvt.s32.f32 %v15951_v27 }
 0x242   :  { %vm21896_vm2 = vcmp.lt.s32.totalorder %v12582_v33, 0  ;;  %v16064_v62 = vsub.s32 32, %v549_v52  ;;  %v1233_v11 = vadd.s32 %v1231_v15, %v1229_v42  ;;  %v1255_v23 = vadd.s32 %v1253_v22, %v1251_v37 }
 0x243   :  { %v16062_v32 = vsel %vm21896_vm2, 0, %v12582_v33  ;;  %v16068_v41 = vsel %vm21415_vm4, %v1333_v35, %v1335_v8  ;;  %v21897_v38 = vor.u32 8388608, %v15936_v7  ;;  %v21898_v53 = vand.u32 2147483647, %v15927_v26 }
 0x244   :  { %v16080_v27 = vadd.s32 %v15728_v46, %v15723_v14  ;;  %vm21899_vm13 = vcmp.lt.s32.totalorder %v15822_v40, 2  ;;  %v16088_v45 = vsel %vm21415_vm4, %v1337_v6, %v1339_v20  ;;  %v4872_v59 = vsub.s32 4294967266, %v16062_v32 }
 0x245   :  { %v16072_v28 = vshll.u32 %v21897_v38, 8  ;;  %v16076_v2 = vmul.f32 %v4750_v10, %v21898_v53  ;;  %v16084_v33 = vsel %vm21899_vm13, %v1201_v56, %v1203_v1  ;;  %v1223_v26 = vshrl.u32 %v15923_v3, 16 }
 0x246   :  { %v1245_v61 = vshrl.u32 %v15930_v63, 16  ;;  %v1225_v29 = vshrl.u32 %v15964_v9, 16  ;;  %v1247_v14 = vshrl.u32 %v15970_v25, 16  ;;  %v21408_v46 = vshrl.u32 %v16068_v41, 16 }
 0x247   :  { %v562_v40 = vshrl.u32 %v21706_v49, %v16064_v62  ;;  %v1234_v42 = vadd.s32 %v1233_v11, %v1223_v26  ;;  %v1342_v37 = vand.u32 65535, %v16072_v28  ;;  %v21410_v22 = vshrl.u32 %v16088_v45, 16 }
 0x248   :  { %v1256_v15 = vadd.s32 %v1255_v23, %v1245_v61  ;;  %v16102_v35 = vunpack.i.h.bf16 %v15938_v5  ;;  %v21413_v3 = vand.u32 2147483647, %v15962_v44  ;;  %v561_v63 = vshll.u32 %v21872_v0, %v549_v52 }
 0x249   :  { %v565_v9 = vshrl.u32 %v21707_v12, %v16064_v62  ;;  %v16108_v8 = vshrl.u32 %v547_v13, 5  ;;  %v553_v56 = vshrl.u32 %v21877_v55, %v16064_v62  ;;  %v556_v1 = vshrl.u32 %v21878_v30, %v16064_v62 }
 0x24a   :  { %21900 = vst [vmem:[#allocation69_spill] sm:$0xff] %v16102_v35  ;;  %v559_v6 = vshrl.u32 %v21872_v0, %v16064_v62  ;;  %v1343_v5 = vshrl.u32 %v16072_v28, 16  ;;  %v16119_v20 = vmul.u32 %v21408_v46, %v1342_v37  ;;  %v563_v10 = vor.u32 %v562_v40, %v561_v63 }
 0x24b   :  { %v564_v11 = vshll.u32 %v21706_v49, %v549_v52  ;;  %v1366_v13 = vand.u32 65535, %v16068_v41  ;;  %v552_v23 = vshll.u32 %v21702_v17, %v549_v52  ;;  %v555_v38 = vshll.u32 %v21877_v55, %v549_v52 }
 0x24c   :  { %v558_v53 = vshll.u32 %v21878_v30, %v549_v52  ;;  %v16128_v26 = vmul.u32 %v21410_v22, %v1342_v37  ;;  %v542_v61 = vand.u32 8388607, %v21413_v3  ;;  %v666_v40 = vand.u32 2139095040, %v16102_v35 }
 0x24d   :  { %v566_v34 = vor.u32 %v565_v9, %v564_v11  ;;  %v16133_v63 = vor.u32 %v553_v56, %v552_v23  ;;  %v16135_v7 = vor.u32 %v556_v1, %v555_v38  ;;  %vm21414_vm11 = vcmp.lt.s32.totalorder %v16108_v8, 4 }
 0x24e   :  { %v16137_v46 = vor.u32 %v559_v6, %v558_v53  ;;  %v4873_v18 = vadd.s32 127, %v4872_v59  ;;  %v1344_v52 = vand.u32 65535, %v16088_v45  ;;  %v1372_v22 = vshll.u32 %v16119_v20, 16 }
 0x24f   :  { %v576_v44 = vsel %vm21414_vm11, %v563_v10, 920167782  ;;  %v16144_v3 = vadd.s32 %v1234_v42, %v1225_v29  ;;  %v1257_v9 = vadd.s32 %v1256_v15, %v1247_v14  ;;  %v1368_v11 = vmul.u32 %v1366_v13, %v1342_v37 }
 0x250   :  { %v16146_v56 = vmul.u32 %v1366_v13, %v1343_v5  ;;  %v1350_v1 = vshll.u32 %v16128_v26, 16  ;;  %vm21428_vm3 = vcmp.lt.s32.totalorder %v16108_v8, 1  ;;  %vm21417_vm2 = vcmp.lt.s32.totalorder %v16108_v8, 3 }
 0x251   :  { %21901 = vst [vmem:[#allocation70_spill] sm:$0xff] %v16144_v3  ;;  %v580_v59 = vsel %vm21414_vm11, %v566_v34, 1326507024  ;;  %v543_v6 = vor.u32 8388608, %v542_v61  ;;  %v575_v29 = vsel %vm21428_vm3, %v16133_v63, %v16135_v7  ;;  %v577_v14 = vsel %vm21417_vm2, %v16137_v46, %v576_v44 }
 0x252   :  { %v667_v42 = vshrl.u32 %v666_v40, 23  ;;  %v21902_v15 = vshll.u32 %v15970_v25, 16  ;;  %v1346_v23 = vmul.u32 %v1344_v52, %v1342_v37  ;;  %v16165_v38 = vmul.u32 %v1344_v52, %v1343_v5 }
 0x253   :  { %vm1376_vm13 = vc.u32 %v1368_v11, %v1372_v22  ;;  %v16167_v34 = vadd.s32 %v1372_v22, %v1368_v11  ;;  %vm21426_vm11 = vcmp.lt.s32.totalorder %v16108_v8, 2  ;;  %v579_v53 = vsel %vm21428_vm3, %v16135_v7, %v16137_v46 }
 0x254   :  { %v16163_v13 = vadd.s32 %v15985_v4, %v21902_v15  ;;  %v581_v44 = vsel %vm21417_vm2, %v563_v10, %v580_v59  ;;  %v1261_v25 = vadd.s32 1, %v1257_v9  ;;  %vm1354_vm4 = vc.u32 %v1346_v23, %v1350_v1 }
 0x255   :  { %v1356_v4 = vadd.s32 %v1350_v1, %v1346_v23  ;;  %v16178_v37 = vsel %vm21426_vm11, %v575_v29, %v577_v14  ;;  %v21420_v22 = vshll.u32 %v16146_v56, 16  ;;  %v16183_v61 = vshll.u32 %v543_v6, 8 }
 0x256   :  { %21903 = vst [vmem:[#allocation71_spill] sm:$0xff] %v16163_v13  ;;  %vm1260_vm0 = vc.u32 %v16144_v3, %v16163_v13  ;;  %v12503_v40 = vadd.s32 4294967169, %v667_v42  ;;  %v4874_v52 = vshll.u32 %v4873_v18, 23  ;;  %v1352_v11 = vshll.u32 %v16165_v38, 16 }
 0x257   :  { %v1377_v10 = vsel %vm1376_vm13, 1, %v21699_v39  ;;  %v16189_v1 = vsel %vm21426_vm11, %v579_v53, %v581_v44  ;;  %v1355_v59 = vsel %vm1354_vm4, 1, %v21699_v39  ;;  %v21904_v29 = vshrl.u32 %v16068_v41, 16 }
 0x258   :  { %vm1380_vm2 = vc.u32 %v16167_v34, %v21420_v22  ;;  %v1258_v18 = vmul.u32 %v15900_v43, %v16084_v33  ;;  %v1262_v42 = vsel %vm1260_vm0, %v1261_v25, %v1257_v9  ;;  %v21905_v15 = vshrl.u32 %v16088_v45, 16  ;;  %v21909_v9 = vld [vmem:[#allocation33_spill] sm:$0xff] }
 0x259   :  { %v1371_v14 = vmul.u32 %v21904_v29, %v1343_v5  ;;  %vm1358_vm13 = vc.u32 %v1356_v4, %v1352_v11  ;;  %v584_v44 = vand.u32 65535, %v16183_v61  ;;  %v587_v41 = vshrl.u32 %v16189_v1, 16 }
 0x25a   :  { %v1349_v23 = vmul.u32 %v21905_v15, %v1343_v5  ;;  %v673_v29 = vadd.s32 1, %v12503_v40  ;;  %v21906_v51 = vsub.s32 32, %v16062_v32  ;;  %v4875_v13 = vor.u32 4788187, %v4874_v52 }
 0x25b   :  { %v1379_v53 = vadd.s32 %v1377_v10, %v1371_v14  ;;  %v1381_v3 = vsel %vm1380_vm2, 1, %v21699_v39  ;;  %v21907_v33 = vand.u32 2147483647, %v15948_v54  ;;  %v21908_v45 = vcvt.s32.f32 %v15925_v36 }
 0x25c   :  { %v4870_v22 = vshrl.u32 %v16080_v27, %v21906_v51  ;;  %v1357_v6 = vadd.s32 %v1355_v59, %v1349_v23  ;;  %vm21423_vm4 = vcmp.lt.s32.totalorder %v21909_v9, 0  ;;  %v1359_v25 = vsel %vm1358_vm13, 1, %v21699_v39 }
 0x25d   :  { %v16213_v5 = vmul.f32 %v21908_v45, %v21907_v33  ;;  %v21910_v4 = vshrl.u32 %v16178_v37, 16  ;;  %v4752_v51 = vxor.u32 2147483648, %v16076_v2  ;;  %v4869_v27 = vshll.u32 %v15881_v21, %v16062_v32 }
 0x25e   :  { %v16224_v52 = vadd.s32 %v1262_v42, %v1258_v18  ;;  %v1309_v36 = vshrl.u32 %v21702_v17, %v15953_v47  ;;  %v1383_v54 = vadd.s32 %v1381_v3, %v1379_v53  ;;  %v16230_v11 = vmul.u32 %v587_v41, %v584_v44  ;;  %v21911_v42 = vld [vmem:[#allocation39_spill] sm:$0xff] }
 0x25f   :  { %v16219_v40 = vmul.u32 %v21910_v4, %v584_v44  ;;  %v608_v10 = vand.u32 65535, %v16178_v37  ;;  %vm674_vm0 = vcmp.gt.s32.totalorder %v673_v29, 0  ;;  %v4871_v59 = vor.u32 %v4870_v22, %v4869_v27 }
 0x260   :  { %v4876_v14 = vand.u32 2147483647, %v4875_v13  ;;  %v1361_v15 = vadd.s32 %v1359_v25, %v1357_v6  ;;  %v586_v23 = vand.u32 65535, %v16189_v1  ;;  %v1330_v21 = vsel %vm1328_vm8, %v16022_v57, 2102212464 }
 0x261   :  { %v1373_v32 = vshrl.u32 %v16119_v20, 16  ;;  %v585_v47 = vshrl.u32 %v16183_v61, 16  ;;  %v614_v3 = vshll.u32 %v16219_v40, 16  ;;  %v1264_v18 = vadd.s32 536870912, %v16224_v52 }
 0x262   :  { %v1329_v22 = vsel %vm1325_vm5, %v1309_v36, %v16018_v58  ;;  %v1351_v13 = vshrl.u32 %v16128_v26, 16  ;;  %v675_v6 = vsel %vm674_vm0, %v673_v29, 0  ;;  %vm21425_vm2 = vcmp.lt.s32.totalorder %v21911_v42, 0 }
 0x263   :  { %v1384_v53 = vadd.s32 %v1383_v54, %v1373_v32  ;;  %v592_v57 = vshll.u32 %v16230_v11, 16  ;;  %v610_v33 = vmul.u32 %v608_v10, %v584_v44  ;;  %v16247_v20 = vmul.u32 %v608_v10, %v585_v47 }
 0x264   :  { %v21912_v45 = vand.u32 2147483647, %v21909_v9  ;;  %vm21915_vm5 = vcmp.lt.s32.totalorder %v15980_v24, 3  ;;  %v1362_v26 = vadd.s32 %v1361_v15, %v1351_v13  ;;  %v1375_v29 = vshrl.u32 %v16146_v56, 16 }
 0x265   :  { %v1331_v58 = vsel %vm21915_vm5, %v16020_v16, %v1330_v21  ;;  %v588_v4 = vmul.u32 %v586_v23, %v584_v44  ;;  %v16259_v27 = vmul.u32 %v586_v23, %v585_v47  ;;  %vm618_vm13 = vc.u32 %v610_v33, %v614_v3 }
 0x266   :  { %vm16251_vm8 = vcmp.le.f32.partialorder %v21912_v45, 0.7853982  ;;  %v16261_v36 = vadd.s32 %v614_v3, %v610_v33  ;;  %v677_v54 = vand.u32 31, %v675_v6  ;;  %v4753_v10 = vsel %vm21423_vm4, %v4752_v51, %v16076_v2 }
 0x267   :  { %v4878_v32 = vcvt.s32.f32 %v4871_v59  ;;  %v16266_v45 = vshrl.u32 %v1264_v18, 30  ;;  %v1353_v43 = vshrl.u32 %v16165_v38, 16  ;;  %v1385_v16 = vadd.s32 %v1384_v53, %v1375_v29 }
 0x268   :  { %vm596_vm0 = vc.u32 %v588_v4, %v592_v57  ;;  %v598_v15 = vadd.s32 %v592_v57, %v588_v4  ;;  %v616_v44 = vshll.u32 %v16247_v20, 16  ;;  %vm21917_vm5 = vcmp.lt.s32.totalorder %v15980_v24, 2 }
 0x269   :  { %21916 = vst [vmem:[#allocation72_spill] sm:$0xff] %v16266_v45  ;;  %v4879_v23 = vmul.f32 %v4878_v32, %v4876_v14  ;;  %v1332_v21 = vsel %vm21917_vm5, %v1329_v22, %v1331_v58  ;;  %v16272_v3 = vadd.s32 %v1362_v26, %v1353_v43  ;;  %v619_v13 = vsel %vm618_vm13, 1, %v21699_v39 }
 0x26a   :  { %v594_v2 = vshll.u32 %v16259_v27, 16  ;;  %v21919_v51 = vshrl.u32 %v16178_v37, 16  ;;  %vm622_vm4 = vc.u32 %v16261_v36, %v616_v44  ;;  %v16281_v38 = vsub.s32 32, %v677_v54 }
 0x26b   :  { %21918 = vst [vmem:[#allocation73_spill] sm:$0xff] %v16272_v3  ;;  %v1266_v14 = vshll.u32 %v16266_v45, 30  ;;  %v21920_v24 = vshll.u32 %v16146_v56, 16  ;;  %v597_v18 = vsel %vm596_vm0, 1, %v21699_v39  ;;  %v21424_v22 = vand.u32 2147483647, %v16102_v35 }
 0x26c   :  { %v613_v59 = vmul.u32 %v21919_v51, %v585_v47  ;;  %v1389_v53 = vadd.s32 1, %v1385_v16  ;;  %v591_v37 = vmul.u32 %v587_v41, %v585_v47  ;;  %vm600_vm13 = vc.u32 %v598_v15, %v594_v2 }
 0x26d   :  { %v16287_v43 = vadd.s32 %v16167_v34, %v21920_v24  ;;  %v21922_v33 = vxor.u32 2147483648, %v15944_v31  ;;  %v470_v56 = vxor.u32 2147483648, %v16213_v5  ;;  %v21923_v34 = vld [vmem:[#allocation62_spill] sm:$0xff]  ;;  %v623_v26 = vsel %vm622_vm4, 1, %v21699_v39 }
 0x26e   :  { %v621_v57 = vadd.s32 %v619_v13, %v613_v59  ;;  %vm21427_vm5 = vcmp.lt.s32.totalorder %v21923_v34, 0  ;;  %v16308_v1 = vsel %vm16251_vm8, %v21909_v9, %v4753_v10  ;;  %v4880_v41 = vxor.u32 2147483648, %v4879_v23 }
 0x26f   :  { %21921 = vst [vmem:[#allocation74_spill] sm:$0xff] %v16287_v43  ;;  %v16298_v58 = vsel %vm21425_vm2, %v21922_v33, %v15944_v31  ;;  %vm1388_vm0 = vc.u32 %v16272_v3, %v16287_v43  ;;  %v599_v47 = vadd.s32 %v597_v18, %v591_v37  ;;  %v690_v31 = vshrl.u32 %v21706_v49, %v16281_v38  ;;  %v21925_v33 = vld [vmem:[#allocation53_spill] sm:$0xff] }
 0x270   :  { %21924 = vst [vmem:[#allocation75_spill] sm:$0xff] %v16308_v1  ;;  %v16313_v29 = vsub.s32 %v16224_v52, %v1266_v14  ;;  %v1386_v4 = vmul.u32 %v16072_v28, %v1332_v21  ;;  %v601_v32 = vsel %vm600_vm13, 1, %v21699_v39  ;;  %v670_v15 = vand.u32 8388607, %v21424_v22 }
 0x271   :  { %v1390_v13 = vsel %vm1388_vm0, %v1389_v53, %v1385_v16  ;;  %v625_v2 = vadd.s32 %v623_v26, %v621_v57  ;;  %v689_v10 = vshll.u32 %v21872_v0, %v677_v54  ;;  %v693_v51 = vshrl.u32 %v21707_v12, %v16281_v38 }
 0x272   :  { %v16322_v59 = vshrl.u32 %v675_v6, 5  ;;  %v681_v52 = vshrl.u32 %v21877_v55, %v16281_v38  ;;  %v684_v28 = vshrl.u32 %v21878_v30, %v16281_v38  ;;  %v687_v21 = vshrl.u32 %v21872_v0, %v16281_v38 }
 0x273   :  { %v603_v14 = vadd.s32 %v601_v32, %v599_v47  ;;  %v615_v16 = vshrl.u32 %v16219_v40, 16  ;;  %v691_v24 = vor.u32 %v690_v31, %v689_v10  ;;  %v692_v18 = vshll.u32 %v21706_v49, %v677_v54 }
 0x274   :  { %v16332_v53 = vadd.s32 %v1390_v13, %v1386_v4  ;;  %v680_v6 = vshll.u32 %v21702_v17, %v677_v54  ;;  %v683_v37 = vshll.u32 %v21877_v55, %v677_v54  ;;  %v686_v57 = vshll.u32 %v21878_v30, %v677_v54 }
 0x275   :  { %v16340_v26 = vmul.f32 %v16308_v1, %v16308_v1  ;;  %v593_v47 = vshrl.u32 %v16230_v11, 16  ;;  %v626_v40 = vadd.s32 %v625_v2, %v615_v16  ;;  %v694_v31 = vor.u32 %v693_v51, %v692_v18  ;;  %v139_v18 = vpop.permute.xlu1 %138 }
 0x276   :  { %v21927_v32 = vand.u32 2147483647, %v21923_v34  ;;  %v21928_v4 = vmov 0  ;;  %v16349_v13 = vor.u32 %v681_v52, %v680_v6  ;;  %v16351_v10 = vor.u32 %v684_v28, %v683_v37 }
 0x277   :  { %21926 = vst [vmem:[#allocation76_spill] sm:$0xff] %v16340_v26  ;;  %v16353_v54 = vor.u32 %v687_v21, %v686_v57  ;;  %vm21431_vm0 = vcmp.lt.s32.totalorder %v16322_v59, 4  ;;  %v4881_v22 = vsel %vm21427_vm5, %v4880_v41, %v4879_v23  ;;  %v1269_v11 = vsub.s32 0, %v16313_v29 }
 0x278   :  { %vm16345_vm13 = vcmp.le.f32.partialorder %v21927_v32, 0.7853982  ;;  %v604_v2 = vadd.s32 %v603_v14, %v593_v47  ;;  %v704_v51 = vsel %vm21431_vm0, %v691_v24, 920167782  ;;  %v21931_v16 = vand.u32 2147483647, %v21882_v60 }
 0x279   :  { %v21929_v4 = vsel %vm16345_vm13, 4294967295, %v21928_v4  ;;  %v21932_v52 = vmov 0  ;;  %v21935_v28 = vand.u32 2147483647, %v21911_v42  ;;  %v21936_v21 = vmov 0 }
 0x27a   :  { %21930 = vst [vmem:[#allocation77_spill] sm:$0xff] %v21929_v4  ;;  %vm16363_vm2 = vcmp.le.f32.partialorder %v21931_v16, 0.7853982  ;;  %vm1268_vm5 = vcmp.lt.s32.totalorder %v16313_v29, 0  ;;  %v1392_v23 = vadd.s32 536870912, %v16332_v53  ;;  %v617_v41 = vshrl.u32 %v16247_v20, 16 }
 0x27b   :  { %v21933_v52 = vsel %vm16363_vm2, 4294967295, %v21932_v52  ;;  %vm16369_vm11 = vcmp.le.f32.partialorder %v21935_v28, 0.7853982  ;;  %v671_v14 = vor.u32 8388608, %v670_v15  ;;  %v595_v6 = vshrl.u32 %v16259_v27, 16 }
 0x27c   :  { %21934 = vst [vmem:[#allocation78_spill] sm:$0xff] %v21933_v52  ;;  %v21937_v21 = vsel %vm16369_vm11, 4294967295, %v21936_v21  ;;  %vm21467_vm4 = vcmp.lt.s32.totalorder %v16322_v59, 1  ;;  %vm21432_vm3 = vcmp.lt.s32.totalorder %v16322_v59, 3  ;;  %v708_v37 = vsel %vm21431_vm0, %v694_v31, 1326507024 }
 0x27d   :  { %21938 = vst [vmem:[#allocation79_spill] sm:$0xff] %v21937_v21  ;;  %v21939_v57 = vand.u32 2147483647, %v21925_v33  ;;  %v21940_v47 = vmov 0  ;;  %vm21943_vm12 = vcmp.lt.s32.totalorder %v16108_v8, 4  ;;  %v627_v32 = vadd.s32 %v626_v40, %v617_v41  ;;  %v21964_v21 = vld [vmem:[#allocation70_spill] sm:$0xff] }
 0x27e   :  { %v572_v15 = vsel %vm21943_vm12, %v16137_v46, 2102212464  ;;  %v703_v27 = vsel %vm21467_vm4, %v16349_v13, %v16351_v10  ;;  %v705_v31 = vsel %vm21432_vm3, %v16353_v54, %v704_v51  ;;  %v1270_v16 = vsel %vm1268_vm5, %v1269_v11, %v16313_v29  ;;  %v16405_v46 = vld [vmem:[%s21236_s2] ss:$0 sm:$0xff] }
 0x27f   :  { %vm16383_vm10 = vcmp.le.f32.partialorder %v21939_v57, 0.7853982  ;;  %v551_v28 = vshrl.u32 %v21702_v17, %v16064_v62  ;;  %v16400_v57 = vadd.s32 %v604_v2, %v595_v6  ;;  %21945 = vst [vmem:[#allocation82_spill] sm:$0xff] %v16405_v46  ;;  %v191_v40 = vmul.f32 %v16405_v46, %v139_v18 }
 0x280   :  { %v21941_v47 = vsel %vm16383_vm10, 4294967295, %v21940_v47  ;;  %v16408_v41 = vshrl.u32 %v1392_v23, 30  ;;  %vm21444_vm12 = vcmp.lt.s32.totalorder %v16322_v59, 2  ;;  %v707_v11 = vsel %vm21467_vm4, %v16351_v10, %v16353_v54 }
 0x281   :  { %21942 = vst [vmem:[#allocation80_spill] sm:$0xff] %v21941_v47  ;;  %v709_v62 = vsel %vm21432_vm3, %v691_v24, %v708_v37  ;;  %vm21947_vm5 = vcmp.lt.s32.totalorder %v16108_v8, 1  ;;  %vm21948_vm0 = vcmp.lt.s32.totalorder %v16108_v8, 3  ;;  %v16426_v23 = vadd.s32 %v16261_v36, %v616_v44 }
 0x282   :  { %21944 = vst [vmem:[#allocation81_spill] sm:$0xff] %v16400_v57  ;;  %v571_v2 = vsel %vm21947_vm5, %v551_v28, %v16133_v63  ;;  %v573_v51 = vsel %vm21948_vm0, %v16135_v7, %v572_v15  ;;  %v16430_v18 = vsel %vm21444_vm12, %v703_v27, %v705_v31  ;;  %vm21950_vm3 = vcmp.lt.s32.totalorder %v21925_v33, 0 }
 0x283   :  { %21946 = vst [vmem:[#allocation83_spill] sm:$0xff] %v16408_v41  ;;  %v471_v24 = vsel %vm21950_vm3, %v470_v56, %v16213_v5  ;;  %v631_v63 = vadd.s32 1, %v627_v32  ;;  %v16437_v6 = vshll.u32 %v671_v14, 8  ;;  %v207_v37 = vpack.c.bf16 %v191_v40, %v191_v40 }
 0x284   :  { %21949 = vst [vmem:[#allocation84_spill] sm:$0xff] %v16426_v23  ;;  %v16442_v7 = vsel %vm16345_vm13, %v21923_v34, %v4881_v22  ;;  %v4901_v20 = vmul.f32 -0.00019511016, %v16340_v26  ;;  %vm630_vm0 = vc.u32 %v16400_v57, %v16426_v23  ;;  %v16449_v36 = vsel %vm21444_vm12, %v707_v11, %v709_v62 }
 0x285   :  { %21951 = vst [vmem:[#allocation85_spill] sm:$0xff] %v16442_v7  ;;  %v1271_v44 = vclz %v1270_v16  ;;  %vm21952_vm3 = vcmp.lt.s32.totalorder %v16108_v8, 2  ;;  %v21435_v56 = vshrl.u32 %v16430_v18, 16  ;;  %v16454_v14 = vunpack.i.l.bf16 %v207_v37 }
 0x286   :  { %v574_v5 = vsel %vm21952_vm3, %v571_v2, %v573_v51  ;;  %v16460_v22 = vsel %vm16363_vm2, %v21882_v60, %v15942_v48  ;;  %v16466_v15 = vsel %vm16369_vm11, %v21911_v42, %v16298_v58  ;;  %v4754_v27 = vsub.s32 4, %v15669_v19 }
 0x287   :  { %21953 = vst [vmem:[#allocation86_spill] sm:$0xff] %v16454_v14  ;;  %v1394_v8 = vshll.u32 %v16408_v41, 30  ;;  %v632_v31 = vsel %vm630_vm0, %v631_v63, %v627_v32  ;;  %v712_v16 = vand.u32 65535, %v16437_v6  ;;  %v715_v28 = vshrl.u32 %v16449_v36, 16 }
 0x288   :  { %21954 = vst [vmem:[#allocation87_spill] sm:$0xff] %v16460_v22  ;;  %v2428_v40 = vand.u32 2139095040, %v16454_v14  ;;  %v16476_v48 = vsel %vm16383_vm10, %v21925_v33, %v471_v24  ;;  %v16480_v58 = vmul.f32 %v16442_v7, %v16442_v7  ;;  %v4902_v11 = vadd.f32 0.008332121, %v4901_v20 }
 0x289   :  { %21955 = vst [vmem:[#allocation88_spill] sm:$0xff] %v16466_v15  ;;  %v628_v62 = vmul.u32 %v16183_v61, %v574_v5  ;;  %v16485_v32 = vmul.f32 %v16460_v22, %v16460_v22  ;;  %v12513_v2 = vadd.s32 4294967294, %v1271_v44  ;;  %v16489_v51 = vmul.u32 %v21435_v56, %v712_v16 }
 0x28a   :  { %21956 = vst [vmem:[#allocation89_spill] sm:$0xff] %v16476_v48  ;;  %v2429_v63 = vshrl.u32 %v2428_v40, 23  ;;  %v16493_v24 = vmul.f32 %v16466_v15, %v16466_v15  ;;  %v16496_v41 = vsub.s32 %v16332_v53, %v1394_v8  ;;  %v736_v61 = vand.u32 65535, %v16430_v18 }
 0x28b   :  { %21957 = vst [vmem:[#allocation90_spill] sm:$0xff] %v16480_v58  ;;  %v16498_v20 = vadd.s32 %v632_v31, %v628_v62  ;;  %v16503_v5 = vmul.f32 %v16476_v48, %v16476_v48  ;;  %vm21962_vm5 = vcmp.lt.s32.totalorder %v21909_v9, 0  ;;  %v16510_v40 = vmul.u32 %v715_v28, %v712_v16 }
 0x28c   :  { %21958 = vst [vmem:[#allocation91_spill] sm:$0xff] %v16485_v32  ;;  %v16508_v44 = vsel %vm21962_vm5, %v4754_v27, %v15669_v19  ;;  %v12536_v56 = vadd.s32 4294967169, %v2429_v63  ;;  %v4903_v53 = vmul.f32 %v4902_v11, %v16340_v26  ;;  %v4909_v8 = vmul.f32 -0.00019511016, %v16480_v58 }
 0x28d   :  { %21959 = vst [vmem:[#allocation92_spill] sm:$0xff] %v16493_v24  ;;  %v714_v31 = vand.u32 65535, %v16449_v36  ;;  %vm12514_vm0 = vcmp.lt.s32.totalorder %v12513_v2, 0  ;;  %v713_v62 = vshrl.u32 %v16437_v6, 16  ;;  %v742_v45 = vshll.u32 %v16489_v51, 16 }
 0x28e   :  { %21960 = vst [vmem:[#allocation93_spill] sm:$0xff] %v16496_v41  ;;  %v2435_v52 = vadd.s32 1, %v12536_v56  ;;  %vm1396_vm3 = vcmp.lt.s32.totalorder %v16496_v41, 0  ;;  %v1397_v19 = vsub.s32 0, %v16496_v41  ;;  %v634_v27 = vadd.s32 536870912, %v16498_v20 }
 0x28f   :  { %21961 = vst [vmem:[#allocation94_spill] sm:$0xff] %v16503_v5  ;;  %v738_v63 = vmul.u32 %v736_v61, %v712_v16  ;;  %v720_v22 = vshll.u32 %v16510_v40, 16  ;;  %v16522_v11 = vmul.u32 %v736_v61, %v713_v62  ;;  %v16524_v9 = vunpack.i.h.bf16 %v207_v37  ;;  %v21965_v5 = vld [vmem:[#allocation71_spill] sm:$0xff] }
 0x290   :  { %vm2436_vm5 = vcmp.gt.s32.totalorder %v2435_v52, 0  ;;  %v4910_v36 = vadd.f32 0.008332121, %v4909_v8  ;;  %v16526_v60 = vsel %vm12514_vm0, 0, %v12513_v2  ;;  %v716_v32 = vmul.u32 %v714_v31, %v712_v16 }
 0x291   :  { %21963 = vst [vmem:[#allocation95_spill] sm:$0xff] %v16524_v9  ;;  %v2437_v48 = vsel %vm2436_vm5, %v2435_v52, 0  ;;  %v16528_v56 = vmul.u32 %v714_v31, %v713_v62  ;;  %vm746_vm12 = vc.u32 %v738_v63, %v742_v45  ;;  %v16530_v15 = vadd.s32 %v742_v45, %v738_v63 }
 0x292   :  { %v2439_v47 = vand.u32 31, %v2437_v48  ;;  %v16532_v33 = vadd.f32 -0.16666654, %v4903_v53  ;;  %v1259_v61 = vadd.s32 %v21965_v5, %v21964_v21  ;;  %v1398_v37 = vsel %vm1396_vm3, %v1397_v19, %v16496_v41 }
 0x293   :  { %v16539_v8 = vshrl.u32 %v634_v27, 30  ;;  %v726_v2 = vadd.s32 %v720_v22, %v716_v32  ;;  %v21456_v52 = vshll.u32 %v16522_v11, 16  ;;  %v2556_v45 = vand.u32 2139095040, %v16524_v9 }
 0x294   :  { %v16542_v16 = vsub.s32 32, %v2439_v47  ;;  %v16546_v31 = vmul.f32 %v4910_v36, %v16480_v58  ;;  %v1275_v53 = vsub.s32 32, %v16526_v60  ;;  %vm724_vm0 = vc.u32 %v716_v32, %v720_v22 }
 0x295   :  { %21966 = vst [vmem:[#allocation70_spill] sm:$0xff] %v16539_v8  ;;  %v747_v21 = vsel %vm746_vm12, 1, %v21699_v39  ;;  %v1279_v5 = vsub.s32 4294967266, %v16526_v60  ;;  %v722_v19 = vshll.u32 %v16528_v56, 16  ;;  %v21968_v27 = vshrl.u32 %v16430_v18, 16 }
 0x296   :  { %21967 = vst [vmem:[#allocation71_spill] sm:$0xff] %v16542_v16  ;;  %vm750_vm3 = vc.u32 %v16530_v15, %v21456_v52  ;;  %v1399_v24 = vclz %v1398_v37  ;;  %v636_v36 = vshll.u32 %v16539_v8, 30  ;;  %v719_v42 = vmul.u32 %v715_v28, %v713_v62 }
 0x297   :  { %v741_v63 = vmul.u32 %v21968_v27, %v713_v62  ;;  %v2452_v22 = vshrl.u32 %v21706_v49, %v16542_v16  ;;  %v725_v32 = vsel %vm724_vm0, 1, %v21699_v39  ;;  %vm728_vm12 = vc.u32 %v726_v2, %v722_v19 }
 0x298   :  { %v2557_v7 = vshrl.u32 %v2556_v45, 23  ;;  %v751_v1 = vsel %vm750_vm3, 1, %v21699_v39  ;;  %v2451_v27 = vshll.u32 %v21872_v0, %v2439_v47  ;;  %v2455_v37 = vshrl.u32 %v21707_v12, %v16542_v16 }
 0x299   :  { %v749_v35 = vadd.s32 %v747_v21, %v741_v63  ;;  %v16566_v52 = vshrl.u32 %v2437_v48, 5  ;;  %v2443_v28 = vshrl.u32 %v21877_v55, %v16542_v16  ;;  %v2446_v62 = vshrl.u32 %v21878_v30, %v16542_v16 }
 0x29a   :  { %v2449_v2 = vshrl.u32 %v21872_v0, %v16542_v16  ;;  %v727_v45 = vadd.s32 %v725_v32, %v719_v42  ;;  %v729_v21 = vsel %vm728_vm12, 1, %v21699_v39  ;;  %v2453_v19 = vor.u32 %v2452_v22, %v2451_v27 }
 0x29b   :  { %v2454_v63 = vshll.u32 %v21706_v49, %v2439_v47  ;;  %v2442_v18 = vshll.u32 %v21702_v17, %v2439_v47  ;;  %v2445_v48 = vshll.u32 %v21877_v55, %v2439_v47  ;;  %v2448_v8 = vshll.u32 %v21878_v30, %v2439_v47 }
 0x29c   :  { %v12539_v4 = vadd.s32 4294967169, %v2557_v7  ;;  %v1276_v23 = vshll.u32 %v16313_v29, %v16526_v60  ;;  %v753_v57 = vadd.s32 %v751_v1, %v749_v35  ;;  %v21969_v41 = vand.u32 2147483647, %v16454_v14 }
 0x29d   :  { %v2456_v42 = vor.u32 %v2455_v37, %v2454_v63  ;;  %v16583_v32 = vor.u32 %v2443_v28, %v2442_v18  ;;  %v16585_v22 = vor.u32 %v2446_v62, %v2445_v48  ;;  %v16587_v27 = vor.u32 %v2449_v2, %v2448_v8 }
 0x29e   :  { %v2432_v16 = vand.u32 8388607, %v21969_v41  ;;  %vm21468_vm5 = vcmp.lt.s32.totalorder %v16566_v52, 4  ;;  %v1280_v43 = vadd.s32 127, %v1279_v5  ;;  %v12516_v3 = vadd.s32 4294967294, %v1399_v24 }
 0x29f   :  { %v731_v47 = vadd.s32 %v729_v21, %v727_v45  ;;  %v2466_v7 = vsel %vm21468_vm5, %v2453_v19, 920167782  ;;  %v1277_v60 = vshrl.u32 %v1259_v61, %v1275_v53  ;;  %v16593_v35 = vsub.s32 %v16498_v20, %v636_v36  ;;  %v134_v53 = vpop.permute.xlu0 %133 }
 0x2a0   :  { %v743_v1 = vshrl.u32 %v16489_v51, 16  ;;  %v2563_v29 = vadd.s32 1, %v12539_v4  ;;  %v721_v41 = vshrl.u32 %v16510_v40, 16  ;;  %vm21469_vm0 = vcmp.lt.s32.totalorder %v16566_v52, 1 }
 0x2a1   :  { %vm21470_vm3 = vcmp.lt.s32.totalorder %v16566_v52, 3  ;;  %v2470_v24 = vsel %vm21468_vm5, %v2456_v42, 1326507024  ;;  %v2433_v5 = vor.u32 8388608, %v2432_v16  ;;  %v2465_v20 = vsel %vm21469_vm0, %v16583_v32, %v16585_v22 }
 0x2a2   :  { %v754_v8 = vadd.s32 %v753_v57, %v743_v1  ;;  %v2467_v4 = vsel %vm21470_vm3, %v16587_v27, %v2466_v7  ;;  %v1281_v51 = vshll.u32 %v1280_v43, 23  ;;  %v732_v40 = vadd.s32 %v731_v47, %v721_v41 }
 0x2a3   :  { %v745_v61 = vshrl.u32 %v16522_v11, 16  ;;  %vm21471_vm4 = vcmp.lt.s32.totalorder %v16566_v52, 2  ;;  %v2469_v57 = vsel %vm21469_vm0, %v16585_v22, %v16587_v27  ;;  %v2471_v16 = vsel %vm21470_vm3, %v2453_v19, %v2470_v24 }
 0x2a4   :  { %vm2564_vm5 = vcmp.gt.s32.totalorder %v2563_v29, 0  ;;  %v639_v36 = vsub.s32 0, %v16593_v35  ;;  %v679_v43 = vshrl.u32 %v21702_v17, %v16281_v38  ;;  %v723_v18 = vshrl.u32 %v16528_v56, 16 }
 0x2a5   :  { %v16622_v37 = vsel %vm21471_vm4, %v2465_v20, %v2467_v4  ;;  %vm638_vm12 = vcmp.lt.s32.totalorder %v16593_v35, 0  ;;  %vm21970_vm0 = vcmp.lt.s32.totalorder %v16322_v59, 4  ;;  %v755_v62 = vadd.s32 %v754_v8, %v745_v61 }
 0x2a6   :  { %v700_v28 = vsel %vm21970_vm0, %v16353_v54, 2102212464  ;;  %v16628_v2 = vshll.u32 %v2433_v5, 8  ;;  %v16630_v45 = vadd.s32 %v732_v40, %v723_v18  ;;  %v16634_v38 = vsel %vm21471_vm4, %v2469_v57, %v2471_v16 }
 0x2a7   :  { %v2565_v56 = vsel %vm2564_vm5, %v2563_v29, 0  ;;  %v190_v21 = vmul.f32 %v16405_v46, %v134_v53  ;;  %v1278_v19 = vor.u32 %v1277_v60, %v1276_v23  ;;  %v1282_v63 = vor.u32 4788187, %v1281_v51 }
 0x2a8   :  { %21971 = vst [vmem:[#allocation96_spill] sm:$0xff] %v16630_v45  ;;  %vm21972_vm3 = vcmp.lt.s32.totalorder %v12516_v3, 0  ;;  %v21473_v42 = vshrl.u32 %v16622_v37, 16  ;;  %v640_v54 = vsel %vm638_vm12, %v639_v36, %v16593_v35  ;;  %vm21973_vm0 = vcmp.lt.s32.totalorder %v16322_v59, 1 }
 0x2a9   :  { %v16638_v48 = vsel %vm21972_vm3, 0, %v12516_v3  ;;  %v699_v47 = vsel %vm21973_vm0, %v679_v43, %v16349_v13  ;;  %vm21974_vm4 = vcmp.lt.s32.totalorder %v16322_v59, 3  ;;  %v21975_v1 = vshll.u32 %v16522_v11, 16 }
 0x2aa   :  { %v701_v7 = vsel %vm21974_vm4, %v16351_v10, %v700_v28  ;;  %v759_v60 = vadd.s32 1, %v755_v62  ;;  %v2474_v3 = vand.u32 65535, %v16628_v2  ;;  %v21472_v29 = vshrl.u32 %v16634_v38, 16 }
 0x2ab   :  { %v16651_v23 = vadd.s32 %v16530_v15, %v21975_v1  ;;  %v2567_v41 = vand.u32 31, %v2565_v56  ;;  %v4905_v24 = vmul.f32 %v16532_v33, %v16340_v26  ;;  %v4912_v13 = vadd.f32 -0.16666654, %v16546_v31 }
 0x2ac   :  { %v16660_v10 = vpack.c.bf16 %v190_v21, %v190_v21  ;;  %v16665_v15 = vsel %vm16251_vm8, 0, %v16508_v44  ;;  %v1283_v11 = vand.u32 2147483647, %v1282_v63  ;;  %vm21978_vm4 = vcmp.lt.s32.totalorder %v16322_v59, 2 }
 0x2ad   :  { %21976 = vst [vmem:[#allocation97_spill] sm:$0xff] %v16651_v23  ;;  %vm758_vm5 = vc.u32 %v16630_v45, %v16651_v23  ;;  %v702_v8 = vsel %vm21978_vm4, %v699_v47, %v701_v7  ;;  %v16671_v5 = vmul.u32 %v21473_v42, %v2474_v3  ;;  %v21979_v33 = vsub.s32 4, %v15841_v50 }
 0x2ae   :  { %21977 = vst [vmem:[#allocation98_spill] sm:$0xff] %v16665_v15  ;;  %vm21980_vm3 = vcmp.lt.s32.totalorder %v21923_v34, 0  ;;  %v1285_v20 = vcvt.s32.f32 %v1278_v19  ;;  %v1407_v25 = vsub.s32 4294967266, %v16638_v48  ;;  %v641_v44 = vclz %v640_v54 }
 0x2af   :  { %v16678_v31 = vsel %vm21980_vm3, %v21979_v33, %v15841_v50  ;;  %v760_v4 = vsel %vm758_vm5, %v759_v60, %v755_v62  ;;  %v16683_v59 = vmul.u32 %v21472_v29, %v2474_v3  ;;  %v2498_v51 = vand.u32 65535, %v16622_v37 }
 0x2b0   :  { %v16686_v40 = vsub.s32 32, %v2567_v41  ;;  %v16688_v61 = vadd.f32 1.0, %v4905_v24  ;;  %v16691_v57 = vmul.f32 %v4912_v13, %v16480_v58  ;;  %v756_v50 = vmul.u32 %v16437_v6, %v702_v8 }
 0x2b1   :  { %v16695_v16 = vunpack.i.l.bf16 %v16660_v10  ;;  %v16697_v53 = vmul.f32 %v1285_v20, %v1283_v11  ;;  %v2476_v43 = vand.u32 65535, %v16634_v38  ;;  %v2504_v18 = vshll.u32 %v16671_v5, 16 }
 0x2b2   :  { %v16702_v28 = vadd.s32 127, %v1407_v25  ;;  %v12501_v62 = vadd.s32 4294967294, %v641_v44  ;;  %v16704_v21 = vadd.s32 %v760_v4, %v756_v50  ;;  %v2475_v19 = vshrl.u32 %v16628_v2, 16 }
 0x2b3   :  { %21981 = vst [vmem:[#allocation99_spill] sm:$0xff] %v16695_v16  ;;  %v2482_v6 = vshll.u32 %v16683_v59, 16  ;;  %v2500_v63 = vmul.u32 %v2498_v51, %v2474_v3  ;;  %v2580_v47 = vshrl.u32 %v21706_v49, %v16686_v40  ;;  %v16713_v1 = vshrl.u32 %v2565_v56, 5 }
 0x2b4   :  { %v16711_v7 = vmul.u32 %v2498_v51, %v2475_v19  ;;  %v2583_v60 = vshrl.u32 %v21707_v12, %v16686_v40  ;;  %v2113_v24 = vand.u32 2139095040, %v16695_v16  ;;  %v2478_v13 = vmul.u32 %v2476_v43, %v2474_v3 }
 0x2b5   :  { %v16718_v11 = vmul.u32 %v2476_v43, %v2475_v19  ;;  %vm16720_vm8 = vc.u32 %v2500_v63, %v2504_v18  ;;  %v2579_v33 = vshll.u32 %v21872_v0, %v2567_v41  ;;  %v2571_v20 = vshrl.u32 %v21877_v55, %v16686_v40 }
 0x2b6   :  { %v2574_v56 = vshrl.u32 %v21878_v30, %v16686_v40  ;;  %v2577_v25 = vshrl.u32 %v21872_v0, %v16686_v40  ;;  %v2582_v3 = vshll.u32 %v21706_v49, %v2567_v41  ;;  %vm16732_vm0 = vc.u32 %v2478_v13, %v2482_v6 }
 0x2b7   :  { %v2488_v4 = vadd.s32 %v2482_v6, %v2478_v13  ;;  %v16736_v51 = vadd.s32 %v2504_v18, %v2500_v63  ;;  %v2581_v50 = vor.u32 %v2580_v47, %v2579_v33  ;;  %v2570_v43 = vshll.u32 %v21702_v17, %v2567_v41 }
 0x2b8   :  { %v2573_v36 = vshll.u32 %v21877_v55, %v2567_v41  ;;  %v2576_v29 = vshll.u32 %v21878_v30, %v2567_v41  ;;  %v2584_v54 = vor.u32 %v2583_v60, %v2582_v3  ;;  %v2484_v42 = vshll.u32 %v16718_v11, 16  ;;  %v21991_v3 = vld [vmem:[#allocation74_spill] sm:$0xff] }
 0x2b9   :  { %v21986_v34 = vshrl.u32 %v16622_v37, 16  ;;  %v2506_v58 = vshll.u32 %v16711_v7, 16  ;;  %v21987_v26 = vand.u32 2147483647, %v16524_v9  ;;  %v16747_v18 = vor.u32 %v2571_v20, %v2570_v43 }
 0x2ba   :  { %v16749_v63 = vor.u32 %v2574_v56, %v2573_v36  ;;  %v16751_v47 = vor.u32 %v2577_v25, %v2576_v29  ;;  %vm21494_vm5 = vcmp.lt.s32.totalorder %v16713_v1, 4  ;;  %v21988_v41 = vshrl.u32 %v16634_v38, 16  ;;  %v21990_v25 = vld [vmem:[#allocation73_spill] sm:$0xff] }
 0x2bb   :  { %v2503_v15 = vmul.u32 %v21986_v34, %v2475_v19  ;;  %v2560_v6 = vand.u32 8388607, %v21987_v26  ;;  %v2487_v34 = vsel %vm16732_vm0, 1, %v21699_v39  ;;  %v2509_v37 = vsel %vm16720_vm8, 1, %v21699_v39 }
 0x2bc   :  { %v2481_v60 = vmul.u32 %v21988_v41, %v2475_v19  ;;  %v2594_v26 = vsel %vm21494_vm5, %v2581_v50, 920167782  ;;  %vm2490_vm4 = vc.u32 %v2488_v4, %v2484_v42  ;;  %vm2512_vm3 = vc.u32 %v16736_v51, %v2506_v58 }
 0x2bd   :  { %v2598_v38 = vsel %vm21494_vm5, %v2584_v54, 1326507024  ;;  %v2114_v29 = vshrl.u32 %v2113_v24, 23  ;;  %v762_v36 = vadd.s32 536870912, %v16704_v21  ;;  %v2561_v19 = vor.u32 8388608, %v2560_v6 }
 0x2be   :  { %vm21493_vm0 = vcmp.lt.s32.totalorder %v16713_v1, 1  ;;  %vm21492_vm12 = vcmp.lt.s32.totalorder %v16713_v1, 3  ;;  %v2489_v13 = vadd.s32 %v2487_v34, %v2481_v60  ;;  %v2511_v8 = vadd.s32 %v2509_v37, %v2503_v15 }
 0x2bf   :  { %v2593_v42 = vsel %vm21493_vm0, %v16747_v18, %v16749_v63  ;;  %v2595_v33 = vsel %vm21492_vm12, %v16751_v47, %v2594_v26  ;;  %v2491_v54 = vsel %vm2490_vm4, 1, %v21699_v39  ;;  %v2513_v24 = vsel %vm2512_vm3, 1, %v21699_v39  ;;  %v21993_v26 = vld [vmem:[#allocation93_spill] sm:$0xff] }
 0x2c0   :  { %v2597_v20 = vsel %vm21493_vm0, %v16749_v63, %v16751_v47  ;;  %v2599_v15 = vsel %vm21492_vm12, %v2581_v50, %v2598_v38  ;;  %v16788_v56 = vadd.f32 1.0, %v16691_v57  ;;  %v1387_v44 = vadd.s32 %v21991_v3, %v21990_v25 }
 0x2c1   :  { %vm21491_vm8 = vcmp.lt.s32.totalorder %v16713_v1, 2  ;;  %v12530_v4 = vadd.s32 4294967169, %v2114_v29  ;;  %vm21992_vm4 = vcmp.lt.s32.totalorder %v12501_v62, 0  ;;  %v16801_v60 = vshll.u32 %v2561_v19, 8 }
 0x2c2   :  { %21989 = vst [vmem:[#allocation100_spill] sm:$0xff] %v16788_v56  ;;  %v16795_v6 = vsel %vm21992_vm4, 0, %v12501_v62  ;;  %v16799_v41 = vsel %vm21491_vm8, %v2593_v42, %v2595_v33  ;;  %v2493_v50 = vadd.s32 %v2491_v54, %v2489_v13  ;;  %v2515_v57 = vadd.s32 %v2513_v24, %v2511_v8 }
 0x2c3   :  { %v16805_v34 = vsel %vm21491_vm8, %v2597_v20, %v2599_v15  ;;  %v2120_v37 = vadd.s32 1, %v12530_v4  ;;  %v21994_v29 = vsub.s32 32, %v16638_v48  ;;  %v16814_v42 = vshrl.u32 %v762_v36, 30 }
 0x2c4   :  { %v2483_v19 = vshrl.u32 %v16683_v59, 16  ;;  %v2505_v13 = vshrl.u32 %v16671_v5, 16  ;;  %v21481_v8 = vshrl.u32 %v16799_v41, 16  ;;  %v21480_v54 = vshrl.u32 %v16805_v34, 16  ;;  %v21997_v59 = vld [vmem:[#allocation71_spill] sm:$0xff] }
 0x2c5   :  { %v16811_v62 = vshrl.u32 %v1387_v44, %v21994_v29  ;;  %21995 = vst [vmem:[#allocation73_spill] sm:$0xff] %v16814_v42  ;;  %vm2121_vm3 = vcmp.gt.s32.totalorder %v2120_v37, 0  ;;  %v16822_v24 = vunpack.i.h.bf16 %v16660_v10  ;;  %v2602_v36 = vand.u32 65535, %v16801_v60 }
 0x2c6   :  { %v2122_v20 = vsel %vm2121_vm3, %v2120_v37, 0  ;;  %v2494_v15 = vadd.s32 %v2493_v50, %v2483_v19  ;;  %v2516_v3 = vadd.s32 %v2515_v57, %v2505_v13  ;;  %v2441_v5 = vshrl.u32 %v21702_v17, %v21997_v59 }
 0x2c7   :  { %21996 = vst [vmem:[#allocation74_spill] sm:$0xff] %v16822_v24  ;;  %vm21998_vm4 = vcmp.lt.s32.totalorder %v16566_v52, 4  ;;  %v2626_v29 = vand.u32 65535, %v16799_v41  ;;  %v2124_v38 = vand.u32 31, %v2122_v20  ;;  %v2485_v37 = vshrl.u32 %v16718_v11, 16 }
 0x2c8   :  { %v2462_v4 = vsel %vm21998_vm4, %v16587_v27, 2102212464  ;;  %v2507_v50 = vshrl.u32 %v16711_v7, 16  ;;  %v16837_v57 = vmul.u32 %v21481_v8, %v2602_v36  ;;  %vm21999_vm3 = vcmp.lt.s32.totalorder %v16566_v52, 1 }
 0x2c9   :  { %v16842_v19 = vsel %vm21999_vm3, %v2441_v5, %v16583_v32  ;;  %v2603_v27 = vshrl.u32 %v16801_v60, 16  ;;  %v16847_v13 = vmul.u32 %v21480_v54, %v2602_v36  ;;  %v16849_v59 = vsub.s32 32, %v2124_v38 }
 0x2ca   :  { %vm22000_vm4 = vcmp.lt.s32.totalorder %v16566_v52, 3  ;;  %v16854_v43 = vadd.s32 %v2494_v15, %v2485_v37  ;;  %v16859_v33 = vadd.s32 %v16736_v51, %v2506_v58  ;;  %v16861_v32 = vadd.s32 %v2516_v3, %v2507_v50 }
 0x2cb   :  { %v2463_v11 = vsel %vm22000_vm4, %v16585_v22, %v2462_v4  ;;  %v2604_v5 = vand.u32 65535, %v16805_v34  ;;  %v2628_v25 = vmul.u32 %v2626_v29, %v2602_v36  ;;  %v16864_v10 = vmul.u32 %v2626_v29, %v2603_v27 }
 0x2cc   :  { %v2128_v54 = vshrl.u32 %v21877_v55, %v16849_v59  ;;  %v2632_v8 = vshll.u32 %v16837_v57, 16  ;;  %v16869_v22 = vshrl.u32 %v2122_v20, 5  ;;  %v2131_v7 = vshrl.u32 %v21878_v30, %v16849_v59 }
 0x2cd   :  { %v2134_v58 = vshrl.u32 %v21872_v0, %v16849_v59  ;;  %v2610_v51 = vshll.u32 %v16847_v13, 16  ;;  %v2127_v15 = vshll.u32 %v21702_v17, %v2124_v38  ;;  %v2136_v3 = vshll.u32 %v21872_v0, %v2124_v38 }
 0x2ce   :  { %v2137_v4 = vshrl.u32 %v21706_v49, %v16849_v59  ;;  %v2130_v29 = vshll.u32 %v21877_v55, %v2124_v38  ;;  %v2133_v20 = vshll.u32 %v21878_v30, %v2124_v38  ;;  %v2139_v37 = vshll.u32 %v21706_v49, %v2124_v38 }
 0x2cf   :  { %v2140_v50 = vshrl.u32 %v21707_v12, %v16849_v59  ;;  %v2606_v44 = vmul.u32 %v2604_v5, %v2602_v36  ;;  %v22001_v9 = vand.u32 2147483647, %v16695_v16  ;;  %v16887_v23 = vor.u32 %v2128_v54, %v2127_v15 }
 0x2d0   :  { %v2138_v45 = vor.u32 %v2137_v4, %v2136_v3  ;;  %v16889_v46 = vor.u32 %v2131_v7, %v2130_v29  ;;  %v16891_v0 = vor.u32 %v2134_v58, %v2133_v20  ;;  %vm21495_vm3 = vcmp.lt.s32.totalorder %v16869_v22, 4 }
 0x2d1   :  { %v2117_v14 = vand.u32 8388607, %v22001_v9  ;;  %v2141_v56 = vor.u32 %v2140_v50, %v2139_v37  ;;  %v16894_v30 = vmul.u32 %v2604_v5, %v2603_v27  ;;  %vm2636_vm4 = vc.u32 %v2628_v25, %v2632_v8 }
 0x2d2   :  { %v16896_v38 = vadd.s32 %v2632_v8, %v2628_v25  ;;  %v2151_v36 = vsel %vm21495_vm3, %v2138_v45, 920167782  ;;  %v2521_v9 = vadd.s32 1, %v16861_v32  ;;  %vm2614_vm12 = vc.u32 %v2606_v44, %v2610_v51 }
 0x2d3   :  { %v21496_v54 = vshll.u32 %v16864_v10, 16  ;;  %v2616_v7 = vadd.s32 %v2610_v51, %v2606_v44  ;;  %vm21501_vm0 = vcmp.lt.s32.totalorder %v16869_v22, 1  ;;  %vm21500_vm5 = vcmp.lt.s32.totalorder %v16869_v22, 3  ;;  %v22002_v44 = vld [vmem:[#allocation60_spill] sm:$0xff] }
 0x2d4   :  { %v2155_v25 = vsel %vm21495_vm3, %v2141_v56, 1326507024  ;;  %v2637_v8 = vsel %vm2636_vm4, 1, %v21699_v39  ;;  %v2118_v5 = vor.u32 8388608, %v2117_v14  ;;  %v2150_v58 = vsel %vm21501_vm0, %v16887_v23, %v16889_v46 }
 0x2d5   :  { %v2152_v15 = vsel %vm21500_vm5, %v16891_v0, %v2151_v36  ;;  %v2612_v51 = vshll.u32 %v16894_v30, 16  ;;  %v22003_v3 = vshrl.u32 %v16799_v41, 16  ;;  %vm2640_vm4 = vc.u32 %v16896_v38, %v21496_v54 }
 0x2d6   :  { %v2241_v14 = vand.u32 2139095040, %v16822_v24  ;;  %v2615_v56 = vsel %vm2614_vm12, 1, %v21699_v39  ;;  %vm21499_vm3 = vcmp.lt.s32.totalorder %v16869_v22, 2  ;;  %v2154_v29 = vsel %vm21501_vm0, %v16889_v46, %v16891_v0 }
 0x2d7   :  { %v2631_v4 = vmul.u32 %v22003_v3, %v2603_v27  ;;  %v2156_v20 = vsel %vm21500_vm5, %v2138_v45, %v2155_v25  ;;  %v22004_v41 = vshrl.u32 %v16805_v34, 16  ;;  %vm2618_vm8 = vc.u32 %v2616_v7, %v2612_v51 }
 0x2d8   :  { %v16936_v36 = vsel %vm21499_vm3, %v2150_v58, %v2152_v15  ;;  %v22005_v3 = vshll.u32 %v16814_v42, 30  ;;  %vm22006_vm12 = vcmp.lt.s32.totalorder %v16566_v52, 2  ;;  %v2641_v45 = vsel %vm2640_vm4, 1, %v21699_v39  ;;  %v22009_v15 = vld [vmem:[#allocation84_spill] sm:$0xff] }
 0x2d9   :  { %v2609_v37 = vmul.u32 %v22004_v41, %v2603_v27  ;;  %v2639_v50 = vadd.s32 %v2637_v8, %v2631_v4  ;;  %v2464_v16 = vsel %vm22006_vm12, %v16842_v19, %v2463_v11  ;;  %v16947_v25 = vshll.u32 %v2118_v5, 8 }
 0x2da   :  { %v16941_v54 = vsub.s32 %v16704_v21, %v22005_v3  ;;  %v22007_v34 = vshll.u32 %v16702_v28, 23  ;;  %v16955_v8 = vsel %vm21499_vm3, %v2154_v29, %v2156_v20  ;;  %v2242_v58 = vshrl.u32 %v2241_v14, 23  ;;  %v22008_v21 = vld [vmem:[#allocation81_spill] sm:$0xff] }
 0x2db   :  { %v2617_v7 = vadd.s32 %v2615_v56, %v2609_v37  ;;  %v629_v51 = vadd.s32 %v22009_v15, %v22008_v21  ;;  %vm22010_vm12 = vc.u32 %v16854_v43, %v16859_v33  ;;  %v2619_v19 = vsel %vm2618_vm8, 1, %v21699_v39 }
 0x2dc   :  { %v16951_v27 = vor.u32 4788187, %v22007_v34  ;;  %v2522_v52 = vsel %vm22010_vm12, %v2521_v9, %v16861_v32  ;;  %v2184_v28 = vshrl.u32 %v16936_v36, 16  ;;  %v645_v11 = vsub.s32 32, %v16795_v6 }
 0x2dd   :  { %v22011_v5 = vsub.s32 4294967266, %v16795_v6  ;;  %v2518_v56 = vmul.u32 %v16628_v2, %v2464_v16  ;;  %v2643_v14 = vadd.s32 %v2641_v45, %v2639_v50  ;;  %vm766_vm4 = vcmp.lt.s32.totalorder %v16941_v54, 0 }
 0x2de   :  { %v767_v29 = vsub.s32 0, %v16941_v54  ;;  %v2159_v20 = vand.u32 65535, %v16947_v25  ;;  %v2162_v32 = vshrl.u32 %v16955_v8, 16  ;;  %v2621_v41 = vadd.s32 %v2619_v19, %v2617_v7 }
 0x2df   :  { %v650_v4 = vadd.s32 127, %v22011_v5  ;;  %v16973_v9 = vadd.s32 %v2522_v52, %v2518_v56  ;;  %v2633_v37 = vshrl.u32 %v16837_v57, 16  ;;  %v12533_v3 = vadd.s32 4294967169, %v2242_v58 }
 0x2e0   :  { %v22012_v34 = vxor.u32 2147483648, %v16697_v53  ;;  %vm22013_vm8 = vcmp.lt.s32.totalorder %v22002_v44, 0  ;;  %v22014_v16 = vshll.u32 %v21993_v26, %v16638_v48  ;;  %v1411_v45 = vand.u32 2147483647, %v16951_v27 }
 0x2e1   :  { %v16990_v7 = vmul.u32 %v2184_v28, %v2159_v20  ;;  %v646_v57 = vshll.u32 %v16593_v35, %v16795_v6  ;;  %v647_v58 = vshrl.u32 %v629_v51, %v645_v11  ;;  %v2611_v21 = vshrl.u32 %v16847_v13, 16 }
 0x2e2   :  { %v16981_v2 = vsel %vm22013_vm8, %v22012_v34, %v16697_v53  ;;  %v1406_v50 = vor.u32 %v16811_v62, %v22014_v16  ;;  %v2644_v15 = vadd.s32 %v2643_v14, %v2633_v37  ;;  %v651_v53 = vshll.u32 %v650_v4, 23 }
 0x2e3   :  { %v768_v48 = vsel %vm766_vm4, %v767_v29, %v16941_v54  ;;  %v17000_v26 = vmul.u32 %v2162_v32, %v2159_v20  ;;  %v2183_v62 = vand.u32 65535, %v16936_v36  ;;  %v2524_v27 = vadd.s32 536870912, %v16973_v9 }
 0x2e4   :  { %v2622_v52 = vadd.s32 %v2621_v41, %v2611_v21  ;;  %v2635_v35 = vshrl.u32 %v16864_v10, 16  ;;  %v2248_v6 = vadd.s32 1, %v12533_v3  ;;  %vm22015_vm12 = vcmp.lt.s32.totalorder %v16713_v1, 4 }
 0x2e5   :  { %v2590_v13 = vsel %vm22015_vm12, %v16751_v47, 2102212464  ;;  %v2160_v51 = vshrl.u32 %v16947_v25, 16  ;;  %v2161_v19 = vand.u32 65535, %v16955_v8  ;;  %v2189_v11 = vshll.u32 %v16990_v7, 16 }
 0x2e6   :  { %v769_v5 = vclz %v768_v48  ;;  %v2569_v4 = vshrl.u32 %v21702_v17, %v16686_v40  ;;  %v2613_v56 = vshrl.u32 %v16894_v30, 16  ;;  %v2645_v14 = vadd.s32 %v2644_v15, %v2635_v35 }
 0x2e7   :  { %v2167_v29 = vshll.u32 %v17000_v26, 16  ;;  %v2185_v41 = vmul.u32 %v2183_v62, %v2159_v20  ;;  %v17015_v37 = vmul.u32 %v2183_v62, %v2160_v51  ;;  %vm2249_vm4 = vcmp.gt.s32.totalorder %v2248_v6, 0 }
 0x2e8   :  { %v17017_v47 = vshrl.u32 %v2524_v27, 30  ;;  %vm22017_vm8 = vcmp.lt.s32.totalorder %v16713_v1, 1  ;;  %vm22018_vm12 = vcmp.lt.s32.totalorder %v16713_v1, 3  ;;  %v17025_v40 = vadd.s32 %v2622_v52, %v2613_v56 }
 0x2e9   :  { %v2589_v3 = vsel %vm22017_vm8, %v2569_v4, %v16747_v18  ;;  %v2591_v34 = vsel %vm22018_vm12, %v16749_v63, %v2590_v13  ;;  %v2163_v30 = vmul.u32 %v2161_v19, %v2159_v20  ;;  %v17027_v16 = vmul.u32 %v2161_v19, %v2160_v51 }
 0x2ea   :  { %22016 = vst [vmem:[#allocation93_spill] sm:$0xff] %v17017_v47  ;;  %vm2193_vm3 = vc.u32 %v2185_v41, %v2189_v11  ;;  %v17029_v21 = vadd.s32 %v2189_v11, %v2185_v41  ;;  %v652_v15 = vor.u32 4788187, %v651_v53  ;;  %v12504_v48 = vadd.s32 4294967294, %v769_v5 }
 0x2eb   :  { %v22019_v62 = vshll.u32 %v16864_v10, 16  ;;  %v2250_v18 = vsel %vm2249_vm4, %v2248_v6, 0  ;;  %v22020_v35 = vand.u32 2147483647, %v22002_v44  ;;  %v22021_v63 = vmov 0 }
 0x2ec   :  { %v2649_v20 = vadd.s32 1, %v2645_v14  ;;  %vm2171_vm12 = vc.u32 %v2163_v30, %v2167_v29  ;;  %v2173_v52 = vadd.s32 %v2167_v29, %v2163_v30  ;;  %v21504_v13 = vshll.u32 %v17015_v37, 16 }
 0x2ed   :  { %v17034_v27 = vadd.s32 %v16896_v38, %v22019_v62  ;;  %vm17038_vm8 = vcmp.le.f32.partialorder %v22020_v35, 0.7853982  ;;  %v2526_v53 = vshll.u32 %v17017_v47, 30  ;;  %vm22024_vm5 = vcmp.lt.s32.totalorder %v16713_v1, 2  ;;  %v22030_v62 = vld [vmem:[#allocation100_spill] sm:$0xff] }
 0x2ee   :  { %v22022_v63 = vsel %vm17038_vm8, 4294967295, %v22021_v63  ;;  %v2592_v10 = vsel %vm22024_vm5, %v2589_v3, %v2591_v34  ;;  %v2194_v38 = vsel %vm2193_vm3, 1, %v21699_v39  ;;  %v2169_v6 = vshll.u32 %v17027_v16, 16 }
 0x2ef   :  { %22023 = vst [vmem:[#allocation71_spill] sm:$0xff] %v22022_v63  ;;  %vm2648_vm0 = vc.u32 %v17025_v40, %v17034_v27  ;;  %v2188_v19 = vmul.u32 %v2184_v28, %v2160_v51  ;;  %vm2197_vm4 = vc.u32 %v17029_v21, %v21504_v13  ;;  %v2252_v11 = vand.u32 31, %v2250_v18  ;;  %v154_v13 = vpop.permute.xlu1 %153 }
 0x2f0   :  { %v1413_v5 = vcvt.s32.f32 %v1406_v50  ;;  %v648_v4 = vor.u32 %v647_v58, %v646_v57  ;;  %vm12505_vm1 = vcmp.lt.s32.totalorder %v12504_v48, 0  ;;  %v2172_v1 = vsel %vm2171_vm12, 1, %v21699_v39 }
 0x2f1   :  { %v2650_v56 = vsel %vm2648_vm0, %v2649_v20, %v2645_v14  ;;  %v2166_v29 = vmul.u32 %v2162_v32, %v2160_v51  ;;  %vm2175_vm5 = vc.u32 %v2173_v52, %v2169_v6  ;;  %v2196_v41 = vadd.s32 %v2194_v38, %v2188_v19 }
 0x2f2   :  { %v17058_v3 = vmul.f32 %v1413_v5, %v1411_v45  ;;  %v653_v36 = vand.u32 2147483647, %v652_v15  ;;  %v2646_v28 = vmul.u32 %v16801_v60, %v2592_v10  ;;  %v2198_v34 = vsel %vm2197_vm4, 1, %v21699_v39  ;;  %v22027_v15 = vld [vmem:[#allocation75_spill] sm:$0xff] }
 0x2f3   :  { %v17062_v30 = vsel %vm12505_vm1, 0, %v12504_v48  ;;  %v17065_v50 = vsub.s32 %v16973_v9, %v2526_v53  ;;  %v2174_v57 = vadd.s32 %v2172_v1, %v2166_v29  ;;  %v17067_v58 = vsub.s32 32, %v2252_v11  ;;  %v22029_v9 = vld [vmem:[#allocation85_spill] sm:$0xff] }
 0x2f4   :  { %v655_v14 = vcvt.s32.f32 %v648_v4  ;;  %v17069_v8 = vadd.s32 %v2650_v56, %v2646_v28  ;;  %v2176_v32 = vsel %vm2175_vm5, 1, %v21699_v39  ;;  %v21503_v45 = vand.u32 2147483647, %v16822_v24 }
 0x2f5   :  { %v17076_v60 = vsel %vm16345_vm13, 0, %v16678_v31  ;;  %v17080_v48 = vmul.f32 %v16688_v61, %v22027_v15  ;;  %v17084_v35 = vmul.f32 %v22030_v62, %v22029_v9  ;;  %v2200_v20 = vadd.s32 %v2198_v34, %v2196_v41 }
 0x2f6   :  { %22026 = vst [vmem:[#allocation81_spill] sm:$0xff] %v17076_v60  ;;  %v17090_v52 = vsel %vm17038_vm8, %v22002_v44, %v16981_v2  ;;  %v1415_v53 = vxor.u32 2147483648, %v17058_v3  ;;  %v17093_v10 = vmul.f32 %v655_v14, %v653_v36  ;;  %v777_v31 = vsub.s32 4294967266, %v17062_v30  ;;  %v22034_v36 = vld [vmem:[#allocation32_spill] sm:$0xff] }
 0x2f7   :  { %22028 = vst [vmem:[#allocation84_spill] sm:$0xff] %v17080_v48  ;;  %vm2528_vm1 = vcmp.lt.s32.totalorder %v17065_v50, 0  ;;  %v2178_v61 = vadd.s32 %v2176_v32, %v2174_v57  ;;  %v2190_v38 = vshrl.u32 %v16990_v7, 16  ;;  %v2265_v6 = vshrl.u32 %v21706_v49, %v17067_v58 }
 0x2f8   :  { %22031 = vst [vmem:[#allocation77_spill] sm:$0xff] %v17084_v35  ;;  %v2529_v19 = vsub.s32 0, %v17065_v50  ;;  %v2652_v5 = vadd.s32 536870912, %v17069_v8  ;;  %v2126_v2 = vshrl.u32 %v21702_v17, %v16849_v59  ;;  %v2245_v4 = vand.u32 8388607, %v21503_v45 }
 0x2f9   :  { %22032 = vst [vmem:[#allocation75_spill] sm:$0xff] %v17090_v52  ;;  %v2168_v1 = vshrl.u32 %v17000_v26, 16  ;;  %v2201_v56 = vadd.s32 %v2200_v20, %v2190_v38  ;;  %v2256_v29 = vshrl.u32 %v21877_v55, %v17067_v58  ;;  %v22033_v7 = vmov 2102212464  }
 0x2fa   :  { %v2264_v41 = vshll.u32 %v22033_v7, %v2252_v11  ;;  %vm21509_vm13 = vcmp.lt.s32.totalorder %v22034_v36, 0  ;;  %v17111_v28 = vshrl.u32 %v2250_v18, 5  ;;  %v22035_v34 = vmov 2131351028  }
 0x2fb   :  { %v2259_v57 = vshrl.u32 %v22035_v34, %v17067_v58  ;;  %v2262_v59 = vshrl.u32 %v22033_v7, %v17067_v58  ;;  %v2268_v14 = vshrl.u32 %v21707_v12, %v17067_v58  ;;  %v2179_v26 = vadd.s32 %v2178_v61, %v2168_v1 }
 0x2fc   :  { %v2192_v32 = vshrl.u32 %v17015_v37, 16  ;;  %v2255_v51 = vshll.u32 %v21702_v17, %v2252_v11  ;;  %v2266_v15 = vor.u32 %v2265_v6, %v2264_v41  ;;  %v17121_v9 = vshrl.u32 %v2652_v5, 30 }
 0x2fd   :  { %v2258_v18 = vshll.u32 %v21877_v55, %v2252_v11  ;;  %v2261_v62 = vshll.u32 %v22035_v34, %v2252_v11  ;;  %v2267_v20 = vshll.u32 %v21706_v49, %v2252_v11  ;;  %vm22037_vm0 = vcmp.lt.s32.totalorder %v16869_v22, 4 }
 0x2fe   :  { %22036 = vst [vmem:[#allocation85_spill] sm:$0xff] %v17121_v9  ;;  %v2147_v38 = vsel %vm22037_vm0, %v16891_v0, 2102212464  ;;  %v2170_v45 = vshrl.u32 %v17027_v16, 16  ;;  %v2202_v61 = vadd.s32 %v2201_v56, %v2192_v32  ;;  %v17130_v1 = vor.u32 %v2256_v29, %v2255_v51 }
 0x2ff   :  { %v17132_v47 = vor.u32 %v2259_v57, %v2258_v18  ;;  %v17134_v6 = vor.u32 %v2262_v59, %v2261_v62  ;;  %v2269_v5 = vor.u32 %v2268_v14, %v2267_v20  ;;  %vm21507_vm3 = vcmp.lt.s32.totalorder %v17111_v28, 4  ;;  %v22044_v57 = vld [vmem:[#allocation68_spill] sm:$0xff] }
 0x300   :  { %v2530_v11 = vsel %vm2528_vm1, %v2529_v19, %v17065_v50  ;;  %vm22038_vm12 = vcmp.lt.s32.totalorder %v16869_v22, 1  ;;  %v17143_v16 = vadd.s32 %v2179_v26, %v2170_v45  ;;  %v2279_v56 = vsel %vm21507_vm3, %v2266_v15, 920167782  ;;  %v22046_v45 = vld [vmem:[#allocation82_spill] sm:$0xff] }
 0x301   :  { %v2146_v0 = vsel %vm22038_vm12, %v2126_v2, %v16887_v23  ;;  %v22040_v29 = vand.u32 2147483647, %v22034_v36  ;;  %v22041_v41 = vmov 0  ;;  %v2654_v59 = vshll.u32 %v17121_v9, 30 }
 0x302   :  { %22039 = vst [vmem:[#allocation100_spill] sm:$0xff] %v17143_v16  ;;  %vm22045_vm1 = vcmp.lt.s32.totalorder %v16869_v22, 3  ;;  %v2246_v23 = vor.u32 8388608, %v2245_v4  ;;  %v194_v2 = vmul.f32 %v22046_v45, %v154_v13  ;;  %v22047_v14 = vshll.u32 %v17015_v37, 16 }
 0x303   :  { %vm17149_vm4 = vcmp.le.f32.partialorder %v22040_v29, 0.7853982  ;;  %v2148_v19 = vsel %vm22045_vm1, %v16889_v46, %v2147_v38  ;;  %v2206_v32 = vadd.s32 1, %v2202_v61  ;;  %vm21533_vm0 = vcmp.lt.s32.totalorder %v17111_v28, 1 }
 0x304   :  { %v22042_v41 = vsel %vm17149_vm4, 4294967295, %v22041_v41  ;;  %v17162_v26 = vadd.s32 %v17029_v21, %v22047_v14  ;;  %vm21508_vm12 = vcmp.lt.s32.totalorder %v17111_v28, 3  ;;  %v2278_v51 = vsel %vm21533_vm0, %v17130_v1, %v17132_v47  ;;  %v22058_v14 = vld [vmem:[#allocation97_spill] sm:$0xff] }
 0x305   :  { %22043 = vst [vmem:[#allocation101_spill] sm:$0xff] %v22042_v41  ;;  %v2280_v46 = vsel %vm21508_vm12, %v17134_v6, %v2279_v56  ;;  %v2283_v37 = vsel %vm21507_vm3, %v2269_v5, 1326507024  ;;  %v210_v13 = vpack.c.bf16 %v194_v2, %v194_v2  ;;  %v1416_v21 = vsel %vm21509_vm13, %v1415_v53, %v17058_v3  ;;  %v22057_v2 = vld [vmem:[#allocation96_spill] sm:$0xff] }
 0x306   :  { %22048 = vst [vmem:[#allocation82_spill] sm:$0xff] %v17162_v26  ;;  %v657_v4 = vxor.u32 2147483648, %v17093_v10  ;;  %v2531_v18 = vclz %v2530_v11  ;;  %vm2205_vm1 = vc.u32 %v17143_v16, %v17162_v26  ;;  %v22049_v62 = vand.u32 2147483647, %v22044_v57 }
 0x307   :  { %v22050_v20 = vmov 0  ;;  %v778_v38 = vadd.s32 127, %v777_v31  ;;  %vm22053_vm3 = vcmp.lt.s32.totalorder %v16869_v22, 2  ;;  %vm21532_vm12 = vcmp.lt.s32.totalorder %v17111_v28, 2 }
 0x308   :  { %vm17183_vm5 = vcmp.le.f32.partialorder %v22049_v62, 0.7853982  ;;  %v2149_v5 = vsel %vm22053_vm3, %v2146_v0, %v2148_v19  ;;  %v17190_v56 = vunpack.i.l.bf16 %v210_v13  ;;  %v773_v3 = vsub.s32 32, %v17062_v30 }
 0x309   :  { %v22051_v20 = vsel %vm17183_vm5, 4294967295, %v22050_v20  ;;  %v2281_v53 = vsel %vm21532_vm12, %v2278_v51, %v2280_v46  ;;  %v2282_v11 = vsel %vm21533_vm0, %v17132_v47, %v17134_v6  ;;  %vm22055_vm13 = vcmp.lt.s32.totalorder %v17111_v28, 3 }
 0x30a   :  { %22052 = vst [vmem:[#allocation102_spill] sm:$0xff] %v22051_v20  ;;  %v2284_v31 = vsel %vm22055_vm13, %v2266_v15, %v2283_v37  ;;  %v17202_v22 = vsub.s32 %v17069_v8, %v2654_v59  ;;  %v2207_v0 = vsel %vm2205_vm1, %v2206_v32, %v2202_v61  ;;  %v17204_v29 = vshll.u32 %v2246_v23, 8 }
 0x30b   :  { %22054 = vst [vmem:[#allocation103_spill] sm:$0xff] %v17190_v56  ;;  %v3373_v19 = vand.u32 2139095040, %v17190_v56  ;;  %v17209_v45 = vmul.f32 %v17090_v52, %v17090_v52  ;;  %v757_v51 = vadd.s32 %v22058_v14, %v22057_v2  ;;  %v12537_v46 = vadd.s32 4294967294, %v2531_v18 }
 0x30c   :  { %v2203_v62 = vmul.u32 %v16947_v25, %v2149_v5  ;;  %v779_v9 = vshll.u32 %v778_v38, 23  ;;  %v17216_v8 = vsel %vm21532_vm12, %v2282_v11, %v2284_v31  ;;  %v2312_v15 = vshrl.u32 %v2281_v53, 16 }
 0x30d   :  { %22056 = vst [vmem:[#allocation104_spill] sm:$0xff] %v17209_v45  ;;  %v3374_v61 = vshrl.u32 %v3373_v19, 23  ;;  %v17221_v59 = vsel %vm17149_vm4, %v22034_v36, %v1416_v21  ;;  %vm22060_vm13 = vcmp.lt.s32.totalorder %v22044_v57, 0  ;;  %v775_v32 = vshrl.u32 %v757_v51, %v773_v3 }
 0x30e   :  { %22059 = vst [vmem:[#allocation96_spill] sm:$0xff] %v17221_v59  ;;  %v658_v23 = vsel %vm22060_vm13, %v657_v4, %v17093_v10  ;;  %v17226_v37 = vadd.s32 %v2207_v0, %v2203_v62  ;;  %v774_v25 = vshll.u32 %v16941_v54, %v17062_v30  ;;  %v2657_v18 = vsub.s32 0, %v17202_v22 }
 0x30f   :  { %v2287_v38 = vand.u32 65535, %v17204_v29  ;;  %v12554_v5 = vadd.s32 4294967169, %v3374_v61  ;;  %vm12538_vm3 = vcmp.lt.s32.totalorder %v12537_v46, 0  ;;  %vm2656_vm1 = vcmp.lt.s32.totalorder %v17202_v22, 0 }
 0x310   :  { %v21512_v21 = vshrl.u32 %v17216_v8, 16  ;;  %v2311_v11 = vand.u32 65535, %v2281_v53  ;;  %v17236_v10 = vmul.f32 %v17221_v59, %v17221_v59  ;;  %v17238_v4 = vor.u32 4788187, %v779_v9 }
 0x311   :  { %v17240_v3 = vmul.u32 %v2312_v15, %v2287_v38  ;;  %v3380_v54 = vadd.s32 1, %v12554_v5  ;;  %v17245_v30 = vsel %vm17183_vm5, %v22044_v57, %v658_v23  ;;  %v17247_v31 = vor.u32 %v775_v32, %v774_v25 }
 0x312   :  { %22061 = vst [vmem:[#allocation97_spill] sm:$0xff] %v17236_v10  ;;  %v2209_v0 = vadd.s32 536870912, %v17226_v37  ;;  %v17251_v53 = vshrl.u32 %v17204_v29, 16  ;;  %v17253_v19 = vsel %vm12538_vm3, 0, %v12537_v46  ;;  %v2658_v9 = vsel %vm2656_vm1, %v2657_v18, %v17202_v22 }
 0x313   :  { %22062 = vst [vmem:[#allocation105_spill] sm:$0xff] %v17245_v30  ;;  %v2289_v2 = vand.u32 65535, %v17216_v8  ;;  %vm3381_vm13 = vcmp.gt.s32.totalorder %v3380_v54, 0  ;;  %v17259_v14 = vmul.u32 %v21512_v21, %v2287_v38  ;;  %v17264_v62 = vunpack.i.h.bf16 %v210_v13 }
 0x314   :  { %v17262_v51 = vmul.u32 %v2311_v11, %v17251_v53  ;;  %v3382_v61 = vsel %vm3381_vm13, %v3380_v54, 0  ;;  %v17269_v46 = vadd.s32 %v16859_v33, %v16854_v43  ;;  %v2317_v32 = vshll.u32 %v17240_v3, 16 }
 0x315   :  { %22063 = vst [vmem:[#allocation106_spill] sm:$0xff] %v17264_v62  ;;  %v3384_v25 = vand.u32 31, %v3382_v61  ;;  %v2535_v18 = vsub.s32 32, %v17253_v19  ;;  %v2539_v5 = vsub.s32 4294967266, %v17253_v19  ;;  %v2659_v21 = vclz %v2658_v9 }
 0x316   :  { %v17274_v35 = vshrl.u32 %v2209_v0, 30  ;;  %v2291_v48 = vmul.u32 %v2289_v2, %v2287_v38  ;;  %v2313_v13 = vmul.u32 %v2311_v11, %v2287_v38  ;;  %v2316_v54 = vmul.u32 %v2312_v15, %v17251_v53 }
 0x317   :  { %v17277_v60 = vsub.s32 32, %v3384_v25  ;;  %v2295_v23 = vshll.u32 %v17259_v14, 16  ;;  %v3501_v59 = vand.u32 2139095040, %v17264_v62  ;;  %v17285_v41 = vshrl.u32 %v3382_v61, 5 }
 0x318   :  { %22064 = vst [vmem:[#allocation107_spill] sm:$0xff] %v17274_v35  ;;  %v17283_v52 = vadd.s32 %v2317_v32, %v2313_v13  ;;  %v3387_v0 = vshll.u32 %v21702_v17, %v3384_v25  ;;  %v3396_v9 = vshll.u32 %v22033_v7, %v3384_v25  ;;  %v3390_v33 = vshll.u32 %v21877_v55, %v3384_v25 }
 0x319   :  { %v3388_v38 = vshrl.u32 %v21877_v55, %v17277_v60  ;;  %v3391_v15 = vshrl.u32 %v22035_v34, %v17277_v60  ;;  %v3394_v11 = vshrl.u32 %v22033_v7, %v17277_v60  ;;  %v3397_v43 = vshrl.u32 %v21706_v49, %v17277_v60 }
 0x31a   :  { %v3393_v61 = vshll.u32 %v22035_v34, %v3384_v25  ;;  %v3399_v63 = vshll.u32 %v21706_v49, %v3384_v25  ;;  %v3400_v10 = vshrl.u32 %v21707_v12, %v17277_v60  ;;  %vm2321_vm3 = vc.u32 %v2313_v13, %v2317_v32 }
 0x31b   :  { %v22065_v45 = vand.u32 2147483647, %v17190_v56  ;;  %v3398_v44 = vor.u32 %v3397_v43, %v3396_v9  ;;  %v3502_v20 = vshrl.u32 %v3501_v59, 23  ;;  %v17304_v42 = vor.u32 %v3388_v38, %v3387_v0 }
 0x31c   :  { %v17306_v57 = vor.u32 %v3391_v15, %v3390_v33  ;;  %v17308_v24 = vor.u32 %v3394_v11, %v3393_v61  ;;  %v3401_v26 = vor.u32 %v3400_v10, %v3399_v63  ;;  %v17311_v16 = vmul.u32 %v2289_v2, %v17251_v53 }
 0x31d   :  { %v3377_v36 = vand.u32 8388607, %v22065_v45  ;;  %vm17313_vm1 = vc.u32 %v2291_v48, %v2295_v23  ;;  %v2301_v32 = vadd.s32 %v2295_v23, %v2291_v48  ;;  %vm21547_vm13 = vcmp.lt.s32.totalorder %v17285_v41, 4 }
 0x31e   :  { %v2322_v45 = vsel %vm2321_vm3, 1, %v21699_v39  ;;  %v22068_v59 = vshll.u32 %v17262_v51, 16  ;;  %v3411_v63 = vsel %vm21547_vm13, %v3398_v44, 920167782  ;;  %v3415_v10 = vsel %vm21547_vm13, %v3401_v26, 1326507024 }
 0x31f   :  { %v3378_v2 = vor.u32 8388608, %v3377_v36  ;;  %vm21546_vm0 = vcmp.lt.s32.totalorder %v17285_v41, 1  ;;  %vm21535_vm15 = vcmp.lt.s32.totalorder %v17285_v41, 3  ;;  %v12557_v48 = vadd.s32 4294967169, %v3502_v20 }
 0x320   :  { %vm17322_vm12 = vc.u32 %v17283_v52, %v22068_v59  ;;  %v3410_v23 = vsel %vm21546_vm0, %v17304_v42, %v17306_v57  ;;  %v3412_v43 = vsel %vm21535_vm15, %v17308_v24, %v3411_v63  ;;  %v3414_v26 = vsel %vm21546_vm0, %v17306_v57, %v17308_v24 }
 0x321   :  { %v3416_v36 = vsel %vm21535_vm15, %v3398_v44, %v3415_v10  ;;  %v2540_v33 = vadd.s32 127, %v2539_v5  ;;  %v12540_v0 = vadd.s32 4294967294, %v2659_v21  ;;  %v2297_v20 = vshll.u32 %v17311_v16, 16 }
 0x322   :  { %v2324_v38 = vadd.s32 %v2322_v45, %v2316_v54  ;;  %v22071_v15 = vshrl.u32 %v17216_v8, 16  ;;  %v2300_v9 = vsel %vm17313_vm1, 1, %v21699_v39  ;;  %v2326_v61 = vsel %vm17322_vm12, 1, %v21699_v39 }
 0x323   :  { %vm21545_vm3 = vcmp.lt.s32.totalorder %v17285_v41, 2  ;;  %vm2303_vm15 = vc.u32 %v2301_v32, %v2297_v20  ;;  %v3508_v8 = vadd.s32 1, %v12557_v48  ;;  %v2537_v5 = vshrl.u32 %v17269_v46, %v2535_v18 }
 0x324   :  { %v2294_v11 = vmul.u32 %v22071_v15, %v17251_v53  ;;  %v17358_v44 = vsel %vm21545_vm3, %v3410_v23, %v3412_v43  ;;  %v17362_v21 = vsel %vm21545_vm3, %v3414_v26, %v3416_v36  ;;  %v783_v53 = vcvt.s32.f32 %v17247_v31 }
 0x325   :  { %v2211_v54 = vshll.u32 %v17274_v35, 30  ;;  %v17367_v25 = vshll.u32 %v3378_v2, 8  ;;  %v2536_v32 = vshll.u32 %v17065_v50, %v17253_v19  ;;  %vm12541_vm12 = vcmp.lt.s32.totalorder %v12540_v0, 0 }
 0x326   :  { %v2302_v45 = vadd.s32 %v2300_v9, %v2294_v11  ;;  %v2328_v59 = vadd.s32 %v2326_v61, %v2324_v38  ;;  %v2541_v13 = vshll.u32 %v2540_v33, 23  ;;  %v2304_v63 = vsel %vm2303_vm15, 1, %v21699_v39  ;;  %v149_v38 = vpop.permute.xlu0 %148 }
 0x327   :  { %v21537_v10 = vshrl.u32 %v17362_v21, 16  ;;  %v21538_v48 = vshrl.u32 %v17358_v44, 16  ;;  %v22072_v31 = vand.u32 2147483647, %v17238_v4  ;;  %v17380_v18 = vadd.s32 %v17034_v27, %v17025_v40 }
 0x328   :  { %v2318_v50 = vshrl.u32 %v17240_v3, 16  ;;  %vm3509_vm1 = vcmp.gt.s32.totalorder %v3508_v8, 0  ;;  %v17383_v19 = vor.u32 %v2537_v5, %v2536_v32  ;;  %v17385_v2 = vsel %vm12541_vm12, 0, %v12540_v0 }
 0x329   :  { %v17376_v46 = vmul.f32 %v783_v53, %v22072_v31  ;;  %v17388_v23 = vsub.s32 %v17226_v37, %v2211_v54  ;;  %v3419_v43 = vand.u32 65535, %v17367_v25  ;;  %v2254_v4 = vshrl.u32 %v21702_v17, %v17067_v58 }
 0x32a   :  { %vm22073_vm15 = vcmp.lt.s32.totalorder %v17111_v28, 4  ;;  %v2306_v27 = vadd.s32 %v2304_v63, %v2302_v45  ;;  %v2329_v26 = vadd.s32 %v2328_v59, %v2318_v50  ;;  %v17396_v3 = vor.u32 4788187, %v2541_v13 }
 0x32b   :  { %v2275_v40 = vsel %vm22073_vm15, %v17134_v6, 2102212464  ;;  %v17400_v36 = vmul.u32 %v21537_v10, %v3419_v43  ;;  %v17404_v37 = vmul.u32 %v21538_v48, %v3419_v43  ;;  %v3510_v33 = vsel %vm3509_vm1, %v3508_v8, 0 }
 0x32c   :  { %vm22074_vm12 = vcmp.lt.s32.totalorder %v17111_v28, 1  ;;  %v2296_v6 = vshrl.u32 %v17259_v14, 16  ;;  %v2320_v20 = vshrl.u32 %v17262_v51, 16  ;;  %v2214_v15 = vsub.s32 0, %v17388_v23 }
 0x32d   :  { %v2274_v58 = vsel %vm22074_vm12, %v2254_v4, %v17130_v1  ;;  %vm22075_vm15 = vcmp.lt.s32.totalorder %v17111_v28, 3  ;;  %v3421_v9 = vand.u32 65535, %v17362_v21  ;;  %v3443_v61 = vand.u32 65535, %v17358_v44 }
 0x32e   :  { %v2276_v11 = vsel %vm22075_vm15, %v17132_v47, %v2275_v40  ;;  %vm2213_vm1 = vcmp.lt.s32.totalorder %v17388_v23, 0  ;;  %v2307_v8 = vadd.s32 %v2306_v27, %v2296_v6  ;;  %v17419_v53 = vadd.s32 %v2329_v26, %v2320_v20  ;;  %v17427_v47 = vld [vmem:[%s21236_s2] ss:$0 sm:$0xff] }
 0x32f   :  { %v3512_v1 = vand.u32 31, %v3510_v33  ;;  %v3427_v14 = vshll.u32 %v17400_v36, 16  ;;  %v3449_v5 = vshll.u32 %v17404_v37, 16  ;;  %v21536_v54 = vand.u32 2147483647, %v17264_v62 }
 0x330   :  { %v193_v32 = vmul.f32 %v17427_v47, %v149_v38  ;;  %vm22076_vm12 = vcmp.lt.s32.totalorder %v17111_v28, 2  ;;  %v2298_v59 = vshrl.u32 %v17311_v16, 16  ;;  %v3420_v13 = vshrl.u32 %v17367_v25, 16 }
 0x331   :  { %v17432_v45 = vsel %vm22076_vm12, %v2274_v58, %v2276_v11  ;;  %v17436_v63 = vsub.s32 32, %v3512_v1  ;;  %v17439_v31 = vsel %vm2213_vm1, %v2214_v15, %v17388_v23  ;;  %v22077_v50 = vshll.u32 %v17262_v51, 16 }
 0x332   :  { %v3423_v40 = vmul.u32 %v3421_v9, %v3419_v43  ;;  %v3445_v27 = vmul.u32 %v3443_v61, %v3419_v43  ;;  %v17446_v26 = vadd.s32 %v2307_v8, %v2298_v59  ;;  %v2334_v28 = vadd.s32 1, %v17419_v53 }
 0x333   :  { %v17444_v4 = vadd.s32 %v17283_v52, %v22077_v50  ;;  %v17449_v58 = vmul.u32 %v3421_v9, %v3420_v13  ;;  %v17451_v16 = vmul.u32 %v3443_v61, %v3420_v13  ;;  %v3505_v52 = vand.u32 8388607, %v21536_v54 }
 0x334   :  { %vm17453_vm15 = vc.u32 %v3423_v40, %v3427_v14  ;;  %vm17457_vm1 = vc.u32 %v3445_v27, %v3449_v5  ;;  %v17463_v51 = vpack.c.bf16 %v193_v32, %v193_v32  ;;  %v17465_v43 = vadd.s32 %v3449_v5, %v3445_v27 }
 0x335   :  { %v17467_v38 = vshrl.u32 %v3510_v33, 5  ;;  %v3519_v15 = vshrl.u32 %v22035_v34, %v17436_v63  ;;  %v3524_v11 = vshll.u32 %v22033_v7, %v3512_v1  ;;  %v3522_v9 = vshrl.u32 %v22033_v7, %v17436_v63 }
 0x336   :  { %v3525_v61 = vshrl.u32 %v21706_v49, %v17436_v63  ;;  %v3527_v8 = vshll.u32 %v21706_v49, %v3512_v1  ;;  %v3528_v32 = vshrl.u32 %v21707_v12, %v17436_v63  ;;  %v3429_v5 = vshll.u32 %v17449_v58, 16 }
 0x337   :  { %v3433_v33 = vadd.s32 %v3427_v14, %v3423_v40  ;;  %v3451_v59 = vshll.u32 %v17451_v16, 16  ;;  %v3516_v50 = vshrl.u32 %v21877_v55, %v17436_v63  ;;  %v3518_v27 = vshll.u32 %v21877_v55, %v3512_v1 }
 0x338   :  { %v3521_v54 = vshll.u32 %v22035_v34, %v3512_v1  ;;  %v3526_v0 = vor.u32 %v3525_v61, %v3524_v11  ;;  %v3529_v10 = vor.u32 %v3528_v32, %v3527_v8  ;;  %v3432_v48 = vsel %vm17453_vm15, 1, %v21699_v39 }
 0x339   :  { %v22082_v35 = vshrl.u32 %v17358_v44, 16  ;;  %v3454_v14 = vsel %vm17457_vm1, 1, %v21699_v39  ;;  %v3515_v40 = vshll.u32 %v21702_v17, %v3512_v1  ;;  %vm3457_vm12 = vc.u32 %v17465_v43, %v3451_v59 }
 0x33a   :  { %v17497_v56 = vor.u32 %v3519_v15, %v3518_v27  ;;  %v17499_v11 = vor.u32 %v3522_v9, %v3521_v54  ;;  %vm21554_vm3 = vcmp.lt.s32.totalorder %v17467_v38, 4  ;;  %v22083_v6 = vshrl.u32 %v17362_v21, 16 }
 0x33b   :  { %v3448_v62 = vmul.u32 %v22082_v35, %v3420_v13  ;;  %vm3435_vm15 = vc.u32 %v3433_v33, %v3429_v5  ;;  %v17504_v35 = vor.u32 %v3516_v50, %v3515_v40  ;;  %v3543_v20 = vsel %vm21554_vm3, %v3529_v10, 1326507024 }
 0x33c   :  { %v3426_v44 = vmul.u32 %v22083_v6, %v3420_v13  ;;  %v2216_v1 = vclz %v17439_v31  ;;  %vm2333_vm1 = vc.u32 %v17446_v26, %v17444_v4  ;;  %v3539_v54 = vsel %vm21554_vm3, %v3526_v0, 920167782 }
 0x33d   :  { %v3456_v15 = vadd.s32 %v3454_v14, %v3448_v62  ;;  %v3458_v61 = vsel %vm3457_vm12, 1, %v21699_v39  ;;  %vm21553_vm0 = vcmp.lt.s32.totalorder %v17467_v38, 1  ;;  %vm21549_vm13 = vcmp.lt.s32.totalorder %v17467_v38, 3 }
 0x33e   :  { %v3434_v9 = vadd.s32 %v3432_v48, %v3426_v44  ;;  %v3436_v21 = vsel %vm3435_vm15, 1, %v21699_v39  ;;  %v3506_v13 = vor.u32 8388608, %v3505_v52  ;;  %v3542_v10 = vsel %vm21553_vm0, %v17497_v56, %v17499_v11 }
 0x33f   :  { %v3544_v62 = vsel %vm21549_vm13, %v3526_v0, %v3543_v20  ;;  %v2335_v31 = vsel %vm2333_vm1, %v2334_v28, %v17419_v53  ;;  %v3538_v48 = vsel %vm21553_vm0, %v17504_v35, %v17497_v56  ;;  %v3540_v8 = vsel %vm21549_vm13, %v17499_v11, %v3539_v54 }
 0x340   :  { %v17532_v52 = vunpack.i.l.bf16 %v17463_v51  ;;  %v2545_v32 = vcvt.s32.f32 %v17383_v19  ;;  %v2331_v5 = vmul.u32 %v17204_v29, %v17432_v45  ;;  %v3460_v0 = vadd.s32 %v3458_v61, %v3456_v15 }
 0x341   :  { %vm21548_vm12 = vcmp.lt.s32.totalorder %v17467_v38, 2  ;;  %v2543_v53 = vand.u32 2147483647, %v17396_v3  ;;  %v2663_v28 = vsub.s32 32, %v17385_v2  ;;  %v3438_v33 = vadd.s32 %v3436_v21, %v3434_v9 }
 0x342   :  { %22084 = vst [vmem:[#allocation108_spill] sm:$0xff] %v17532_v52  ;;  %v17542_v50 = vsel %vm21548_vm12, %v3542_v10, %v3544_v62  ;;  %v17544_v27 = vadd.s32 %v2335_v31, %v2331_v5  ;;  %v3450_v14 = vshrl.u32 %v17404_v37, 16  ;;  %v17549_v19 = vsel %vm21548_vm12, %v3538_v48, %v3540_v8 }
 0x343   :  { %v17551_v29 = vshll.u32 %v3506_v13, 8  ;;  %v22085_v45 = vsub.s32 4294967266, %v17385_v2  ;;  %v12531_v40 = vadd.s32 4294967294, %v2216_v1  ;;  %v3428_v6 = vshrl.u32 %v17400_v36, 16 }
 0x344   :  { %v3058_v44 = vand.u32 2139095040, %v17532_v52  ;;  %v17560_v15 = vmul.f32 %v17245_v30, %v17245_v30  ;;  %v3461_v37 = vadd.s32 %v3460_v0, %v3450_v14  ;;  %v3550_v54 = vshrl.u32 %v17542_v50, 16 }
 0x345   :  { %v2668_v3 = vadd.s32 127, %v22085_v45  ;;  %v17563_v9 = vmul.f32 %v2545_v32, %v2543_v53  ;;  %v2665_v61 = vshrl.u32 %v17380_v18, %v2663_v28  ;;  %v3439_v21 = vadd.s32 %v3438_v33, %v3428_v6 }
 0x346   :  { %22086 = vst [vmem:[#allocation109_spill] sm:$0xff] %v17560_v15  ;;  %v3572_v1 = vshrl.u32 %v17549_v19, 16  ;;  %v2664_v36 = vshll.u32 %v17202_v22, %v17385_v2  ;;  %v2337_v13 = vadd.s32 536870912, %v17544_v27  ;;  %v3452_v10 = vshrl.u32 %v17451_v16, 16 }
 0x347   :  { %v3547_v62 = vand.u32 65535, %v17551_v29  ;;  %v2669_v31 = vshll.u32 %v2668_v3, 23  ;;  %vm12532_vm15 = vcmp.lt.s32.totalorder %v12531_v40, 0  ;;  %v3430_v48 = vshrl.u32 %v17449_v58, 16 }
 0x348   :  { %v3059_v8 = vshrl.u32 %v3058_v44, 23  ;;  %v3386_v18 = vshrl.u32 %v21702_v17, %v17277_v60  ;;  %vm22087_vm1 = vcmp.lt.s32.totalorder %v17285_v41, 4  ;;  %v3462_v5 = vadd.s32 %v3461_v37, %v3452_v10 }
 0x349   :  { %v3407_v32 = vsel %vm22087_vm1, %v17308_v24, 2102212464  ;;  %v17578_v22 = vmul.u32 %v3550_v54, %v3547_v62  ;;  %v17580_v2 = vor.u32 %v2665_v61, %v2664_v36  ;;  %v17582_v0 = vadd.s32 %v3439_v21, %v3430_v48  ;;  %v22092_v48 = vld [vmem:[#allocation100_spill] sm:$0xff] }
 0x34a   :  { %v17586_v53 = vmul.u32 %v3572_v1, %v3547_v62  ;;  %v12548_v58 = vadd.s32 4294967169, %v3059_v8  ;;  %v17588_v28 = vsel %vm12532_vm15, 0, %v12531_v40  ;;  %v17590_v33 = vshrl.u32 %v2337_v13, 30  ;;  %v22093_v8 = vld [vmem:[#allocation82_spill] sm:$0xff] }
 0x34b   :  { %vm22089_vm12 = vcmp.lt.s32.totalorder %v17285_v41, 1  ;;  %v3549_v60 = vand.u32 65535, %v17542_v50  ;;  %vm22090_vm1 = vcmp.lt.s32.totalorder %v17285_v41, 3  ;;  %v17602_v45 = vadd.s32 %v17465_v43, %v3451_v59 }
 0x34c   :  { %22088 = vst [vmem:[#allocation110_spill] sm:$0xff] %v17590_v33  ;;  %v3406_v24 = vsel %vm22089_vm12, %v3386_v18, %v17304_v42  ;;  %v3408_v14 = vsel %vm22090_vm1, %v17306_v57, %v3407_v32  ;;  %v3571_v3 = vand.u32 65535, %v17549_v19  ;;  %v3065_v40 = vadd.s32 1, %v12548_v58 }
 0x34d   :  { %v17605_v6 = vor.u32 4788187, %v2669_v31  ;;  %v3466_v44 = vadd.s32 1, %v3462_v5  ;;  %v3548_v37 = vshrl.u32 %v17551_v29, 16  ;;  %v3555_v42 = vshll.u32 %v17578_v22, 16 }
 0x34e   :  { %v2224_v50 = vsub.s32 4294967266, %v17588_v28  ;;  %vm3465_vm12 = vc.u32 %v17582_v0, %v17602_v45  ;;  %v3577_v57 = vshll.u32 %v17586_v53, 16  ;;  %vm3066_vm15 = vcmp.gt.s32.totalorder %v3065_v40, 0 }
 0x34f   :  { %vm22091_vm1 = vcmp.lt.s32.totalorder %v17285_v41, 2  ;;  %v3551_v43 = vmul.u32 %v3549_v60, %v3547_v62  ;;  %v17615_v59 = vmul.u32 %v3549_v60, %v3548_v37  ;;  %v3067_v61 = vsel %vm3066_vm15, %v3065_v40, 0 }
 0x350   :  { %v3409_v16 = vsel %vm22091_vm1, %v3406_v24, %v3408_v14  ;;  %v2339_v21 = vshll.u32 %v17590_v33, 30  ;;  %v3573_v36 = vmul.u32 %v3571_v3, %v3547_v62  ;;  %v17618_v13 = vmul.u32 %v3571_v3, %v3548_v37 }
 0x351   :  { %v3069_v10 = vand.u32 31, %v3067_v61  ;;  %v2673_v31 = vcvt.s32.f32 %v17580_v2  ;;  %v2204_v18 = vadd.s32 %v22093_v8, %v22092_v48  ;;  %v3467_v32 = vsel %vm3465_vm12, %v3466_v44, %v3462_v5 }
 0x352   :  { %v3561_v58 = vadd.s32 %v3555_v42, %v3551_v43  ;;  %v3463_v41 = vmul.u32 %v17367_v25, %v3409_v16  ;;  %vm3559_vm1 = vc.u32 %v3551_v43, %v3555_v42  ;;  %v17624_v24 = vadd.s32 %v3577_v57, %v3573_v36 }
 0x353   :  { %v17626_v60 = vsub.s32 32, %v3069_v10  ;;  %v2220_v14 = vsub.s32 32, %v17588_v28  ;;  %v17629_v62 = vadd.s32 127, %v2224_v50  ;;  %v3557_v3 = vshll.u32 %v17615_v59, 16 }
 0x354   :  { %vm3581_vm15 = vc.u32 %v3573_v36, %v3577_v57  ;;  %v17633_v2 = vsub.s32 %v17544_v27, %v2339_v21  ;;  %v17635_v40 = vadd.s32 %v3467_v32, %v3463_v41  ;;  %v21550_v5 = vshll.u32 %v17618_v13, 16 }
 0x355   :  { %v3554_v44 = vmul.u32 %v3550_v54, %v3548_v37  ;;  %v3560_v42 = vsel %vm3559_vm1, 1, %v21699_v39  ;;  %vm3563_vm12 = vc.u32 %v3561_v58, %v3557_v3  ;;  %v3082_v50 = vshrl.u32 %v21706_v49, %v17626_v60 }
 0x356   :  { %v3582_v16 = vsel %vm3581_vm15, 1, %v21699_v39  ;;  %vm17646_vm13 = vc.u32 %v17624_v24, %v21550_v5  ;;  %v3073_v57 = vshrl.u32 %v21877_v55, %v17626_v60  ;;  %v3081_v54 = vshll.u32 %v22033_v7, %v3069_v10 }
 0x357   :  { %v17653_v43 = vshrl.u32 %v3067_v61, 5  ;;  %v3076_v21 = vshrl.u32 %v22035_v34, %v17626_v60  ;;  %v3079_v36 = vshrl.u32 %v22033_v7, %v17626_v60  ;;  %v3085_v48 = vshrl.u32 %v21707_v12, %v17626_v60 }
 0x358   :  { %v3562_v8 = vadd.s32 %v3560_v42, %v3554_v44  ;;  %v3576_v32 = vmul.u32 %v3572_v1, %v3548_v37  ;;  %v3072_v58 = vshll.u32 %v21702_v17, %v3069_v10  ;;  %v3083_v41 = vor.u32 %v3082_v50, %v3081_v54 }
 0x359   :  { %v3564_v3 = vsel %vm3563_vm12, 1, %v21699_v39  ;;  %v3075_v61 = vshll.u32 %v21877_v55, %v3069_v10  ;;  %v3078_v20 = vshll.u32 %v22035_v34, %v3069_v10  ;;  %v3084_v5 = vshll.u32 %v21706_v49, %v3069_v10 }
 0x35a   :  { %v3584_v25 = vadd.s32 %v3582_v16, %v3576_v32  ;;  %v3586_v33 = vsel %vm17646_vm13, 1, %v21699_v39  ;;  %v22096_v44 = vand.u32 2147483647, %v17532_v52  ;;  %v17673_v1 = vor.u32 %v3073_v57, %v3072_v58 }
 0x35b   :  { %v17675_v37 = vor.u32 %v3076_v21, %v3075_v61  ;;  %v17677_v42 = vor.u32 %v3079_v36, %v3078_v20  ;;  %v3086_v50 = vor.u32 %v3085_v48, %v3084_v5  ;;  %vm21555_vm1 = vcmp.lt.s32.totalorder %v17653_v43, 4  ;;  %v22098_v48 = vld [vmem:[#allocation69_spill] sm:$0xff] }
 0x35c   :  { %v3062_v19 = vand.u32 8388607, %v22096_v44  ;;  %v2671_v54 = vand.u32 2147483647, %v17605_v6  ;;  %v2222_v10 = vshrl.u32 %v2204_v18, %v2220_v14  ;;  %v17682_v16 = vunpack.i.h.bf16 %v17463_v51 }
 0x35d   :  { %v3096_v27 = vsel %vm21555_vm1, %v3083_v41, 920167782  ;;  %v2226_v32 = vshll.u32 %v17629_v62, 23  ;;  %vm2341_vm13 = vcmp.lt.s32.totalorder %v17633_v2, 0  ;;  %v2342_v57 = vsub.s32 0, %v17633_v2 }
 0x35e   :  { %22097 = vst [vmem:[#allocation100_spill] sm:$0xff] %v17682_v16  ;;  %v3469_v20 = vadd.s32 536870912, %v17635_v40  ;;  %v3566_v5 = vadd.s32 %v3564_v3, %v3562_v8  ;;  %v3588_v21 = vadd.s32 %v3586_v33, %v3584_v25  ;;  %vm21557_vm15 = vcmp.lt.s32.totalorder %v17653_v43, 1  ;;  %v22099_v8 = vld [vmem:[#allocation86_spill] sm:$0xff] }
 0x35f   :  { %vm21556_vm12 = vcmp.lt.s32.totalorder %v17653_v43, 3  ;;  %v3063_v6 = vor.u32 8388608, %v3062_v19  ;;  %v3095_v51 = vsel %vm21557_vm15, %v17673_v1, %v17675_v37  ;;  %v3100_v14 = vsel %vm21555_vm1, %v3086_v50, 1326507024 }
 0x360   :  { %v3097_v18 = vsel %vm21556_vm12, %v17677_v42, %v3096_v27  ;;  %v2674_v62 = vmul.f32 %v2673_v31, %v2671_v54  ;;  %v2221_v33 = vshll.u32 %v17388_v23, %v17588_v28  ;;  %v3578_v25 = vshrl.u32 %v17586_v53, 16  ;;  %v22101_v31 = vld [vmem:[#allocation95_spill] sm:$0xff] }
 0x361   :  { %v3186_v36 = vand.u32 2139095040, %v17682_v16  ;;  %vm21562_vm0 = vcmp.lt.s32.totalorder %v22098_v48, 0  ;;  %v2343_v58 = vsel %vm2341_vm13, %v2342_v57, %v17633_v2  ;;  %v17710_v3 = vshrl.u32 %v3469_v20, 30 }
 0x362   :  { %v3556_v61 = vshrl.u32 %v17578_v22, 16  ;;  %vm21558_vm1 = vcmp.lt.s32.totalorder %v17653_v43, 2  ;;  %v3589_v23 = vadd.s32 %v3588_v21, %v3578_v25  ;;  %v3099_v28 = vsel %vm21557_vm15, %v17675_v37, %v17677_v42 }
 0x363   :  { %22100 = vst [vmem:[#allocation82_spill] sm:$0xff] %v17710_v3  ;;  %v17717_v53 = vsel %vm21558_vm1, %v3095_v51, %v3097_v18  ;;  %vm22102_vm13 = vcmp.lt.s32.totalorder %v17653_v43, 3  ;;  %v2223_v19 = vor.u32 %v2222_v10, %v2221_v33  ;;  %v2227_v50 = vor.u32 4788187, %v2226_v32 }
 0x364   :  { %v3101_v44 = vsel %vm22102_vm13, %v3083_v41, %v3100_v14  ;;  %v3567_v22 = vadd.s32 %v3566_v5, %v3556_v61  ;;  %v17725_v54 = vshll.u32 %v3063_v6, 8  ;;  %v2547_v27 = vxor.u32 2147483648, %v17563_v9 }
 0x365   :  { %v2344_v57 = vclz %v2343_v58  ;;  %v3580_v20 = vshrl.u32 %v17618_v13, 16  ;;  %v3187_v21 = vshrl.u32 %v3186_v36, 23  ;;  %v3471_v51 = vshll.u32 %v17710_v3, 30 }
 0x366   :  { %v3558_v18 = vshrl.u32 %v17615_v59, 16  ;;  %v17733_v25 = vsel %vm21558_vm1, %v3099_v28, %v3101_v44  ;;  %v22103_v10 = vand.u32 2147483647, %v22098_v48  ;;  %v22104_v32 = vmov 0 }
 0x367   :  { %v2675_v5 = vxor.u32 2147483648, %v2674_v62  ;;  %v3514_v6 = vshrl.u32 %v21702_v17, %v17436_v63  ;;  %vm22107_vm15 = vcmp.lt.s32.totalorder %v17467_v38, 4  ;;  %v3590_v14 = vadd.s32 %v3589_v23, %v3580_v20 }
 0x368   :  { %vm17738_vm13 = vcmp.le.f32.partialorder %v22103_v10, 0.7853982  ;;  %v3535_v59 = vsel %vm22107_vm15, %v17499_v11, 2102212464  ;;  %v22108_v33 = vand.u32 2147483647, %v22099_v8  ;;  %v2230_v44 = vcvt.s32.f32 %v2223_v19 }
 0x369   :  { %v22105_v32 = vsel %vm17738_vm13, 4294967295, %v22104_v32  ;;  %v22109_v36 = vmov 0  ;;  %v22112_v58 = vand.u32 2147483647, %v22101_v31  ;;  %v22113_v61 = vmov 0 }
 0x36a   :  { %22106 = vst [vmem:[#allocation111_spill] sm:$0xff] %v22105_v32  ;;  %vm17749_vm1 = vcmp.le.f32.partialorder %v22108_v33, 0.7853982  ;;  %v2228_v28 = vand.u32 2147483647, %v2227_v50  ;;  %v17759_v63 = vadd.s32 %v3567_v22, %v3558_v18  ;;  %v3104_v10 = vand.u32 65535, %v17725_v54 }
 0x36b   :  { %v22110_v36 = vsel %vm17749_vm1, 4294967295, %v22109_v36  ;;  %vm17755_vm12 = vcmp.le.f32.partialorder %v22112_v58, 0.7853982  ;;  %v12534_v11 = vadd.s32 4294967294, %v2344_v57  ;;  %vm22116_vm15 = vcmp.lt.s32.totalorder %v17467_v38, 1 }
 0x36c   :  { %22111 = vst [vmem:[#allocation112_spill] sm:$0xff] %v22110_v36  ;;  %v22114_v61 = vsel %vm17755_vm12, 4294967295, %v22113_v61  ;;  %v3534_v23 = vsel %vm22116_vm15, %v3514_v6, %v17504_v35  ;;  %v3107_v20 = vshrl.u32 %v17733_v25, 16  ;;  %v12551_v33 = vadd.s32 4294967169, %v3187_v21 }
 0x36d   :  { %22115 = vst [vmem:[#allocation113_spill] sm:$0xff] %v22114_v61  ;;  %v17767_v41 = vsub.s32 %v17635_v40, %v3471_v51  ;;  %vm22117_vm3 = vcmp.lt.s32.totalorder %v17467_v38, 3  ;;  %v22118_v19 = vshll.u32 %v17618_v13, 16  ;;  %v22119_v57 = vshrl.u32 %v17717_v53, 16 }
 0x36e   :  { %v3536_v50 = vsel %vm22117_vm3, %v17497_v56, %v3535_v59  ;;  %v22120_v35 = vxor.u32 2147483648, %v17376_v46  ;;  %vm22121_vm15 = vcmp.lt.s32.totalorder %v22099_v8, 0  ;;  %v3594_v56 = vadd.s32 1, %v3590_v14 }
 0x36f   :  { %v17775_v22 = vadd.s32 %v17624_v24, %v22118_v19  ;;  %v17779_v18 = vmul.u32 %v22119_v57, %v3104_v10  ;;  %v2548_v21 = vsel %vm22121_vm15, %v2547_v27, %v17563_v9  ;;  %v3193_v51 = vadd.s32 1, %v12551_v33  ;;  %v22123_v24 = vld [vmem:[#allocation99_spill] sm:$0xff] }
 0x370   :  { %v786_v40 = vsel %vm21562_vm0, %v22120_v35, %v17376_v46  ;;  %vm22122_vm3 = vcmp.lt.s32.totalorder %v22101_v31, 0  ;;  %vm21581_vm7 = vcmp.lt.s32.totalorder %v22123_v24, 0  ;;  %v2231_v6 = vmul.f32 %v2230_v44, %v2228_v28 }
 0x371   :  { %v2676_v13 = vsel %vm22122_vm3, %v2675_v5, %v2674_v62  ;;  %vm3593_vm14 = vc.u32 %v17759_v63, %v17775_v22  ;;  %v3128_v59 = vand.u32 65535, %v17717_v53  ;;  %vm12535_vm9 = vcmp.lt.s32.totalorder %v12534_v11, 0 }
 0x372   :  { %vm22124_vm0 = vcmp.lt.s32.totalorder %v17467_v38, 2  ;;  %v17797_v58 = vmul.u32 %v3107_v20, %v3104_v10  ;;  %vm3194_vm15 = vcmp.gt.s32.totalorder %v3193_v51, 0  ;;  %v3474_v9 = vsub.s32 0, %v17767_v41 }
 0x373   :  { %v3537_v46 = vsel %vm22124_vm0, %v3534_v23, %v3536_v50  ;;  %v3105_v27 = vshrl.u32 %v17725_v54, 16  ;;  %v3134_v62 = vshll.u32 %v17779_v18, 16  ;;  %v3195_v5 = vsel %vm3194_vm15, %v3193_v51, 0 }
 0x374   :  { %vm3473_vm3 = vcmp.lt.s32.totalorder %v17767_v41, 0  ;;  %v3595_v28 = vsel %vm3593_vm14, %v3594_v56, %v3590_v14  ;;  %v3106_v44 = vand.u32 65535, %v17733_v25  ;;  %v17804_v33 = vand.u32 31, %v3195_v5 }
 0x375   :  { %v17809_v38 = vsel %vm17738_vm13, %v22098_v48, %v786_v40  ;;  %v3591_v23 = vmul.u32 %v17551_v29, %v3537_v46  ;;  %v3130_v50 = vmul.u32 %v3128_v59, %v3104_v10  ;;  %v17812_v19 = vmul.u32 %v3128_v59, %v3105_v27 }
 0x376   :  { %22125 = vst [vmem:[#allocation114_spill] sm:$0xff] %v17809_v38  ;;  %v17817_v57 = vsel %vm17749_vm1, %v22099_v8, %v2548_v21  ;;  %v17822_v25 = vsel %vm17755_vm12, %v22101_v31, %v2676_v13  ;;  %v2232_v14 = vxor.u32 2147483648, %v2231_v6  ;;  %v3112_v35 = vshll.u32 %v17797_v58, 16  ;;  %v169_v31 = vpop.permute.xlu1 %168 }
 0x377   :  { %22126 = vst [vmem:[#allocation115_spill] sm:$0xff] %v17817_v57  ;;  %v17826_v40 = vsel %vm12535_vm9, 0, %v12534_v11  ;;  %v3475_v29 = vsel %vm3473_vm3, %v3474_v9, %v17767_v41  ;;  %v17829_v56 = vadd.s32 %v3595_v28, %v3591_v23  ;;  %v17831_v51 = vadd.s32 %v3134_v62, %v3130_v50 }
 0x378   :  { %22127 = vst [vmem:[#allocation116_spill] sm:$0xff] %v17822_v25  ;;  %v3108_v59 = vmul.u32 %v3106_v44, %v3104_v10  ;;  %v17833_v21 = vmul.u32 %v3106_v44, %v3105_v27  ;;  %vm3138_vm14 = vc.u32 %v3130_v50, %v3134_v62  ;;  %v17836_v46 = vsub.s32 32, %v17804_v33 }
 0x379   :  { %v17840_v13 = vmul.f32 %v17809_v38, %v17809_v38  ;;  %v17844_v11 = vmul.f32 %v17817_v57, %v17817_v57  ;;  %v17848_v9 = vmul.f32 %v17822_v25, %v17822_v25  ;;  %v22131_v10 = vand.u32 2147483647, %v22123_v24 }
 0x37a   :  { %v22132_v28 = vmov 0  ;;  %v21570_v62 = vshll.u32 %v17812_v19, 16  ;;  %v2233_v44 = vsel %vm21581_vm7, %v2232_v14, %v2231_v6  ;;  %v2332_v23 = vadd.s32 %v17444_v4, %v17446_v26 }
 0x37b   :  { %22128 = vst [vmem:[#allocation117_spill] sm:$0xff] %v17840_v13  ;;  %vm17852_vm9 = vcmp.le.f32.partialorder %v22131_v10, 0.7853982  ;;  %vm3116_vm0 = vc.u32 %v3108_v59, %v3112_v35  ;;  %v3118_v50 = vadd.s32 %v3112_v35, %v3108_v59  ;;  %v2348_v52 = vsub.s32 32, %v17826_v40 }
 0x37c   :  { %22129 = vst [vmem:[#allocation118_spill] sm:$0xff] %v17844_v11  ;;  %v22133_v28 = vsel %vm17852_vm9, 4294967295, %v22132_v28  ;;  %v3476_v3 = vclz %v3475_v29  ;;  %v3139_v25 = vsel %vm3138_vm14, 1, %v21699_v39  ;;  %vm3142_vm15 = vc.u32 %v17831_v51, %v21570_v62 }
 0x37d   :  { %22130 = vst [vmem:[#allocation119_spill] sm:$0xff] %v17848_v9  ;;  %v3597_v10 = vadd.s32 536870912, %v17829_v56  ;;  %v3114_v57 = vshll.u32 %v17833_v21, 16  ;;  %v22135_v6 = vshrl.u32 %v17717_v53, 16  ;;  %v3213_v4 = vshrl.u32 %v21707_v12, %v17836_v46 }
 0x37e   :  { %22134 = vst [vmem:[#allocation120_spill] sm:$0xff] %v22133_v28  ;;  %v2352_v26 = vsub.s32 4294967266, %v17826_v40  ;;  %v3111_v35 = vmul.u32 %v3107_v20, %v3105_v27  ;;  %v3117_v29 = vsel %vm3116_vm0, 1, %v21699_v39  ;;  %v3143_v62 = vsel %vm3142_vm15, 1, %v21699_v39 }
 0x37f   :  { %v3133_v14 = vmul.u32 %v22135_v6, %v3105_v27  ;;  %vm3120_vm3 = vc.u32 %v3118_v50, %v3114_v57  ;;  %v3212_v9 = vshll.u32 %v21706_v49, %v17804_v33  ;;  %v17878_v11 = vshrl.u32 %v3195_v5, 5 }
 0x380   :  { %v3204_v53 = vshrl.u32 %v22035_v34, %v17836_v46  ;;  %v3207_v6 = vshrl.u32 %v22033_v7, %v17836_v46  ;;  %v3210_v20 = vshrl.u32 %v21706_v49, %v17836_v46  ;;  %v12555_v27 = vadd.s32 4294967294, %v3476_v3 }
 0x381   :  { %v3141_v61 = vadd.s32 %v3139_v25, %v3133_v14  ;;  %v17886_v59 = vshrl.u32 %v3597_v10, 30  ;;  %v3119_v57 = vadd.s32 %v3117_v29, %v3111_v35  ;;  %v3214_v25 = vor.u32 %v3213_v4, %v3212_v9 }
 0x382   :  { %v3121_v50 = vsel %vm3120_vm3, 1, %v21699_v39  ;;  %v3203_v5 = vshll.u32 %v21877_v55, %v17804_v33  ;;  %v3206_v14 = vshll.u32 %v22035_v34, %v17804_v33  ;;  %v3209_v36 = vshll.u32 %v22033_v7, %v17804_v33 }
 0x383   :  { %22136 = vst [vmem:[#allocation121_spill] sm:$0xff] %v17886_v59  ;;  %v17898_v3 = vsel %vm17852_vm9, %v22123_v24, %v2233_v44  ;;  %v2349_v9 = vshll.u32 %v17633_v2, %v17826_v40  ;;  %v3145_v10 = vadd.s32 %v3143_v62, %v3141_v61  ;;  %v22138_v4 = vand.u32 2147483647, %v17682_v16 }
 0x384   :  { %22137 = vst [vmem:[#allocation122_spill] sm:$0xff] %v17898_v3  ;;  %v17904_v29 = vor.u32 %v3204_v53, %v3203_v5  ;;  %v17906_v8 = vor.u32 %v3207_v6, %v3206_v14  ;;  %v3211_v38 = vor.u32 %v3210_v20, %v3209_v36  ;;  %vm21582_vm14 = vcmp.lt.s32.totalorder %v17878_v11, 4 }
 0x385   :  { %v3190_v35 = vand.u32 8388607, %v22138_v4  ;;  %v2353_v30 = vadd.s32 127, %v2352_v26  ;;  %v3123_v32 = vadd.s32 %v3121_v50, %v3119_v57  ;;  %v3228_v44 = vsel %vm21582_vm14, %v3214_v25, 1326507024 }
 0x386   :  { %v197_v28 = vmul.f32 %v17427_v47, %v169_v31  ;;  %v2350_v24 = vshrl.u32 %v2332_v23, %v2348_v52  ;;  %vm12556_vm0 = vcmp.lt.s32.totalorder %v12555_v27, 0  ;;  %v3599_v2 = vshll.u32 %v17886_v59, 30 }
 0x387   :  { %v3135_v61 = vshrl.u32 %v17779_v18, 16  ;;  %v3113_v40 = vshrl.u32 %v17797_v58, 16  ;;  %v3201_v36 = vshrl.u32 %v21877_v55, %v17836_v46  ;;  %vm21592_vm15 = vcmp.lt.s32.totalorder %v17878_v11, 1 }
 0x388   :  { %vm21584_vm3 = vcmp.lt.s32.totalorder %v17878_v11, 3  ;;  %v3191_v26 = vor.u32 8388608, %v3190_v35  ;;  %v3227_v47 = vsel %vm21592_vm15, %v17904_v29, %v17906_v8  ;;  %v2354_v31 = vshll.u32 %v2353_v30, 23 }
 0x389   :  { %v3146_v62 = vadd.s32 %v3145_v10, %v3135_v61  ;;  %v3229_v52 = vsel %vm21584_vm3, %v3211_v38, %v3228_v44  ;;  %v3124_v18 = vadd.s32 %v3123_v32, %v3113_v40  ;;  %v3200_v58 = vshll.u32 %v21702_v17, %v17804_v33 }
 0x38a   :  { %v213_v23 = vpack.c.bf16 %v197_v28, %v197_v28  ;;  %v3479_v53 = vsel %vm12556_vm0, 0, %v12555_v27  ;;  %vm22139_vm7 = vcmp.lt.s32.totalorder %v17653_v43, 4  ;;  %v3137_v20 = vshrl.u32 %v17812_v19, 16 }
 0x38b   :  { %v3092_v6 = vsel %vm22139_vm7, %v17677_v42, 2102212464  ;;  %vm21583_vm14 = vcmp.lt.s32.totalorder %v17878_v11, 2  ;;  %v17933_v57 = vsub.s32 %v17829_v56, %v3599_v2  ;;  %v3115_v25 = vshrl.u32 %v17833_v21, 16 }
 0x38c   :  { %v17936_v30 = vor.u32 %v3201_v36, %v3200_v58  ;;  %v17940_v32 = vsel %vm21583_vm14, %v3227_v47, %v3229_v52  ;;  %v3071_v33 = vshrl.u32 %v21702_v17, %v17626_v60  ;;  %v3147_v28 = vadd.s32 %v3146_v62, %v3137_v20 }
 0x38d   :  { %vm22140_vm7 = vcmp.lt.s32.totalorder %v17878_v11, 4  ;;  %v17946_v27 = vshll.u32 %v3191_v26, 8  ;;  %v2351_v50 = vor.u32 %v2350_v24, %v2349_v9  ;;  %v3480_v56 = vsub.s32 32, %v3479_v53 }
 0x38e   :  { %v3224_v42 = vsel %vm22140_vm7, %v3211_v38, 920167782  ;;  %v17948_v5 = vadd.s32 %v3124_v18, %v3115_v25  ;;  %v17950_v21 = vunpack.i.l.bf16 %v213_v23  ;;  %v3484_v14 = vsub.s32 4294967266, %v3479_v53 }
 0x38f   :  { %vm22143_vm0 = vcmp.lt.s32.totalorder %v17653_v43, 1  ;;  %vm22144_vm14 = vcmp.lt.s32.totalorder %v17653_v43, 3  ;;  %v3235_v4 = vshrl.u32 %v17940_v32, 16  ;;  %v3602_v38 = vsub.s32 0, %v17933_v57 }
 0x390   :  { %22141 = vst [vmem:[#allocation123_spill] sm:$0xff] %v17948_v5  ;;  %v3091_v10 = vsel %vm22143_vm0, %v3071_v33, %v17673_v1  ;;  %v3093_v60 = vsel %vm22144_vm14, %v17675_v37, %v3092_v6  ;;  %v22145_v24 = vshll.u32 %v17812_v19, 16  ;;  %v3223_v35 = vsel %vm21592_vm15, %v17936_v30, %v17904_v29 }
 0x391   :  { %22142 = vst [vmem:[#allocation124_spill] sm:$0xff] %v17950_v21  ;;  %v3225_v1 = vsel %vm21584_vm3, %v17906_v8, %v3224_v42  ;;  %v2355_v44 = vor.u32 4788187, %v2354_v31  ;;  %vm3601_vm14 = vcmp.lt.s32.totalorder %v17933_v57, 0  ;;  %v3151_v37 = vadd.s32 1, %v3147_v28 }
 0x392   :  { %v17963_v9 = vadd.s32 %v17831_v51, %v22145_v24  ;;  %v3232_v2 = vand.u32 65535, %v17946_v27  ;;  %v2358_v61 = vcvt.s32.f32 %v2351_v50  ;;  %v3464_v19 = vadd.s32 %v17602_v45, %v17582_v0 }
 0x393   :  { %v4318_v51 = vand.u32 2139095040, %v17950_v21  ;;  %vm22147_vm0 = vcmp.lt.s32.totalorder %v17653_v43, 2  ;;  %vm22148_vm3 = vcmp.lt.s32.totalorder %v17878_v11, 2  ;;  %v17987_v26 = vunpack.i.h.bf16 %v213_v23 }
 0x394   :  { %22146 = vst [vmem:[#allocation125_spill] sm:$0xff] %v17963_v9  ;;  %vm3150_vm7 = vc.u32 %v17948_v5, %v17963_v9  ;;  %v3094_v40 = vsel %vm22147_vm0, %v3091_v10, %v3093_v60  ;;  %v17983_v36 = vsel %vm22148_vm3, %v3223_v35, %v3225_v1  ;;  %v17985_v62 = vmul.u32 %v3235_v4, %v3232_v2 }
 0x395   :  { %22149 = vst [vmem:[#allocation126_spill] sm:$0xff] %v17987_v26  ;;  %v3482_v47 = vshrl.u32 %v3464_v19, %v3480_v56  ;;  %v3485_v52 = vadd.s32 127, %v3484_v14  ;;  %v3603_v0 = vsel %vm3601_vm14, %v3602_v38, %v17933_v57  ;;  %v4319_v45 = vshrl.u32 %v4318_v51, 23 }
 0x396   :  { %v2356_v31 = vand.u32 2147483647, %v2355_v44  ;;  %v3481_v18 = vshll.u32 %v17767_v41, %v3479_v53  ;;  %v3152_v58 = vsel %vm3150_vm7, %v3151_v37, %v3147_v28  ;;  %v3234_v43 = vand.u32 65535, %v17940_v32 }
 0x397   :  { %v3148_v6 = vmul.u32 %v17725_v54, %v3094_v40  ;;  %v21586_v20 = vshrl.u32 %v17983_v36, 16  ;;  %v21585_v25 = vand.u32 2147483647, %v17950_v21  ;;  %v12572_v33 = vadd.s32 4294967169, %v4319_v45 }
 0x398   :  { %v3604_v23 = vclz %v3603_v0  ;;  %v17996_v42 = vshrl.u32 %v17946_v27, 16  ;;  %v3240_v50 = vshll.u32 %v17985_v62, 16  ;;  %v4446_v56 = vand.u32 2139095040, %v17987_v26 }
 0x399   :  { %v18000_v14 = vor.u32 %v3482_v47, %v3481_v18  ;;  %v3486_v41 = vshll.u32 %v3485_v52, 23  ;;  %v18002_v53 = vadd.s32 %v3152_v58, %v3148_v6  ;;  %v4325_v32 = vadd.s32 1, %v12572_v33 }
 0x39a   :  { %v18004_v54 = vmul.f32 %v2358_v61, %v2356_v31  ;;  %v3236_v28 = vmul.u32 %v3234_v43, %v3232_v2  ;;  %v18007_v10 = vmul.u32 %v3234_v43, %v17996_v42  ;;  %v3256_v60 = vand.u32 65535, %v17983_v36 }
 0x39b   :  { %v18012_v38 = vadd.s32 %v17775_v22, %v17759_v63  ;;  %v18016_v24 = vmul.u32 %v21586_v20, %v3232_v2  ;;  %v4322_v35 = vand.u32 8388607, %v21585_v25  ;;  %vm4326_vm3 = vcmp.gt.s32.totalorder %v4325_v32, 0 }
 0x39c   :  { %v12558_v1 = vadd.s32 4294967294, %v3604_v23  ;;  %vm3244_vm14 = vc.u32 %v3236_v28, %v3240_v50  ;;  %v4327_v44 = vsel %vm4326_vm3, %v4325_v32, 0  ;;  %v4447_v37 = vshrl.u32 %v4446_v56, 23 }
 0x39d   :  { %v18020_v61 = vor.u32 4788187, %v3486_v41  ;;  %v18024_v51 = vadd.s32 536870912, %v18002_v53  ;;  %v4329_v63 = vand.u32 31, %v4327_v44  ;;  %v3239_v22 = vmul.u32 %v3235_v4, %v17996_v42 }
 0x39e   :  { %v3242_v40 = vshll.u32 %v18007_v10, 16  ;;  %v3258_v47 = vmul.u32 %v3256_v60, %v3232_v2  ;;  %v18029_v52 = vmul.u32 %v3256_v60, %v17996_v42  ;;  %v3245_v0 = vsel %vm3244_vm14, 1, %v21699_v39 }
 0x39f   :  { %v3262_v45 = vshll.u32 %v18016_v24, 16  ;;  %v4323_v31 = vor.u32 8388608, %v4322_v35  ;;  %v18033_v18 = vsub.s32 32, %v4329_v63  ;;  %v18035_v58 = vshrl.u32 %v4327_v44, 5 }
 0x3a0   :  { %v4332_v43 = vshll.u32 %v21702_v17, %v4329_v63  ;;  %v4335_v4 = vshll.u32 %v21877_v55, %v4329_v63  ;;  %v12575_v6 = vadd.s32 4294967169, %v4447_v37  ;;  %v4338_v23 = vshll.u32 %v22035_v34, %v4329_v63 }
 0x3a1   :  { %v4333_v2 = vshrl.u32 %v21877_v55, %v18033_v18  ;;  %v4336_v33 = vshrl.u32 %v22035_v34, %v18033_v18  ;;  %v4339_v56 = vshrl.u32 %v22033_v7, %v18033_v18  ;;  %v4341_v41 = vshll.u32 %v22033_v7, %v4329_v63 }
 0x3a2   :  { %v4342_v32 = vshrl.u32 %v21706_v49, %v18033_v18  ;;  %v4344_v60 = vshll.u32 %v21706_v49, %v4329_v63  ;;  %v4345_v35 = vshrl.u32 %v21707_v12, %v18033_v18  ;;  %v3246_v44 = vadd.s32 %v3240_v50, %v3236_v28 }
 0x3a3   :  { %v18052_v37 = vor.u32 %v4333_v2, %v4332_v43  ;;  %v18054_v25 = vor.u32 %v4336_v33, %v4335_v4  ;;  %v18056_v19 = vor.u32 %v4339_v56, %v4338_v23  ;;  %v21598_v20 = vshll.u32 %v18029_v52, 16 }
 0x3a4   :  { %v4343_v16 = vor.u32 %v4342_v32, %v4341_v41  ;;  %v4346_v59 = vor.u32 %v4345_v35, %v4344_v60  ;;  %vm21594_vm0 = vcmp.lt.s32.totalorder %v18035_v58, 1  ;;  %v3247_v48 = vadd.s32 %v3245_v0, %v3239_v22 }
 0x3a5   :  { %vm21595_vm3 = vcmp.lt.s32.totalorder %v18035_v58, 4  ;;  %v4355_v50 = vsel %vm21594_vm0, %v18052_v37, %v18054_v25  ;;  %v18065_v28 = vshll.u32 %v4323_v31, 8  ;;  %vm4349_vm14 = vcmp.lt.s32.totalorder %v18035_v58, 3 }
 0x3a6   :  { %v4356_v63 = vsel %vm21595_vm3, %v4343_v16, 920167782  ;;  %v4359_v43 = vsel %vm21594_vm0, %v18054_v25, %v18056_v19  ;;  %v4453_v22 = vadd.s32 1, %v12575_v6  ;;  %vm18074_vm15 = vc.u32 %v3246_v44, %v3242_v40 }
 0x3a7   :  { %vm21596_vm7 = vcmp.lt.s32.totalorder %v18035_v58, 2  ;;  %v4357_v31 = vsel %vm4349_vm14, %v18056_v19, %v4356_v63  ;;  %v4360_v4 = vsel %vm21595_vm3, %v4346_v59, 1326507024  ;;  %vm18084_vm12 = vc.u32 %v3258_v47, %v3262_v45 }
 0x3a8   :  { %v18088_v33 = vadd.s32 %v3262_v45, %v3258_v47  ;;  %v4358_v40 = vsel %vm21596_vm7, %v4355_v50, %v4357_v31  ;;  %v4361_v6 = vsel %vm4349_vm14, %v4343_v16, %v4360_v4  ;;  %v4364_v56 = vand.u32 65535, %v18065_v28 }
 0x3a9   :  { %v4362_v23 = vsel %vm21596_vm7, %v4359_v43, %v4361_v6  ;;  %v4365_v41 = vshrl.u32 %v18065_v28, 16  ;;  %v4389_v59 = vshrl.u32 %v4358_v40, 16  ;;  %v4388_v35 = vand.u32 65535, %v4358_v40 }
 0x3aa   :  { %v4366_v32 = vand.u32 65535, %v4362_v23  ;;  %v4367_v60 = vshrl.u32 %v4362_v23, 16  ;;  %vm4454_vm0 = vcmp.gt.s32.totalorder %v4453_v22, 0  ;;  %vm22154_vm3 = vcmp.lt.s32.totalorder %v12558_v1, 0 }
 0x3ab   :  { %v18099_v47 = vsel %vm22154_vm3, 0, %v12558_v1  ;;  %v18103_v45 = vshrl.u32 %v21702_v17, %v17836_v46  ;;  %v3249_v16 = vsel %vm18074_vm15, 1, %v21699_v39  ;;  %v4391_v44 = vmul.u32 %v4389_v59, %v4364_v56 }
 0x3ac   :  { %v3267_v50 = vsel %vm18084_vm12, 1, %v21699_v39  ;;  %vm3270_vm7 = vc.u32 %v18088_v33, %v21598_v20  ;;  %v4369_v63 = vmul.u32 %v4367_v60, %v4364_v56  ;;  %v18114_v1 = vmul.u32 %v4366_v32, %v4365_v41 }
 0x3ad   :  { %v18117_v43 = vshrl.u32 %v18024_v51, 30  ;;  %v22156_v46 = vshrl.u32 %v17983_v36, 16  ;;  %v4394_v31 = vshll.u32 %v4391_v44, 16  ;;  %v4455_v4 = vsel %vm4454_vm0, %v4453_v22, 0 }
 0x3ae   :  { %v3251_v40 = vadd.s32 %v3249_v16, %v3247_v48  ;;  %v4368_v6 = vmul.u32 %v4366_v32, %v4364_v56  ;;  %v4372_v2 = vshll.u32 %v4369_v63, 16  ;;  %v18122_v23 = vmul.u32 %v4388_v35, %v4365_v41 }
 0x3af   :  { %22155 = vst [vmem:[#allocation127_spill] sm:$0xff] %v18117_v43  ;;  %v3261_v0 = vmul.u32 %v22156_v46, %v17996_v42  ;;  %v3271_v20 = vsel %vm3270_vm7, 1, %v21699_v39  ;;  %v4390_v15 = vmul.u32 %v4388_v35, %v4364_v56  ;;  %v21604_v21 = vand.u32 2147483647, %v17987_v26 }
 0x3b0   :  { %v4374_v51 = vshll.u32 %v18114_v1, 16  ;;  %vm4376_vm12 = vc.u32 %v4368_v6, %v4372_v2  ;;  %v4378_v9 = vadd.s32 %v4372_v2, %v4368_v6  ;;  %v4457_v5 = vand.u32 31, %v4455_v4 }
 0x3b1   :  { %v3269_v13 = vadd.s32 %v3267_v50, %v3261_v0  ;;  %v4371_v36 = vmul.u32 %v4367_v60, %v4365_v41  ;;  %v4377_v42 = vsel %vm4376_vm12, 1, %v21699_v39  ;;  %v4393_v22 = vmul.u32 %v4389_v59, %v4365_v41 }
 0x3b2   :  { %vm4398_vm15 = vc.u32 %v4390_v15, %v4394_v31  ;;  %vm4380_vm0 = vc.u32 %v4378_v9, %v4374_v51  ;;  %v21605_v48 = vshll.u32 %v18122_v23, 16  ;;  %v4400_v16 = vadd.s32 %v4394_v31, %v4390_v15 }
 0x3b3   :  { %v4399_v32 = vsel %vm4398_vm15, 1, %v21699_v39  ;;  %v3273_v50 = vadd.s32 %v3271_v20, %v3269_v13  ;;  %v4379_v56 = vadd.s32 %v4377_v42, %v4371_v36  ;;  %v4450_v46 = vand.u32 8388607, %v21604_v21 }
 0x3b4   :  { %v4401_v35 = vadd.s32 %v4399_v32, %v4393_v22  ;;  %v3241_v0 = vshrl.u32 %v17985_v62, 16  ;;  %v4381_v60 = vsel %vm4380_vm0, 1, %v21699_v39  ;;  %vm4402_vm7 = vc.u32 %v4400_v16, %v21605_v48 }
 0x3b5   :  { %v18136_v41 = vsub.s32 32, %v4457_v5  ;;  %vm22157_vm3 = vcmp.lt.s32.totalorder %v17878_v11, 4  ;;  %v3263_v13 = vshrl.u32 %v18016_v24, 16  ;;  %v4403_v20 = vsel %vm4402_vm7, 1, %v21699_v39 }
 0x3b6   :  { %v18141_v9 = vsel %vm22157_vm3, %v17906_v8, 2102212464  ;;  %v3252_v59 = vadd.s32 %v3251_v40, %v3241_v0  ;;  %v3265_v62 = vshrl.u32 %v18029_v52, 16  ;;  %v4405_v31 = vadd.s32 %v4403_v20, %v4401_v35 }
 0x3b7   :  { %v4461_v6 = vshrl.u32 %v21877_v55, %v18136_v41  ;;  %v3274_v2 = vadd.s32 %v3273_v50, %v3263_v13  ;;  %v4383_v51 = vadd.s32 %v4381_v60, %v4379_v56  ;;  %v4451_v36 = vor.u32 8388608, %v4450_v46  ;;  %v164_v56 = vpop.permute.xlu0 %163 }
 0x3b8   :  { %v4464_v8 = vshrl.u32 %v22035_v34, %v18136_v41  ;;  %v4395_v42 = vshrl.u32 %v4391_v44, 16  ;;  %v4460_v22 = vshll.u32 %v21702_v17, %v4457_v5  ;;  %v4463_v24 = vshll.u32 %v21877_v55, %v4457_v5 }
 0x3b9   :  { %v4467_v40 = vshrl.u32 %v22033_v7, %v18136_v41  ;;  %v4373_v32 = vshrl.u32 %v4369_v63, 16  ;;  %v18155_v0 = vshrl.u32 %v4455_v4, 5  ;;  %v4469_v35 = vshll.u32 %v22033_v7, %v4457_v5 }
 0x3ba   :  { %v4470_v50 = vshrl.u32 %v21706_v49, %v18136_v41  ;;  %v4406_v46 = vadd.s32 %v4405_v31, %v4395_v42  ;;  %v18160_v60 = vor.u32 %v4461_v6, %v4460_v22  ;;  %v18162_v44 = vor.u32 %v4464_v8, %v4463_v24  ;;  %v18176_v31 = vld [vmem:[%s21236_s2] ss:$0 sm:$0xff] }
 0x3bb   :  { %v4466_v13 = vshll.u32 %v22035_v34, %v4457_v5  ;;  %v4384_v20 = vadd.s32 %v4383_v51, %v4373_v32  ;;  %v4472_v15 = vshll.u32 %v21706_v49, %v4457_v5  ;;  %v4473_v63 = vshrl.u32 %v21707_v12, %v18136_v41 }
 0x3bc   :  { %v4471_v21 = vor.u32 %v4470_v50, %v4469_v35  ;;  %v4397_v4 = vshrl.u32 %v18122_v23, 16  ;;  %v18171_v26 = vshll.u32 %v4451_v36, 8  ;;  %v196_v6 = vmul.f32 %v18176_v31, %v164_v56 }
 0x3bd   :  { %v18169_v48 = vor.u32 %v4467_v40, %v4466_v13  ;;  %v4331_v51 = vshrl.u32 %v21702_v17, %v18033_v18  ;;  %v4375_v5 = vshrl.u32 %v18114_v1, 16  ;;  %v4474_v8 = vor.u32 %v4473_v63, %v4472_v15 }
 0x3be   :  { %vm4475_vm12 = vcmp.lt.s32.totalorder %v18155_v0, 1  ;;  %vm22158_vm15 = vcmp.lt.s32.totalorder %v18035_v58, 4  ;;  %v4407_v42 = vadd.s32 %v4406_v46, %v4397_v4  ;;  %vm21610_vm0 = vcmp.lt.s32.totalorder %v18155_v0, 4 }
 0x3bf   :  { %v4352_v36 = vsel %vm22158_vm15, %v18056_v19, 2102212464  ;;  %v4483_v22 = vsel %vm4475_vm12, %v18160_v60, %v18162_v44  ;;  %vm22159_vm7 = vcmp.lt.s32.totalorder %v18035_v58, 1  ;;  %v18194_v1 = vadd.s32 %v4384_v20, %v4375_v5 }
 0x3c0   :  { %v4351_v18 = vsel %vm22159_vm7, %v4331_v51, %v18052_v37  ;;  %vm21609_vm3 = vcmp.lt.s32.totalorder %v18155_v0, 3  ;;  %v4484_v15 = vsel %vm21610_vm0, %v4471_v21, 920167782  ;;  %vm21608_vm15 = vcmp.lt.s32.totalorder %v18155_v0, 2 }
 0x3c1   :  { %v4485_v19 = vsel %vm21609_vm3, %v18169_v48, %v4484_v15  ;;  %v4487_v24 = vsel %vm4475_vm12, %v18162_v44, %v18169_v48  ;;  %v4488_v37 = vsel %vm21610_vm0, %v4474_v8, 1326507024  ;;  %v4353_v40 = vsel %vm4349_vm14, %v18054_v25, %v4352_v36 }
 0x3c2   :  { %v22160_v32 = vshll.u32 %v18122_v23, 16  ;;  %v4486_v50 = vsel %vm21608_vm15, %v4483_v22, %v4485_v19  ;;  %v4489_v56 = vsel %vm21609_vm3, %v4471_v21, %v4488_v37  ;;  %v4411_v46 = vadd.s32 1, %v4407_v42 }
 0x3c3   :  { %v4490_v13 = vsel %vm21608_vm15, %v4487_v24, %v4489_v56  ;;  %v4492_v20 = vand.u32 65535, %v18171_v26  ;;  %v4517_v63 = vshrl.u32 %v4486_v50, 16  ;;  %v3156_v4 = vshll.u32 %v18117_v43, 30 }
 0x3c4   :  { %v18214_v35 = vadd.s32 %v4400_v16, %v22160_v32  ;;  %v3275_v25 = vadd.s32 %v3274_v2, %v3265_v62  ;;  %v4495_v23 = vshrl.u32 %v4490_v13, 16  ;;  %vm22161_vm7 = vcmp.lt.s32.totalorder %v17878_v11, 1 }
 0x3c5   :  { %v3219_v16 = vsel %vm22161_vm7, %v18103_v45, %v17936_v30  ;;  %v22162_v21 = vshrl.u32 %v18007_v10, 16  ;;  %vm22164_vm15 = vcmp.lt.s32.totalorder %v18035_v58, 2  ;;  %v18236_v8 = vmul.u32 %v4517_v63, %v4492_v20 }
 0x3c6   :  { %vm4410_vm14 = vc.u32 %v18194_v1, %v18214_v35  ;;  %v4354_v5 = vsel %vm22164_vm15, %v4351_v18, %v4353_v40  ;;  %vm22165_vm3 = vcmp.lt.s32.totalorder %v17878_v11, 3  ;;  %v4494_v2 = vand.u32 65535, %v4490_v13 }
 0x3c7   :  { %v18232_v51 = vadd.s32 %v3252_v59, %v22162_v21  ;;  %v3221_v62 = vsel %vm22165_vm3, %v17904_v29, %v18141_v9  ;;  %v18242_v36 = vmul.u32 %v4495_v23, %v4492_v20  ;;  %v18244_v22 = vpack.c.bf16 %v196_v6, %v196_v6 }
 0x3c8   :  { %v3612_v30 = vsub.s32 4294967266, %v18099_v47  ;;  %v22166_v10 = vshll.u32 %v18029_v52, 16  ;;  %v4412_v58 = vsel %vm4410_vm14, %v4411_v46, %v4407_v42  ;;  %v4516_v59 = vand.u32 65535, %v4486_v50 }
 0x3c9   :  { %22163 = vst [vmem:[#allocation128_spill] sm:$0xff] %v18232_v51  ;;  %v3279_v18 = vadd.s32 1, %v3275_v25  ;;  %v4408_v15 = vmul.u32 %v18065_v28, %v4354_v5  ;;  %v4493_v19 = vshrl.u32 %v18171_v26, 16  ;;  %v4500_v29 = vshll.u32 %v18242_v36, 16 }
 0x3ca   :  { %v18250_v45 = vadd.s32 %v18088_v33, %v22166_v10  ;;  %v18256_v9 = vsub.s32 %v18002_v53, %v3156_v4  ;;  %vm22168_vm3 = vcmp.lt.s32.totalorder %v17878_v11, 2  ;;  %v4522_v52 = vshll.u32 %v18236_v8, 16 }
 0x3cb   :  { %v3222_v6 = vsel %vm22168_vm3, %v3219_v16, %v3221_v62  ;;  %v18263_v33 = vadd.s32 %v4412_v58, %v4408_v15  ;;  %v4496_v42 = vmul.u32 %v4494_v2, %v4492_v20  ;;  %v18265_v24 = vmul.u32 %v4494_v2, %v4493_v19 }
 0x3cc   :  { %22167 = vst [vmem:[#allocation129_spill] sm:$0xff] %v18250_v45  ;;  %vm3278_vm15 = vc.u32 %v18232_v51, %v18250_v45  ;;  %v18268_v28 = vunpack.i.l.bf16 %v18244_v22  ;;  %v3488_v37 = vand.u32 2147483647, %v18020_v61  ;;  %v3608_v53 = vsub.s32 32, %v18099_v47 }
 0x3cd   :  { %v4518_v40 = vmul.u32 %v4516_v59, %v4492_v20  ;;  %v18272_v11 = vmul.u32 %v4516_v59, %v4493_v19  ;;  %v3613_v32 = vadd.s32 127, %v3612_v30  ;;  %v3280_v50 = vsel %vm3278_vm15, %v3279_v18, %v3275_v25 }
 0x3ce   :  { %vm4504_vm14 = vc.u32 %v4496_v42, %v4500_v29  ;;  %v4506_v56 = vadd.s32 %v4500_v29, %v4496_v42  ;;  %v3159_v46 = vsub.s32 0, %v18256_v9  ;;  %v3276_v13 = vmul.u32 %v17946_v27, %v3222_v6 }
 0x3cf   :  { %vm4526_vm7 = vc.u32 %v4518_v40, %v4522_v52  ;;  %v18276_v4 = vadd.s32 %v4522_v52, %v4518_v40  ;;  %vm3158_vm3 = vcmp.lt.s32.totalorder %v18256_v9, 0  ;;  %v4414_v61 = vadd.s32 536870912, %v18263_v33 }
 0x3d0   :  { %v4502_v16 = vshll.u32 %v18265_v24, 16  ;;  %v4003_v20 = vand.u32 2139095040, %v18268_v28  ;;  %v22169_v21 = vcvt.s32.f32 %v18000_v14  ;;  %v18286_v5 = vadd.s32 %v3280_v50, %v3276_v13 }
 0x3d1   :  { %v4505_v62 = vsel %vm4504_vm14, 1, %v21699_v39  ;;  %v4524_v27 = vshll.u32 %v18272_v11, 16  ;;  %v4499_v2 = vmul.u32 %v4495_v23, %v4493_v19  ;;  %v4527_v30 = vsel %vm4526_vm7, 1, %v21699_v39 }
 0x3d2   :  { %v18284_v25 = vmul.f32 %v22169_v21, %v3488_v37  ;;  %vm4508_vm15 = vc.u32 %v4506_v56, %v4502_v16  ;;  %v4004_v10 = vshrl.u32 %v4003_v20, 23  ;;  %v3610_v58 = vshrl.u32 %v18012_v38, %v3608_v53 }
 0x3d3   :  { %v3160_v59 = vsel %vm3158_vm3, %v3159_v46, %v18256_v9  ;;  %v4521_v18 = vmul.u32 %v4517_v63, %v4493_v19  ;;  %vm4530_vm0 = vc.u32 %v18276_v4, %v4524_v27  ;;  %v3614_v14 = vshll.u32 %v3613_v32, 23 }
 0x3d4   :  { %v18296_v15 = vshrl.u32 %v4414_v61, 30  ;;  %v4507_v29 = vadd.s32 %v4505_v62, %v4499_v2  ;;  %v12566_v6 = vadd.s32 4294967169, %v4004_v10  ;;  %v3609_v23 = vshll.u32 %v17933_v57, %v18099_v47 }
 0x3d5   :  { %v4509_v52 = vsel %vm4508_vm15, 1, %v21699_v39  ;;  %v4529_v42 = vadd.s32 %v4527_v30, %v4521_v18  ;;  %v21611_v38 = vand.u32 2147483647, %v18268_v28  ;;  %v3161_v37 = vclz %v3160_v59 }
 0x3d6   :  { %22170 = vst [vmem:[#allocation130_spill] sm:$0xff] %v18296_v15  ;;  %v3282_v63 = vadd.s32 536870912, %v18286_v5  ;;  %v4531_v19 = vsel %vm4530_vm0, 1, %v21699_v39  ;;  %v4010_v53 = vadd.s32 1, %v12566_v6  ;;  %v18307_v32 = vmul.f32 %v17898_v3, %v17898_v3 }
 0x3d7   :  { %v18310_v57 = vor.u32 %v3610_v58, %v3609_v23  ;;  %v18312_v47 = vor.u32 4788187, %v3614_v14  ;;  %v4416_v56 = vshll.u32 %v18296_v15, 30  ;;  %v4511_v46 = vadd.s32 %v4509_v52, %v4507_v29 }
 0x3d8   :  { %22171 = vst [vmem:[#allocation131_spill] sm:$0xff] %v18307_v32  ;;  %vm4011_vm14 = vcmp.gt.s32.totalorder %v4010_v53, 0  ;;  %v4459_v13 = vshrl.u32 %v21702_v17, %v18136_v41  ;;  %v4533_v61 = vadd.s32 %v4531_v19, %v4529_v42  ;;  %v4007_v16 = vand.u32 8388607, %v21611_v38 }
 0x3d9   :  { %v4012_v20 = vsel %vm4011_vm14, %v4010_v53, 0  ;;  %v18319_v21 = vadd.s32 4294967294, %v3161_v37  ;;  %v18321_v62 = vshrl.u32 %v3282_v63, 30  ;;  %v4501_v2 = vshrl.u32 %v18242_v36, 16 }
 0x3da   :  { %v4014_v30 = vand.u32 31, %v4012_v20  ;;  %v4479_v10 = vsel %vm4475_vm12, %v4459_v13, %v18160_v60  ;;  %vm22173_vm0 = vcmp.lt.s32.totalorder %v18155_v0, 4  ;;  %v4523_v58 = vshrl.u32 %v18236_v8, 16 }
 0x3db   :  { %22172 = vst [vmem:[#allocation132_spill] sm:$0xff] %v18321_v62  ;;  %v4480_v41 = vsel %vm22173_vm0, %v18169_v48, 2102212464  ;;  %v18332_v59 = vunpack.i.h.bf16 %v18244_v22  ;;  %v18335_v18 = vsub.s32 %v18263_v33, %v4416_v56  ;;  %v4512_v14 = vadd.s32 %v4511_v46, %v4501_v2 }
 0x3dc   :  { %v4525_v36 = vshrl.u32 %v18272_v11, 16  ;;  %v18338_v29 = vsub.s32 32, %v4014_v30  ;;  %v4534_v6 = vadd.s32 %v4533_v61, %v4523_v58  ;;  %v4008_v23 = vor.u32 8388608, %v4007_v16 }
 0x3dd   :  { %22174 = vst [vmem:[#allocation133_spill] sm:$0xff] %v18332_v59  ;;  %v18340_v60 = vshrl.u32 %v4012_v20, 5  ;;  %v4017_v52 = vshll.u32 %v21702_v17, %v4014_v30  ;;  %v4020_v8 = vshll.u32 %v21877_v55, %v4014_v30  ;;  %v4023_v42 = vshll.u32 %v22035_v34, %v4014_v30 }
 0x3de   :  { %v4018_v48 = vshrl.u32 %v21877_v55, %v18338_v29  ;;  %v4021_v22 = vshrl.u32 %v22035_v34, %v18338_v29  ;;  %v4024_v33 = vshrl.u32 %v22033_v7, %v18338_v29  ;;  %v4026_v37 = vshll.u32 %v22033_v7, %v4014_v30 }
 0x3df   :  { %v4027_v63 = vshrl.u32 %v21706_v49, %v18338_v29  ;;  %v4030_v19 = vshrl.u32 %v21707_v12, %v18338_v29  ;;  %v4029_v46 = vshll.u32 %v21706_v49, %v4014_v30  ;;  %v4131_v13 = vand.u32 2139095040, %v18332_v59 }
 0x3e0   :  { %v18357_v53 = vor.u32 %v4018_v48, %v4017_v52  ;;  %v18359_v56 = vor.u32 %v4021_v22, %v4020_v8  ;;  %vm22175_vm7 = vcmp.lt.s32.totalorder %v18155_v0, 3  ;;  %v4503_v16 = vshrl.u32 %v18265_v24, 16 }
 0x3e1   :  { %v4481_v61 = vsel %vm22175_vm7, %v18162_v44, %v4480_v41  ;;  %v4025_v20 = vor.u32 %v4024_v33, %v4023_v42  ;;  %v4028_v2 = vor.u32 %v4027_v63, %v4026_v37  ;;  %vm4418_vm3 = vcmp.lt.s32.totalorder %v18335_v18, 0 }
 0x3e2   :  { %v4419_v58 = vsub.s32 0, %v18335_v18  ;;  %v4535_v52 = vadd.s32 %v4534_v6, %v4525_v36  ;;  %v4031_v48 = vor.u32 %v4030_v19, %v4029_v46  ;;  %v18369_v8 = vadd.s32 %v4512_v14, %v4503_v16 }
 0x3e3   :  { %vm4032_vm15 = vcmp.lt.s32.totalorder %v18340_v60, 1  ;;  %vm4035_vm14 = vcmp.lt.s32.totalorder %v18340_v60, 4  ;;  %v18373_v30 = vshll.u32 %v4008_v23, 8  ;;  %vm21613_vm0 = vcmp.lt.s32.totalorder %v18340_v60, 3 }
 0x3e4   :  { %v4040_v44 = vsel %vm4032_vm15, %v18357_v53, %v18359_v56  ;;  %v4041_v24 = vsel %vm4035_vm14, %v4028_v2, 920167782  ;;  %v4132_v41 = vshrl.u32 %v4131_v13, 23  ;;  %vm22176_vm7 = vcmp.lt.s32.totalorder %v18155_v0, 2 }
 0x3e5   :  { %v4482_v14 = vsel %vm22176_vm7, %v4479_v10, %v4481_v61  ;;  %v18387_v36 = vadd.s32 %v18276_v4, %v4524_v27  ;;  %vm21612_vm12 = vcmp.lt.s32.totalorder %v18340_v60, 2  ;;  %v4042_v6 = vsel %vm21613_vm0, %v4025_v20, %v4041_v24 }
 0x3e6   :  { %v4539_v23 = vadd.s32 1, %v4535_v52  ;;  %v4043_v22 = vsel %vm21612_vm12, %v4040_v44, %v4042_v6  ;;  %v4044_v33 = vsel %vm4032_vm15, %v18359_v56, %v4025_v20  ;;  %v4045_v0 = vsel %vm4035_vm14, %v4031_v48, 1326507024 }
 0x3e7   :  { %v4420_v11 = vsel %vm4418_vm3, %v4419_v58, %v18335_v18  ;;  %vm4538_vm7 = vc.u32 %v18369_v8, %v18387_v36  ;;  %v4046_v4 = vsel %vm21613_vm0, %v4028_v2, %v4045_v0  ;;  %v4074_v27 = vshrl.u32 %v4043_v22, 16 }
 0x3e8   :  { %v4047_v10 = vsel %vm21612_vm12, %v4044_v33, %v4046_v4  ;;  %v4049_v42 = vand.u32 65535, %v18373_v30  ;;  %v4073_v37 = vand.u32 65535, %v4043_v22  ;;  %v12569_v63 = vadd.s32 4294967169, %v4132_v41 }
 0x3e9   :  { %v4050_v19 = vshrl.u32 %v18373_v30, 16  ;;  %v4051_v46 = vand.u32 65535, %v4047_v10  ;;  %v4052_v13 = vshrl.u32 %v4047_v10, 16  ;;  %v21614_v61 = vand.u32 2147483647, %v18332_v59 }
 0x3ea   :  { %v4540_v48 = vsel %vm4538_vm7, %v4539_v23, %v4535_v52  ;;  %v4076_v2 = vmul.u32 %v4074_v27, %v4049_v42  ;;  %vm22177_vm3 = vcmp.lt.s32.totalorder %v18319_v21, 0  ;;  %v4536_v24 = vmul.u32 %v18171_v26, %v4482_v14 }
 0x3eb   :  { %v18416_v44 = vsel %vm22177_vm3, 0, %v18319_v21  ;;  %v4054_v41 = vmul.u32 %v4052_v13, %v4049_v42  ;;  %v4055_v6 = vmul.u32 %v4051_v46, %v4050_v19  ;;  %v3284_v22 = vshll.u32 %v18321_v62, 30 }
 0x3ec   :  { %v4421_v33 = vclz %v4420_v11  ;;  %v4077_v0 = vmul.u32 %v4073_v37, %v4050_v19  ;;  %v4138_v4 = vadd.s32 1, %v12569_v63  ;;  %v18420_v10 = vadd.s32 %v4540_v48, %v4536_v24 }
 0x3ed   :  { %v4053_v38 = vmul.u32 %v4051_v46, %v4049_v42  ;;  %v4057_v50 = vshll.u32 %v4054_v41, 16  ;;  %v18424_v52 = vand.u32 8388607, %v21614_v61  ;;  %v4037_v21 = vsel %vm4035_vm14, %v4025_v20, 2102212464 }
 0x3ee   :  { %v4075_v23 = vmul.u32 %v4073_v37, %v4049_v42  ;;  %v4078_v26 = vmul.u32 %v4074_v27, %v4050_v19  ;;  %v4079_v14 = vshll.u32 %v4076_v2, 16  ;;  %v4056_v40 = vmul.u32 %v4052_v13, %v4050_v19 }
 0x3ef   :  { %v4059_v58 = vshll.u32 %v4055_v6, 16  ;;  %vm4061_vm7 = vc.u32 %v4053_v38, %v4057_v50  ;;  %v4063_v11 = vadd.s32 %v4057_v50, %v4053_v38  ;;  %v4081_v48 = vshll.u32 %v4077_v0, 16 }
 0x3f0   :  { %v4062_v63 = vsel %vm4061_vm7, 1, %v21699_v39  ;;  %vm4083_vm3 = vc.u32 %v4075_v23, %v4079_v14  ;;  %vm4139_vm12 = vcmp.gt.s32.totalorder %v4138_v4, 0  ;;  %v4085_v61 = vadd.s32 %v4079_v14, %v4075_v23 }
 0x3f1   :  { %v4064_v46 = vadd.s32 %v4062_v63, %v4056_v40  ;;  %vm4065_vm0 = vc.u32 %v4063_v11, %v4059_v58  ;;  %v4084_v24 = vsel %vm4083_vm3, 1, %v21699_v39  ;;  %v4542_v16 = vadd.s32 536870912, %v18420_v10 }
 0x3f2   :  { %v4016_v20 = vshrl.u32 %v21702_v17, %v18338_v29  ;;  %v4066_v27 = vsel %vm4065_vm0, 1, %v21699_v39  ;;  %v4086_v42 = vadd.s32 %v4084_v24, %v4078_v26  ;;  %v4058_v37 = vshrl.u32 %v4054_v41, 16 }
 0x3f3   :  { %v4068_v38 = vadd.s32 %v4066_v27, %v4064_v46  ;;  %vm4087_vm14 = vc.u32 %v4085_v61, %v4081_v48  ;;  %v4140_v50 = vsel %vm4139_vm12, %v4138_v4, 0  ;;  %vm22178_vm7 = vcmp.lt.s32.totalorder %v18340_v60, 3 }
 0x3f4   :  { %v4036_v40 = vsel %vm4032_vm15, %v4016_v20, %v18357_v53  ;;  %v4038_v19 = vsel %vm22178_vm7, %v18359_v56, %v4037_v21  ;;  %v4088_v13 = vsel %vm4087_vm14, 1, %v21699_v39  ;;  %v4142_v58 = vand.u32 31, %v4140_v50 }
 0x3f5   :  { %v4060_v23 = vshrl.u32 %v4055_v6, 16  ;;  %v4069_v29 = vadd.s32 %v4068_v38, %v4058_v37  ;;  %v4080_v14 = vshrl.u32 %v4076_v2, 16  ;;  %v4090_v11 = vadd.s32 %v4088_v13, %v4086_v42 }
 0x3f6   :  { %v12573_v26 = vadd.s32 4294967294, %v4421_v33  ;;  %v18441_v41 = vshrl.u32 %v4542_v16, 30  ;;  %v4136_v4 = vor.u32 8388608, %v18424_v52  ;;  %v18444_v63 = vsub.s32 32, %v4142_v58 }
 0x3f7   :  { %vm22180_vm12 = vcmp.lt.s32.totalorder %v18340_v60, 2  ;;  %v18448_v46 = vadd.s32 %v4069_v29, %v4060_v23  ;;  %v4082_v56 = vshrl.u32 %v4077_v0, 16  ;;  %v4091_v21 = vadd.s32 %v4090_v11, %v4080_v14 }
 0x3f8   :  { %22179 = vst [vmem:[#allocation134_spill] sm:$0xff] %v18441_v41  ;;  %v4039_v53 = vsel %vm22180_vm12, %v4036_v40, %v4038_v19  ;;  %v18450_v24 = vadd.s32 %v4085_v61, %v4081_v48  ;;  %v4145_v6 = vshll.u32 %v21702_v17, %v4142_v58  ;;  %v4146_v2 = vshrl.u32 %v21877_v55, %v18444_v63 }
 0x3f9   :  { %v4149_v16 = vshrl.u32 %v22035_v34, %v18444_v63  ;;  %v4092_v33 = vadd.s32 %v4091_v21, %v4082_v56  ;;  %v4148_v52 = vshll.u32 %v21877_v55, %v4142_v58  ;;  %v4151_v60 = vshll.u32 %v22035_v34, %v4142_v58 }
 0x3fa   :  { %v4152_v20 = vshrl.u32 %v22033_v7, %v18444_v63  ;;  %vm4095_vm15 = vc.u32 %v18448_v46, %v18450_v24  ;;  %v18463_v61 = vshrl.u32 %v4140_v50, 5  ;;  %v4154_v0 = vshll.u32 %v22033_v7, %v4142_v58 }
 0x3fb   :  { %v4155_v48 = vshrl.u32 %v21706_v49, %v18444_v63  ;;  %v4096_v27 = vadd.s32 1, %v4092_v33  ;;  %v18468_v42 = vor.u32 %v4146_v2, %v4145_v6  ;;  %v18470_v37 = vor.u32 %v4149_v16, %v4148_v52 }
 0x3fc   :  { %v18472_v38 = vor.u32 %v4152_v20, %v4151_v60  ;;  %v4093_v40 = vmul.u32 %v18373_v30, %v4039_v53  ;;  %v4157_v13 = vshll.u32 %v21706_v49, %v4142_v58  ;;  %v4158_v50 = vshrl.u32 %v21707_v12, %v18444_v63 }
 0x3fd   :  { %v4156_v19 = vor.u32 %v4155_v48, %v4154_v0  ;;  %vm12574_vm0 = vcmp.lt.s32.totalorder %v12573_v26, 0  ;;  %v4544_v23 = vshll.u32 %v18441_v41, 30  ;;  %v4097_v29 = vsel %vm4095_vm15, %v4096_v27, %v4092_v33  ;;  %v179_v41 = vpop.permute.xlu0 %178 }
 0x3fe   :  { %v18479_v14 = vshll.u32 %v4136_v4, 8  ;;  %v4098_v11 = vadd.s32 %v4097_v29, %v4093_v40  ;;  %v4159_v56 = vor.u32 %v4158_v50, %v4157_v13  ;;  %vm21625_vm3 = vcmp.lt.s32.totalorder %v18463_v61, 1 }
 0x3ff   :  { %vm21626_vm14 = vcmp.lt.s32.totalorder %v18463_v61, 4  ;;  %vm21624_vm7 = vcmp.lt.s32.totalorder %v18463_v61, 3  ;;  %v4168_v30 = vsel %vm21625_vm3, %v18468_v42, %v18470_v37  ;;  %v4172_v4 = vsel %vm21625_vm3, %v18470_v37, %v18472_v38 }
 0x400   :  { %v4169_v58 = vsel %vm21626_vm14, %v4156_v19, 920167782  ;;  %v4099_v53 = vadd.s32 536870912, %v4098_v11  ;;  %vm21615_vm12 = vcmp.lt.s32.totalorder %v18463_v61, 2  ;;  %v4173_v6 = vsel %vm21626_vm14, %v4159_v56, 1326507024 }
 0x401   :  { %v4170_v21 = vsel %vm21624_vm7, %v18472_v38, %v4169_v58  ;;  %v18503_v2 = vsub.s32 %v18286_v5, %v3284_v22  ;;  %v18506_v16 = vsub.s32 %v18420_v10, %v4544_v23  ;;  %v4174_v52 = vsel %vm21624_vm7, %v4156_v19, %v4173_v6 }
 0x402   :  { %v4171_v33 = vsel %vm21615_vm12, %v4168_v30, %v4170_v21  ;;  %v4175_v60 = vsel %vm21615_vm12, %v4172_v4, %v4174_v52  ;;  %v4177_v20 = vand.u32 65535, %v18479_v14  ;;  %v18516_v27 = vsel %vm12574_vm0, 0, %v12573_v26 }
 0x403   :  { %22181 = vst [vmem:[#allocation135_spill] sm:$0xff] %v18503_v2  ;;  %v4201_v0 = vand.u32 65535, %v4171_v33  ;;  %v4202_v48 = vshrl.u32 %v4171_v33, 16  ;;  %v4178_v5 = vshrl.u32 %v18479_v14, 16  ;;  %v4179_v22 = vand.u32 65535, %v4175_v60 }
 0x404   :  { %v4180_v10 = vshrl.u32 %v4175_v60, 16  ;;  %v22182_v40 = vand.u32 2147483647, %v18312_v47  ;;  %v22183_v13 = vcvt.s32.f32 %v18310_v57  ;;  %v18526_v23 = vshrl.u32 %v4099_v53, 30 }
 0x405   :  { %v4204_v29 = vmul.u32 %v4202_v48, %v4177_v20  ;;  %v3287_v26 = vsub.s32 0, %v18503_v2  ;;  %v4183_v30 = vmul.u32 %v4179_v22, %v4178_v5  ;;  %v4429_v58 = vsub.s32 4294967266, %v18516_v27 }
 0x406   :  { %v18523_v50 = vmul.f32 %v22183_v13, %v22182_v40  ;;  %22184 = vst [vmem:[#allocation136_spill] sm:$0xff] %v18526_v23  ;;  %v4182_v56 = vmul.u32 %v4180_v10, %v4177_v20  ;;  %v4547_v4 = vsub.s32 0, %v18506_v16  ;;  %v4205_v47 = vmul.u32 %v4201_v0, %v4178_v5 }
 0x407   :  { %v4207_v21 = vshll.u32 %v4204_v29, 16  ;;  %vm4546_vm0 = vcmp.lt.s32.totalorder %v18506_v16, 0  ;;  %v4181_v57 = vmul.u32 %v4179_v22, %v4177_v20  ;;  %v4203_v33 = vmul.u32 %v4201_v0, %v4177_v20  ;;  %v22185_v22 = vld [vmem:[#allocation74_spill] sm:$0xff] }
 0x408   :  { %v4185_v6 = vshll.u32 %v4182_v56, 16  ;;  %v4101_v53 = vshll.u32 %v18526_v23, 30  ;;  %v4184_v52 = vmul.u32 %v4180_v10, %v4178_v5  ;;  %v4187_v60 = vshll.u32 %v4183_v30, 16 }
 0x409   :  { %v4206_v40 = vmul.u32 %v4202_v48, %v4178_v5  ;;  %vm4211_vm15 = vc.u32 %v4203_v33, %v4207_v21  ;;  %v4213_v19 = vadd.s32 %v4207_v21, %v4203_v33  ;;  %v4548_v62 = vsel %vm4546_vm0, %v4547_v4, %v18506_v16  ;;  %v22186_v5 = vld [vmem:[#allocation103_spill] sm:$0xff] }
 0x40a   :  { %vm4189_vm12 = vc.u32 %v4181_v57, %v4185_v6  ;;  %v4191_v13 = vadd.s32 %v4185_v6, %v4181_v57  ;;  %v4209_v3 = vshll.u32 %v4205_v47, 16  ;;  %v4212_v32 = vsel %vm4211_vm15, 1, %v21699_v39 }
 0x40b   :  { %v4190_v43 = vsel %vm4189_vm12, 1, %v21699_v39  ;;  %vm21645_vm7 = vcmp.lt.s32.totalorder %v22185_v22, 0  ;;  %v4144_v20 = vshrl.u32 %v21702_v17, %v18444_v63  ;;  %v4214_v48 = vadd.s32 %v4212_v32, %v4206_v40 }
 0x40c   :  { %v4192_v0 = vadd.s32 %v4190_v43, %v4184_v52  ;;  %vm4193_vm3 = vc.u32 %v4191_v13, %v4187_v60  ;;  %v18541_v10 = vsub.s32 %v4098_v11, %v4101_v53  ;;  %vm22187_vm0 = vcmp.lt.s32.totalorder %v18463_v61, 4 }
 0x40d   :  { %v4165_v4 = vsel %vm22187_vm0, %v18472_v38, 2102212464  ;;  %v4194_v21 = vsel %vm4193_vm3, 1, %v21699_v39  ;;  %vm4215_vm12 = vc.u32 %v4213_v19, %v4209_v3  ;;  %v4186_v57 = vshrl.u32 %v4182_v56, 16 }
 0x40e   :  { %v4196_v6 = vadd.s32 %v4194_v21, %v4192_v0  ;;  %v4216_v33 = vsel %vm4215_vm12, 1, %v21699_v39  ;;  %v199_v63 = vmul.f32 %v18176_v31, %v179_v41  ;;  %v4430_v43 = vadd.s32 127, %v4429_v58  ;;  %v22191_v58 = vld [vmem:[#allocation106_spill] sm:$0xff] }
 0x40f   :  { %vm22188_vm15 = vcmp.lt.s32.totalorder %v18463_v61, 1  ;;  %v4208_v11 = vshrl.u32 %v4204_v29, 16  ;;  %v4218_v53 = vadd.s32 %v4216_v33, %v4214_v48  ;;  %vm22189_vm14 = vcmp.lt.s32.totalorder %v18463_v61, 3 }
 0x410   :  { %v4164_v32 = vsel %vm22188_vm15, %v4144_v20, %v18468_v42  ;;  %v4166_v38 = vsel %vm22189_vm14, %v18470_v37, %v4165_v4  ;;  %v4188_v52 = vshrl.u32 %v4183_v30, 16  ;;  %v4197_v60 = vadd.s32 %v4196_v6, %v4186_v57 }
 0x411   :  { %v215_v40 = vpack.c.bf16 %v199_v63, %v199_v63  ;;  %vm22190_vm3 = vcmp.lt.s32.totalorder %v18503_v2, 0  ;;  %v4549_v13 = vclz %v4548_v62  ;;  %v4210_v31 = vshrl.u32 %v4205_v47, 16 }
 0x412   :  { %v3288_v56 = vsel %vm22190_vm3, %v3287_v26, %v18503_v2  ;;  %v4219_v41 = vadd.s32 %v4218_v53, %v4208_v11  ;;  %vm21628_vm0 = vcmp.lt.s32.totalorder %v22191_v58, 0  ;;  %v4425_v42 = vsub.s32 32, %v18516_v27 }
 0x413   :  { %v4104_v29 = vsub.s32 0, %v18541_v10  ;;  %v18561_v20 = vadd.s32 %v4197_v60, %v4188_v52  ;;  %v18563_v0 = vadd.s32 %v4213_v19, %v4209_v3  ;;  %vm4103_vm14 = vcmp.lt.s32.totalorder %v18541_v10, 0 }
 0x414   :  { %vm22192_vm12 = vcmp.lt.s32.totalorder %v18463_v61, 2  ;;  %v4220_v30 = vadd.s32 %v4219_v41, %v4210_v31  ;;  %v18568_v26 = vunpack.i.l.bf16 %v215_v40  ;;  %v3289_v62 = vclz %v3288_v56  ;;  %v22198_v31 = vld [vmem:[#allocation123_spill] sm:$0xff] }
 0x415   :  { %v4167_v37 = vsel %vm22192_vm12, %v4164_v32, %v4166_v38  ;;  %v4409_v47 = vadd.s32 %v18214_v35, %v18194_v1  ;;  %v4431_v48 = vshll.u32 %v4430_v43, 23  ;;  %vm4223_vm15 = vc.u32 %v18561_v20, %v18563_v0 }
 0x416   :  { %22193 = vst [vmem:[#allocation137_spill] sm:$0xff] %v18568_v26  ;;  %v22194_v3 = vxor.u32 2147483648, %v18004_v54  ;;  %v12576_v61 = vadd.s32 4294967294, %v4549_v13  ;;  %v4224_v4 = vadd.s32 1, %v4220_v30  ;;  %v4948_v21 = vand.u32 2139095040, %v18568_v26 }
 0x417   :  { %v22195_v57 = vxor.u32 2147483648, %v18284_v25  ;;  %vm22196_vm3 = vcmp.lt.s32.totalorder %v22186_v5, 0  ;;  %v4427_v35 = vshrl.u32 %v4409_v47, %v4425_v42  ;;  %v4105_v6 = vsel %vm4103_vm14, %v4104_v29, %v18541_v10 }
 0x418   :  { %v18579_v19 = vsel %vm21645_vm7, %v22194_v3, %v18004_v54  ;;  %v4221_v33 = vmul.u32 %v18479_v14, %v4167_v37  ;;  %v3620_v63 = vxor.u32 2147483648, %v18523_v50  ;;  %v22197_v54 = vsub.s32 4294967266, %v18416_v44  ;;  %v22199_v14 = vld [vmem:[#allocation125_spill] sm:$0xff] }
 0x419   :  { %v18587_v1 = vsel %vm22196_vm3, %v22195_v57, %v18284_v25  ;;  %v4225_v32 = vsel %vm4223_vm15, %v4224_v4, %v4220_v30  ;;  %v4949_v11 = vshrl.u32 %v4948_v21, 23  ;;  %v12552_v53 = vadd.s32 4294967294, %v3289_v62 }
 0x41a   :  { %v3170_v43 = vadd.s32 127, %v22197_v54  ;;  %v4426_v38 = vshll.u32 %v18335_v18, %v18516_v27  ;;  %v4432_v52 = vor.u32 4788187, %v4431_v48  ;;  %v4226_v60 = vadd.s32 %v4225_v32, %v4221_v33 }
 0x41b   :  { %vm12577_vm12 = vcmp.lt.s32.totalorder %v12576_v61, 0  ;;  %v4106_v25 = vclz %v4105_v6  ;;  %v21627_v56 = vand.u32 2147483647, %v18568_v26  ;;  %v12584_v13 = vadd.s32 4294967169, %v4949_v11 }
 0x41c   :  { %v3149_v41 = vadd.s32 %v22199_v14, %v22198_v31  ;;  %v3165_v42 = vsub.s32 32, %v18416_v44  ;;  %v4428_v29 = vor.u32 %v4427_v35, %v4426_v38  ;;  %v4227_v37 = vadd.s32 536870912, %v4226_v60 }
 0x41d   :  { %v18603_v30 = vsel %vm21628_vm0, %v3620_v63, %v18523_v50  ;;  %v3171_v27 = vshll.u32 %v3170_v43, 23  ;;  %v4955_v62 = vadd.s32 1, %v12584_v13  ;;  %vm12553_vm14 = vcmp.lt.s32.totalorder %v12552_v53, 0 }
 0x41e   :  { %v4433_v47 = vand.u32 2147483647, %v4432_v52  ;;  %v18607_v48 = vsel %vm12577_vm12, 0, %v12576_v61  ;;  %v18609_v3 = vshrl.u32 %v4227_v37, 30  ;;  %v12567_v4 = vadd.s32 4294967294, %v4106_v25 }
 0x41f   :  { %v18611_v21 = vunpack.i.h.bf16 %v215_v40  ;;  %v4952_v57 = vand.u32 8388607, %v21627_v56  ;;  %vm4956_vm15 = vcmp.gt.s32.totalorder %v4955_v62, 0  ;;  %v18615_v50 = vshrl.u32 %v3149_v41, %v3165_v42 }
 0x420   :  { %22200 = vst [vmem:[#allocation123_spill] sm:$0xff] %v18609_v3  ;;  %v4435_v35 = vcvt.s32.f32 %v4428_v29  ;;  %v4229_v6 = vshll.u32 %v18609_v3, 30  ;;  %v4957_v33 = vsel %vm4956_vm15, %v4955_v62, 0  ;;  %v18618_v63 = vor.u32 4788187, %v3171_v27 }
 0x421   :  { %22201 = vst [vmem:[#allocation125_spill] sm:$0xff] %v18611_v21  ;;  %v18620_v54 = vsel %vm12553_vm14, 0, %v12552_v53  ;;  %v18624_v61 = vadd.s32 %v18387_v36, %v18369_v8  ;;  %v4959_v40 = vand.u32 31, %v4957_v33  ;;  %v4557_v38 = vsub.s32 4294967266, %v18607_v48 }
 0x422   :  { %22202 = vst [vmem:[#allocation138_spill] sm:$0xff] %v18615_v50  ;;  %v18626_v43 = vmul.f32 %v4435_v35, %v4433_v47  ;;  %vm12568_vm3 = vcmp.lt.s32.totalorder %v12567_v4, 0  ;;  %v4953_v52 = vor.u32 8388608, %v4952_v57  ;;  %v5076_v53 = vand.u32 2139095040, %v18611_v21 }
 0x423   :  { %22203 = vst [vmem:[#allocation139_spill] sm:$0xff] %v18618_v63  ;;  %v4960_v25 = vsub.s32 32, %v4959_v40  ;;  %v18633_v13 = vsub.s32 %v4226_v60, %v4229_v6  ;;  %v18635_v31 = vshrl.u32 %v4957_v33, 5  ;;  %v4962_v8 = vshll.u32 %v21702_v17, %v4959_v40  ;;  %v19225_v63 = vld [vmem:[%s21238_s4 + $0x28] sm:$0xf0] }
 0x424   :  { %v4965_v36 = vshll.u32 %v21877_v55, %v4959_v40  ;;  %v4968_v42 = vshll.u32 %v22035_v34, %v4959_v40  ;;  %v18643_v37 = vadd.s32 127, %v4557_v38  ;;  %v18645_v27 = vsel %vm12568_vm3, 0, %v12567_v4 }
 0x425   :  { %v4963_v14 = vshrl.u32 %v21877_v55, %v4960_v25  ;;  %v4966_v41 = vshrl.u32 %v22035_v34, %v4960_v25  ;;  %v4969_v29 = vshrl.u32 %v22033_v7, %v4960_v25  ;;  %v4971_v60 = vshll.u32 %v22033_v7, %v4959_v40 }
 0x426   :  { %v4972_v62 = vshrl.u32 %v21706_v49, %v4960_v25  ;;  %v18653_v6 = vshll.u32 %v4953_v52, 8  ;;  %v4232_v33 = vsub.s32 0, %v18633_v13  ;;  %v4974_v18 = vshll.u32 %v21706_v49, %v4959_v40 }
 0x427   :  { %v18649_v47 = vor.u32 %v4963_v14, %v4962_v8  ;;  %v18651_v57 = vor.u32 %v4966_v41, %v4965_v36  ;;  %v4970_v35 = vor.u32 %v4969_v29, %v4968_v42  ;;  %v4975_v38 = vshrl.u32 %v21707_v12, %v4960_v25 }
 0x428   :  { %v4973_v56 = vor.u32 %v4972_v62, %v4971_v60  ;;  %vm4231_vm12 = vcmp.lt.s32.totalorder %v18633_v13, 0  ;;  %vm4977_vm14 = vcmp.lt.s32.totalorder %v18635_v31, 1  ;;  %vm4980_vm15 = vcmp.lt.s32.totalorder %v18635_v31, 4 }
 0x429   :  { %v5077_v4 = vshrl.u32 %v5076_v53, 23  ;;  %v4976_v8 = vor.u32 %v4975_v38, %v4974_v18  ;;  %vm21647_vm3 = vcmp.lt.s32.totalorder %v18635_v31, 3  ;;  %v4985_v52 = vsel %vm4977_vm14, %v18649_v47, %v18651_v57 }
 0x42a   :  { %v4986_v40 = vsel %vm4980_vm15, %v4973_v56, 920167782  ;;  %v4094_v36 = vadd.s32 %v18450_v24, %v18448_v46  ;;  %vm21646_vm0 = vcmp.lt.s32.totalorder %v18635_v31, 2  ;;  %v4989_v18 = vsel %vm4977_vm14, %v18651_v57, %v4970_v35 }
 0x42b   :  { %v4987_v14 = vsel %vm21647_vm3, %v4970_v35, %v4986_v40  ;;  %v4110_v53 = vsub.s32 32, %v18645_v27  ;;  %v4233_v41 = vsel %vm4231_vm12, %v4232_v33, %v18633_v13  ;;  %v4990_v29 = vsel %vm4980_vm15, %v4976_v8, 1326507024 }
 0x42c   :  { %v4988_v42 = vsel %vm21646_vm0, %v4985_v52, %v4987_v14  ;;  %v4114_v46 = vsub.s32 4294967266, %v18645_v27  ;;  %v4991_v24 = vsel %vm21647_vm3, %v4973_v56, %v4990_v29  ;;  %v4994_v60 = vand.u32 65535, %v18653_v6 }
 0x42d   :  { %v4992_v38 = vsel %vm21646_vm0, %v4989_v18, %v4991_v24  ;;  %v5018_v40 = vand.u32 65535, %v4988_v42  ;;  %v5019_v33 = vshrl.u32 %v4988_v42, 16  ;;  %v12587_v11 = vadd.s32 4294967169, %v5077_v4 }
 0x42e   :  { %v4234_v32 = vclz %v4233_v41  ;;  %v4995_v52 = vshrl.u32 %v18653_v6, 16  ;;  %v4996_v14 = vand.u32 65535, %v4992_v38  ;;  %v4997_v8 = vshrl.u32 %v4992_v38, 16 }
 0x42f   :  { %v18693_v29 = vshrl.u32 %v4094_v36, %v4110_v53  ;;  %v5021_v3 = vmul.u32 %v5019_v33, %v4994_v60  ;;  %v18695_v62 = vadd.s32 127, %v4114_v46  ;;  %v22204_v42 = vand.u32 2147483647, %v18611_v21 }
 0x430   :  { %v4999_v23 = vmul.u32 %v4997_v8, %v4994_v60  ;;  %v5022_v18 = vmul.u32 %v5018_v40, %v4995_v52  ;;  %v4961_v41 = vshrl.u32 %v21702_v17, %v4960_v25  ;;  %v5000_v24 = vmul.u32 %v4996_v14, %v4995_v52 }
 0x431   :  { %v18699_v4 = vand.u32 8388607, %v22204_v42  ;;  %v5024_v38 = vshll.u32 %v5021_v3, 16  ;;  %v5083_v2 = vadd.s32 1, %v12587_v11  ;;  %v12570_v15 = vadd.s32 4294967294, %v4234_v32 }
 0x432   :  { %v4998_v45 = vmul.u32 %v4996_v14, %v4994_v60  ;;  %v5002_v51 = vshll.u32 %v4999_v23, 16  ;;  %v5020_v56 = vmul.u32 %v5018_v40, %v4994_v60  ;;  %v4982_v36 = vsel %vm4980_vm15, %v4970_v35, 2102212464 }
 0x433   :  { %v5001_v53 = vmul.u32 %v4997_v8, %v4995_v52  ;;  %v5004_v46 = vshll.u32 %v5000_v24, 16  ;;  %v5023_v26 = vmul.u32 %v5019_v33, %v4995_v52  ;;  %v5026_v21 = vshll.u32 %v5022_v18, 16 }
 0x434   :  { %vm5006_vm12 = vc.u32 %v4998_v45, %v5002_v51  ;;  %v5008_v59 = vadd.s32 %v5002_v51, %v4998_v45  ;;  %vm5028_vm7 = vc.u32 %v5020_v56, %v5024_v38  ;;  %v5030_v50 = vadd.s32 %v5024_v38, %v5020_v56 }
 0x435   :  { %v5007_v42 = vsel %vm5006_vm12, 1, %v21699_v39  ;;  %v5029_v25 = vsel %vm5028_vm7, 1, %v21699_v39  ;;  %vm5084_vm0 = vcmp.gt.s32.totalorder %v5083_v2, 0  ;;  %v4981_v32 = vsel %vm4977_vm14, %v4961_v41, %v18649_v47 }
 0x436   :  { %v5009_v11 = vadd.s32 %v5007_v42, %v5001_v53  ;;  %vm5010_vm3 = vc.u32 %v5008_v59, %v5004_v46  ;;  %v5031_v35 = vadd.s32 %v5029_v25, %v5023_v26  ;;  %vm12571_vm15 = vcmp.lt.s32.totalorder %v12570_v15, 0 }
 0x437   :  { %v5011_v60 = vsel %vm5010_vm3, 1, %v21699_v39  ;;  %vm5032_vm1 = vc.u32 %v5030_v50, %v5026_v21  ;;  %v5085_v51 = vsel %vm5084_vm0, %v5083_v2, 0  ;;  %vm22205_vm9 = vcmp.lt.s32.totalorder %v18635_v31, 3 }
 0x438   :  { %v4983_v45 = vsel %vm22205_vm9, %v18651_v57, %v4982_v36  ;;  %v5003_v40 = vshrl.u32 %v4999_v23, 16  ;;  %v5013_v33 = vadd.s32 %v5011_v60, %v5009_v11  ;;  %v5033_v52 = vsel %vm5032_vm1, 1, %v21699_v39 }
 0x439   :  { %v4116_v14 = vshll.u32 %v18695_v62, 23  ;;  %v5025_v8 = vshrl.u32 %v5021_v3, 16  ;;  %v5035_v47 = vadd.s32 %v5033_v52, %v5031_v35  ;;  %v5087_v56 = vand.u32 31, %v5085_v51 }
 0x43a   :  { %v18715_v59 = vsel %vm12571_vm15, 0, %v12570_v15  ;;  %v5005_v26 = vshrl.u32 %v5000_v24, 16  ;;  %v5014_v41 = vadd.s32 %v5013_v33, %v5003_v40  ;;  %v5081_v38 = vor.u32 8388608, %v18699_v4 }
 0x43b   :  { %vm22206_vm7 = vcmp.lt.s32.totalorder %v18635_v31, 2  ;;  %v5027_v53 = vshrl.u32 %v5022_v18, 16  ;;  %v5036_v57 = vadd.s32 %v5035_v47, %v5025_v8  ;;  %v18720_v23 = vsub.s32 32, %v5087_v56 }
 0x43c   :  { %v4984_v2 = vsel %vm22206_vm7, %v4981_v32, %v4983_v45  ;;  %v18722_v36 = vadd.s32 %v5014_v41, %v5005_v26  ;;  %v18724_v46 = vadd.s32 %v5030_v50, %v5026_v21  ;;  %v18726_v3 = vshrl.u32 %v5085_v51, 5 }
 0x43d   :  { %v5090_v15 = vshll.u32 %v21702_v17, %v5087_v56  ;;  %v5037_v42 = vadd.s32 %v5036_v57, %v5027_v53  ;;  %v5091_v24 = vshrl.u32 %v21877_v55, %v18720_v23  ;;  %v5093_v4 = vshll.u32 %v21877_v55, %v5087_v56 }
 0x43e   :  { %v5094_v31 = vshrl.u32 %v22035_v34, %v18720_v23  ;;  %vm5040_vm1 = vc.u32 %v18722_v36, %v18724_v46  ;;  %v5096_v18 = vshll.u32 %v22035_v34, %v5087_v56  ;;  %v5097_v21 = vshrl.u32 %v22033_v7, %v18720_v23 }
 0x43f   :  { %v5099_v50 = vshll.u32 %v22033_v7, %v5087_v56  ;;  %v5041_v25 = vadd.s32 1, %v5037_v42  ;;  %v18740_v32 = vor.u32 %v5091_v24, %v5090_v15  ;;  %v5100_v55 = vshrl.u32 %v21706_v49, %v18720_v23 }
 0x440   :  { %v18742_v11 = vor.u32 %v5094_v31, %v5093_v4  ;;  %v5038_v35 = vmul.u32 %v18653_v6, %v4984_v2  ;;  %v18747_v60 = vor.u32 %v5097_v21, %v5096_v18  ;;  %v5102_v51 = vshll.u32 %v21706_v49, %v5087_v56 }
 0x441   :  { %v5103_v34 = vshrl.u32 %v21707_v12, %v18720_v23  ;;  %v5042_v45 = vsel %vm5040_vm1, %v5041_v25, %v5037_v42  ;;  %v5101_v40 = vor.u32 %v5100_v55, %v5099_v50  ;;  %vm5105_vm9 = vcmp.lt.s32.totalorder %v18726_v3, 1 }
 0x442   :  { %v18753_v7 = vshll.u32 %v5081_v38, 8  ;;  %v5043_v33 = vadd.s32 %v5042_v45, %v5038_v35  ;;  %vm5108_vm0 = vcmp.lt.s32.totalorder %v18726_v3, 4  ;;  %v5113_v6 = vsel %vm5105_vm9, %v18740_v32, %v18742_v11 }
 0x443   :  { %v5104_v52 = vor.u32 %v5103_v34, %v5102_v51  ;;  %v4242_v49 = vsub.s32 4294967266, %v18715_v59  ;;  %vm5107_vm14 = vcmp.lt.s32.totalorder %v18726_v3, 3  ;;  %v5114_v12 = vsel %vm5108_vm0, %v5101_v40, 920167782 }
 0x444   :  { %v5117_v8 = vsel %vm5105_vm9, %v18742_v11, %v18747_v60  ;;  %v5044_v47 = vadd.s32 536870912, %v5043_v33  ;;  %vm5106_vm3 = vcmp.lt.s32.totalorder %v18726_v3, 2  ;;  %v5115_v56 = vsel %vm5107_vm14, %v18747_v60, %v5114_v12 }
 0x445   :  { %v5118_v26 = vsel %vm5108_vm0, %v5104_v52, 1326507024  ;;  %v5116_v41 = vsel %vm5106_vm3, %v5113_v6, %v5115_v56  ;;  %v5122_v2 = vand.u32 65535, %v18753_v7  ;;  %v5123_v53 = vshrl.u32 %v18753_v7, 16 }
 0x446   :  { %v5119_v38 = vsel %vm5107_vm14, %v5101_v40, %v5118_v26  ;;  %v4238_v57 = vsub.s32 32, %v18715_v59  ;;  %v18781_v15 = vshrl.u32 %v5044_v47, 30  ;;  %v5147_v24 = vshrl.u32 %v5116_v41, 16 }
 0x447   :  { %v5120_v42 = vsel %vm5106_vm3, %v5117_v8, %v5119_v38  ;;  %v4243_v4 = vadd.s32 127, %v4242_v49  ;;  %v5146_v21 = vand.u32 65535, %v5116_v41  ;;  %v22207_v50 = vsub.s32 32, %v18607_v48 }
 0x448   :  { %v5124_v31 = vand.u32 65535, %v5120_v42  ;;  %v5125_v18 = vshrl.u32 %v5120_v42, 16  ;;  %v4222_v55 = vadd.s32 %v18563_v0, %v18561_v20  ;;  %v5046_v35 = vshll.u32 %v18781_v15, 30 }
 0x449   :  { %v18788_v25 = vshrl.u32 %v18624_v61, %v22207_v50  ;;  %v5149_v51 = vmul.u32 %v5147_v24, %v5122_v2  ;;  %v22208_v34 = vshll.u32 %v18643_v37, 23  ;;  %v22209_v40 = vshll.u32 %v18541_v10, %v18645_v27 }
 0x44a   :  { %v5127_v6 = vmul.u32 %v5125_v18, %v5122_v2  ;;  %v5128_v49 = vmul.u32 %v5124_v31, %v5123_v53  ;;  %v18805_v61 = vor.u32 4788187, %v4116_v14  ;;  %v4239_v20 = vshll.u32 %v18633_v13, %v18715_v59 }
 0x44b   :  { %v18795_v45 = vor.u32 4788187, %v22208_v34  ;;  %v18801_v52 = vor.u32 %v18693_v29, %v22209_v40  ;;  %v4240_v0 = vshrl.u32 %v4222_v55, %v4238_v57  ;;  %v5047_v12 = vsub.s32 %v5043_v33, %v5046_v35 }
 0x44c   :  { %v4244_v37 = vshll.u32 %v4243_v4, 23  ;;  %v5126_v8 = vmul.u32 %v5124_v31, %v5122_v2  ;;  %v5130_v47 = vshll.u32 %v5127_v6, 16  ;;  %v5148_v56 = vmul.u32 %v5146_v21, %v5122_v2 }
 0x44d   :  { %vm5048_vm12 = vcmp.lt.s32.totalorder %v5047_v12, 0  ;;  %v5049_v10 = vsub.s32 0, %v5047_v12  ;;  %v5150_v27 = vmul.u32 %v5146_v21, %v5123_v53  ;;  %v5152_v29 = vshll.u32 %v5149_v51, 16 }
 0x44e   :  { %v5129_v26 = vmul.u32 %v5125_v18, %v5123_v53  ;;  %v5132_v41 = vshll.u32 %v5128_v49, 16  ;;  %vm5134_vm15 = vc.u32 %v5126_v8, %v5130_v47  ;;  %v5136_v38 = vadd.s32 %v5130_v47, %v5126_v8 }
 0x44f   :  { %v5050_v62 = vsel %vm5048_vm12, %v5049_v10, %v5047_v12  ;;  %v5135_v14 = vsel %vm5134_vm15, 1, %v21699_v39  ;;  %v5151_v42 = vmul.u32 %v5147_v24, %v5123_v53  ;;  %vm5156_vm7 = vc.u32 %v5148_v56, %v5152_v29 }
 0x450   :  { %v5051_v13 = vclz %v5050_v62  ;;  %v5137_v59 = vadd.s32 %v5135_v14, %v5129_v26  ;;  %vm5138_vm1 = vc.u32 %v5136_v38, %v5132_v41  ;;  %v5157_v33 = vsel %vm5156_vm7, 1, %v21699_v39 }
 0x451   :  { %v5139_v2 = vsel %vm5138_vm1, 1, %v21699_v39  ;;  %v5154_v57 = vshll.u32 %v5150_v27, 16  ;;  %v5158_v4 = vadd.s32 %v5152_v29, %v5148_v56  ;;  %v5159_v31 = vadd.s32 %v5157_v33, %v5151_v42 }
 0x452   :  { %v4245_v21 = vor.u32 4788187, %v4244_v37  ;;  %v12585_v18 = vadd.s32 4294967294, %v5051_v13  ;;  %v5131_v50 = vshrl.u32 %v5127_v6, 16  ;;  %v5141_v55 = vadd.s32 %v5139_v2, %v5137_v59 }
 0x453   :  { %v5039_v35 = vadd.s32 %v18724_v46, %v18722_v36  ;;  %v5089_v53 = vshrl.u32 %v21702_v17, %v18720_v23  ;;  %v5110_v24 = vsel %vm5108_vm0, %v18747_v60, 2102212464  ;;  %vm5160_vm12 = vc.u32 %v5158_v4, %v5154_v57 }
 0x454   :  { %vm12586_vm15 = vcmp.lt.s32.totalorder %v12585_v18, 0  ;;  %v5133_v34 = vshrl.u32 %v5128_v49, 16  ;;  %v5142_v40 = vadd.s32 %v5141_v55, %v5131_v50  ;;  %v5161_v8 = vsel %vm5160_vm12, 1, %v21699_v39 }
 0x455   :  { %v5054_v37 = vsel %vm12586_vm15, 0, %v12585_v18  ;;  %v5109_v6 = vsel %vm5105_vm9, %v5089_v53, %v18740_v32  ;;  %v5153_v47 = vshrl.u32 %v5149_v51, 16  ;;  %v5163_v36 = vadd.s32 %v5161_v8, %v5159_v31  ;;  %v12744_v8 = vld [vmem:[%s21238_s4 + $0x70] sm:$0xf] }
 0x456   :  { %v22210_v46 = vand.u32 2147483647, %v22185_v22  ;;  %v22211_v17 = vmov 0  ;;  %v22214_v23 = vand.u32 2147483647, %v22186_v5  ;;  %v22215_v60 = vmov 0 }
 0x457   :  { %v22218_v39 = vand.u32 2147483647, %v22191_v58  ;;  %v22219_v49 = vmov 0  ;;  %v5055_v32 = vsub.s32 32, %v5054_v37  ;;  %v5059_v51 = vsub.s32 4294967266, %v5054_v37 }
 0x458   :  { %vm18825_vm7 = vcmp.le.f32.partialorder %v22210_v46, 0.7853982  ;;  %vm18831_vm0 = vcmp.le.f32.partialorder %v22214_v23, 0.7853982  ;;  %v5111_v56 = vsel %vm5107_vm14, %v18742_v11, %v5110_v24  ;;  %v18844_v10 = vadd.s32 %v5142_v40, %v5133_v34  ;;  %v22234_v46 = vld [vmem:[#allocation138_spill] sm:$0xff] }
 0x459   :  { %v22212_v17 = vsel %vm18825_vm7, 4294967295, %v22211_v17  ;;  %v22216_v60 = vsel %vm18831_vm0, 4294967295, %v22215_v60  ;;  %vm18837_vm1 = vcmp.le.f32.partialorder %v22218_v39, 0.7853982  ;;  %v4118_v29 = vand.u32 2147483647, %v18805_v61 }
 0x45a   :  { %22213 = vst [vmem:[#allocation140_spill] sm:$0xff] %v22212_v17  ;;  %v22220_v49 = vsel %vm18837_vm1, 4294967295, %v22219_v49  ;;  %v4241_v26 = vor.u32 %v4240_v0, %v4239_v20  ;;  %v5155_v41 = vshrl.u32 %v5150_v27, 16  ;;  %v5164_v38 = vadd.s32 %v5163_v36, %v5153_v47  ;;  %v22223_v27 = vld [vmem:[#allocation124_spill] sm:$0xff]  ;;  %v12973_v39 = vld [vmem:[%s21238_s4 + $0xf4] sm:$0xf0] }
 0x45b   :  { %22217 = vst [vmem:[#allocation141_spill] sm:$0xff] %v22216_v60  ;;  %v5056_v62 = vshll.u32 %v5047_v12, %v5054_v37  ;;  %v5057_v14 = vshrl.u32 %v5039_v35, %v5055_v32  ;;  %v5060_v42 = vadd.s32 127, %v5059_v51  ;;  %v18847_v13 = vadd.s32 %v5158_v4, %v5154_v57  ;;  %v19125_v4 = vld [vmem:[%s21238_s4 + $0x30] sm:$0xf] }
 0x45c   :  { %22221 = vst [vmem:[#allocation142_spill] sm:$0xff] %v22220_v49  ;;  %v22222_v59 = vshll.u32 %v18506_v16, %v18607_v48  ;;  %v4120_v2 = vcvt.s32.f32 %v18801_v52  ;;  %v5112_v11 = vsel %vm5106_vm3, %v5109_v6, %v5111_v56  ;;  %v5165_v31 = vadd.s32 %v5164_v38, %v5155_v41  ;;  %v12746_v56 = vld [vmem:[%s21238_s4 + $0x78] sm:$0xf0]  ;;  %v22240_v38 = vld [vmem:[#allocation137_spill] sm:$0xff] }
 0x45d   :  { %v4246_v61 = vand.u32 2147483647, %v4245_v21  ;;  %v5058_v20 = vor.u32 %v5057_v14, %v5056_v62  ;;  %v5061_v0 = vshll.u32 %v5060_v42, 23  ;;  %vm5168_vm9 = vc.u32 %v18844_v10, %v18847_v13 }
 0x45e   :  { %v4556_v33 = vor.u32 %v18788_v25, %v22222_v59  ;;  %v4561_v16 = vand.u32 2147483647, %v18795_v45  ;;  %v5169_v48 = vadd.s32 1, %v5165_v31  ;;  %v4121_v25 = vmul.f32 %v4120_v2, %v4118_v29  ;;  %v22236_v29 = vld [vmem:[#allocation133_spill] sm:$0xff]  ;;  %v12972_v2 = vld [vmem:[%s21238_s4 + $0xf4] sm:$0xf] }
 0x45f   :  { %v4248_v57 = vcvt.s32.f32 %v4241_v26  ;;  %v5062_v52 = vor.u32 4788187, %v5061_v0  ;;  %v5166_v3 = vmul.u32 %v18753_v7, %v5112_v11  ;;  %v4437_v21 = vxor.u32 2147483648, %v18626_v43 }
 0x460   :  { %v4563_v18 = vcvt.s32.f32 %v4556_v33  ;;  %v5170_v50 = vsel %vm5168_vm9, %v5169_v48, %v5165_v31  ;;  %v22224_v55 = vand.u32 2147483647, %v22223_v27  ;;  %v22225_v35 = vmov 0  ;;  %v22245_v31 = vld [vmem:[#allocation126_spill] sm:$0xff]  ;;  %v12736_v48 = vld [vmem:[%s21238_s4 + $0x60] sm:$0xf] }
 0x461   :  { %v22227_v45 = vand.u32 2147483647, %v18268_v28  ;;  %v4249_v24 = vmul.f32 %v4248_v57, %v4246_v61  ;;  %v5063_v7 = vand.u32 2147483647, %v5062_v52  ;;  %v5065_v34 = vcvt.s32.f32 %v5058_v20  ;;  %v12955_v57 = vld [vmem:[%s21238_s4 + $0x64] sm:$0xf0] }
 0x462   :  { %vm18866_vm3 = vcmp.le.f32.partialorder %v22224_v55, 0.7853982  ;;  %v5171_v40 = vadd.s32 %v5170_v50, %v5166_v3  ;;  %v18883_v37 = vsel %vm18825_vm7, %v22185_v22, %v18579_v19  ;;  %v18889_v6 = vsel %vm18831_vm0, %v22186_v5, %v18587_v1  ;;  %v12957_v19 = vld [vmem:[%s21238_s4 + $0x74] sm:$0xf0]  ;;  %v12808_v1 = vld [vmem:[%s21238_s4 + $0xf0] sm:$0xf] }
 0x463   :  { %v22226_v35 = vsel %vm18866_vm3, 4294967295, %v22225_v35  ;;  %vm18872_vm12 = vcmp.le.f32.partialorder %v22227_v45, 0.7853982  ;;  %22230 = vst [vmem:[#allocation124_spill] sm:$0xff] %v18883_v37  ;;  %v18895_v47 = vsel %vm18837_vm1, %v22191_v58, %v18603_v30  ;;  %v22233_v36 = vshll.u32 %v18256_v9, %v18416_v44  ;;  %v12956_v44 = vld [vmem:[%s21238_s4 + $0x74] sm:$0xf] }
 0x464   :  { %22231 = vst [vmem:[#allocation143_spill] sm:$0xff] %v18889_v6  ;;  %v18912_v30 = vmul.f32 %v4563_v18, %v4561_v16  ;;  %v4122_v32 = vxor.u32 2147483648, %v4121_v25  ;;  %v5066_v51 = vmul.f32 %v5065_v34, %v5063_v7  ;;  %v5172_v9 = vadd.s32 536870912, %v5171_v40  ;;  %v12810_v16 = vld [vmem:[%s21238_s4 + $0xf8] sm:$0xf0] }
 0x465   :  { %22232 = vst [vmem:[#allocation144_spill] sm:$0xff] %v18895_v47  ;;  %v18901_v23 = vor.u32 %v22234_v46, %v22233_v36  ;;  %v22237_v26 = vand.u32 2147483647, %v22236_v29  ;;  %v22238_v41 = vmov 0  ;;  %v22241_v62 = vand.u32 2147483647, %v22240_v38 }
 0x466   :  { %v4250_v42 = vxor.u32 2147483648, %v4249_v24  ;;  %vm4947_vm0 = vcmp.lt.s32.totalorder %v22240_v38, 0  ;;  %v5067_v59 = vxor.u32 2147483648, %v5066_v51  ;;  %v18935_v33 = vshrl.u32 %v5172_v9, 30  ;;  %v12800_v18 = vld [vmem:[%s21238_s4 + $0xe0] sm:$0xf] }
 0x467   :  { %22235 = vst [vmem:[#allocation138_spill] sm:$0xff] %v18901_v23  ;;  %vm18923_vm9 = vcmp.le.f32.partialorder %v22237_v26, 0.7853982  ;;  %vm18930_vm1 = vcmp.le.f32.partialorder %v22241_v62, 0.7853982  ;;  %vm22244_vm15 = vcmp.lt.s32.totalorder %v22223_v27, 0  ;;  %v12745_v61 = vor.u32 %v12957_v19, %v12744_v8 }
 0x468   :  { %v22239_v41 = vsel %vm18923_vm9, 4294967295, %v22238_v41  ;;  %v4438_v11 = vsel %vm22244_vm15, %v4437_v21, %v18626_v43  ;;  %vm21669_vm14 = vcmp.lt.s32.totalorder %v22245_v31, 0  ;;  %v12809_v20 = vor.u32 %v12973_v39, %v12808_v1  ;;  %v12971_v50 = vld [vmem:[%s21238_s4 + $0xe4] sm:$0xf0]  ;;  %v12954_v55 = vld [vmem:[%s21238_s4 + $0x64] sm:$0xf] }
 0x469   :  { %v12749_v0 = vor.u32 %v12956_v44, %v12746_v56  ;;  %v4565_v52 = vxor.u32 2147483648, %v18912_v30  ;;  %vm22246_vm15 = vcmp.lt.s32.totalorder %v18268_v28, 0  ;;  %v5068_v3 = vsel %vm4947_vm0, %v5067_v59, %v5066_v51  ;;  %10814 = vmatpush.bf16.msra.mxu0 %v12745_v61  ;;  %v12738_v8 = vld [vmem:[%s21238_s4 + $0x68] sm:$0xf0]  ;;  %v18991_v36 = vld [vmem:[%s21238_s4 + $0xe4] sm:$0xf] }
 0x46a   :  { %v4123_v43 = vsel %vm22246_vm15, %v4122_v32, %v4121_v25  ;;  %v5174_v21 = vshll.u32 %v18935_v33, 30  ;;  %v18970_v25 = vmul.f32 %v18883_v37, %v18883_v37  ;;  %v18974_v45 = vmul.f32 %v18889_v6, %v18889_v6  ;;  %v18996_v46 = vld [vmem:[%s21238_s4 + $0xe8] sm:$0xf0]  ;;  %10863 = vmatpush.bf16.msra.mxu1 %v12809_v20  ;;  %v19010_v51 = vld [vmem:[%s21238_s4 + $0x50] sm:$0xf] }
 0x46b   :  { %v18978_v7 = vmul.f32 %v18895_v47, %v18895_v47  ;;  %v18983_v34 = vsel %vm18930_vm1, %v22240_v38, %v5068_v3  ;;  %vm22250_vm15 = vcmp.lt.s32.totalorder %v22236_v29, 0  ;;  %10912 = vmatpush.bf16.msra.mxu2 %v12749_v0  ;;  %v19015_v9 = vld [vmem:[%s21238_s4 + $0x54] sm:$0xf0]  ;;  %v22252_v44 = vld [vmem:[#allocation129_spill] sm:$0xff]  ;;  %v19029_v26 = vsel %vm18866_vm3, %v22223_v27, %v4438_v11  ;;  %v19044_v61 = vld [vmem:[%s21238_s4 + $0x54] sm:$0xf] }
 0x46c   :  { %22247 = vst [vmem:[#allocation133_spill] sm:$0xff] %v18970_v25  ;;  %v4251_v1 = vsel %vm22250_vm15, %v4250_v42, %v4249_v24  ;;  %v19001_v39 = vsub.s32 %v5171_v40, %v5174_v21  ;;  %v19005_v32 = vmul.f32 %v18983_v34, %v18983_v34  ;;  %v19020_v24 = vld [vmem:[%s21238_s4 + $0xd0] sm:$0xf]  ;;  %v22251_v40 = vld [vmem:[#allocation128_spill] sm:$0xff]  ;;  %v19034_v62 = vsel %vm18872_vm12, %v18268_v28, %v4123_v43  ;;  %v19039_v59 = vld [vmem:[%s21238_s4 + $0xd4] sm:$0xf0] }
 0x46d   :  { %22248 = vst [vmem:[#allocation137_spill] sm:$0xff] %v18974_v45  ;;  %v19024_v56 = vadd.s32 %v22252_v44, %v22251_v40  ;;  %v12813_v42 = vor.u32 %v12972_v2, %v12810_v16  ;;  %v19049_v11 = vld [vmem:[%s21238_s4 + $0x58] sm:$0xf0]  ;;  %v12737_v0 = vor.u32 %v12955_v57, %v12736_v48  ;;  %v19057_v16 = vld [vmem:[%s21238_s4 + $0xd4] sm:$0xf]  ;;  %v19067_v3 = vsel %vm18923_vm9, %v22236_v29, %v4251_v1 }
 0x46e   :  { %22249 = vst [vmem:[#allocation126_spill] sm:$0xff] %v18978_v7  ;;  %vm5176_vm15 = vcmp.lt.s32.totalorder %v19001_v39, 0  ;;  %v5177_v20 = vsub.s32 0, %v19001_v39  ;;  %v5216_v2 = vmul.f32 -0.00019511016, %v19005_v32  ;;  %v12801_v21 = vor.u32 %v12971_v50, %v12800_v18 }
 0x46f   :  { %22253 = vst [vmem:[#allocation128_spill] sm:$0xff] %v19029_v26  ;;  %v19062_v43 = vld [vmem:[%s21238_s4 + $0xd8] sm:$0xf0]  ;;  %10961 = vmatpush.bf16.msra.mxu3 %v12813_v42  ;;  %v12741_v40 = vor.u32 %v12954_v55, %v12738_v8  ;;  %v12805_v48 = vor.u32 %v18991_v36, %v18996_v46  ;;  %v19074_v57 = vld [vmem:[%s21238_s4 + $0x40] sm:$0xf]  ;;  %v5069_v50 = vsub.s32 4, %v18781_v15  ;;  %10815 = vmatpush.bf16.msra.mxu0 %v12737_v0 }
 0x470   :  { %22254 = vst [vmem:[#allocation129_spill] sm:$0xff] %v19034_v62  ;;  %v19079_v44 = vld [vmem:[%s21238_s4 + $0x44] sm:$0xf0]  ;;  %v19084_v1 = vld [vmem:[%s21238_s4 + $0xc0] sm:$0xf]  ;;  %v5178_v55 = vsel %vm5176_vm15, %v5177_v20, %v19001_v39  ;;  %v12729_v36 = vor.u32 %v19015_v9, %v19010_v51  ;;  %10864 = vmatpush.bf16.msra.mxu1 %v12801_v21  ;;  %v12793_v19 = vor.u32 %v19039_v59, %v19020_v24 }
 0x471   :  { %22255 = vst [vmem:[#allocation145_spill] sm:$0xff] %v19067_v3  ;;  %v19089_v18 = vld [vmem:[%s21238_s4 + $0xc4] sm:$0xf0]  ;;  %v19101_v46 = vld [vmem:[%s21238_s4 + $0x44] sm:$0xf]  ;;  %v5179_v51 = vclz %v5178_v55  ;;  %10913 = vmatpush.bf16.msra.mxu2 %v12741_v40  ;;  %v12733_v12 = vor.u32 %v19044_v61, %v19049_v11  ;;  %v19159_v40 = vsel %vm21669_vm14, %v4565_v52, %v18912_v30  ;;  %v19163_v55 = vmul.f32 %v19029_v26, %v19029_v26 }
 0x472   :  { %v19106_v42 = vld [vmem:[%s21238_s4 + $0x48] sm:$0xf0]  ;;  %v19111_v20 = vld [vmem:[%s21238_s4 + $0xc4] sm:$0xf]  ;;  %v5217_v9 = vadd.f32 0.008332121, %v5216_v2  ;;  %v19167_v47 = vmul.f32 %v19034_v62, %v19034_v62  ;;  %v19191_v7 = vmul.f32 %v19067_v3, %v19067_v3  ;;  %v12797_v60 = vor.u32 %v19057_v16, %v19062_v43 }
 0x473   :  { %v19116_v0 = vld [vmem:[%s21238_s4 + $0xc8] sm:$0xf0]  ;;  %v19130_v8 = vld [vmem:[%s21238_s4 + $0x34] sm:$0xf0]  ;;  %v19135_v2 = vld [vmem:[%s21238_s4 + $0xb0] sm:$0xf]  ;;  %10962 = vmatpush.bf16.msra.mxu3 %v12805_v48  ;;  %v19214_v16 = vsel %vm4947_vm0, %v5069_v50, %v18781_v15  ;;  %v5167_v43 = vadd.s32 %v18847_v13, %v18844_v10  ;;  %10816 = vmatpush.bf16.msra.mxu0 %v12729_v36  ;;  %v12721_v37 = vor.u32 %v19079_v44, %v19074_v57 }
 0x474   :  { %v19140_v24 = vld [vmem:[%s21238_s4 + $0xb4] sm:$0xf0]  ;;  %v19145_v59 = vld [vmem:[%s21238_s4 + $0x34] sm:$0xf]  ;;  %v19150_v61 = vld [vmem:[%s21238_s4 + $0x38] sm:$0xf0]  ;;  %v12785_v23 = vor.u32 %v19089_v18, %v19084_v1  ;;  %v19238_v13 = vmul.f32 %v5217_v9, %v19005_v32  ;;  %10865 = vmatpush.bf16.msra.mxu1 %v12793_v19  ;;  %v12725_v57 = vor.u32 %v19101_v46, %v19106_v42  ;;  %v12789_v44 = vor.u32 %v19111_v20, %v19116_v0 }
 0x475   :  { %v19172_v6 = vld [vmem:[%s21238_s4 + $0xb4] sm:$0xf]  ;;  %v19177_v21 = vld [vmem:[%s21238_s4 + $0xb8] sm:$0xf0]  ;;  %v19182_v30 = vld [vmem:[%s21238_s4 + $0x20] sm:$0xf]  ;;  %10914 = vmatpush.bf16.msra.mxu2 %v12733_v12  ;;  %v12713_v12 = vor.u32 %v19130_v8, %v19125_v4  ;;  %v12777_v19 = vor.u32 %v19140_v24, %v19135_v2  ;;  %v12717_v36 = vor.u32 %v19145_v59, %v19150_v61 }
 0x476   :  { %v19187_v52 = vld [vmem:[%s21238_s4 + $0x24] sm:$0xf0]  ;;  %v12588_v49 = vadd.s32 4294967294, %v5179_v51  ;;  %v19198_v45 = vld [vmem:[%s21238_s4 + $0xa0] sm:$0xf]  ;;  %v22257_v51 = vld [vmem:[#allocation59_spill] sm:$0xff]  ;;  %v12781_v20 = vor.u32 %v19172_v6, %v19177_v21 }
 0x477   :  { %v19203_v58 = vld [vmem:[%s21238_s4 + $0xa4] sm:$0xf0]  ;;  %v19208_v5 = vld [vmem:[%s21238_s4 + $0x24] sm:$0xf]  ;;  %v344_v48 = vsub.s32 4, %v22257_v51  ;;  %10963 = vmatpush.bf16.msra.mxu3 %v12797_v60  ;;  %v12705_v0 = vor.u32 %v19187_v52, %v19182_v30  ;;  %10817 = vmatpush.bf16.msra.mxu0 %v12721_v37  ;;  %v22262_v30 = vld [vmem:[#allocation94_spill] sm:$0xff] }
 0x478   :  { %v19230_v15 = vld [vmem:[%s21238_s4 + $0xa4] sm:$0xf]  ;;  %v19235_v10 = vld [vmem:[%s21238_s4 + $0xa8] sm:$0xf0]  ;;  %vm12589_vm0 = vcmp.lt.s32.totalorder %v12588_v49, 0  ;;  %v12769_v60 = vor.u32 %v19203_v58, %v19198_v45  ;;  %v12709_v6 = vor.u32 %v19208_v5, %v19225_v63  ;;  %10866 = vmatpush.bf16.msra.mxu1 %v12785_v23  ;;  %v22258_v58 = vld [vmem:[#allocation39_spill] sm:$0xff] }
 0x479   :  { %v19247_v1 = vld [vmem:[%s21238_s4 + $0x10] sm:$0xf]  ;;  %v19252_v18 = vld [vmem:[%s21238_s4 + $0x14] sm:$0xf0]  ;;  %v5182_v50 = vsel %vm12589_vm0, 0, %v12588_v49  ;;  %10915 = vmatpush.bf16.msra.mxu2 %v12725_v57  ;;  %vm22259_vm15 = vcmp.lt.s32.totalorder %v22258_v58, 0 }
 0x47a   :  { %v5183_v46 = vsub.s32 32, %v5182_v50  ;;  %v5187_v42 = vsub.s32 4294967266, %v5182_v50  ;;  %v19267_v49 = vld [vmem:[%s21238_s4 + $0x90] sm:$0xf]  ;;  %v19272_v4 = vld [vmem:[%s21238_s4 + $0x94] sm:$0xf0]  ;;  %v5184_v2 = vshll.u32 %v19001_v39, %v5182_v50  ;;  %v345_v63 = vsel %vm22259_vm15, %v344_v48, %v22257_v51 }
 0x47b   :  { %v19286_v37 = vld [vmem:[%s21238_s4 + $0x14] sm:$0xf]  ;;  %v19291_v5 = vld [vmem:[%s21238_s4 + $0x18] sm:$0xf0]  ;;  %v484_v52 = vmul.f32 -0.001358992, %v22262_v30  ;;  %10964 = vmatpush.bf16.msra.mxu3 %v12789_v44  ;;  %10818 = vmatpush.bf16.msra.mxu0 %v12713_v12 }
 0x47c   :  { %v5185_v24 = vshrl.u32 %v5167_v43, %v5183_v46  ;;  %v5188_v59 = vadd.s32 127, %v5187_v42  ;;  %v22260_v39 = vld [vmem:[#allocation63_spill] sm:$0xff]  ;;  %v22261_v61 = vld [vmem:[#allocation92_spill] sm:$0xff]  ;;  %v499_v46 = vmul.f32 -0.00019511016, %v22262_v30  ;;  %v22263_v42 = vld [vmem:[#allocation125_spill] sm:$0xff]  ;;  %10867 = vmatpush.bf16.msra.mxu1 %v12777_v19  ;;  %v12701_v11 = vor.u32 %v19286_v37, %v19291_v5 }
 0x47d   :  { %v472_v23 = vsub.s32 4, %v22260_v39  ;;  %v477_v21 = vmul.f32 -0.001358992, %v22261_v61  ;;  %v19304_v50 = vld [vmem:[%s21238_s4 + $0x94] sm:$0xf]  ;;  %vm21671_vm0 = vcmp.lt.s32.totalorder %v22263_v42, 0  ;;  %10916 = vmatpush.bf16.msra.mxu2 %v12717_v36 }
 0x47e   :  { %v5186_v43 = vor.u32 %v5185_v24, %v5184_v2  ;;  %v5189_v57 = vshll.u32 %v5188_v59, 23  ;;  %v19309_v51 = vld [vmem:[%s21238_s4 + $0x98] sm:$0xf0]  ;;  %v491_v48 = vmul.f32 -0.00019511016, %v22261_v61  ;;  %v19326_v59 = vsel %vm16369_vm11, 0, %v345_v63 }
 0x47f   :  { %v19317_v44 = vld [vmem:[%s21238_s4] sm:$0xf]  ;;  %v19322_v2 = vld [vmem:[%s21238_s4 + $0x4] sm:$0xf0]  ;;  %v478_v8 = vadd.f32 0.041655596, %v477_v21  ;;  %10965 = vmatpush.bf16.msra.mxu3 %v12781_v20  ;;  %10819 = vmatpush.bf16.msra.mxu0 %v12705_v0 }
 0x480   :  { %v22265_v45 = vld [vmem:[#allocation53_spill] sm:$0xff]  ;;  %v485_v12 = vadd.f32 0.041655596, %v484_v52  ;;  %v5190_v17 = vor.u32 4788187, %v5189_v57  ;;  %10868 = vmatpush.bf16.msra.mxu1 %v12769_v60  ;;  %v22272_v60 = vor.u32 %v19230_v15, %v19235_v10  ;;  %v22274_v15 = vor.u32 %v19272_v4, %v19267_v49  ;;  %v22277_v49 = vld [vmem:[#allocation88_spill] sm:$0xff] }
 0x481   :  { %vm22266_vm15 = vcmp.lt.s32.totalorder %v22265_v45, 0  ;;  %v492_v26 = vadd.f32 0.008332121, %v491_v48  ;;  %v22268_v63 = vand.u32 2147483647, %v22263_v42  ;;  %v479_v22 = vmul.f32 %v478_v8, %v22261_v61  ;;  %10917 = vmatpush.bf16.msra.mxu2 %v12709_v6 }
 0x482   :  { %v473_v9 = vsel %vm22266_vm15, %v472_v23, %v22260_v39  ;;  %v5193_v39 = vcvt.s32.f32 %v5186_v43  ;;  %v12752_v19 = vld [vmem:[%s21238_s4 + $0x80] sm:$0xf]  ;;  %v12959_v36 = vld [vmem:[%s21238_s4 + $0x84] sm:$0xf0]  ;;  %v500_v37 = vadd.f32 0.008332121, %v499_v46  ;;  %v12765_v8 = vor.u32 %v19304_v50, %v19309_v51 }
 0x483   :  { %v19335_v25 = vsel %vm16383_vm10, 0, %v473_v9  ;;  %vm19339_vm11 = vcmp.le.f32.partialorder %v22268_v63, 0.7853982  ;;  %v486_v9 = vmul.f32 %v485_v12, %v22262_v30  ;;  %v5191_v5 = vand.u32 2147483647, %v5190_v17  ;;  %v22271_v50 = vld [vmem:[#allocation70_spill] sm:$0xff]  ;;  %10966 = vmatpush.bf16.msra.mxu3 %v22272_v60 }
 0x484   :  { %v12942_v23 = vld [vmem:[%s21238_s4 + $0x4] sm:$0xf]  ;;  %v12690_v21 = vld [vmem:[%s21238_s4 + $0x8] sm:$0xf0]  ;;  %v493_v52 = vmul.f32 %v492_v26, %v22261_v61  ;;  %v508_v43 = vadd.s32 3, %v19326_v59  ;;  %v519_v57 = vadd.s32 3, %v19335_v25  ;;  %v501_v46 = vmul.f32 %v500_v37, %v22262_v30  ;;  %10869 = vmatpush.bf16.msra.mxu1 %v22274_v15 }
 0x485   :  { %v12958_v17 = vld [vmem:[%s21238_s4 + $0x84] sm:$0xf]  ;;  %v480_v20 = vadd.f32 -0.4999988, %v479_v22  ;;  %v487_v48 = vadd.f32 -0.4999988, %v486_v9  ;;  %v5194_v12 = vmul.f32 %v5193_v39, %v5191_v5  ;;  %v12689_v26 = vor.u32 %v19322_v2, %v19317_v44  ;;  %10918 = vmatpush.bf16.msra.mxu2 %v12701_v11 }
 0x486   :  { %v12754_v0 = vld [vmem:[%s21238_s4 + $0x88] sm:$0xf0]  ;;  %v494_v63 = vadd.f32 -0.16666654, %v493_v52  ;;  %v659_v51 = vsub.s32 4, %v22271_v50  ;;  %v509_v62 = vand.u32 3, %v508_v43  ;;  %v12753_v6 = vor.u32 %v12959_v36, %v12752_v19 }
 0x487   :  { %v481_v3 = vmul.f32 %v480_v20, %v22261_v61  ;;  %v488_v22 = vmul.f32 %v487_v48, %v22262_v30  ;;  %v502_v9 = vadd.f32 -0.16666654, %v501_v46  ;;  %v5195_v37 = vxor.u32 2147483648, %v5194_v12  ;;  %10967 = vmatpush.bf16.msra.mxu3 %v12765_v8  ;;  %v22281_v46 = vld [vmem:[#allocation117_spill] sm:$0xff] }
 0x488   :  { %v495_v44 = vmul.f32 %v494_v63, %v22261_v61  ;;  %v520_v2 = vand.u32 3, %v519_v57  ;;  %v22273_v39 = vor.u32 %v19252_v18, %v19247_v1  ;;  %v12693_v5 = vor.u32 %v12942_v23, %v12690_v21  ;;  %v22275_v1 = vld [vmem:[#allocation68_spill] sm:$0xff]  ;;  %v22279_v23 = vld [vmem:[#allocation73_spill] sm:$0xff]  ;;  %10870 = vmatpush.bf16.msra.mxu1 %v12753_v6 }
 0x489   :  { %v12757_v52 = vor.u32 %v12958_v17, %v12754_v0  ;;  %v19381_v20 = vadd.f32 1.0, %v481_v3  ;;  %v503_v48 = vmul.f32 %v502_v9, %v22262_v30  ;;  %v5196_v43 = vsel %vm21671_vm0, %v5195_v37, %v5194_v12  ;;  %v22278_v30 = vld [vmem:[#allocation89_spill] sm:$0xff] }
 0x48a   :  { %10820 = vmatpush.bf16.msra.mxu0 %v22273_v39  ;;  %v19389_v10 = vadd.f32 1.0, %v488_v22  ;;  %v496_v61 = vadd.f32 1.0, %v495_v44  ;;  %vm22276_vm10 = vcmp.lt.s32.totalorder %v22275_v1, 0  ;;  %vm511_vm14 = vcmp.eq.s32.totalorder %v509_v62, 0  ;;  %v22280_v57 = vld [vmem:[#allocation109_spill] sm:$0xff]  ;;  %10919 = vmatpush.bf16.msra.mxu2 %v12693_v5 }
 0x48b   :  { %v660_v18 = vsel %vm22276_vm10, %v659_v51, %v22271_v50  ;;  %v504_v19 = vadd.f32 1.0, %v503_v48  ;;  %vm514_vm7 = vcmp.eq.s32.totalorder %v509_v62, 2  ;;  %v19397_v3 = vsel %vm19339_vm11, %v22263_v42, %v5196_v43  ;;  %v22282_v50 = vld [vmem:[#allocation69_spill] sm:$0xff]  ;;  %10968 = vmatpush.bf16.msra.mxu3 %v12757_v52 }
 0x48c   :  { %v19400_v4 = vmul.f32 %v496_v61, %v22277_v49  ;;  %v515_v11 = vxor.u32 2147483648, %v19381_v20  ;;  %v787_v21 = vsub.s32 4, %v22279_v23  ;;  %v792_v17 = vmul.f32 -0.001358992, %v22280_v57 }
 0x48d   :  { %v19404_v36 = vmul.f32 %v504_v19, %v22278_v30  ;;  %v799_v12 = vmul.f32 -0.001358992, %v22281_v46  ;;  %vm522_vm10 = vcmp.eq.s32.totalorder %v520_v2, 0  ;;  %v21676_v0 = vxor.u32 2147483648, %v19389_v10 }
 0x48e   :  { %10821 = vmatpush.bf16.msra.mxu0 %v12689_v26  ;;  %v512_v8 = vxor.u32 2147483648, %v19400_v4  ;;  %v806_v63 = vmul.f32 -0.00019511016, %v22280_v57  ;;  %vm525_vm0 = vcmp.eq.s32.totalorder %v520_v2, 2  ;;  %vm22283_vm15 = vcmp.lt.s32.totalorder %v22282_v50, 0 }
 0x48f   :  { %v21677_v26 = vxor.u32 2147483648, %v19404_v36  ;;  %v788_v51 = vsel %vm22283_vm15, %v787_v21, %v22279_v23  ;;  %v793_v22 = vadd.f32 0.041655596, %v792_v17  ;;  %v19418_v9 = vmul.f32 %v19397_v3, %v19397_v3 }
 0x490   :  { %v513_v37 = vsel %vm511_vm14, %v19381_v20, %v512_v8  ;;  %v662_v6 = vsel %vm17183_vm5, 0, %v660_v18  ;;  %v800_v44 = vadd.f32 0.041655596, %v799_v12  ;;  %v516_v39 = vsel %vm514_vm7, %v515_v11, %v19400_v4 }
 0x491   :  { %v524_v5 = vsel %vm522_vm10, %v19389_v10, %v21677_v26  ;;  %v794_v52 = vmul.f32 %v793_v22, %v22280_v57  ;;  %v807_v48 = vadd.f32 0.008332121, %v806_v63  ;;  %vm22285_vm15 = vcmp.lt.s32.totalorder %v509_v62, 2 }
 0x492   :  { %v517_v43 = vsel %vm22285_vm15, %v513_v37, %v516_v39  ;;  %v527_v15 = vsel %vm525_vm0, %v21676_v0, %v19404_v36  ;;  %v790_v18 = vsel %vm17738_vm13, 0, %v788_v51  ;;  %v801_v19 = vmul.f32 %v800_v44, %v22281_v46 }
 0x493   :  { %vm22287_vm5 = vcmp.lt.s32.totalorder %v520_v2, 2  ;;  %v795_v30 = vadd.f32 -0.4999988, %v794_v52  ;;  %v808_v23 = vmul.f32 %v807_v48, %v22280_v57  ;;  %v814_v21 = vmul.f32 -0.00019511016, %v22281_v46 }
 0x494   :  { %v528_v49 = vsel %vm22287_vm5, %v524_v5, %v527_v15  ;;  %v5224_v17 = vmul.f32 -0.00019511016, %v19418_v9  ;;  %vm21673_vm7 = vweird.f32 %v22258_v58  ;;  %vm21672_vm14 = vweird.f32 %v22265_v45 }
 0x495   :  { %v802_v62 = vadd.f32 -0.4999988, %v801_v19  ;;  %v19449_v12 = vsel %vm21673_vm7, nan, %v517_v43  ;;  %v796_v63 = vmul.f32 %v795_v30, %v22280_v57  ;;  %v809_v2 = vadd.f32 -0.16666654, %v808_v23 }
 0x496   :  { %v815_v51 = vadd.f32 0.008332121, %v814_v21  ;;  %v19454_v22 = vsel %vm21672_vm14, nan, %v528_v49  ;;  %v823_v60 = vadd.s32 3, %v662_v6  ;;  %v834_v44 = vadd.s32 3, %v790_v18 }
 0x497   :  { %v803_v37 = vmul.f32 %v802_v62, %v22281_v46  ;;  %v19458_v39 = vadd.f32 -0.16666654, %v19238_v13  ;;  %v797_v5 = vadd.f32 1.0, %v796_v63  ;;  %v810_v52 = vmul.f32 %v809_v2, %v22280_v57  ;;  %v22288_v57 = vld [vmem:[#allocation105_spill] sm:$0xff]  ;;  %v12988_v63 = vld [vmem:[#allocation6 + $0x74] sm:$0xf] }
 0x498   :  { %v816_v48 = vmul.f32 %v815_v51, %v22281_v46  ;;  %v19462_v43 = vadd.f32 0.008332121, %v5224_v17  ;;  %v824_v61 = vand.u32 3, %v823_v60  ;;  %v835_v19 = vand.u32 3, %v834_v44 }
 0x499   :  { %v19464_v15 = vadd.f32 1.0, %v803_v37  ;;  %v811_v30 = vadd.f32 1.0, %v810_v52  ;;  %v5548_v21 = vand.u32 3, %v19326_v59  ;;  %v830_v13 = vxor.u32 2147483648, %v797_v5  ;;  %v12874_v59 = vld [vmem:[#allocation6 + $0x78] sm:$0xf0] }
 0x49a   :  { %v817_v23 = vadd.f32 -0.16666654, %v816_v48  ;;  %vm826_vm10 = vcmp.eq.s32.totalorder %v824_v61, 0  ;;  %vm829_vm15 = vcmp.eq.s32.totalorder %v824_v61, 2  ;;  %vm837_vm7 = vcmp.eq.s32.totalorder %v835_v19, 0  ;;  %v22289_v48 = vld [vmem:[#allocation114_spill] sm:$0xff] }
 0x49b   :  { %v812_v62 = vmul.f32 %v811_v30, %v22288_v57  ;;  %vm840_vm3 = vcmp.eq.s32.totalorder %v835_v19, 2  ;;  %v841_v2 = vxor.u32 2147483648, %v19464_v15  ;;  %vm5550_vm9 = vcmp.eq.s32.totalorder %v5548_v21, 0 }
 0x49c   :  { %v818_v17 = vmul.f32 %v817_v23, %v22281_v46  ;;  %vm5549_vm13 = vcmp.lt.s32.totalorder %v5548_v21, 2  ;;  %v5552_v60 = vsel %vm5550_vm9, %v19381_v20, %v512_v8  ;;  %vm5553_vm0 = vcmp.eq.s32.totalorder %v5548_v21, 2 }
 0x49d   :  { %v827_v37 = vxor.u32 2147483648, %v812_v62  ;;  %v831_v44 = vsel %vm829_vm15, %v830_v13, %v812_v62  ;;  %v5558_v46 = vand.u32 3, %v19335_v25  ;;  %v5861_v52 = vand.u32 3, %v662_v6 }
 0x49e   :  { %v819_v51 = vadd.f32 1.0, %v818_v17  ;;  %v5555_v57 = vsel %vm5553_vm0, %v515_v11, %v19400_v4  ;;  %v12877_v17 = vor.u32 %v12988_v63, %v12874_v59  ;;  %vm22290_vm14 = vcmp.lt.s32.totalorder %v824_v61, 2  ;;  %v13004_v63 = vld [vmem:[#allocation6 + $0xf4] sm:$0xf]  ;;  %v12938_v59 = vld [vmem:[#allocation6 + $0xf8] sm:$0xf0] }
 0x49f   :  { %v828_v23 = vsel %vm826_vm10, %v797_v5, %v827_v37  ;;  %v5556_v0 = vsel %vm5549_vm13, %v5552_v60, %v5555_v57  ;;  %vm5559_vm5 = vcmp.lt.s32.totalorder %v5558_v46, 2  ;;  %v5871_v26 = vand.u32 3, %v790_v18  ;;  %v12986_v60 = vld [vmem:[#allocation6 + $0x64] sm:$0xf]  ;;  %v12858_v57 = vld [vmem:[#allocation6 + $0x58] sm:$0xf0] }
 0x4a0   :  { %v820_v30 = vmul.f32 %v819_v51, %v22289_v48  ;;  %v832_v49 = vsel %vm22290_vm14, %v828_v23, %v831_v44  ;;  %vm22291_vm9 = vweird.f32 %v22275_v1  ;;  %vm5560_vm15 = vcmp.eq.s32.totalorder %v5558_v46, 0  ;;  %11858 = vmatpush.bf16.msrb.mxu2 %v12877_v17  ;;  %v12866_v44 = vld [vmem:[#allocation6 + $0x68] sm:$0xf0] }
 0x4a1   :  { %v833_v8 = vsel %vm22291_vm9, nan, %v832_v49  ;;  %vm22292_vm10 = vweird.f32 %v22258_v58  ;;  %v22293_v20 = vxor.u32 2147483648, %v19404_v36  ;;  %vm5563_vm0 = vcmp.eq.s32.totalorder %v5558_v46, 2  ;;  %v12930_v46 = vld [vmem:[#allocation6 + $0xe8] sm:$0xf0] }
 0x4a2   :  { %v838_v21 = vxor.u32 2147483648, %v820_v30  ;;  %v842_v25 = vsel %vm840_vm3, %v841_v2, %v820_v30  ;;  %v5557_v6 = vsel %vm22292_vm10, nan, %v5556_v0  ;;  %vm5863_vm14 = vcmp.eq.s32.totalorder %v5861_v52, 0 }
 0x4a3   :  { %v5562_v4 = vsel %vm5560_vm15, %v19389_v10, %v22293_v20  ;;  %v22294_v18 = vxor.u32 2147483648, %v19389_v10  ;;  %v5865_v49 = vsel %vm5863_vm14, %v797_v5, %v827_v37  ;;  %vm5866_vm3 = vcmp.eq.s32.totalorder %v5861_v52, 2 }
 0x4a4   :  { %v839_v11 = vsel %vm837_vm7, %v19464_v15, %v838_v21  ;;  %vm22295_vm13 = vcmp.lt.s32.totalorder %v835_v19, 2  ;;  %vm5862_vm9 = vcmp.lt.s32.totalorder %v5861_v52, 2  ;;  %v5868_v51 = vsel %vm5866_vm3, %v830_v13, %v812_v62  ;;  %v12984_v52 = vld [vmem:[#allocation6 + $0x54] sm:$0xf] }
 0x4a5   :  { %v5565_v61 = vsel %vm5563_vm0, %v22294_v18, %v19404_v36  ;;  %v843_v58 = vsel %vm22295_vm13, %v839_v11, %v842_v25  ;;  %vm22296_vm15 = vweird.f32 %v22282_v50  ;;  %vm22297_vm7 = vweird.f32 %v22265_v45  ;;  %v13002_v36 = vld [vmem:[#allocation6 + $0xe4] sm:$0xf]  ;;  %v22302_v18 = vld [vmem:[#allocation48_spill] sm:$0xff] }
 0x4a6   :  { %v5566_v0 = vsel %vm5559_vm5, %v5562_v4, %v5565_v61  ;;  %v844_v48 = vsel %vm22296_vm15, nan, %v843_v58  ;;  %v5869_v10 = vsel %vm5862_vm9, %v5865_v49, %v5868_v51  ;;  %vm5873_vm10 = vcmp.eq.s32.totalorder %v5871_v26, 0  ;;  %vm22303_vm13 = vmmov %vm22296_vm15  ;;  %v22307_v51 = vld [vmem:[#allocation67_spill] sm:$0xff]  ;;  %v12998_v50 = vld [vmem:[#allocation6 + $0xc4] sm:$0xf] }
 0x4a7   :  { %v5567_v23 = vsel %vm22297_vm7, nan, %v5566_v0  ;;  %v22298_v5 = vsub.s32 4, %v18935_v33  ;;  %vm22299_vm0 = vcmp.lt.s32.totalorder %v22263_v42, 0  ;;  %v845_v37 = vpack.i.bf16 %v844_v48, %v833_v8 }
 0x4a8   :  { %v5568_v13 = vpack.i.bf16 %v5567_v23, %v5557_v6  ;;  %v5875_v62 = vsel %vm5873_vm10, %v19464_v15, %v838_v21  ;;  %v22300_v45 = vpack.i.bf16 %v19454_v22, %v19449_v12  ;;  %vm5876_vm5 = vcmp.eq.s32.totalorder %v5871_v26, 2  ;;  %v13000_v6 = vld [vmem:[#allocation6 + $0xd4] sm:$0xf] }
 0x4a9   :  { %v19508_v19 = vsel %vm22299_vm0, %v22298_v5, %v18935_v33  ;;  %v12941_v25 = vor.u32 %v13004_v63, %v12938_v59  ;;  %v12869_v20 = vor.u32 %v12986_v60, %v12866_v44  ;;  %v10281_v4 = vunpack.c.l.b16 %v845_v37  ;;  %v12922_v63 = vld [vmem:[#allocation6 + $0xd8] sm:$0xf0]  ;;  %v12982_v59 = vld [vmem:[#allocation6 + $0x44] sm:$0xf]  ;;  %v22308_v44 = vld [vmem:[#allocation91_spill] sm:$0xff] }
 0x4aa   :  { %v10280_v17 = vunpack.c.l.b16 %v22300_v45  ;;  %vm22301_vm14 = vweird.f32 %v22275_v1  ;;  %vm5872_vm3 = vcmp.lt.s32.totalorder %v5871_v26, 2  ;;  %v5878_v33 = vsel %vm5876_vm5, %v841_v2, %v820_v30  ;;  %v22304_v1 = vld [vmem:[#allocation64_spill] sm:$0xff]  ;;  %v12850_v2 = vld [vmem:[#allocation6 + $0x48] sm:$0xf0] }
 0x4ab   :  { %v5870_v11 = vsel %vm22301_vm14, nan, %v5869_v10  ;;  %v5879_v8 = vsel %vm5872_vm3, %v5875_v62, %v5878_v33  ;;  %11907 = vmatpush.bf16.msrb.mxu3 %v12941_v25  ;;  %11859 = vmatpush.bf16.msrb.mxu2 %v12869_v20  ;;  %v12933_v15 = vor.u32 %v13002_v36, %v12930_v46  ;;  %v12861_v21 = vor.u32 %v12984_v52, %v12858_v57  ;;  %v22305_v30 = vld [vmem:[#allocation30_spill] sm:$0xff] }
 0x4ac   :  { %v974_v61 = vsub.s32 4, %v22302_v18  ;;  %v19517_v49 = vpack.c.b16 %v10281_v4, %v10280_v17  ;;  %v5880_v12 = vsel %vm22303_vm13, nan, %v5879_v8  ;;  %v10328_v22 = vunpack.c.l.b16 %v5568_v13  ;;  %v22310_v36 = vld [vmem:[#allocation34_spill] sm:$0xff] }
 0x4ad   :  { %v1102_v58 = vsub.s32 4, %v22304_v1  ;;  %v5881_v26 = vpack.i.bf16 %v5880_v12, %v5870_v11  ;;  %vm22306_vm9 = vcmp.lt.s32.totalorder %v22305_v30, 0  ;;  %v1107_v60 = vmul.f32 -0.001358992, %v22307_v51  ;;  %v12914_v20 = vld [vmem:[#allocation6 + $0xc8] sm:$0xf0] }
 0x4ae   :  { %v975_v0 = vsel %vm22306_vm9, %v974_v61, %v22302_v18  ;;  %v1114_v48 = vmul.f32 -0.001358992, %v22308_v44  ;;  %10822 = vmatmul.bf16.vlgmr.msra.gmra.mxu0 %v19517_v49  ;;  %10920 = vmatmul.bf16.vlgmr.msra.gmra.mxu2 %v19517_v49  ;;  %vm22311_vm15 = vcmp.lt.s32.totalorder %v22310_v36, 0  ;;  %v1121_v37 = vmul.f32 -0.00019511016, %v22307_v51 }
 0x4af   :  { %v19531_v10 = vsel %vm15830_vm6, 0, %v975_v0  ;;  %v1103_v5 = vsel %vm22311_vm15, %v1102_v58, %v22304_v1  ;;  %v1129_v13 = vmul.f32 -0.00019511016, %v22308_v44  ;;  %v10329_v62 = vunpack.c.l.b16 %v5881_v26  ;;  %11908 = vmatpush.bf16.msrb.mxu3 %v12933_v15  ;;  %11860 = vmatpush.bf16.msrb.mxu2 %v12861_v21  ;;  %v22314_v1 = vld [vmem:[#allocation72_spill] sm:$0xff] }
 0x4b0   :  { %v19540_v52 = vsel %vm16363_vm2, 0, %v1103_v5  ;;  %v1108_v57 = vadd.f32 0.041655596, %v1107_v60  ;;  %v1115_v45 = vadd.f32 0.041655596, %v1114_v48  ;;  %v12925_v17 = vor.u32 %v13000_v6, %v12922_v63  ;;  %v22315_v60 = vld [vmem:[#allocation83_spill] sm:$0xff] }
 0x4b1   :  { %v12853_v25 = vor.u32 %v12982_v59, %v12850_v2  ;;  %v1122_v4 = vadd.f32 0.008332121, %v1121_v37  ;;  %v1130_v11 = vadd.f32 0.008332121, %v1129_v13  ;;  %v19542_v33 = vpack.c.b16 %v10329_v62, %v10328_v22  ;;  %v22316_v13 = vld [vmem:[#allocation60_spill] sm:$0xff] }
 0x4b2   :  { %v1109_v8 = vmul.f32 %v1108_v57, %v22307_v51  ;;  %v1116_v18 = vmul.f32 %v1115_v45, %v22308_v44  ;;  %v1138_v15 = vadd.s32 3, %v19531_v10  ;;  %v1149_v12 = vadd.s32 3, %v19540_v52 }
 0x4b3   :  { %22313 = vst [vmem:[#allocation59_spill] sm:$0xff] %v19542_v33  ;;  %v1123_v21 = vmul.f32 %v1122_v4, %v22307_v51  ;;  %v1131_v61 = vmul.f32 %v1130_v11, %v22308_v44  ;;  %v1289_v6 = vsub.s32 4, %v22314_v1  ;;  %10871 = vmatmul.bf16.vlgmr.msra.gmra.mxu1 %v19542_v33  ;;  %10969 = vmatmul.bf16.vlgmr.msra.gmra.mxu3 %v19542_v33  ;;  %v1417_v48 = vsub.s32 4, %v22315_v60  ;;  %v22320_v4 = vld [vmem:[#allocation104_spill] sm:$0xff] }
 0x4b4   :  { %v12917_v22 = vor.u32 %v12998_v50, %v12914_v20  ;;  %v1110_v63 = vadd.f32 -0.4999988, %v1109_v8  ;;  %v1117_v59 = vadd.f32 -0.4999988, %v1116_v18  ;;  %v1139_v58 = vand.u32 3, %v1138_v15  ;;  %11909 = vmatpush.bf16.msrb.mxu3 %v12925_v17  ;;  %11861 = vmatpush.bf16.msrb.mxu2 %v12853_v25  ;;  %v22321_v8 = vld [vmem:[#allocation66_spill] sm:$0xff] }
 0x4b5   :  { %v1124_v26 = vadd.f32 -0.16666654, %v1123_v21  ;;  %v1132_v2 = vadd.f32 -0.16666654, %v1131_v61  ;;  %v1150_v0 = vand.u32 3, %v1149_v12  ;;  %v5226_v23 = vmul.f32 %v19462_v43, %v19418_v9  ;;  %v22322_v15 = vld [vmem:[#allocation87_spill] sm:$0xff] }
 0x4b6   :  { %v1111_v5 = vmul.f32 %v1110_v63, %v22307_v51  ;;  %v1118_v37 = vmul.f32 %v1117_v59, %v22308_v44  ;;  %vm22317_vm6 = vcmp.lt.s32.totalorder %v22316_v13, 0  ;;  %vm1140_vm2 = vcmp.lt.s32.totalorder %v1139_v58, 2  ;;  %v22323_v61 = vld [vmem:[#allocation97_spill] sm:$0xff] }
 0x4b7   :  { %v1290_v50 = vsel %vm22317_vm6, %v1289_v6, %v22314_v1  ;;  %v1125_v62 = vmul.f32 %v1124_v26, %v22307_v51  ;;  %v1133_v46 = vmul.f32 %v1132_v2, %v22308_v44  ;;  %vm1141_vm7 = vcmp.eq.s32.totalorder %v1139_v58, 0  ;;  %v22318_v51 = vld [vmem:[#allocation32_spill] sm:$0xff] }
 0x4b8   :  { %v19563_v57 = vadd.f32 1.0, %v1111_v5  ;;  %v19565_v45 = vadd.f32 1.0, %v1118_v37  ;;  %vm1136_vm10 = vweird.f32 %v22305_v30  ;;  %vm21680_vm0 = vweird.f32 %v22310_v36  ;;  %11910 = vmatpush.bf16.msrb.mxu3 %v12917_v22 }
 0x4b9   :  { %vm1144_vm5 = vcmp.eq.s32.totalorder %v1139_v58, 2  ;;  %vm1151_vm14 = vcmp.lt.s32.totalorder %v1150_v0, 2  ;;  %v1126_v43 = vadd.f32 1.0, %v1125_v62  ;;  %v1134_v17 = vadd.f32 1.0, %v1133_v46 }
 0x4ba   :  { %vm1152_vm3 = vcmp.eq.s32.totalorder %v1150_v0, 0  ;;  %vm22319_vm13 = vcmp.lt.s32.totalorder %v22318_v51, 0  ;;  %v1145_v25 = vxor.u32 2147483648, %v19563_v57  ;;  %vm1155_vm9 = vcmp.eq.s32.totalorder %v1150_v0, 2 }
 0x4bb   :  { %v1418_v44 = vsel %vm22319_vm13, %v1417_v48, %v22315_v60  ;;  %v21678_v20 = vxor.u32 2147483648, %v19565_v45  ;;  %v1422_v11 = vmul.f32 -0.001358992, %v22320_v4  ;;  %v19576_v18 = vmul.f32 %v1126_v43, %v22321_v8 }
 0x4bc   :  { %v19579_v21 = vmul.f32 %v1134_v17, %v22322_v15  ;;  %v1429_v12 = vmul.f32 -0.001358992, %v22323_v61  ;;  %v1436_v1 = vmul.f32 -0.00019511016, %v22320_v4  ;;  %v19585_v22 = vsel %vm17038_vm8, 0, %v1290_v50 }
 0x4bd   :  { %v19589_v59 = vsel %vm17149_vm4, 0, %v1418_v44  ;;  %v1423_v26 = vadd.f32 0.041655596, %v1422_v11  ;;  %v1444_v2 = vmul.f32 -0.00019511016, %v22323_v61  ;;  %v1142_v60 = vxor.u32 2147483648, %v19576_v18 }
 0x4be   :  { %v1146_v48 = vsel %vm1144_vm5, %v1145_v25, %v19576_v18  ;;  %v21679_v5 = vxor.u32 2147483648, %v19579_v21  ;;  %v1157_v37 = vsel %vm1155_vm9, %v21678_v20, %v19579_v21  ;;  %v1430_v62 = vadd.f32 0.041655596, %v1429_v12 }
 0x4bf   :  { %v1424_v50 = vmul.f32 %v1423_v26, %v22320_v4  ;;  %v1437_v46 = vadd.f32 0.008332121, %v1436_v1  ;;  %v1445_v43 = vadd.f32 0.008332121, %v1444_v2  ;;  %v1143_v17 = vsel %vm1141_vm7, %v19563_v57, %v1142_v60 }
 0x4c0   :  { %v1154_v44 = vsel %vm1152_vm3, %v19565_v45, %v21679_v5  ;;  %v1453_v11 = vadd.s32 3, %v19585_v22  ;;  %v1464_v8 = vadd.s32 3, %v19589_v59  ;;  %v1147_v15 = vsel %vm1140_vm2, %v1143_v17, %v1146_v48 }
 0x4c1   :  { %v1158_v6 = vsel %vm1151_vm14, %v1154_v44, %v1157_v37  ;;  %v1425_v63 = vadd.f32 -0.4999988, %v1424_v50  ;;  %v1431_v12 = vmul.f32 %v1430_v62, %v22323_v61  ;;  %v1148_v1 = vsel %vm1136_vm10, nan, %v1147_v15 }
 0x4c2   :  { %v1159_v26 = vsel %vm21680_vm0, nan, %v1158_v6  ;;  %v1438_v2 = vmul.f32 %v1437_v46, %v22320_v4  ;;  %v1446_v20 = vmul.f32 %v1445_v43, %v22323_v61  ;;  %v19621_v5 = vmul.f32 %v19458_v39, %v19005_v32 }
 0x4c3   :  { %v1426_v58 = vmul.f32 %v1425_v63, %v22320_v4  ;;  %v1432_v0 = vadd.f32 -0.4999988, %v1431_v12  ;;  %v1454_v48 = vand.u32 3, %v1453_v11  ;;  %v1465_v62 = vand.u32 3, %v1464_v8  ;;  %v22327_v12 = vld [vmem:[#allocation96_spill] sm:$0xff] }
 0x4c4   :  { %v1439_v37 = vadd.f32 -0.16666654, %v1438_v2  ;;  %v1447_v50 = vadd.f32 -0.16666654, %v1446_v20  ;;  %v6174_v17 = vand.u32 3, %v19531_v10  ;;  %v1160_v15 = vpack.i.bf16 %v1159_v26, %v1148_v1 }
 0x4c5   :  { %v19625_v44 = vadd.f32 -0.16666654, %v5226_v23  ;;  %v1427_v6 = vadd.f32 1.0, %v1426_v58  ;;  %v1433_v46 = vmul.f32 %v1432_v0, %v22323_v61  ;;  %vm1455_vm8 = vcmp.lt.s32.totalorder %v1454_v48, 2 }
 0x4c6   :  { %v1440_v43 = vmul.f32 %v1439_v37, %v22320_v4  ;;  %v1448_v39 = vmul.f32 %v1447_v50, %v22323_v61  ;;  %vm1456_vm4 = vcmp.eq.s32.totalorder %v1454_v48, 0  ;;  %vm1459_vm15 = vcmp.eq.s32.totalorder %v1454_v48, 2  ;;  %v22326_v61 = vld [vmem:[#allocation75_spill] sm:$0xff] }
 0x4c7   :  { %v1434_v63 = vadd.f32 1.0, %v1433_v46  ;;  %v1460_v20 = vxor.u32 2147483648, %v1427_v6  ;;  %vm1466_vm7 = vcmp.lt.s32.totalorder %v1465_v62, 2  ;;  %vm1467_vm5 = vcmp.eq.s32.totalorder %v1465_v62, 0 }
 0x4c8   :  { %v1441_v10 = vadd.f32 1.0, %v1440_v43  ;;  %v1449_v23 = vadd.f32 1.0, %v1448_v39  ;;  %vm1470_vm14 = vcmp.eq.s32.totalorder %v1465_v62, 2  ;;  %vm6175_vm3 = vcmp.lt.s32.totalorder %v6174_v17, 2 }
 0x4c9   :  { %v1471_v11 = vxor.u32 2147483648, %v1434_v63  ;;  %vm6176_vm13 = vcmp.eq.s32.totalorder %v6174_v17, 0  ;;  %vm6179_vm9 = vcmp.eq.s32.totalorder %v6174_v17, 2  ;;  %v6184_v4 = vand.u32 3, %v19540_v52 }
 0x4ca   :  { %v1442_v8 = vmul.f32 %v1441_v10, %v22326_v61  ;;  %v1450_v1 = vmul.f32 %v1449_v23, %v22327_v12  ;;  %v6178_v26 = vsel %vm6176_vm13, %v19563_v57, %v1142_v60  ;;  %v6181_v2 = vsel %vm6179_vm9, %v1145_v25, %v19576_v18 }
 0x4cb   :  { %v6182_v58 = vsel %vm6175_vm3, %v6178_v26, %v6181_v2  ;;  %vm6185_vm2 = vcmp.lt.s32.totalorder %v6184_v4, 2  ;;  %vm6186_vm6 = vcmp.eq.s32.totalorder %v6184_v4, 0  ;;  %vm6189_vm0 = vcmp.eq.s32.totalorder %v6184_v4, 2  ;;  %v12980_v26 = vld [vmem:[#allocation6 + $0x34] sm:$0xf] }
 0x4cc   :  { %v1457_v0 = vxor.u32 2147483648, %v1442_v8  ;;  %v1461_v37 = vsel %vm1459_vm15, %v1460_v20, %v1442_v8  ;;  %v1468_v50 = vxor.u32 2147483648, %v1450_v1  ;;  %v1472_v52 = vsel %vm1470_vm14, %v1471_v11, %v1450_v1 }
 0x4cd   :  { %v6183_v17 = vsel %vm1136_vm10, nan, %v6182_v58  ;;  %v22328_v46 = vxor.u32 2147483648, %v19579_v21  ;;  %v22329_v57 = vxor.u32 2147483648, %v19565_v45  ;;  %v6487_v18 = vand.u32 3, %v19585_v22 }
 0x4ce   :  { %v1458_v43 = vsel %vm1456_vm4, %v1427_v6, %v1457_v0  ;;  %v1469_v39 = vsel %vm1467_vm5, %v1434_v63, %v1468_v50  ;;  %v6497_v23 = vand.u32 3, %v19589_v59  ;;  %v10282_v61 = vunpack.c.l.b16 %v1160_v15  ;;  %v12906_v59 = vld [vmem:[#allocation6 + $0xb8] sm:$0xf0]  ;;  %v12978_v15 = vld [vmem:[#allocation6 + $0x24] sm:$0xf] }
 0x4cf   :  { %v6188_v60 = vsel %vm6186_vm6, %v19565_v45, %v22328_v46  ;;  %v6191_v25 = vsel %vm6189_vm0, %v22329_v57, %v19579_v21  ;;  %v1462_v30 = vsel %vm1455_vm8, %v1458_v43, %v1461_v37  ;;  %v1473_v4 = vsel %vm1466_vm7, %v1469_v39, %v1472_v52  ;;  %v12842_v45 = vld [vmem:[#allocation6 + $0x38] sm:$0xf0]  ;;  %v12996_v21 = vld [vmem:[#allocation6 + $0xb4] sm:$0xf]  ;;  %v12834_v37 = vld [vmem:[#allocation6 + $0x28] sm:$0xf0] }
 0x4d0   :  { %v6192_v10 = vsel %vm6185_vm2, %v6188_v60, %v6191_v25  ;;  %vm22330_vm10 = vweird.f32 %v22310_v36  ;;  %vm22331_vm0 = vweird.f32 %v22316_v13  ;;  %vm22332_vm4 = vweird.f32 %v22318_v51  ;;  %v12994_v52 = vld [vmem:[#allocation6 + $0xa4] sm:$0xf]  ;;  %v12898_v43 = vld [vmem:[#allocation6 + $0xa8] sm:$0xf0]  ;;  %v12976_v39 = vld [vmem:[#allocation6 + $0x14] sm:$0xf] }
 0x4d1   :  { %v6193_v12 = vsel %vm22330_vm10, nan, %v6192_v10  ;;  %v1463_v22 = vsel %vm22331_vm0, nan, %v1462_v30  ;;  %v1474_v2 = vsel %vm22332_vm4, nan, %v1473_v4  ;;  %vm6488_vm15 = vcmp.lt.s32.totalorder %v6487_v18, 2  ;;  %v12826_v10 = vld [vmem:[#allocation6 + $0x18] sm:$0xf0]  ;;  %vm22333_vm14 = vmmov %vm22331_vm0 }
 0x4d2   :  { %vm6489_vm6 = vcmp.eq.s32.totalorder %v6487_v18, 0  ;;  %v1475_v48 = vpack.i.bf16 %v1474_v2, %v1463_v22  ;;  %v6194_v58 = vpack.i.bf16 %v6193_v12, %v6183_v17  ;;  %vm6492_vm8 = vcmp.eq.s32.totalorder %v6487_v18, 2  ;;  %v12992_v18 = vld [vmem:[#allocation6 + $0x94] sm:$0xf]  ;;  %v12890_v4 = vld [vmem:[#allocation6 + $0x98] sm:$0xf0]  ;;  %vm22334_vm3 = vmmov %vm22332_vm4 }
 0x4d3   :  { %v6491_v62 = vsel %vm6489_vm6, %v1427_v6, %v1457_v0  ;;  %v6494_v36 = vsel %vm6492_vm8, %v1460_v20, %v1442_v8  ;;  %vm6498_vm2 = vcmp.lt.s32.totalorder %v6497_v23, 2  ;;  %vm6499_vm7 = vcmp.eq.s32.totalorder %v6497_v23, 0  ;;  %v12818_v12 = vld [vmem:[#allocation6 + $0x8] sm:$0xf0]  ;;  %v22336_v22 = vld [vmem:[#allocation19_spill] sm:$0xff] }
 0x4d4   :  { %vm6502_vm5 = vcmp.eq.s32.totalorder %v6497_v23, 2  ;;  %v10283_v46 = vunpack.c.l.b16 %v1475_v48  ;;  %v6495_v60 = vsel %vm6488_vm15, %v6491_v62, %v6494_v36  ;;  %v6501_v57 = vsel %vm6499_vm7, %v1434_v63, %v1468_v50  ;;  %v12974_v23 = vld [vmem:[#allocation6 + $0x4] sm:$0xf]  ;;  %v22337_v2 = vld [vmem:[#allocation35_spill] sm:$0xff] }
 0x4d5   :  { %v6504_v25 = vsel %vm6502_vm5, %v1471_v11, %v1450_v1  ;;  %v6496_v30 = vsel %vm22333_vm14, nan, %v6495_v60  ;;  %v12845_v6 = vor.u32 %v12980_v26, %v12842_v45  ;;  %v12909_v0 = vor.u32 %v12996_v21, %v12906_v59  ;;  %v22335_v26 = vld [vmem:[#allocation17_spill] sm:$0xff] }
 0x4d6   :  { %v6505_v17 = vsel %vm6498_vm2, %v6501_v57, %v6504_v25  ;;  %v5228_v20 = vmul.f32 %v19625_v44, %v19418_v9  ;;  %v19665_v8 = vpack.c.b16 %v10283_v46, %v10282_v61  ;;  %v10330_v11 = vunpack.c.l.b16 %v6194_v58  ;;  %v12990_v21 = vld [vmem:[#allocation6 + $0x84] sm:$0xf]  ;;  %v12882_v58 = vld [vmem:[#allocation6 + $0x88] sm:$0xf0] }
 0x4d7   :  { %v6506_v63 = vsel %vm22334_vm3, nan, %v6505_v17  ;;  %11862 = vmatpush.bf16.msrb.mxu2 %v12845_v6  ;;  %11911 = vmatpush.bf16.msrb.mxu3 %v12909_v0  ;;  %v12837_v50 = vor.u32 %v12978_v15, %v12834_v37  ;;  %v12901_v13 = vor.u32 %v12994_v52, %v12898_v43  ;;  %v1604_v45 = vsub.s32 4, %v22335_v26  ;;  %v22338_v62 = vld [vmem:[#allocation13_spill] sm:$0xff]  ;;  %v22340_v37 = vld [vmem:[#allocation27_spill] sm:$0xff]  ;;  %v22343_v57 = vld [vmem:[#allocation14_spill] sm:$0xff] }
 0x4d8   :  { %v6507_v1 = vpack.i.bf16 %v6506_v63, %v6496_v30  ;;  %10827 = vmatmul.bf16.gmra.mxu0 %v19665_v8  ;;  %10925 = vmatmul.bf16.gmra.mxu2 %v19665_v8  ;;  %v12829_v44 = vor.u32 %v12976_v39, %v12826_v10  ;;  %v12893_v61 = vor.u32 %v12992_v18, %v12890_v4  ;;  %v1732_v51 = vsub.s32 4, %v22336_v22  ;;  %v22341_v46 = vld [vmem:[#allocation25_spill] sm:$0xff] }
 0x4d9   :  { %v1737_v59 = vmul.f32 -0.001358992, %v22337_v2  ;;  %vm22339_vm13 = vcmp.lt.s32.totalorder %v22338_v62, 0  ;;  %v1744_v36 = vmul.f32 -0.001358992, %v22340_v37  ;;  %vm22342_vm9 = vnez %v22341_v46  ;;  %v22345_v30 = vld [vmem:[#allocation37_spill] sm:$0xff] }
 0x4da   :  { %v10331_v48 = vunpack.c.l.b16 %v6507_v1  ;;  %v1605_v15 = vsel %vm22339_vm13, %v1604_v45, %v22335_v26  ;;  %v1751_v52 = vmul.f32 -0.00019511016, %v22337_v2  ;;  %vm22344_vm10 = vcmp.lt.s32.totalorder %v22343_v57, 0 }
 0x4db   :  { %v19681_v60 = vsel %vm22342_vm9, 0, %v1605_v15  ;;  %v1733_v25 = vsel %vm22344_vm10, %v1732_v51, %v22336_v22  ;;  %v1738_v43 = vadd.f32 0.041655596, %v1737_v59  ;;  %v1759_v39 = vmul.f32 -0.00019511016, %v22340_v37  ;;  %11863 = vmatpush.bf16.msrb.mxu2 %v12837_v50  ;;  %11912 = vmatpush.bf16.msrb.mxu3 %v12901_v13 }
 0x4dc   :  { %v19687_v10 = vpack.c.b16 %v10331_v48, %v10330_v11  ;;  %vm22346_vm0 = vnez %v22345_v30  ;;  %v1745_v6 = vadd.f32 0.041655596, %v1744_v36  ;;  %v1752_v0 = vadd.f32 0.008332121, %v1751_v52  ;;  %v22349_v30 = vld [vmem:[#allocation15_spill] sm:$0xff] }
 0x4dd   :  { %v19691_v17 = vsel %vm22346_vm0, 0, %v1733_v25  ;;  %v12821_v18 = vor.u32 %v12974_v23, %v12818_v12  ;;  %v12885_v4 = vor.u32 %v12990_v21, %v12882_v58  ;;  %v1739_v63 = vmul.f32 %v1738_v43, %v22337_v2  ;;  %v22347_v23 = vld [vmem:[#allocation21_spill] sm:$0xff]  ;;  %v22348_v21 = vld [vmem:[#allocation23_spill] sm:$0xff] }
 0x4de   :  { %v1760_v1 = vadd.f32 0.008332121, %v1759_v39  ;;  %10876 = vmatmul.bf16.gmra.mxu1 %v19687_v10  ;;  %10974 = vmatmul.bf16.gmra.mxu3 %v19687_v10  ;;  %v1746_v11 = vmul.f32 %v1745_v6, %v22340_v37  ;;  %v1753_v50 = vmul.f32 %v1752_v0, %v22337_v2  ;;  %v1768_v13 = vadd.s32 3, %v19681_v60 }
 0x4df   :  { %v1779_v26 = vadd.s32 3, %v19691_v17  ;;  %v1740_v45 = vadd.f32 -0.4999988, %v1739_v63  ;;  %v1919_v12 = vsub.s32 4, %v22347_v23  ;;  %v2047_v51 = vsub.s32 4, %v22348_v21  ;;  %11864 = vmatpush.bf16.msrb.mxu2 %v12829_v44  ;;  %11913 = vmatpush.bf16.msrb.mxu3 %v12893_v61  ;;  %v22351_v61 = vld [vmem:[#allocation16_spill] sm:$0xff] }
 0x4e0   :  { %v1761_v22 = vmul.f32 %v1760_v1, %v22340_v37  ;;  %v1747_v59 = vadd.f32 -0.4999988, %v1746_v11  ;;  %v1754_v48 = vadd.f32 -0.16666654, %v1753_v50  ;;  %v1769_v58 = vand.u32 3, %v1768_v13  ;;  %v22353_v11 = vld [vmem:[#allocation29_spill] sm:$0xff] }
 0x4e1   :  { %v1780_v15 = vand.u32 3, %v1779_v26  ;;  %v19704_v36 = vadd.f32 1.0, %v19621_v5  ;;  %v19706_v52 = vadd.f32 1.0, %v5228_v20  ;;  %v1741_v46 = vmul.f32 %v1740_v45, %v22337_v2  ;;  %v22354_v13 = vld [vmem:[#allocation49_spill] sm:$0xff]  ;;  %v22356_v45 = vld [vmem:[#allocation38_spill] sm:$0xff] }
 0x4e2   :  { %v1762_v25 = vadd.f32 -0.16666654, %v1761_v22  ;;  %v1748_v43 = vmul.f32 %v1747_v59, %v22340_v37  ;;  %v1755_v39 = vmul.f32 %v1754_v48, %v22337_v2  ;;  %vm22350_vm4 = vcmp.lt.s32.totalorder %v22349_v30, 0  ;;  %v22359_v48 = vld [vmem:[#allocation44_spill] sm:$0xff] }
 0x4e3   :  { %v1920_v44 = vsel %vm22350_vm4, %v1919_v12, %v22347_v23  ;;  %vm22352_vm15 = vcmp.lt.s32.totalorder %v22351_v61, 0  ;;  %v19717_v0 = vadd.f32 1.0, %v1741_v46  ;;  %vm1766_vm6 = vweird.f32 %v22338_v62  ;;  %11865 = vmatpush.bf16.msrb.mxu2 %v12821_v18  ;;  %11914 = vmatpush.bf16.msrb.mxu3 %v12885_v4  ;;  %v22355_v4 = vld [vmem:[#allocation50_spill] sm:$0xff]  ;;  %v22357_v23 = vld [vmem:[#allocation43_spill] sm:$0xff] }
 0x4e4   :  { %v2048_v6 = vsel %vm22352_vm15, %v2047_v51, %v22348_v21  ;;  %v1763_v5 = vmul.f32 %v1762_v25, %v22340_v37  ;;  %vm1770_vm8 = vcmp.lt.s32.totalorder %v1769_v58, 2  ;;  %vm1771_vm2 = vcmp.eq.s32.totalorder %v1769_v58, 0 }
 0x4e5   :  { %v19721_v20 = vadd.f32 1.0, %v1748_v43  ;;  %v1756_v2 = vadd.f32 1.0, %v1755_v39  ;;  %vm21684_vm7 = vweird.f32 %v22343_v57  ;;  %vm1774_vm5 = vcmp.eq.s32.totalorder %v1769_v58, 2 }
 0x4e6   :  { %vm1781_vm14 = vcmp.lt.s32.totalorder %v1780_v15, 2  ;;  %v1764_v63 = vadd.f32 1.0, %v1763_v5  ;;  %v21681_v1 = vxor.u32 2147483648, %v19717_v0  ;;  %vm1782_vm3 = vcmp.eq.s32.totalorder %v1780_v15, 0 }
 0x4e7   :  { %vm1785_vm13 = vcmp.eq.s32.totalorder %v1780_v15, 2  ;;  %v19726_v37 = vmul.f32 %v1756_v2, %v22353_v11  ;;  %v21682_v50 = vxor.u32 2147483648, %v19721_v20  ;;  %v2052_v18 = vmul.f32 -0.001358992, %v22354_v13 }
 0x4e8   :  { %v2059_v26 = vmul.f32 -0.001358992, %v22355_v4  ;;  %v19732_v22 = vmul.f32 %v1764_v63, %v22356_v45  ;;  %vm22358_vm9 = vnez %v22357_v23  ;;  %v2066_v21 = vmul.f32 -0.00019511016, %v22354_v13 }
 0x4e9   :  { %v19736_v12 = vsel %vm22358_vm9, 0, %v1920_v44  ;;  %v2074_v51 = vmul.f32 -0.00019511016, %v22355_v4  ;;  %v1772_v59 = vxor.u32 2147483648, %v19726_v37  ;;  %vm22360_vm10 = vnez %v22359_v48 }
 0x4ea   :  { %v19743_v46 = vsel %vm22360_vm10, 0, %v2048_v6  ;;  %v2053_v25 = vadd.f32 0.041655596, %v2052_v18  ;;  %v2060_v43 = vadd.f32 0.041655596, %v2059_v26  ;;  %v1776_v39 = vsel %vm1774_vm5, %v21681_v1, %v19726_v37 }
 0x4eb   :  { %v1783_v44 = vxor.u32 2147483648, %v19732_v22  ;;  %v2067_v5 = vadd.f32 0.008332121, %v2066_v21  ;;  %v2075_v2 = vadd.f32 0.008332121, %v2074_v51  ;;  %v1773_v63 = vsel %vm1771_vm2, %v19717_v0, %v1772_v59 }
 0x4ec   :  { %v1787_v6 = vsel %vm1785_vm13, %v21682_v50, %v19732_v22  ;;  %v2054_v11 = vmul.f32 %v2053_v25, %v22354_v13  ;;  %v2061_v18 = vmul.f32 %v2060_v43, %v22355_v4  ;;  %v1777_v26 = vsel %vm1770_vm8, %v1773_v63, %v1776_v39 }
 0x4ed   :  { %v1784_v45 = vsel %vm1782_vm3, %v19721_v20, %v1783_v44  ;;  %v2068_v23 = vmul.f32 %v2067_v5, %v22354_v13  ;;  %v2076_v21 = vmul.f32 %v2075_v2, %v22355_v4  ;;  %v1778_v51 = vsel %vm1766_vm6, nan, %v1777_v26 }
 0x4ee   :  { %v1788_v48 = vsel %vm1781_vm14, %v1784_v45, %v1787_v6  ;;  %v2055_v1 = vadd.f32 -0.4999988, %v2054_v11  ;;  %v2062_v50 = vadd.f32 -0.4999988, %v2061_v18  ;;  %v2083_v39 = vadd.s32 3, %v19736_v12 }
 0x4ef   :  { %v1789_v25 = vsel %vm21684_vm7, nan, %v1788_v48  ;;  %v2069_v43 = vadd.f32 -0.16666654, %v2068_v23  ;;  %v2077_v58 = vadd.f32 -0.16666654, %v2076_v21  ;;  %v2094_v2 = vadd.s32 3, %v19743_v46 }
 0x4f0   :  { %v1790_v63 = vpack.i.bf16 %v1789_v25, %v1778_v51  ;;  %v2056_v33 = vmul.f32 %v2055_v1, %v22354_v13  ;;  %v2063_v5 = vmul.f32 %v2062_v50, %v22355_v4  ;;  %v2084_v6 = vand.u32 3, %v2083_v39  ;;  %v22362_v48 = vld [vmem:[#allocation46_spill] sm:$0xff] }
 0x4f1   :  { %v2070_v26 = vmul.f32 %v2069_v43, %v22354_v13  ;;  %v2078_v15 = vmul.f32 %v2077_v58, %v22355_v4  ;;  %v6800_v11 = vand.u32 3, %v19681_v60  ;;  %vm2081_vm0 = vweird.f32 %v22349_v30  ;;  %v22361_v13 = vld [vmem:[#allocation45_spill] sm:$0xff] }
 0x4f2   :  { %v2057_v18 = vadd.f32 1.0, %v2056_v33  ;;  %v2064_v45 = vadd.f32 1.0, %v2063_v5  ;;  %v2095_v23 = vand.u32 3, %v2094_v2  ;;  %v10284_v21 = vunpack.c.l.b16 %v1790_v63 }
 0x4f3   :  { %v2071_v1 = vadd.f32 1.0, %v2070_v26  ;;  %v2079_v51 = vadd.f32 1.0, %v2078_v15  ;;  %vm2085_vm15 = vcmp.lt.s32.totalorder %v2084_v6, 2  ;;  %vm2086_vm8 = vcmp.eq.s32.totalorder %v2084_v6, 0 }
 0x4f4   :  { %vm2089_vm2 = vcmp.eq.s32.totalorder %v2084_v6, 2  ;;  %v2090_v50 = vxor.u32 2147483648, %v2057_v18  ;;  %vm2096_vm5 = vcmp.lt.s32.totalorder %v2095_v23, 2  ;;  %vm2097_vm14 = vcmp.eq.s32.totalorder %v2095_v23, 0 }
 0x4f5   :  { %v2072_v4 = vmul.f32 %v2071_v1, %v22361_v13  ;;  %v2080_v60 = vmul.f32 %v2079_v51, %v22362_v48  ;;  %vm2100_vm3 = vcmp.eq.s32.totalorder %v2095_v23, 2  ;;  %v2101_v33 = vxor.u32 2147483648, %v2064_v45 }
 0x4f6   :  { %vm6801_vm13 = vcmp.lt.s32.totalorder %v6800_v11, 2  ;;  %vm6802_vm9 = vcmp.eq.s32.totalorder %v6800_v11, 0  ;;  %vm6805_vm10 = vcmp.eq.s32.totalorder %v6800_v11, 2  ;;  %v6810_v25 = vand.u32 3, %v19691_v17 }
 0x4f7   :  { %v2087_v43 = vxor.u32 2147483648, %v2072_v4  ;;  %v2091_v58 = vsel %vm2089_vm2, %v2090_v50, %v2072_v4  ;;  %v2098_v39 = vxor.u32 2147483648, %v2080_v60  ;;  %v2102_v63 = vsel %vm2100_vm3, %v2101_v33, %v2080_v60 }
 0x4f8   :  { %v6804_v5 = vsel %vm6802_vm9, %v19717_v0, %v1772_v59  ;;  %v22363_v2 = vxor.u32 2147483648, %v19717_v0  ;;  %vm6811_vm7 = vcmp.lt.s32.totalorder %v6810_v25, 2  ;;  %vm6812_vm4 = vcmp.eq.s32.totalorder %v6810_v25, 0 }
 0x4f9   :  { %v2088_v15 = vsel %vm2086_vm8, %v2057_v18, %v2087_v43  ;;  %v2099_v1 = vsel %vm2097_vm14, %v2064_v45, %v2098_v39  ;;  %v6814_v11 = vsel %vm6812_vm4, %v19721_v20, %v1783_v44  ;;  %vm6815_vm2 = vcmp.eq.s32.totalorder %v6810_v25, 2 }
 0x4fa   :  { %v6807_v26 = vsel %vm6805_vm10, %v22363_v2, %v19726_v37  ;;  %v2092_v17 = vsel %vm2085_vm15, %v2088_v15, %v2091_v58  ;;  %v2103_v13 = vsel %vm2096_vm5, %v2099_v1, %v2102_v63  ;;  %vm22364_vm3 = vweird.f32 %v22351_v61  ;;  %v22366_v63 = vld [vmem:[#allocation76_spill] sm:$0xff] }
 0x4fb   :  { %v6808_v51 = vsel %vm6801_vm13, %v6804_v5, %v6807_v26  ;;  %v2093_v0 = vsel %vm2081_vm0, nan, %v2092_v17  ;;  %v2104_v37 = vsel %vm22364_vm3, nan, %v2103_v13  ;;  %v22365_v48 = vxor.u32 2147483648, %v19721_v20 }
 0x4fc   :  { %v6809_v59 = vsel %vm1766_vm6, nan, %v6808_v51  ;;  %v7113_v44 = vand.u32 3, %v19736_v12  ;;  %v2105_v6 = vpack.i.bf16 %v2104_v37, %v2093_v0  ;;  %v7123_v23 = vand.u32 3, %v19743_v46  ;;  %v22372_v37 = vld [vmem:[#allocation33_spill] sm:$0xff] }
 0x4fd   :  { %v6817_v5 = vsel %vm6815_vm2, %v22365_v48, %v19732_v22  ;;  %v4887_v62 = vmul.f32 -0.001358992, %v22366_v63  ;;  %vm22367_vm6 = vweird.f32 %v22343_v57  ;;  %v19810_v57 = vsel %vm18930_vm1, 0, %v19214_v16  ;;  %v22370_v16 = vld [vmem:[#allocation98_spill] sm:$0xff] }
 0x4fe   :  { %v6818_v58 = vsel %vm6811_vm7, %v6814_v11, %v6817_v5  ;;  %vm7114_vm4 = vcmp.lt.s32.totalorder %v7113_v44, 2  ;;  %vm7115_vm15 = vcmp.eq.s32.totalorder %v7113_v44, 0  ;;  %vm7118_vm8 = vcmp.eq.s32.totalorder %v7113_v44, 2  ;;  %vm22369_vm7 = vmmov %vm22364_vm3  ;;  %v22374_v5 = vld [vmem:[#allocation77_spill] sm:$0xff] }
 0x4ff   :  { %v6819_v25 = vsel %vm22367_vm6, nan, %v6818_v58  ;;  %v10285_v2 = vunpack.c.l.b16 %v2105_v6  ;;  %v7117_v15 = vsel %vm7115_vm15, %v2057_v18, %v2087_v43  ;;  %v7120_v1 = vsel %vm7118_vm8, %v2090_v50, %v2072_v4  ;;  %v22368_v18 = vld [vmem:[#allocation90_spill] sm:$0xff] }
 0x500   :  { %v6820_v26 = vpack.i.bf16 %v6819_v25, %v6809_v59  ;;  %v7121_v20 = vsel %vm7114_vm4, %v7117_v15, %v7120_v1  ;;  %vm7124_vm5 = vcmp.lt.s32.totalorder %v7123_v23, 2  ;;  %vm7125_vm14 = vcmp.eq.s32.totalorder %v7123_v23, 0  ;;  %v22375_v25 = vld [vmem:[#allocation62_spill] sm:$0xff] }
 0x501   :  { %vm7128_vm13 = vcmp.eq.s32.totalorder %v7123_v23, 2  ;;  %v19803_v22 = vpack.c.b16 %v10285_v2, %v10284_v21  ;;  %v7122_v12 = vsel %vm2081_vm0, nan, %v7121_v20  ;;  %v7127_v46 = vsel %vm7125_vm14, %v2064_v45, %v2098_v39 }
 0x502   :  { %v7130_v51 = vsel %vm7128_vm13, %v2101_v33, %v2080_v60  ;;  %v4888_v17 = vadd.f32 0.041655596, %v4887_v62  ;;  %v4894_v50 = vmul.f32 -0.001358992, %v22368_v18  ;;  %v19816_v4 = vsel %vm19339_vm11, 0, %v19508_v19 }
 0x503   :  { %v7131_v11 = vsel %vm7124_vm5, %v7127_v46, %v7130_v51  ;;  %v19820_v30 = vmul.f32 %v19704_v36, %v18983_v34  ;;  %10832 = vmatmul.bf16.gmra.mxu0 %v19803_v22  ;;  %10930 = vmatmul.bf16.gmra.mxu2 %v19803_v22  ;;  %v4918_v45 = vadd.s32 3, %v22370_v16  ;;  %v19829_v21 = vmul.f32 %v19706_v52, %v19397_v3  ;;  %v22371_v36 = vld [vmem:[#allocation81_spill] sm:$0xff]  ;;  %v22373_v3 = vld [vmem:[#allocation84_spill] sm:$0xff] }
 0x504   :  { %v7132_v14 = vsel %vm22369_vm7, nan, %v7131_v11  ;;  %v4889_v19 = vmul.f32 %v4888_v17, %v22366_v63  ;;  %v4895_v60 = vadd.f32 0.041655596, %v4894_v50  ;;  %v10332_v33 = vunpack.c.l.b16 %v6820_v26 }
 0x505   :  { %v7133_v24 = vpack.i.bf16 %v7132_v14, %v7122_v12  ;;  %v4919_v34 = vand.u32 3, %v4918_v45  ;;  %v4929_v43 = vadd.s32 3, %v22371_v36  ;;  %v5202_v39 = vmul.f32 -0.001358992, %v19005_v32 }
 0x506   :  { %v4890_v13 = vadd.f32 -0.4999988, %v4889_v19  ;;  %v4896_v59 = vmul.f32 %v4895_v60, %v22368_v18  ;;  %v5209_v0 = vmul.f32 -0.001358992, %v19418_v9  ;;  %vm4916_vm1 = vweird.f32 %v22372_v37 }
 0x507   :  { %v10333_v61 = vunpack.c.l.b16 %v7133_v24  ;;  %v4922_v52 = vxor.u32 2147483648, %v22373_v3  ;;  %v4930_v48 = vand.u32 3, %v4929_v43  ;;  %v4933_v44 = vxor.u32 2147483648, %v22374_v5 }
 0x508   :  { %v4891_v58 = vmul.f32 %v4890_v13, %v22366_v63  ;;  %v4897_v23 = vadd.f32 -0.4999988, %v4896_v59  ;;  %v5203_v62 = vadd.f32 0.041655596, %v5202_v39  ;;  %vm4917_vm11 = vweird.f32 %v22375_v25 }
 0x509   :  { %v19839_v6 = vpack.c.b16 %v10333_v61, %v10332_v33  ;;  %vm4920_vm0 = vcmp.lt.s32.totalorder %v4919_v34, 2  ;;  %vm4921_vm9 = vcmp.eq.s32.totalorder %v4919_v34, 0  ;;  %vm4924_vm10 = vcmp.eq.s32.totalorder %v4919_v34, 2 }
 0x50a   :  { %v5210_v2 = vadd.f32 0.041655596, %v5209_v0  ;;  %v4892_v26 = vadd.f32 1.0, %v4891_v58  ;;  %v4898_v15 = vmul.f32 %v4897_v23, %v22368_v18  ;;  %vm4931_vm2 = vcmp.lt.s32.totalorder %v4930_v48, 2 }
 0x50b   :  { %10881 = vmatmul.bf16.gmra.mxu1 %v19839_v6  ;;  %10979 = vmatmul.bf16.gmra.mxu3 %v19839_v6  ;;  %v5204_v1 = vmul.f32 %v5203_v62, %v19005_v32  ;;  %vm4932_vm3 = vcmp.eq.s32.totalorder %v4930_v48, 0  ;;  %vm4935_vm6 = vcmp.eq.s32.totalorder %v4930_v48, 2  ;;  %v5233_v20 = vadd.s32 3, %v19810_v57 }
 0x50c   :  { %v5211_v63 = vmul.f32 %v5210_v2, %v19418_v9  ;;  %v4899_v12 = vadd.f32 1.0, %v4898_v15  ;;  %v4923_v46 = vsel %vm4921_vm9, %v4892_v26, %v4922_v52  ;;  %v4925_v51 = vxor.u32 2147483648, %v4892_v26 }
 0x50d   :  { %v5205_v11 = vadd.f32 -0.4999988, %v5204_v1  ;;  %vm5231_vm4 = vweird.f32 %v22240_v38  ;;  %v5234_v50 = vand.u32 3, %v5233_v20  ;;  %v5237_v18 = vxor.u32 2147483648, %v19820_v30 }
 0x50e   :  { %v5212_v17 = vadd.f32 -0.4999988, %v5211_v63  ;;  %v5244_v14 = vadd.s32 3, %v19816_v4  ;;  %v4926_v45 = vsel %vm4924_vm10, %v4925_v51, %v22373_v3  ;;  %v4934_v24 = vsel %vm4932_vm3, %v4899_v12, %v4933_v44 }
 0x50f   :  { %v4936_v19 = vxor.u32 2147483648, %v4899_v12  ;;  %v5206_v60 = vmul.f32 %v5205_v11, %v19005_v32  ;;  %v4927_v33 = vsel %vm4920_vm0, %v4923_v46, %v4926_v45  ;;  %vm5232_vm15 = vweird.f32 %v22263_v42 }
 0x510   :  { %v5213_v43 = vmul.f32 %v5212_v17, %v19418_v9  ;;  %vm5235_vm8 = vcmp.lt.s32.totalorder %v5234_v50, 2  ;;  %v5248_v39 = vxor.u32 2147483648, %v19829_v21  ;;  %v4928_v61 = vsel %vm4916_vm1, nan, %v4927_v33 }
 0x511   :  { %v4937_v13 = vsel %vm4935_vm6, %v4936_v19, %v22374_v5  ;;  %v5207_v59 = vadd.f32 1.0, %v5206_v60  ;;  %vm5236_vm5 = vcmp.eq.s32.totalorder %v5234_v50, 0  ;;  %v5245_v34 = vand.u32 3, %v5244_v14 }
 0x512   :  { %v4938_v0 = vsel %vm4931_vm2, %v4934_v24, %v4937_v13  ;;  %v5214_v32 = vadd.f32 1.0, %v5213_v43  ;;  %v9930_v58 = vand.u32 3, %v22370_v16  ;;  %vm5239_vm14 = vcmp.eq.s32.totalorder %v5234_v50, 2 }
 0x513   :  { %v4939_v9 = vsel %vm4917_vm11, nan, %v4938_v0  ;;  %v5238_v23 = vsel %vm5236_vm5, %v5207_v59, %v5237_v18  ;;  %v5240_v62 = vxor.u32 2147483648, %v5207_v59  ;;  %vm5246_vm13 = vcmp.lt.s32.totalorder %v5245_v34, 2  ;;  %v22380_v0 = vld [vmem:[#allocation123_spill] sm:$0xff] }
 0x514   :  { %v4940_v2 = vpack.i.bf16 %v4939_v9, %v4928_v61  ;;  %vm5247_vm7 = vcmp.eq.s32.totalorder %v5245_v34, 0  ;;  %v9940_v15 = vand.u32 3, %v22371_v36  ;;  %vm5250_vm0 = vcmp.eq.s32.totalorder %v5245_v34, 2  ;;  %v22379_v61 = vld [vmem:[#allocation136_spill] sm:$0xff] }
 0x515   :  { %v5241_v48 = vsel %vm5239_vm14, %v5240_v62, %v19820_v30  ;;  %v5249_v1 = vsel %vm5247_vm7, %v5214_v32, %v5248_v39  ;;  %v5251_v63 = vxor.u32 2147483648, %v5214_v32  ;;  %vm9931_vm9 = vcmp.lt.s32.totalorder %v9930_v58, 2 }
 0x516   :  { %v5242_v16 = vsel %vm5235_vm8, %v5238_v23, %v5241_v48  ;;  %vm9932_vm10 = vcmp.eq.s32.totalorder %v9930_v58, 0  ;;  %vm9935_vm2 = vcmp.eq.s32.totalorder %v9930_v58, 2  ;;  %vm9941_vm3 = vcmp.lt.s32.totalorder %v9940_v15, 2 }
 0x517   :  { %v5243_v20 = vsel %vm5231_vm4, nan, %v5242_v16  ;;  %v5252_v46 = vsel %vm5250_vm0, %v5251_v63, %v19829_v21  ;;  %v9934_v11 = vsel %vm9932_vm10, %v4892_v26, %v4922_v52  ;;  %v9937_v36 = vsel %vm9935_vm2, %v4925_v51, %v22373_v3 }
 0x518   :  { %v5253_v17 = vsel %vm5246_vm13, %v5249_v1, %v5252_v46  ;;  %v9938_v14 = vsel %vm9931_vm9, %v9934_v11, %v9937_v36  ;;  %vm9942_vm6 = vcmp.eq.s32.totalorder %v9940_v15, 0  ;;  %vm9945_vm8 = vcmp.eq.s32.totalorder %v9940_v15, 2 }
 0x519   :  { %v5254_v50 = vsel %vm5232_vm15, nan, %v5253_v17  ;;  %v9939_v45 = vsel %vm4916_vm1, nan, %v9938_v14  ;;  %v9944_v24 = vsel %vm9942_vm6, %v4899_v12, %v4933_v44  ;;  %v22376_v60 = vand.u32 2147483647, %v22245_v31 }
 0x51a   :  { %v5255_v3 = vpack.i.bf16 %v5254_v50, %v5243_v20  ;;  %v9947_v26 = vsel %vm9945_vm8, %v4936_v19, %v22374_v5  ;;  %v10243_v51 = vand.u32 3, %v19810_v57  ;;  %v10253_v33 = vand.u32 3, %v19816_v4  ;;  %v22384_v50 = vld [vmem:[#allocation130_spill] sm:$0xff] }
 0x51b   :  { %vm19890_vm5 = vcmp.le.f32.partialorder %v22376_v60, 0.7853982  ;;  %v10294_v43 = vunpack.c.l.b16 %v4940_v2  ;;  %v9948_v37 = vsel %vm9941_vm3, %v9944_v24, %v9947_v26  ;;  %v4124_v13 = vsub.s32 4, %v22379_v61 }
 0x51c   :  { %v4252_v44 = vsub.s32 4, %v22380_v0  ;;  %v10295_v12 = vunpack.c.l.b16 %v5255_v3  ;;  %v9949_v34 = vsel %vm4917_vm11, nan, %v9948_v37  ;;  %vm10245_vm1 = vcmp.eq.s32.totalorder %v10243_v51, 0 }
 0x51d   :  { %v4257_v58 = vmul.f32 -0.001358992, %v19167_v47  ;;  %v9950_v9 = vpack.i.bf16 %v9949_v34, %v9939_v45  ;;  %vm10244_vm14 = vcmp.lt.s32.totalorder %v10243_v51, 2  ;;  %v10247_v57 = vsel %vm10245_vm1, %v5207_v59, %v5237_v18  ;;  %v22387_v34 = vld [vmem:[#allocation134_spill] sm:$0xff] }
 0x51e   :  { %vm10248_vm13 = vcmp.eq.s32.totalorder %v10243_v51, 2  ;;  %v19904_v4 = vpack.c.b16 %v10295_v12, %v10294_v43  ;;  %vm10255_vm7 = vcmp.eq.s32.totalorder %v10253_v33, 0  ;;  %vm10258_vm0 = vcmp.eq.s32.totalorder %v10253_v33, 2 }
 0x51f   :  { %v10250_v5 = vsel %vm10248_vm13, %v5240_v62, %v19820_v30  ;;  %vm10254_vm9 = vcmp.lt.s32.totalorder %v10253_v33, 2  ;;  %v10257_v23 = vsel %vm10255_vm7, %v5214_v32, %v5248_v39  ;;  %v10260_v25 = vsel %vm10258_vm0, %v5251_v63, %v19829_v21 }
 0x520   :  { %v10251_v19 = vsel %vm10244_vm14, %v10247_v57, %v10250_v5  ;;  %12448 = vmatpush.bf16.xpose.msra.mxu2 %v19904_v4  ;;  %v10261_v15 = vsel %vm10254_vm9, %v10257_v23, %v10260_v25  ;;  %vm22381_vm11 = vcmp.lt.s32.totalorder %v18268_v28, 0  ;;  %vm22382_vm10 = vcmp.lt.s32.totalorder %v22236_v29, 0 }
 0x521   :  { %v10252_v2 = vsel %vm5231_vm4, nan, %v10251_v19  ;;  %v4125_v18 = vsel %vm22381_vm11, %v4124_v13, %v22379_v61  ;;  %v4253_v30 = vsel %vm22382_vm10, %v4252_v44, %v22380_v0  ;;  %v10262_v59 = vsel %vm5232_vm15, nan, %v10261_v15 }
 0x522   :  { %v19921_v21 = vsel %vm18872_vm12, 0, %v4125_v18  ;;  %vm22383_vm2 = vnez %v22239_v41  ;;  %v4258_v39 = vadd.f32 0.041655596, %v4257_v58  ;;  %v10263_v32 = vpack.i.bf16 %v10262_v59, %v10252_v2  ;;  %v22390_v59 = vld [vmem:[#allocation129_spill] sm:$0xff] }
 0x523   :  { %v19925_v38 = vsel %vm22383_vm2, 0, %v4253_v30  ;;  %v4264_v62 = vmul.f32 -0.001358992, %v19191_v7  ;;  %v4271_v48 = vmul.f32 -0.00019511016, %v19167_v47  ;;  %v19934_v42 = vsel %vm19890_vm5, %v22245_v31, %v19159_v40 }
 0x524   :  { %v4279_v1 = vmul.f32 -0.00019511016, %v19191_v7  ;;  %v10342_v53 = vunpack.c.l.b16 %v9950_v9  ;;  %v4259_v63 = vmul.f32 %v4258_v39, %v19167_v47  ;;  %v4288_v41 = vadd.s32 3, %v19921_v21 }
 0x525   :  { %v10343_v16 = vunpack.c.l.b16 %v10263_v32  ;;  %v4265_v20 = vadd.f32 0.041655596, %v4264_v62  ;;  %v4272_v46 = vadd.f32 0.008332121, %v4271_v48  ;;  %v4299_v14 = vadd.s32 3, %v19925_v38  ;;  %v22391_v32 = vld [vmem:[#allocation145_spill] sm:$0xff] }
 0x526   :  { %v4280_v11 = vadd.f32 0.008332121, %v4279_v1  ;;  %v4260_v36 = vadd.f32 -0.4999988, %v4259_v63  ;;  %v4289_v17 = vand.u32 3, %v4288_v41  ;;  %v4439_v45 = vsub.s32 4, %v22384_v50 }
 0x527   :  { %v19940_v24 = vpack.c.b16 %v10343_v16, %v10342_v53  ;;  %v4266_v40 = vmul.f32 %v4265_v20, %v19191_v7  ;;  %v4273_v60 = vmul.f32 %v4272_v46, %v19167_v47  ;;  %v22385_v26 = vsub.s32 32, %v18620_v54 }
 0x528   :  { %v4281_v3 = vmul.f32 %v4280_v11, %v19191_v7  ;;  %v3297_v33 = vsub.s32 4294967266, %v18620_v54  ;;  %v19953_v43 = vmul.f32 %v19934_v42, %v19934_v42  ;;  %v4261_v37 = vmul.f32 %v4260_v36, %v19167_v47 }
 0x529   :  { %v19948_v51 = vshrl.u32 %v19024_v56, %v22385_v26  ;;  %12461 = vmatpush.bf16.xpose.msra.mxu3 %v19940_v24  ;;  %v4267_v61 = vadd.f32 -0.4999988, %v4266_v40  ;;  %v4274_v13 = vadd.f32 -0.16666654, %v4273_v60  ;;  %vm22386_vm12 = vcmp.lt.s32.totalorder %v22223_v27, 0 }
 0x52a   :  { %v4282_v0 = vadd.f32 -0.16666654, %v4281_v3  ;;  %v4440_v44 = vsel %vm22386_vm12, %v4439_v45, %v22384_v50  ;;  %v19960_v12 = vadd.f32 1.0, %v4261_v37  ;;  %vm4291_vm4 = vcmp.eq.s32.totalorder %v4289_v17, 0 }
 0x52b   :  { %v4300_v56 = vand.u32 3, %v4299_v14  ;;  %v4567_v58 = vsub.s32 4, %v22387_v34  ;;  %v4268_v9 = vmul.f32 %v4267_v61, %v19191_v7  ;;  %v4275_v57 = vmul.f32 %v4274_v13, %v19167_v47 }
 0x52c   :  { %v4283_v5 = vmul.f32 %v4282_v0, %v19191_v7  ;;  %vm4290_vm15 = vcmp.lt.s32.totalorder %v4289_v17, 2  ;;  %v4572_v19 = vmul.f32 -0.001358992, %v19163_v55  ;;  %vm4286_vm3 = vweird.f32 %v18268_v28 }
 0x52d   :  { %vm4287_vm6 = vweird.f32 %v22236_v29  ;;  %vm4294_vm8 = vcmp.eq.s32.totalorder %v4289_v17, 2  ;;  %v4295_v23 = vxor.u32 2147483648, %v19960_v12  ;;  %vm4301_vm1 = vcmp.lt.s32.totalorder %v4300_v56, 2 }
 0x52e   :  { %vm22388_vm14 = vnez %v22226_v35  ;;  %v19974_v2 = vadd.f32 1.0, %v4268_v9  ;;  %v4276_v47 = vadd.f32 1.0, %v4275_v57  ;;  %v4284_v15 = vadd.f32 1.0, %v4283_v5 }
 0x52f   :  { %v19972_v25 = vsel %vm22388_vm14, 0, %v4440_v44  ;;  %vm22389_vm13 = vcmp.lt.s32.totalorder %v22245_v31, 0  ;;  %vm4302_vm7 = vcmp.eq.s32.totalorder %v4300_v56, 0  ;;  %vm4305_vm0 = vcmp.eq.s32.totalorder %v4300_v56, 2 }
 0x530   :  { %v4568_v7 = vsel %vm22389_vm13, %v4567_v58, %v22387_v34  ;;  %v4573_v18 = vadd.f32 0.041655596, %v4572_v19  ;;  %v4579_v30 = vmul.f32 -0.001358992, %v19953_v43  ;;  %v4277_v39 = vmul.f32 %v4276_v47, %v22390_v59 }
 0x531   :  { %v19982_v62 = vmul.f32 %v4284_v15, %v22391_v32  ;;  %v4306_v35 = vxor.u32 2147483648, %v19974_v2  ;;  %v4586_v48 = vmul.f32 -0.00019511016, %v19163_v55  ;;  %v4570_v1 = vsel %vm19890_vm5, 0, %v4568_v7 }
 0x532   :  { %v4574_v53 = vmul.f32 %v4573_v18, %v19163_v55  ;;  %v4580_v63 = vadd.f32 0.041655596, %v4579_v30  ;;  %v4594_v41 = vmul.f32 -0.00019511016, %v19953_v43  ;;  %v4292_v16 = vxor.u32 2147483648, %v4277_v39 }
 0x533   :  { %v4296_v20 = vsel %vm4294_vm8, %v4295_v23, %v4277_v39  ;;  %v4303_v46 = vxor.u32 2147483648, %v19982_v62  ;;  %v4307_v11 = vsel %vm4305_vm0, %v4306_v35, %v19982_v62  ;;  %v4587_v14 = vadd.f32 0.008332121, %v4586_v48 }
 0x534   :  { %v4575_v36 = vadd.f32 -0.4999988, %v4574_v53  ;;  %v4581_v52 = vmul.f32 %v4580_v63, %v19953_v43  ;;  %v4595_v50 = vadd.f32 0.008332121, %v4594_v41  ;;  %v4293_v45 = vsel %vm4291_vm4, %v19960_v12, %v4292_v16  ;;  %v22392_v41 = vld [vmem:[#allocation128_spill] sm:$0xff] }
 0x535   :  { %v4304_v40 = vsel %vm4302_vm7, %v19974_v2, %v4303_v46  ;;  %v4603_v60 = vadd.s32 3, %v19972_v25  ;;  %v4614_v3 = vadd.s32 3, %v4570_v1  ;;  %v4297_v26 = vsel %vm4290_vm15, %v4293_v45, %v4296_v20 }
 0x536   :  { %v4308_v37 = vsel %vm4301_vm1, %v4304_v40, %v4307_v11  ;;  %v4576_v61 = vmul.f32 %v4575_v36, %v19163_v55  ;;  %v4582_v13 = vadd.f32 -0.4999988, %v4581_v52  ;;  %v4298_v0 = vsel %vm4286_vm3, nan, %v4297_v26 }
 0x537   :  { %v4309_v44 = vsel %vm4287_vm6, nan, %v4308_v37  ;;  %v4588_v34 = vmul.f32 %v4587_v14, %v19163_v55  ;;  %v4596_v58 = vmul.f32 %v4595_v50, %v19953_v43  ;;  %v4604_v5 = vand.u32 3, %v4603_v60 }
 0x538   :  { %v4310_v9 = vpack.i.bf16 %v4309_v44, %v4298_v0  ;;  %v4577_v57 = vadd.f32 1.0, %v4576_v61  ;;  %v4583_v17 = vmul.f32 %v4582_v13, %v19953_v43  ;;  %v4615_v47 = vand.u32 3, %v4614_v3 }
 0x539   :  { %v4589_v56 = vadd.f32 -0.16666654, %v4588_v34  ;;  %v4597_v19 = vadd.f32 -0.16666654, %v4596_v58  ;;  %v9304_v15 = vand.u32 3, %v19921_v21  ;;  %v20018_v7 = vadd.s32 127, %v3297_v33 }
 0x53a   :  { %v4584_v18 = vadd.f32 1.0, %v4583_v17  ;;  %vm4606_vm5 = vcmp.eq.s32.totalorder %v4604_v5, 0  ;;  %vm4609_vm9 = vcmp.eq.s32.totalorder %v4604_v5, 2  ;;  %vm4605_vm11 = vcmp.lt.s32.totalorder %v4604_v5, 2  ;;  %v22393_v34 = vld [vmem:[#allocation107_spill] sm:$0xff] }
 0x53b   :  { %v4590_v30 = vmul.f32 %v4589_v56, %v19163_v55  ;;  %v4598_v59 = vmul.f32 %v4597_v19, %v19953_v43  ;;  %v4610_v32 = vxor.u32 2147483648, %v4577_v57  ;;  %vm4616_vm10 = vcmp.lt.s32.totalorder %v4615_v47, 2  ;;  %v22395_v5 = vld [vmem:[#allocation131_spill] sm:$0xff]  ;;  %v22396_v19 = vld [vmem:[#allocation133_spill] sm:$0xff] }
 0x53c   :  { %vm4601_vm2 = vweird.f32 %v22223_v27  ;;  %vm4602_vm12 = vweird.f32 %v22245_v31  ;;  %vm4617_vm4 = vcmp.eq.s32.totalorder %v4615_v47, 0  ;;  %vm4620_vm15 = vcmp.eq.s32.totalorder %v4615_v47, 2 }
 0x53d   :  { %v4621_v21 = vxor.u32 2147483648, %v4584_v18  ;;  %v10292_v48 = vunpack.c.l.b16 %v4310_v9  ;;  %v4591_v33 = vadd.f32 1.0, %v4590_v30  ;;  %v4599_v53 = vadd.f32 1.0, %v4598_v59  ;;  %v22397_v30 = vld [vmem:[#allocation99_spill] sm:$0xff] }
 0x53e   :  { %vm9305_vm8 = vcmp.lt.s32.totalorder %v9304_v15, 2  ;;  %vm9306_vm1 = vcmp.eq.s32.totalorder %v9304_v15, 0  ;;  %vm9309_vm14 = vcmp.eq.s32.totalorder %v9304_v15, 2  ;;  %v9314_v55 = vand.u32 3, %v19925_v38 }
 0x53f   :  { %v9308_v63 = vsel %vm9306_vm1, %v19960_v12, %v4292_v16  ;;  %v9617_v43 = vand.u32 3, %v19972_v25  ;;  %v4592_v20 = vmul.f32 %v4591_v33, %v22392_v41  ;;  %v4600_v11 = vmul.f32 %v4599_v53, %v19934_v42  ;;  %v22401_v53 = vld [vmem:[#allocation74_spill] sm:$0xff]  ;;  %v22405_v41 = vld [vmem:[#allocation140_spill] sm:$0xff] }
 0x540   :  { %v9311_v36 = vsel %vm9309_vm14, %v4295_v23, %v4277_v39  ;;  %v9627_v52 = vand.u32 3, %v4570_v1  ;;  %vm9315_vm13 = vcmp.lt.s32.totalorder %v9314_v55, 2  ;;  %vm9316_vm7 = vcmp.eq.s32.totalorder %v9314_v55, 0 }
 0x541   :  { %v9312_v14 = vsel %vm9305_vm8, %v9308_v63, %v9311_v36  ;;  %vm9319_vm0 = vcmp.eq.s32.totalorder %v9314_v55, 2  ;;  %v4607_v50 = vxor.u32 2147483648, %v4592_v20  ;;  %v4611_v16 = vsel %vm4609_vm9, %v4610_v32, %v4592_v20  ;;  %v22403_v55 = vld [vmem:[#allocation135_spill] sm:$0xff] }
 0x542   :  { %v4618_v45 = vxor.u32 2147483648, %v4600_v11  ;;  %v4622_v38 = vsel %vm4620_vm15, %v4621_v21, %v4600_v11  ;;  %v9313_v25 = vsel %vm4286_vm3, nan, %v9312_v14  ;;  %v9318_v42 = vsel %vm9316_vm7, %v19974_v2, %v4303_v46 }
 0x543   :  { %v9321_v12 = vsel %vm9319_vm0, %v4306_v35, %v19982_v62  ;;  %vm9618_vm8 = vcmp.lt.s32.totalorder %v9617_v43, 2  ;;  %v4608_v23 = vsel %vm4606_vm5, %v4577_v57, %v4607_v50  ;;  %vm9619_vm9 = vcmp.eq.s32.totalorder %v9617_v43, 0 }
 0x544   :  { %v4619_v39 = vsel %vm4617_vm4, %v4584_v18, %v4618_v45  ;;  %v9322_v1 = vsel %vm9315_vm13, %v9318_v42, %v9321_v12  ;;  %v4612_v40 = vsel %vm4605_vm11, %v4608_v23, %v4611_v16  ;;  %v9621_v3 = vsel %vm9619_vm9, %v4577_v57, %v4607_v50  ;;  %v22394_v57 = vld [vmem:[#allocation110_spill] sm:$0xff]  ;;  %v22407_v23 = vld [vmem:[#allocation93_spill] sm:$0xff] }
 0x545   :  { %v4623_v28 = vsel %vm4616_vm10, %v4619_v39, %v4622_v38  ;;  %v9323_v60 = vsel %vm4287_vm6, nan, %v9322_v1  ;;  %v4613_v46 = vsel %vm4601_vm2, nan, %v4612_v40  ;;  %vm9622_vm3 = vcmp.eq.s32.totalorder %v9617_v43, 2  ;;  %v22410_v40 = vld [vmem:[#allocation138_spill] sm:$0xff] }
 0x546   :  { %v4624_v2 = vsel %vm4602_vm12, nan, %v4623_v28  ;;  %v9324_v62 = vpack.i.bf16 %v9323_v60, %v9313_v25  ;;  %v9624_v26 = vsel %vm9622_vm3, %v4610_v32, %v4592_v20  ;;  %vm9628_vm5 = vcmp.lt.s32.totalorder %v9627_v52, 2 }
 0x547   :  { %v4625_v35 = vpack.i.bf16 %v4624_v2, %v4613_v46  ;;  %vm9629_vm4 = vcmp.eq.s32.totalorder %v9627_v52, 0  ;;  %v9625_v37 = vsel %vm9618_vm8, %v9621_v3, %v9624_v26  ;;  %vm9632_vm11 = vcmp.eq.s32.totalorder %v9627_v52, 2 }
 0x548   :  { %v9631_v61 = vsel %vm9629_vm4, %v4584_v18, %v4618_v45  ;;  %v10340_v13 = vunpack.c.l.b16 %v9324_v62  ;;  %v9626_v0 = vsel %vm4601_vm2, nan, %v9625_v37  ;;  %v9634_v44 = vsel %vm9632_vm11, %v4621_v21, %v4600_v11  ;;  %v22399_v21 = vld [vmem:[#allocation120_spill] sm:$0xff]  ;;  %v22412_v37 = vld [vmem:[#allocation85_spill] sm:$0xff] }
 0x549   :  { %v10293_v29 = vunpack.c.l.b16 %v4625_v35  ;;  %v2234_v58 = vsub.s32 4, %v22393_v34  ;;  %v9635_v9 = vsel %vm9628_vm5, %v9631_v61, %v9634_v44  ;;  %v2362_v17 = vsub.s32 4, %v22394_v57 }
 0x54a   :  { %v2367_v56 = vmul.f32 -0.001358992, %v22395_v5  ;;  %v2374_v47 = vmul.f32 -0.001358992, %v22396_v19  ;;  %v9636_v18 = vsel %vm4602_vm12, nan, %v9635_v9  ;;  %vm22398_vm6 = vcmp.lt.s32.totalorder %v22397_v30, 0 }
 0x54b   :  { %v20058_v15 = vpack.c.b16 %v10293_v29, %v10292_v48  ;;  %v2235_v27 = vsel %vm22398_vm6, %v2234_v58, %v22393_v34  ;;  %v2381_v59 = vmul.f32 -0.00019511016, %v22395_v5  ;;  %v9637_v32 = vpack.i.bf16 %v9636_v18, %v9626_v0  ;;  %v22413_v9 = vld [vmem:[#allocation86_spill] sm:$0xff] }
 0x54c   :  { %vm22400_vm10 = vnez %v22399_v21  ;;  %vm22402_vm2 = vcmp.lt.s32.totalorder %v22401_v53, 0  ;;  %v2368_v48 = vadd.f32 0.041655596, %v2367_v56  ;;  %v22404_v31 = vshll.u32 %v22403_v55, %v18620_v54  ;;  %v22418_v21 = vld [vmem:[#allocation112_spill] sm:$0xff] }
 0x54d   :  { %v20068_v33 = vsel %vm22400_vm10, 0, %v2235_v27  ;;  %v2363_v63 = vsel %vm22402_vm2, %v2362_v17, %v22394_v57  ;;  %12449 = vmatpush.bf16.xpose.msra.mxu2 %v20058_v15  ;;  %vm22406_vm12 = vnez %v22405_v41  ;;  %v2375_v11 = vadd.f32 0.041655596, %v2374_v47  ;;  %v22421_v41 = vld [vmem:[#allocation119_spill] sm:$0xff] }
 0x54e   :  { %v20077_v43 = vor.u32 %v19948_v51, %v22404_v31  ;;  %v20082_v20 = vsel %vm22406_vm12, 0, %v2363_v63  ;;  %v2382_v36 = vadd.f32 0.008332121, %v2381_v59  ;;  %v3299_v52 = vshll.u32 %v20018_v7, 23  ;;  %v22408_v7 = vld [vmem:[#allocation139_spill] sm:$0xff]  ;;  %v22417_v59 = vld [vmem:[#allocation122_spill] sm:$0xff] }
 0x54f   :  { %v10341_v14 = vunpack.c.l.b16 %v9637_v32  ;;  %v2369_v50 = vmul.f32 %v2368_v48, %v22395_v5  ;;  %v2389_v16 = vmul.f32 -0.00019511016, %v22396_v19  ;;  %v2376_v54 = vmul.f32 %v2375_v11, %v22396_v19  ;;  %v22420_v48 = vld [vmem:[#allocation118_spill] sm:$0xff] }
 0x550   :  { %v2383_v51 = vmul.f32 %v2382_v36, %v22395_v5  ;;  %v2398_v45 = vadd.s32 3, %v20068_v33  ;;  %v2409_v38 = vadd.s32 3, %v20082_v20  ;;  %v2549_v39 = vsub.s32 4, %v22407_v23 }
 0x551   :  { %v20091_v25 = vpack.c.b16 %v10341_v14, %v10340_v13  ;;  %v2370_v42 = vadd.f32 -0.4999988, %v2369_v50  ;;  %v2390_v12 = vadd.f32 0.008332121, %v2389_v16  ;;  %v22409_v1 = vand.u32 2147483647, %v22408_v7 }
 0x552   :  { %v22411_v28 = vcvt.s32.f32 %v22410_v40  ;;  %v2377_v3 = vadd.f32 -0.4999988, %v2376_v54  ;;  %v2384_v46 = vadd.f32 -0.16666654, %v2383_v51  ;;  %v2399_v2 = vand.u32 3, %v2398_v45  ;;  %v22422_v14 = vld [vmem:[#allocation113_spill] sm:$0xff] }
 0x553   :  { %12462 = vmatpush.bf16.xpose.msra.mxu3 %v20091_v25  ;;  %v2371_v62 = vmul.f32 %v2370_v42, %v22395_v5  ;;  %v2391_v35 = vmul.f32 %v2390_v12, %v22396_v19  ;;  %v2410_v26 = vand.u32 3, %v2409_v38  ;;  %v2677_v61 = vsub.s32 4, %v22412_v37  ;;  %v22424_v51 = vld [vmem:[#allocation124_spill] sm:$0xff] }
 0x554   :  { %v20098_v60 = vmul.f32 %v22411_v28, %v22409_v1  ;;  %v20104_v13 = vor.u32 4788187, %v3299_v52  ;;  %v3303_v29 = vcvt.s32.f32 %v20077_v43  ;;  %v2378_v0 = vmul.f32 %v2377_v3, %v22396_v19 }
 0x555   :  { %v2385_v44 = vmul.f32 %v2384_v46, %v22395_v5  ;;  %v20109_v34 = vadd.f32 1.0, %v2371_v62  ;;  %v2392_v58 = vadd.f32 -0.16666654, %v2391_v35  ;;  %vm2396_vm15 = vweird.f32 %v22397_v30  ;;  %v22415_v5 = vld [vmem:[#allocation95_spill] sm:$0xff] }
 0x556   :  { %vm2400_vm1 = vcmp.lt.s32.totalorder %v2399_v2, 2  ;;  %vm22414_vm14 = vcmp.lt.s32.totalorder %v22413_v9, 0  ;;  %v20115_v17 = vadd.f32 1.0, %v2378_v0  ;;  %vm2401_vm13 = vcmp.eq.s32.totalorder %v2399_v2, 0 }
 0x557   :  { %v2550_v57 = vsel %vm22414_vm14, %v2549_v39, %v22407_v23  ;;  %v2386_v56 = vadd.f32 1.0, %v2385_v44  ;;  %vm2404_vm7 = vcmp.eq.s32.totalorder %v2399_v2, 2  ;;  %v2393_v47 = vmul.f32 %v2392_v58, %v22396_v19 }
 0x558   :  { %v2405_v18 = vxor.u32 2147483648, %v20109_v34  ;;  %vm2411_vm0 = vcmp.lt.s32.totalorder %v2410_v26, 2  ;;  %vm2412_vm8 = vcmp.eq.s32.totalorder %v2410_v26, 0  ;;  %vm22416_vm9 = vcmp.lt.s32.totalorder %v22415_v5, 0 }
 0x559   :  { %v2678_v27 = vsel %vm22416_vm9, %v2677_v61, %v22412_v37  ;;  %v20123_v32 = vmul.f32 %v2386_v56, %v22417_v59  ;;  %vm2397_vm3 = vweird.f32 %v22401_v53  ;;  %vm2415_vm5 = vcmp.eq.s32.totalorder %v2410_v26, 2 }
 0x55a   :  { %vm22419_vm4 = vnez %v22418_v21  ;;  %v2682_v19 = vmul.f32 -0.001358992, %v22420_v48  ;;  %v2394_v55 = vadd.f32 1.0, %v2393_v47  ;;  %v2416_v31 = vxor.u32 2147483648, %v20115_v17 }
 0x55b   :  { %v20128_v63 = vsel %vm22419_vm4, 0, %v2550_v57  ;;  %v2689_v11 = vmul.f32 -0.001358992, %v22421_v41  ;;  %v2696_v36 = vmul.f32 -0.00019511016, %v22420_v48  ;;  %v2402_v52 = vxor.u32 2147483648, %v20123_v32 }
 0x55c   :  { %vm22423_vm11 = vnez %v22422_v14  ;;  %v2683_v16 = vadd.f32 0.041655596, %v2682_v19  ;;  %v2704_v54 = vmul.f32 -0.00019511016, %v22421_v41  ;;  %v20141_v45 = vmul.f32 %v2394_v55, %v22424_v51 }
 0x55d   :  { %v20137_v50 = vsel %vm22423_vm11, 0, %v2678_v27  ;;  %v2406_v38 = vsel %vm2404_vm7, %v2405_v18, %v20123_v32  ;;  %v2690_v42 = vadd.f32 0.041655596, %v2689_v11  ;;  %v2697_v12 = vadd.f32 0.008332121, %v2696_v36 }
 0x55e   :  { %v2403_v23 = vsel %vm2401_vm13, %v20109_v34, %v2402_v52  ;;  %v2684_v39 = vmul.f32 %v2683_v16, %v22420_v48  ;;  %v2705_v7 = vadd.f32 0.008332121, %v2704_v54  ;;  %v2713_v1 = vadd.s32 3, %v20128_v63 }
 0x55f   :  { %v2407_v40 = vsel %vm2400_vm1, %v2403_v23, %v2406_v38  ;;  %v2413_v28 = vxor.u32 2147483648, %v20141_v45  ;;  %v2417_v3 = vsel %vm2415_vm5, %v2416_v31, %v20141_v45  ;;  %v2691_v46 = vmul.f32 %v2690_v42, %v22421_v41  ;;  %v22425_v23 = vld [vmem:[#allocation115_spill] sm:$0xff] }
 0x560   :  { %v2408_v62 = vsel %vm2396_vm15, nan, %v2407_v40  ;;  %v2685_v35 = vadd.f32 -0.4999988, %v2684_v39  ;;  %v2698_v37 = vmul.f32 %v2697_v12, %v22420_v48  ;;  %v2706_v61 = vmul.f32 %v2705_v7, %v22421_v41  ;;  %v22426_v39 = vld [vmem:[#allocation116_spill] sm:$0xff] }
 0x561   :  { %v2414_v2 = vsel %vm2412_vm8, %v20115_v17, %v2413_v28  ;;  %v2692_v0 = vadd.f32 -0.4999988, %v2691_v46  ;;  %v2714_v44 = vand.u32 3, %v2713_v1  ;;  %v2724_v58 = vadd.s32 3, %v20137_v50 }
 0x562   :  { %v2418_v57 = vsel %vm2411_vm0, %v2414_v2, %v2417_v3  ;;  %v2686_v56 = vmul.f32 %v2685_v35, %v22420_v48  ;;  %v2699_v47 = vadd.f32 -0.16666654, %v2698_v37  ;;  %v2707_v27 = vadd.f32 -0.16666654, %v2706_v61 }
 0x563   :  { %v3301_v59 = vand.u32 2147483647, %v20104_v13  ;;  %v2419_v21 = vsel %vm2397_vm3, nan, %v2418_v57  ;;  %v2693_v19 = vmul.f32 %v2692_v0, %v22421_v41  ;;  %vm2716_vm6 = vcmp.eq.s32.totalorder %v2714_v44, 0 }
 0x564   :  { %v2420_v55 = vpack.i.bf16 %v2419_v21, %v2408_v62  ;;  %v2687_v11 = vadd.f32 1.0, %v2686_v56  ;;  %v2700_v36 = vmul.f32 %v2699_v47, %v22420_v48  ;;  %v2708_v14 = vmul.f32 %v2707_v27, %v22421_v41  ;;  %v22427_v27 = vld [vmem:[#allocation82_spill] sm:$0xff] }
 0x565   :  { %vm2715_vm10 = vcmp.lt.s32.totalorder %v2714_v44, 2  ;;  %v2694_v26 = vadd.f32 1.0, %v2693_v19  ;;  %vm2711_vm2 = vweird.f32 %v22413_v9  ;;  %vm2712_vm12 = vweird.f32 %v22415_v5  ;;  %v22428_v19 = vld [vmem:[#allocation121_spill] sm:$0xff] }
 0x566   :  { %vm2719_vm1 = vcmp.eq.s32.totalorder %v2714_v44, 2  ;;  %v2725_v16 = vand.u32 3, %v2724_v58  ;;  %v7426_v54 = vand.u32 3, %v20068_v33  ;;  %v2701_v51 = vadd.f32 1.0, %v2700_v36 }
 0x567   :  { %v2709_v38 = vadd.f32 1.0, %v2708_v14  ;;  %v2720_v42 = vxor.u32 2147483648, %v2687_v11  ;;  %v10286_v12 = vunpack.c.l.b16 %v2420_v55  ;;  %v2731_v48 = vxor.u32 2147483648, %v2694_v26 }
 0x568   :  { %vm2726_vm14 = vcmp.lt.s32.totalorder %v2725_v16, 2  ;;  %vm2727_vm13 = vcmp.eq.s32.totalorder %v2725_v16, 0  ;;  %vm2730_vm7 = vcmp.eq.s32.totalorder %v2725_v16, 2  ;;  %v2702_v41 = vmul.f32 %v2701_v51, %v22425_v23  ;;  %v22433_v23 = vld [vmem:[#allocation137_spill] sm:$0xff] }
 0x569   :  { %v2710_v7 = vmul.f32 %v2709_v38, %v22426_v39  ;;  %vm7427_vm0 = vcmp.lt.s32.totalorder %v7426_v54, 2  ;;  %vm7428_vm8 = vcmp.eq.s32.totalorder %v7426_v54, 0  ;;  %vm7431_vm9 = vcmp.eq.s32.totalorder %v7426_v54, 2  ;;  %v22431_v38 = vld [vmem:[#allocation106_spill] sm:$0xff] }
 0x56a   :  { %v7430_v1 = vsel %vm7428_vm8, %v20109_v34, %v2402_v52  ;;  %v7436_v40 = vand.u32 3, %v20082_v20  ;;  %v7739_v33 = vand.u32 3, %v20128_v63  ;;  %v2717_v3 = vxor.u32 2147483648, %v2702_v41 }
 0x56b   :  { %v2721_v46 = vsel %vm2719_vm1, %v2720_v42, %v2702_v41  ;;  %v2728_v62 = vxor.u32 2147483648, %v2710_v7  ;;  %v2732_v35 = vsel %vm2730_vm7, %v2731_v48, %v2710_v7  ;;  %v7433_v37 = vsel %vm7431_vm9, %v2405_v18, %v20123_v32 }
 0x56c   :  { %vm7437_vm5 = vcmp.lt.s32.totalorder %v7436_v40, 2  ;;  %vm7438_vm4 = vcmp.eq.s32.totalorder %v7436_v40, 0  ;;  %vm7441_vm11 = vcmp.eq.s32.totalorder %v7436_v40, 2  ;;  %v2718_v61 = vsel %vm2716_vm6, %v2687_v11, %v2717_v3 }
 0x56d   :  { %v2729_v52 = vsel %vm2727_vm13, %v2694_v26, %v2728_v62  ;;  %v7434_v20 = vsel %vm7427_vm0, %v7430_v1, %v7433_v37  ;;  %v7440_v63 = vsel %vm7438_vm4, %v20115_v17, %v2413_v28  ;;  %v2722_v2 = vsel %vm2715_vm10, %v2718_v61, %v2721_v46 }
 0x56e   :  { %v2733_v0 = vsel %vm2726_vm14, %v2729_v52, %v2732_v35  ;;  %v7435_v58 = vsel %vm2396_vm15, nan, %v7434_v20  ;;  %v7443_v34 = vsel %vm7441_vm11, %v2416_v31, %v20141_v45  ;;  %v2723_v18 = vsel %vm2711_vm2, nan, %v2722_v2  ;;  %v22439_v2 = vld [vmem:[#allocation108_spill] sm:$0xff] }
 0x56f   :  { %v2734_v32 = vsel %vm2712_vm12, nan, %v2733_v0  ;;  %v7444_v57 = vsel %vm7437_vm5, %v7440_v63, %v7443_v34  ;;  %vm7740_vm6 = vcmp.lt.s32.totalorder %v7739_v33, 2  ;;  %vm7741_vm10 = vcmp.eq.s32.totalorder %v7739_v33, 0 }
 0x570   :  { %v2735_v28 = vpack.i.bf16 %v2734_v32, %v2723_v18  ;;  %v7445_v44 = vsel %vm2397_vm3, nan, %v7444_v57  ;;  %vm7744_vm1 = vcmp.eq.s32.totalorder %v7739_v33, 2  ;;  %v7743_v56 = vsel %vm7741_vm10, %v2687_v11, %v2717_v3 }
 0x571   :  { %v7446_v30 = vpack.i.bf16 %v7445_v44, %v7435_v58  ;;  %v7746_v47 = vsel %vm7744_vm1, %v2720_v42, %v2702_v41  ;;  %v7749_v17 = vand.u32 3, %v20137_v50  ;;  %v3494_v21 = vsub.s32 4, %v22427_v27  ;;  %v22429_v50 = vld [vmem:[#allocation103_spill] sm:$0xff]  ;;  %v22436_v41 = vld [vmem:[#allocation142_spill] sm:$0xff] }
 0x572   :  { %v10287_v31 = vunpack.c.l.b16 %v2735_v28  ;;  %v7747_v45 = vsel %vm7740_vm6, %v7743_v56, %v7746_v47  ;;  %v3622_v55 = vsub.s32 4, %v22428_v19  ;;  %vm22430_vm3 = vcmp.lt.s32.totalorder %v22429_v50, 0  ;;  %v22440_v28 = vld [vmem:[#allocation36_spill] sm:$0xff] }
 0x573   :  { %v7748_v36 = vsel %vm2711_vm2, nan, %v7747_v45  ;;  %vm7750_vm15 = vcmp.lt.s32.totalorder %v7749_v17, 2  ;;  %vm7751_vm14 = vcmp.eq.s32.totalorder %v7749_v17, 0  ;;  %vm7754_vm13 = vcmp.eq.s32.totalorder %v7749_v17, 2  ;;  %v22441_v45 = vld [vmem:[#allocation42_spill] sm:$0xff] }
 0x574   :  { %v20207_v53 = vpack.c.b16 %v10287_v31, %v10286_v12  ;;  %v7753_v14 = vsel %vm7751_vm14, %v2694_v26, %v2728_v62  ;;  %v7756_v16 = vsel %vm7754_vm13, %v2731_v48, %v2710_v7  ;;  %v10334_v11 = vunpack.c.l.b16 %v7446_v30  ;;  %v22434_v26 = vld [vmem:[#allocation141_spill] sm:$0xff]  ;;  %v22438_v7 = vld [vmem:[#allocation126_spill] sm:$0xff] }
 0x575   :  { %v7757_v54 = vsel %vm7750_vm15, %v7753_v14, %v7756_v16  ;;  %v3495_v51 = vsel %vm22430_vm3, %v3494_v21, %v22427_v27  ;;  %vm22432_vm7 = vcmp.lt.s32.totalorder %v22431_v38, 0  ;;  %v3627_v9 = vmul.f32 -0.001358992, %v22433_v23  ;;  %v22442_v27 = vld [vmem:[#allocation54_spill] sm:$0xff] }
 0x576   :  { %v3623_v42 = vsel %vm22432_vm7, %v3622_v55, %v22428_v19  ;;  %10837 = vmatmul.bf16.gmra.mxu0 %v20207_v53  ;;  %v7758_v12 = vsel %vm2712_vm12, nan, %v7757_v54  ;;  %10935 = vmatmul.bf16.gmra.mxu2 %v20207_v53  ;;  %vm22435_vm2 = vnez %v22434_v26  ;;  %vm22437_vm0 = vnez %v22436_v41  ;;  %v22443_v16 = vld [vmem:[#allocation22_spill] sm:$0xff]  ;;  %v22447_v41 = vld [vmem:[#allocation55_spill] sm:$0xff] }
 0x577   :  { %v20222_v48 = vsel %vm22435_vm2, 0, %v3495_v51  ;;  %v20226_v39 = vsel %vm22437_vm0, 0, %v3623_v42  ;;  %v3634_v1 = vmul.f32 -0.001358992, %v22438_v7  ;;  %v7759_v40 = vpack.i.bf16 %v7758_v12, %v7748_v36 }
 0x578   :  { %v3628_v33 = vadd.f32 0.041655596, %v3627_v9  ;;  %v3641_v3 = vmul.f32 -0.00019511016, %v22433_v23  ;;  %v3649_v46 = vmul.f32 -0.00019511016, %v22438_v7  ;;  %v20236_v62 = vmul.f32 %v3303_v29, %v3301_v59 }
 0x579   :  { %v3177_v5 = vxor.u32 2147483648, %v20098_v60  ;;  %v3635_v35 = vadd.f32 0.041655596, %v3634_v1  ;;  %v3658_v37 = vadd.s32 3, %v20222_v48  ;;  %v10335_v61 = vunpack.c.l.b16 %v7759_v40  ;;  %v22448_v1 = vld [vmem:[#allocation100_spill] sm:$0xff]  ;;  %v22449_v40 = vld [vmem:[#allocation143_spill] sm:$0xff] }
 0x57a   :  { %v3629_v52 = vmul.f32 %v3628_v33, %v22433_v23  ;;  %v3642_v20 = vadd.f32 0.008332121, %v3641_v3  ;;  %v3650_v63 = vadd.f32 0.008332121, %v3649_v46  ;;  %vm21686_vm12 = vcmp.lt.s32.totalorder %v22439_v2, 0  ;;  %v22450_v3 = vld [vmem:[#allocation144_spill] sm:$0xff] }
 0x57b   :  { %v3636_v0 = vmul.f32 %v3635_v35, %v22438_v7  ;;  %v3659_v58 = vand.u32 3, %v3658_v37  ;;  %v3669_v34 = vadd.s32 3, %v20226_v39  ;;  %v20243_v13 = vpack.c.b16 %v10335_v61, %v10334_v11  ;;  %v22451_v37 = vld [vmem:[#allocation57_spill] sm:$0xff] }
 0x57c   :  { %v3630_v43 = vadd.f32 -0.4999988, %v3629_v52  ;;  %v3643_v29 = vmul.f32 %v3642_v20, %v22433_v23  ;;  %v3651_v59 = vmul.f32 %v3650_v63, %v22438_v7  ;;  %v20250_v18 = vsel %vm21686_vm12, %v3177_v5, %v20098_v60  ;;  %v22453_v52 = vld [vmem:[#allocation58_spill] sm:$0xff] }
 0x57d   :  { %v3305_v32 = vxor.u32 2147483648, %v20236_v62  ;;  %v3637_v57 = vadd.f32 -0.4999988, %v3636_v0  ;;  %v3809_v44 = vsub.s32 4, %v22440_v28  ;;  %10886 = vmatmul.bf16.gmra.mxu1 %v20243_v13  ;;  %10984 = vmatmul.bf16.gmra.mxu3 %v20243_v13  ;;  %v3670_v17 = vand.u32 3, %v3669_v34 }
 0x57e   :  { %v3631_v30 = vmul.f32 %v3630_v43, %v22433_v23  ;;  %v3644_v56 = vadd.f32 -0.16666654, %v3643_v29  ;;  %v3652_v47 = vadd.f32 -0.16666654, %v3651_v59  ;;  %vm3661_vm8 = vcmp.eq.s32.totalorder %v3659_v58, 0 }
 0x57f   :  { %v3638_v31 = vmul.f32 %v3637_v57, %v22438_v7  ;;  %v3937_v60 = vsub.s32 4, %v22441_v45  ;;  %v3942_v21 = vmul.f32 -0.001358992, %v22442_v27  ;;  %vm3660_vm9 = vcmp.lt.s32.totalorder %v3659_v58, 2 }
 0x580   :  { %v20260_v19 = vadd.f32 1.0, %v3631_v30  ;;  %v3645_v55 = vmul.f32 %v3644_v56, %v22433_v23  ;;  %v3653_v36 = vmul.f32 %v3652_v47, %v22438_v7  ;;  %vm3664_vm5 = vcmp.eq.s32.totalorder %v3659_v58, 2  ;;  %v22445_v23 = vld [vmem:[#allocation24_spill] sm:$0xff] }
 0x581   :  { %v20264_v14 = vadd.f32 1.0, %v3638_v31  ;;  %vm3656_vm4 = vweird.f32 %v22429_v50  ;;  %vm3657_vm11 = vweird.f32 %v22431_v38  ;;  %vm3671_vm6 = vcmp.lt.s32.totalorder %v3670_v17, 2 }
 0x582   :  { %vm3672_vm10 = vcmp.eq.s32.totalorder %v3670_v17, 0  ;;  %vm22444_vm1 = vcmp.lt.s32.totalorder %v22443_v16, 0  ;;  %v3646_v54 = vadd.f32 1.0, %v3645_v55  ;;  %v3654_v51 = vadd.f32 1.0, %v3653_v36 }
 0x583   :  { %v3810_v11 = vsel %vm22444_vm1, %v3809_v44, %v22440_v28  ;;  %v3665_v42 = vxor.u32 2147483648, %v20260_v19  ;;  %vm22446_vm15 = vcmp.lt.s32.totalorder %v22445_v23, 0  ;;  %vm3675_vm14 = vcmp.eq.s32.totalorder %v3670_v17, 2 }
 0x584   :  { %v3938_v9 = vsel %vm22446_vm15, %v3937_v60, %v22441_v45  ;;  %v3676_v12 = vxor.u32 2147483648, %v20264_v14  ;;  %v3943_v26 = vadd.f32 0.041655596, %v3942_v21  ;;  %v3949_v7 = vmul.f32 -0.001358992, %v22447_v41 }
 0x585   :  { %vm21685_vm13 = vcmp.lt.s32.totalorder %v22448_v1, 0  ;;  %v3647_v33 = vmul.f32 %v3646_v54, %v22449_v40  ;;  %v20280_v46 = vmul.f32 %v3654_v51, %v22450_v3  ;;  %v3956_v5 = vmul.f32 -0.00019511016, %v22442_v27 }
 0x586   :  { %v3964_v35 = vmul.f32 -0.00019511016, %v22447_v41  ;;  %vm22452_vm3 = vnez %v22451_v37  ;;  %vm22454_vm7 = vnez %v22453_v52  ;;  %v3944_v63 = vmul.f32 %v3943_v26, %v22442_v27 }
 0x587   :  { %v3812_v61 = vsel %vm22452_vm3, 0, %v3810_v11  ;;  %v3940_v20 = vsel %vm22454_vm7, 0, %v3938_v9  ;;  %v3950_v0 = vadd.f32 0.041655596, %v3949_v7  ;;  %v3662_v34 = vxor.u32 2147483648, %v3647_v33 }
 0x588   :  { %v3666_v43 = vsel %vm3664_vm5, %v3665_v42, %v3647_v33  ;;  %v3673_v29 = vxor.u32 2147483648, %v20280_v46  ;;  %v3677_v59 = vsel %vm3675_vm14, %v3676_v12, %v20280_v46  ;;  %v3945_v57 = vadd.f32 -0.4999988, %v3944_v63 }
 0x589   :  { %v3951_v28 = vmul.f32 %v3950_v0, %v22447_v41  ;;  %v3957_v44 = vadd.f32 0.008332121, %v3956_v5  ;;  %v3965_v30 = vadd.f32 0.008332121, %v3964_v35  ;;  %v3663_v56 = vsel %vm3661_vm8, %v20260_v19, %v3662_v34 }
 0x58a   :  { %v3674_v47 = vsel %vm3672_vm10, %v20264_v14, %v3673_v29  ;;  %v3973_v31 = vadd.s32 3, %v3812_v61  ;;  %v3984_v45 = vadd.s32 3, %v3940_v20  ;;  %v3667_v60 = vsel %vm3660_vm9, %v3663_v56, %v3666_v43 }
 0x58b   :  { %v3678_v21 = vsel %vm3671_vm6, %v3674_v47, %v3677_v59  ;;  %v3946_v55 = vmul.f32 %v3945_v57, %v22442_v27  ;;  %v3952_v36 = vadd.f32 -0.4999988, %v3951_v28  ;;  %v3668_v11 = vsel %vm3656_vm4, nan, %v3667_v60  ;;  %v22455_v28 = vld [vmem:[#allocation52_spill] sm:$0xff] }
 0x58c   :  { %v3679_v54 = vsel %vm3657_vm11, nan, %v3678_v21  ;;  %v3958_v51 = vmul.f32 %v3957_v44, %v22442_v27  ;;  %v3966_v9 = vmul.f32 %v3965_v30, %v22447_v41  ;;  %v3974_v17 = vand.u32 3, %v3973_v31  ;;  %v22456_v30 = vld [vmem:[#allocation47_spill] sm:$0xff] }
 0x58d   :  { %v3680_v26 = vpack.i.bf16 %v3679_v54, %v3668_v11  ;;  %v20313_v7 = vadd.f32 1.0, %v3946_v55  ;;  %v3953_v58 = vmul.f32 %v3952_v36, %v22447_v41  ;;  %v3985_v5 = vand.u32 3, %v3984_v45 }
 0x58e   :  { %v3959_v40 = vadd.f32 -0.16666654, %v3958_v51  ;;  %v3967_v3 = vadd.f32 -0.16666654, %v3966_v9  ;;  %v8678_v35 = vand.u32 3, %v20222_v48  ;;  %v20322_v37 = vsel %vm21685_vm13, %v3305_v32, %v20236_v62 }
 0x58f   :  { %v20324_v52 = vadd.f32 1.0, %v3953_v58  ;;  %vm3976_vm2 = vcmp.eq.s32.totalorder %v3974_v17, 0  ;;  %vm3979_vm0 = vcmp.eq.s32.totalorder %v3974_v17, 2  ;;  %vm3975_vm8 = vcmp.lt.s32.totalorder %v3974_v17, 2 }
 0x590   :  { %v3960_v63 = vmul.f32 %v3959_v40, %v22442_v27  ;;  %v3968_v0 = vmul.f32 %v3967_v3, %v22447_v41  ;;  %v3980_v43 = vxor.u32 2147483648, %v20313_v7  ;;  %vm3986_vm9 = vcmp.lt.s32.totalorder %v3985_v5, 2 }
 0x591   :  { %vm3971_vm5 = vweird.f32 %v22443_v16  ;;  %vm3972_vm6 = vweird.f32 %v22445_v23  ;;  %vm3987_vm10 = vcmp.eq.s32.totalorder %v3985_v5, 0  ;;  %vm3990_vm1 = vcmp.eq.s32.totalorder %v3985_v5, 2 }
 0x592   :  { %v3991_v48 = vxor.u32 2147483648, %v20324_v52  ;;  %v10290_v62 = vunpack.c.l.b16 %v3680_v26  ;;  %v3961_v32 = vadd.f32 1.0, %v3960_v63  ;;  %v3969_v59 = vadd.f32 1.0, %v3968_v0  ;;  %v22463_v63 = vld [vmem:[#allocation26_spill] sm:$0xff] }
 0x593   :  { %vm8679_vm15 = vcmp.lt.s32.totalorder %v8678_v35, 2  ;;  %vm8680_vm14 = vcmp.eq.s32.totalorder %v8678_v35, 0  ;;  %vm8683_vm3 = vcmp.eq.s32.totalorder %v8678_v35, 2  ;;  %v8688_v41 = vand.u32 3, %v20226_v39 }
 0x594   :  { %v8682_v27 = vsel %vm8680_vm14, %v20260_v19, %v3662_v34  ;;  %v8991_v57 = vand.u32 3, %v3812_v61  ;;  %v3962_v44 = vmul.f32 %v3961_v32, %v22455_v28  ;;  %v3970_v56 = vmul.f32 %v3969_v59, %v22456_v30  ;;  %v22464_v59 = vld [vmem:[#allocation31_spill] sm:$0xff]  ;;  %v22467_v30 = vld [vmem:[#allocation18_spill] sm:$0xff] }
 0x595   :  { %v8685_v47 = vsel %vm8683_vm3, %v3665_v42, %v3647_v33  ;;  %v9001_v31 = vand.u32 3, %v3940_v20  ;;  %vm8689_vm7 = vcmp.lt.s32.totalorder %v8688_v41, 2  ;;  %vm8690_vm13 = vcmp.eq.s32.totalorder %v8688_v41, 0  ;;  %v22466_v28 = vld [vmem:[#allocation51_spill] sm:$0xff] }
 0x596   :  { %v8686_v45 = vsel %vm8679_vm15, %v8682_v27, %v8685_v47  ;;  %vm8693_vm12 = vcmp.eq.s32.totalorder %v8688_v41, 2  ;;  %v3977_v60 = vxor.u32 2147483648, %v3962_v44  ;;  %v3981_v21 = vsel %vm3979_vm0, %v3980_v43, %v3962_v44  ;;  %v22465_v41 = vld [vmem:[#allocation40_spill] sm:$0xff]  ;;  %v22469_v47 = vld [vmem:[#allocation61_spill] sm:$0xff] }
 0x597   :  { %v3988_v34 = vxor.u32 2147483648, %v3970_v56  ;;  %v3992_v55 = vsel %vm3990_vm1, %v3991_v48, %v3970_v56  ;;  %v8687_v39 = vsel %vm3656_vm4, nan, %v8686_v45  ;;  %v8692_v61 = vsel %vm8690_vm13, %v20264_v14, %v3673_v29  ;;  %v22471_v45 = vld [vmem:[#allocation20_spill] sm:$0xff] }
 0x598   :  { %v8695_v19 = vsel %vm8693_vm12, %v3676_v12, %v20280_v46  ;;  %vm8992_vm15 = vcmp.lt.s32.totalorder %v8991_v57, 2  ;;  %v22457_v42 = vand.u32 2147483647, %v22439_v2  ;;  %v3978_v20 = vsel %vm3976_vm2, %v20313_v7, %v3977_v60 }
 0x599   :  { %v3989_v50 = vsel %vm3987_vm10, %v20324_v52, %v3988_v34  ;;  %v8696_v36 = vsel %vm8689_vm7, %v8692_v61, %v8695_v19  ;;  %vm8993_vm4 = vcmp.eq.s32.totalorder %v8991_v57, 0  ;;  %v22460_v29 = vand.u32 2147483647, %v22448_v1 }
 0x59a   :  { %vm20350_vm14 = vcmp.le.f32.partialorder %v22457_v42, 0.7853982  ;;  %v3982_v12 = vsel %vm3975_vm8, %v3978_v20, %v3981_v21  ;;  %v3993_v46 = vsel %vm3986_vm9, %v3989_v50, %v3992_v55  ;;  %v8697_v11 = vsel %vm3657_vm11, nan, %v8696_v36  ;;  %v22473_v21 = vld [vmem:[#allocation56_spill] sm:$0xff] }
 0x59b   :  { %vm20360_vm13 = vcmp.le.f32.partialorder %v22460_v29, 0.7853982  ;;  %v8995_v54 = vsel %vm8993_vm4, %v20313_v7, %v3977_v60  ;;  %v3983_v51 = vsel %vm3971_vm5, nan, %v3982_v12  ;;  %v3994_v9 = vsel %vm3972_vm6, nan, %v3993_v46 }
 0x59c   :  { %v8698_v26 = vpack.i.bf16 %v8697_v11, %v8687_v39  ;;  %vm8996_vm12 = vcmp.eq.s32.totalorder %v8991_v57, 2  ;;  %v3995_v58 = vpack.i.bf16 %v3994_v9, %v3983_v51  ;;  %vm9002_vm2 = vcmp.lt.s32.totalorder %v9001_v31, 2 }
 0x59d   :  { %v8998_v40 = vsel %vm8996_vm12, %v3980_v43, %v3962_v44  ;;  %vm9003_vm0 = vcmp.eq.s32.totalorder %v9001_v31, 0  ;;  %vm9006_vm8 = vcmp.eq.s32.totalorder %v9001_v31, 2  ;;  %v2864_v0 = vsub.s32 4, %v22463_v63 }
 0x59e   :  { %v8999_v17 = vsel %vm8992_vm15, %v8995_v54, %v8998_v40  ;;  %v9005_v3 = vsel %vm9003_vm0, %v20324_v52, %v3988_v34  ;;  %v10338_v38 = vunpack.c.l.b16 %v8698_v26  ;;  %v10291_v5 = vunpack.c.l.b16 %v3995_v58  ;;  %v22475_v54 = vld [vmem:[#allocation127_spill] sm:$0xff] }
 0x59f   :  { %v9000_v7 = vsel %vm3971_vm5, nan, %v8999_v17  ;;  %v9008_v35 = vsel %vm9006_vm8, %v3991_v48, %v3970_v56  ;;  %v2992_v27 = vsub.s32 4, %v22464_v59  ;;  %v2997_v43 = vmul.f32 -0.001358992, %v22465_v41 }
 0x5a0   :  { %v9009_v32 = vsel %vm9002_vm2, %v9005_v3, %v9008_v35  ;;  %v3004_v44 = vmul.f32 -0.001358992, %v22466_v28  ;;  %v20381_v57 = vpack.c.b16 %v10291_v5, %v10290_v62  ;;  %vm22468_vm11 = vcmp.lt.s32.totalorder %v22467_v30, 0  ;;  %v22476_v3 = vld [vmem:[#allocation132_spill] sm:$0xff] }
 0x5a1   :  { %v9010_v52 = vsel %vm3972_vm6, nan, %v9009_v32  ;;  %v2865_v16 = vsel %vm22468_vm11, %v2864_v0, %v22463_v63  ;;  %v3011_v48 = vmul.f32 -0.00019511016, %v22465_v41  ;;  %vm22470_vm9 = vnez %v22469_v47 }
 0x5a2   :  { %v9011_v56 = vpack.i.bf16 %v9010_v52, %v9000_v7  ;;  %v20391_v31 = vsel %vm22470_vm9, 0, %v2865_v16  ;;  %vm22472_vm5 = vcmp.lt.s32.totalorder %v22471_v45, 0  ;;  %v2998_v62 = vadd.f32 0.041655596, %v2997_v43  ;;  %12450 = vmatpush.bf16.xpose.msra.mxu2 %v20381_v57  ;;  %v22479_v16 = vld [vmem:[#allocation28_spill] sm:$0xff] }
 0x5a3   :  { %v2993_v60 = vsel %vm22472_vm5, %v2992_v27, %v22464_v59  ;;  %v20400_v23 = vsel %vm20350_vm14, %v22439_v2, %v20250_v18  ;;  %vm22474_vm6 = vnez %v22473_v21  ;;  %v3005_v55 = vadd.f32 0.041655596, %v3004_v44 }
 0x5a4   :  { %v20405_v34 = vsel %vm22474_vm6, 0, %v2993_v60  ;;  %v3012_v39 = vadd.f32 0.008332121, %v3011_v48  ;;  %v20411_v61 = vsel %vm20360_vm13, %v22448_v1, %v20322_v37  ;;  %v10339_v19 = vunpack.c.l.b16 %v9011_v56 }
 0x5a5   :  { %v2999_v42 = vmul.f32 %v2998_v62, %v22465_v41  ;;  %v3019_v18 = vmul.f32 -0.00019511016, %v22466_v28  ;;  %v3006_v20 = vmul.f32 %v3005_v55, %v22466_v28  ;;  %v3028_v36 = vadd.s32 3, %v20391_v31 }
 0x5a6   :  { %v3013_v50 = vmul.f32 %v3012_v39, %v22465_v41  ;;  %v3039_v29 = vadd.s32 3, %v20405_v34  ;;  %v20419_v12 = vpack.c.b16 %v10339_v19, %v10338_v38  ;;  %v3179_v37 = vsub.s32 4, %v22475_v54 }
 0x5a7   :  { %v3000_v46 = vadd.f32 -0.4999988, %v2999_v42  ;;  %v3020_v11 = vadd.f32 0.008332121, %v3019_v18  ;;  %v3007_v51 = vadd.f32 -0.4999988, %v3006_v20  ;;  %v3311_v38 = vmul.f32 %v20400_v23, %v20400_v23 }
 0x5a8   :  { %v3014_v9 = vadd.f32 -0.16666654, %v3013_v50  ;;  %v3029_v26 = vand.u32 3, %v3028_v36  ;;  %12463 = vmatpush.bf16.xpose.msra.mxu3 %v20419_v12  ;;  %v3040_v17 = vand.u32 3, %v3039_v29  ;;  %v3307_v5 = vsub.s32 4, %v22476_v3  ;;  %v22480_v18 = vld [vmem:[#allocation41_spill] sm:$0xff] }
 0x5a9   :  { %v3001_v58 = vmul.f32 %v3000_v46, %v22465_v41  ;;  %v3021_v40 = vmul.f32 %v3020_v11, %v22466_v28  ;;  %v3318_v7 = vmul.f32 %v20411_v61, %v20411_v61  ;;  %v3008_v35 = vmul.f32 %v3007_v51, %v22466_v28 }
 0x5aa   :  { %v3015_v63 = vmul.f32 %v3014_v9, %v22465_v41  ;;  %vm3030_vm10 = vcmp.lt.s32.totalorder %v3029_v26, 2  ;;  %vm22477_vm1 = vcmp.lt.s32.totalorder %v22439_v2, 0  ;;  %vm3031_vm3 = vcmp.eq.s32.totalorder %v3029_v26, 0  ;;  %v20471_v9 = vld [vmem:[#allocation3] sm:$0x3] }
 0x5ab   :  { %v20432_v0 = vadd.f32 1.0, %v3001_v58  ;;  %v3022_v32 = vadd.f32 -0.16666654, %v3021_v40  ;;  %v3180_v59 = vsel %vm22477_vm1, %v3179_v37, %v22475_v54  ;;  %v20437_v27 = vadd.f32 1.0, %v3008_v35 }
 0x5ac   :  { %v3016_v43 = vadd.f32 1.0, %v3015_v63  ;;  %vm3034_vm7 = vcmp.eq.s32.totalorder %v3029_v26, 2  ;;  %vm3041_vm15 = vcmp.lt.s32.totalorder %v3040_v17, 2  ;;  %vm22478_vm4 = vcmp.lt.s32.totalorder %v22448_v1, 0 }
 0x5ad   :  { %v3023_v44 = vmul.f32 %v3022_v32, %v22466_v28  ;;  %v3035_v52 = vxor.u32 2147483648, %v20432_v0  ;;  %v3308_v41 = vsel %vm22478_vm4, %v3307_v5, %v22476_v3  ;;  %vm3026_vm12 = vweird.f32 %v22467_v30 }
 0x5ae   :  { %v20445_v48 = vmul.f32 %v3016_v43, %v22479_v16  ;;  %vm3027_vm2 = vweird.f32 %v22471_v45  ;;  %vm3042_vm0 = vcmp.eq.s32.totalorder %v3040_v17, 0  ;;  %v20451_v56 = vsel %vm20350_vm14, 0, %v3180_v59 }
 0x5af   :  { %v3312_v28 = vmul.f32 -0.001358992, %v3311_v38  ;;  %v3024_v47 = vadd.f32 1.0, %v3023_v44  ;;  %v3046_v60 = vxor.u32 2147483648, %v20437_v27  ;;  %v3319_v62 = vmul.f32 -0.001358992, %v3318_v7 }
 0x5b0   :  { %v3326_v21 = vmul.f32 -0.00019511016, %v3311_v38  ;;  %v3032_v55 = vxor.u32 2147483648, %v20445_v48  ;;  %v20457_v39 = vsel %vm20360_vm13, 0, %v3308_v41  ;;  %v3334_v42 = vmul.f32 -0.00019511016, %v3318_v7 }
 0x5b1   :  { %v3313_v19 = vadd.f32 0.041655596, %v3312_v28  ;;  %v20460_v20 = vmul.f32 %v3024_v47, %v22480_v18  ;;  %v3036_v33 = vsel %vm3034_vm7, %v3035_v52, %v20445_v48  ;;  %v3320_v50 = vadd.f32 0.041655596, %v3319_v62 }
 0x5b2   :  { %v3327_v36 = vadd.f32 0.008332121, %v3326_v21  ;;  %v3033_v29 = vsel %vm3031_vm3, %v20432_v0, %v3032_v55  ;;  %v3335_v11 = vadd.f32 0.008332121, %v3334_v42  ;;  %v3343_v14 = vadd.s32 3, %v20451_v56 }
 0x5b3   :  { %v3314_v46 = vmul.f32 %v3313_v19, %v3311_v38  ;;  %v3037_v54 = vsel %vm3030_vm10, %v3033_v29, %v3036_v33  ;;  %v3043_v37 = vxor.u32 2147483648, %v20460_v20  ;;  %vm3045_vm14 = vcmp.eq.s32.totalorder %v3040_v17, 2 }
 0x5b4   :  { %v3321_v51 = vmul.f32 %v3320_v50, %v3318_v7  ;;  %v3047_v58 = vsel %vm3045_vm14, %v3046_v60, %v20460_v20  ;;  %v3328_v3 = vmul.f32 %v3327_v36, %v3311_v38  ;;  %v3336_v5 = vmul.f32 %v3335_v11, %v3318_v7 }
 0x5b5   :  { %v3315_v40 = vadd.f32 -0.4999988, %v3314_v46  ;;  %v3044_v35 = vsel %vm3042_vm0, %v20437_v27, %v3043_v37  ;;  %v3344_v32 = vand.u32 3, %v3343_v14  ;;  %v3354_v26 = vadd.s32 3, %v20457_v39 }
 0x5b6   :  { %v3322_v63 = vadd.f32 -0.4999988, %v3321_v51  ;;  %v3048_v59 = vsel %vm3041_vm15, %v3044_v35, %v3047_v58  ;;  %v3329_v44 = vadd.f32 -0.16666654, %v3328_v3  ;;  %v3337_v41 = vadd.f32 -0.16666654, %v3336_v5 }
 0x5b7   :  { %v3316_v43 = vmul.f32 %v3315_v40, %v3311_v38  ;;  %v10394_v16 = vperm.slane %v20471_v9, 0  ;;  %v3038_v28 = vsel %vm3026_vm12, nan, %v3037_v54  ;;  %v3049_v47 = vsel %vm3027_vm2, nan, %v3048_v59 }
 0x5b8   :  { %v3323_v62 = vmul.f32 %v3322_v63, %v3318_v7  ;;  %v10395_v21 = vperm.slane %v20471_v9, 1  ;;  %v3330_v42 = vmul.f32 %v3329_v44, %v3311_v38  ;;  %v3338_v18 = vmul.f32 %v3337_v41, %v3318_v7  ;;  %v10402_v9 = vpop.permute.xlu1 %10401 }
 0x5b9   :  { %v3317_v19 = vadd.f32 1.0, %v3316_v43  ;;  %vm3341_vm13 = vweird.f32 %v22439_v2  ;;  %vm3342_vm8 = vweird.f32 %v22448_v1  ;;  %vm3345_vm11 = vcmp.lt.s32.totalorder %v3344_v32, 2 }
 0x5ba   :  { %v3324_v33 = vadd.f32 1.0, %v3323_v62  ;;  %v3355_v17 = vand.u32 3, %v3354_v26  ;;  %v8052_v50 = vand.u32 3, %v20391_v31  ;;  %v3050_v36 = vpack.i.bf16 %v3049_v47, %v3038_v28 }
 0x5bb   :  { %v3331_v29 = vadd.f32 1.0, %v3330_v42  ;;  %v3339_v46 = vadd.f32 1.0, %v3338_v18  ;;  %vm3346_vm9 = vcmp.eq.s32.totalorder %v3344_v32, 0  ;;  %vm3349_vm5 = vcmp.eq.s32.totalorder %v3344_v32, 2 }
 0x5bc   :  { %v3350_v11 = vxor.u32 2147483648, %v3317_v19  ;;  %vm3356_vm6 = vcmp.lt.s32.totalorder %v3355_v17, 2  ;;  %v3361_v14 = vxor.u32 2147483648, %v3324_v33  ;;  %vm3357_vm10 = vcmp.eq.s32.totalorder %v3355_v17, 0 }
 0x5bd   :  { %v3332_v38 = vmul.f32 %v3331_v29, %v20400_v23  ;;  %v3340_v7 = vmul.f32 %v3339_v46, %v20411_v61  ;;  %vm8054_vm1 = vcmp.eq.s32.totalorder %v8052_v50, 0  ;;  %vm3360_vm3 = vcmp.eq.s32.totalorder %v3355_v17, 2 }
 0x5be   :  { %vm8053_vm7 = vcmp.lt.s32.totalorder %v8052_v50, 2  ;;  %v8056_v54 = vsel %vm8054_vm1, %v20432_v0, %v3032_v55  ;;  %v8062_v31 = vand.u32 3, %v20405_v34  ;;  %vm8057_vm15 = vcmp.eq.s32.totalorder %v8052_v50, 2 }
 0x5bf   :  { %v3347_v51 = vxor.u32 2147483648, %v3332_v38  ;;  %v3358_v58 = vxor.u32 2147483648, %v3340_v7  ;;  %v8365_v40 = vand.u32 3, %v20451_v56  ;;  %v3351_v3 = vsel %vm3349_vm5, %v3350_v11, %v3332_v38 }
 0x5c0   :  { %v3362_v5 = vsel %vm3360_vm3, %v3361_v14, %v3340_v7  ;;  %v8059_v23 = vsel %vm8057_vm15, %v3035_v52, %v20445_v48  ;;  %vm8064_vm4 = vcmp.eq.s32.totalorder %v8062_v31, 0  ;;  %vm8067_vm0 = vcmp.eq.s32.totalorder %v8062_v31, 2 }
 0x5c1   :  { %v3348_v61 = vsel %vm3346_vm9, %v3317_v19, %v3347_v51  ;;  %v3359_v35 = vsel %vm3357_vm10, %v3324_v33, %v3358_v58  ;;  %v8066_v55 = vsel %vm8064_vm4, %v20437_v27, %v3043_v37  ;;  %vm8063_vm14 = vcmp.lt.s32.totalorder %v8062_v31, 2  ;;  %v10411_v31 = vpop.permute.xlu2 %10410 }
 0x5c2   :  { %v3352_v34 = vsel %vm3345_vm11, %v3348_v61, %v3351_v3  ;;  %v3363_v63 = vsel %vm3356_vm6, %v3359_v35, %v3362_v5  ;;  %v8069_v56 = vsel %vm8067_vm0, %v3046_v60, %v20460_v20  ;;  %v8060_v48 = vsel %vm8053_vm7, %v8056_v54, %v8059_v23  ;;  %v12989_v61 = vld [vmem:[#allocation6 + $0x74] sm:$0xf0] }
 0x5c3   :  { %v3353_v0 = vsel %vm3341_vm13, nan, %v3352_v34  ;;  %v3364_v52 = vsel %vm3342_vm8, nan, %v3363_v63  ;;  %v8070_v26 = vsel %vm8063_vm14, %v8066_v55, %v8069_v56  ;;  %v10288_v59 = vunpack.c.l.b16 %v3050_v36  ;;  %v10921_v55 = vpop.f32.mrf.mxu2  ;;  %v10970_v34 = vpop.f32.mrf.mxu3  ;;  %v12936_v56 = vld [vmem:[#allocation6 + $0xf0] sm:$0xf] }
 0x5c4   :  { %v3365_v37 = vpack.i.bf16 %v3364_v52, %v3353_v0  ;;  %vm8367_vm9 = vcmp.eq.s32.totalorder %v8365_v40, 0  ;;  %vm8370_vm11 = vcmp.eq.s32.totalorder %v8365_v40, 2  ;;  %vm8366_vm5 = vcmp.lt.s32.totalorder %v8365_v40, 2  ;;  %v13005_v0 = vld [vmem:[#allocation6 + $0xf4] sm:$0xf0] }
 0x5c5   :  { %v8369_v32 = vsel %vm8367_vm9, %v3317_v19, %v3347_v51  ;;  %v8372_v43 = vsel %vm8370_vm11, %v3350_v11, %v3332_v38  ;;  %v8375_v44 = vand.u32 3, %v20457_v39  ;;  %v8061_v60 = vsel %vm3026_vm12, nan, %v8060_v48 }
 0x5c6   :  { %v10289_v27 = vunpack.c.l.b16 %v3365_v37  ;;  %v8071_v20 = vsel %vm3027_vm2, nan, %v8070_v26  ;;  %v8373_v41 = vsel %vm8366_vm5, %v8369_v32, %v8372_v43  ;;  %v10398_v39 = vpack.c.bf16 %v10395_v21, %v10394_v16 }
 0x5c7   :  { %v8374_v28 = vsel %vm3341_vm13, nan, %v8373_v41  ;;  %vm8377_vm6 = vcmp.eq.s32.totalorder %v8375_v44, 0  ;;  %vm8380_vm10 = vcmp.eq.s32.totalorder %v8375_v44, 2  ;;  %vm8376_vm1 = vcmp.lt.s32.totalorder %v8375_v44, 2  ;;  %v12987_v41 = vld [vmem:[#allocation6 + $0x64] sm:$0xf0] }
 0x5c8   :  { %v10300_v47 = vpack.c.b16 %v10289_v27, %v10288_v59  ;;  %v8379_v62 = vsel %vm8377_vm6, %v3324_v33, %v3358_v58  ;;  %v8382_v19 = vsel %vm8380_vm10, %v3361_v14, %v3340_v7  ;;  %v8072_v30 = vpack.i.bf16 %v8071_v20, %v8061_v60  ;;  %v11074_v59 = vld [vmem:[%s21239_s5] sm:$0x3]  ;;  %v12864_v20 = vld [vmem:[#allocation6 + $0x60] sm:$0xf] }
 0x5c9   :  { %v8383_v42 = vsel %vm8376_vm1, %v8379_v62, %v8382_v19  ;;  %v10544_v18 = vunpack.c.l.b16 %v10398_v39  ;;  %v10545_v17 = vunpack.c.h.b16 %v10398_v39  ;;  %v13400_v29 = vmov 839922192  }
 0x5ca   :  { %12451 = vmatpush.bf16.xpose.msra.mxu2 %v10300_v47  ;;  %v8384_v45 = vsel %vm3342_vm8, nan, %v8383_v42  ;;  %10842 = vmatmul.bf16.gmra.mxu0 %v10300_v47  ;;  %v10336_v50 = vunpack.c.l.b16 %v8072_v30  ;;  %v10405_v46 = vunpack.c.l.s4 %v13400_v29  ;;  %v12937_v48 = vor.u32 %v13005_v0, %v12936_v56  ;;  %v13003_v42 = vld [vmem:[#allocation6 + $0xe4] sm:$0xf0]  ;;  %v22481_v29 = vld [vmem:[#allocation59_spill] sm:$0xff]  ;;  %v12840_v56 = vld [vmem:[#allocation6 + $0x30] sm:$0xf] }
 0x5cb   :  { %v8385_v2 = vpack.i.bf16 %v8384_v45, %v8374_v28  ;;  %10940 = vmatmul.bf16.gmra.mxu2 %v10300_v47  ;;  %v10546_v11 = vpack.c.b16 %v10544_v18, %v10544_v18  ;;  %v10547_v14 = vpack.c.b16 %v10545_v17, %v10545_v17  ;;  %v10971_v26 = vadd.f32 %v10970_v34, %v10921_v55  ;;  %v12928_v28 = vld [vmem:[#allocation6 + $0xe0] sm:$0xf]  ;;  %v10972_v39 = vpop.f32.mrf.mxu3  ;;  %v12981_v0 = vld [vmem:[#allocation6 + $0x34] sm:$0xf0] }
 0x5cc   :  { %v20524_v1 = vunpack.c.0.s8 %v10405_v46  ;;  %11809 = vmatpush.bf16.msrb.mxu1 %v12937_v48  ;;  %v20548_v44 = vperm.slane %v11074_v59, 1  ;;  %v20553_v62 = vperm.slane %v11074_v59, 0  ;;  %v12865_v30 = vor.u32 %v12987_v41, %v12864_v20  ;;  %v12997_v48 = vld [vmem:[#allocation6 + $0xb4] sm:$0xf0]  ;;  %v12995_v59 = vld [vmem:[#allocation6 + $0xa4] sm:$0xf0] }
 0x5cd   :  { %v10337_v36 = vunpack.c.l.b16 %v8385_v2  ;;  %v10549_v16 = vpack.i.b16 %v10546_v11, %v10546_v11  ;;  %v10553_v21 = vpack.i.b16 %v10547_v14, %v10547_v14  ;;  %v12929_v18 = vor.u32 %v13003_v42, %v12928_v28  ;;  %v12824_v20 = vld [vmem:[#allocation6 + $0x10] sm:$0xf]  ;;  %v12977_v41 = vld [vmem:[#allocation6 + $0x14] sm:$0xf0]  ;;  %v12816_v42 = vld [vmem:[#allocation6] sm:$0xf] }
 0x5ce   :  { %v10407_v38 = vperm.slane %v10402_v9, %v20524_v1  ;;  %v12888_v28 = vld [vmem:[#allocation6 + $0x90] sm:$0xf] }
 0x5cf   :  { %v10348_v33 = vpack.c.b16 %v10337_v36, %v10336_v50  ;;  %v10551_v7 = vperm.slane %v10549_v16, 0  ;;  %v10555_v54 = vperm.slane %v10553_v21, 0 }
 0x5d0   :  { %v10556_v51 = vunpack.c.l.bf16 %v10407_v38  ;;  %11810 = vmatpush.bf16.msrb.mxu1 %v12929_v18  ;;  %v12991_v18 = vld [vmem:[#allocation6 + $0x84] sm:$0xf0] }
 0x5d1   :  { %12464 = vmatpush.bf16.xpose.msra.mxu3 %v10348_v33  ;;  %10891 = vmatmul.bf16.gmra.mxu1 %v10348_v33  ;;  %v20532_v58 = vunpack.c.l.bf16 %v10551_v7  ;;  %v20534_v40 = vunpack.c.l.bf16 %v10555_v54  ;;  %v12856_v7 = vld [vmem:[#allocation6 + $0x50] sm:$0xf]  ;;  %v12985_v54 = vld [vmem:[#allocation6 + $0x54] sm:$0xf0] }
 0x5d2   :  { %10989 = vmatmul.bf16.gmra.mxu3 %v10348_v33  ;;  %12452 = vmatpush.bf16.xpose.msra.mxu2 %v20207_v53  ;;  %v10416_v53 = vperm.slane %v10411_v31, %v20524_v1  ;;  %v12920_v31 = vld [vmem:[#allocation6 + $0xd0] sm:$0xf] }
 0x5d3   :  { %v10574_v3 = vmul.f32 %v20532_v58, %v10556_v51  ;;  %v10575_v5 = vmul.f32 %v20534_v40, %v10556_v51  ;;  %v12857_v51 = vor.u32 %v12985_v54, %v12856_v7 }
 0x5d4   :  { %v10557_v23 = vunpack.c.l.bf16 %v10416_v53  ;;  %v13001_v53 = vld [vmem:[#allocation6 + $0xd4] sm:$0xf0] }
 0x5d5   :  { %v10606_v35 = vpack.c.bf16 %v10575_v5, %v10574_v3  ;;  %v12983_v3 = vld [vmem:[#allocation6 + $0x44] sm:$0xf0] }
 0x5d6   :  { %v10576_v52 = vmul.f32 %v20532_v58, %v10557_v23 }
 0x5d7   :  { %v11010_v32 = vunpack.c.l.bf16 %v10606_v35 }
 0x5d9   :  { %12465 = vmatpush.bf16.xpose.msra.mxu3 %v20243_v13  ;;  %v10872_v13 = vpop.f32.mrf.mxu1 }
 0x5da   :  { %12453 = vmatpush.bf16.xpose.msra.mxu2 %v19803_v22  ;;  %10847 = vmatmul.bf16.gmra.mxu0 %v20381_v57  ;;  %v10823_v22 = vpop.f32.mrf.mxu0 }
 0x5db   :  { %10945 = vmatmul.bf16.gmra.mxu2 %v20381_v57  ;;  %v12872_v57 = vld [vmem:[#allocation6 + $0x70] sm:$0xf] }
 0x5dc   :  { %v12873_v63 = vor.u32 %v12989_v61, %v12872_v57  ;;  %v12921_v61 = vor.u32 %v13001_v53, %v12920_v31  ;;  %v10420_v53 = vpop.permute.xlu0 %10419 }
 0x5de   :  { %11760 = vmatpush.bf16.msrb.mxu0 %v12873_v63  ;;  %11811 = vmatpush.bf16.msrb.mxu1 %v12921_v61 }
 0x5e1   :  { %12466 = vmatpush.bf16.xpose.msra.mxu3 %v19839_v6  ;;  %10896 = vmatmul.bf16.gmra.mxu1 %v20419_v12  ;;  %v10577_v6 = vmul.f32 %v20534_v40, %v10557_v23  ;;  %v10874_v60 = vpop.f32.mrf.mxu1  ;;  %v12912_v23 = vld [vmem:[#allocation6 + $0xc0] sm:$0xf] }
 0x5e2   :  { %10994 = vmatmul.bf16.gmra.mxu3 %v20419_v12  ;;  %12454 = vmatpush.bf16.xpose.msra.mxu2 %v19665_v8  ;;  %v10873_v12 = vadd.f32 %v10872_v13, %v10823_v22  ;;  %v11011_v8 = vunpack.c.h.bf16 %v10606_v35  ;;  %v10825_v27 = vpop.f32.mrf.mxu0  ;;  %v12999_v22 = vld [vmem:[#allocation6 + $0xc4] sm:$0xf0] }
 0x5e3   :  { %v10607_v37 = vpack.c.bf16 %v10577_v6, %v10576_v52  ;;  %v10875_v19 = vadd.f32 %v10874_v60, %v10825_v27  ;;  %11761 = vmatpush.bf16.msrb.mxu0 %v12865_v30  ;;  %v12913_v34 = vor.u32 %v12999_v22, %v12912_v23  ;;  %v12904_v52 = vld [vmem:[#allocation6 + $0xb0] sm:$0xf]  ;;  %v12841_v6 = vor.u32 %v12981_v0, %v12840_v56  ;;  %v12993_v30 = vld [vmem:[#allocation6 + $0x94] sm:$0xf0]  ;;  %v10429_v23 = vpop.permute.xlu1 %10428 }
 0x5e4   :  { %v11043_v43 = vadd.f32 %v11011_v8, %v10971_v26  ;;  %v11042_v47 = vadd.f32 %v11010_v32, %v10873_v12  ;;  %v12832_v26 = vld [vmem:[#allocation6 + $0x20] sm:$0xf]  ;;  %v12979_v12 = vld [vmem:[#allocation6 + $0x24] sm:$0xf0]  ;;  %v12905_v8 = vor.u32 %v12997_v48, %v12904_v52 }
 0x5e5   :  { %v11012_v45 = vunpack.c.l.bf16 %v10607_v37  ;;  %11812 = vmatpush.bf16.msrb.mxu1 %v12913_v34  ;;  %v12833_v32 = vor.u32 %v12979_v12, %v12832_v26 }
 0x5e6   :  { %v11081_v17 = vadd.f32 %v20548_v44, %v11043_v43 }
 0x5e7   :  { %v11044_v50 = vadd.f32 %v11012_v45, %v10875_v19  ;;  %11762 = vmatpush.bf16.msrb.mxu0 %v12857_v51  ;;  %v12975_v45 = vld [vmem:[#allocation6 + $0x4] sm:$0xf0] }
 0x5e9   :  { %12467 = vmatpush.bf16.xpose.msra.mxu3 %v19687_v10  ;;  %v10923_v10 = vpop.f32.mrf.mxu2  ;;  %v11082_v11 = vadd.f32 %v20553_v62, %v11044_v50  ;;  %11813 = vmatpush.bf16.msrb.mxu1 %v12905_v8 }
 0x5ea   :  { %12455 = vmatpush.bf16.xpose.msra.mxu2 %v19517_v49  ;;  %10852 = vmatmul.bf16.gmra.mxu0 %v20058_v15  ;;  %v10973_v2 = vadd.f32 %v10972_v39, %v10923_v10  ;;  %v11013_v49 = vunpack.c.h.bf16 %v10607_v37  ;;  %v12896_v37 = vld [vmem:[#allocation6 + $0xa0] sm:$0xf]  ;;  %v20572_v10 = vpop.f32.mrf.mxu0  ;;  %v12825_v39 = vor.u32 %v12977_v41, %v12824_v20 }
 0x5eb   :  { %10950 = vmatmul.bf16.gmra.mxu2 %v20058_v15  ;;  %v11080_v15 = vadd.f32 %v20553_v62, %v11042_v47  ;;  %v12897_v27 = vor.u32 %v12995_v59, %v12896_v37  ;;  %v20593_v20 = vpop.permute.xlu1 %10455 }
 0x5ec   :  { %v11045_v36 = vadd.f32 %v11013_v49, %v10973_v2  ;;  %v12889_v2 = vor.u32 %v12993_v30, %v12888_v28  ;;  %v12880_v49 = vld [vmem:[#allocation6 + $0x80] sm:$0xf] }
 0x5ed   :  { %v20560_v46 = vpack.c.bf16 %v11081_v17, %v11080_v15  ;;  %11814 = vmatpush.bf16.msrb.mxu1 %v12897_v27  ;;  %v12817_v17 = vor.u32 %v12975_v45, %v12816_v42  ;;  %v12881_v15 = vor.u32 %v12991_v18, %v12880_v49 }
 0x5ee   :  { %v11083_v33 = vadd.f32 %v20548_v44, %v11045_v36 }
 0x5ef   :  { %v11128_v9 = vxor.u32 2147516416, %v20560_v46 }
 0x5f0   :  { %v20564_v14 = vpack.c.bf16 %v11083_v33, %v11082_v11 }
 0x5f1   :  { %12468 = vmatpush.bf16.xpose.msra.mxu3 %v22481_v29  ;;  %10901 = vmatmul.bf16.gmra.mxu1 %v20091_v25  ;;  %v11144_v21 = vunpack.c.l.bf16 %v11128_v9  ;;  %v11145_v38 = vunpack.c.h.bf16 %v11128_v9  ;;  %v10877_v29 = vpop.f32.mrf.mxu1  ;;  %v10926_v11 = vpop.f32.mrf.mxu2 }
 0x5f2   :  { %10999 = vmatmul.bf16.gmra.mxu3 %v20091_v25  ;;  %v11129_v16 = vxor.u32 2147516416, %v20564_v14  ;;  %v12848_v25 = vld [vmem:[#allocation6 + $0x40] sm:$0xf]  ;;  %11815 = vmatpush.bf16.msrb.mxu1 %v12889_v2  ;;  %v10975_v9 = vpop.f32.mrf.mxu3  ;;  %v20574_v31 = vpop.f32.mrf.mxu0 }
 0x5f3   :  { %v11176_v13 = vmul.f32 1.442695, %v11144_v21  ;;  %v12849_v35 = vor.u32 %v12983_v3, %v12848_v25  ;;  %v11178_v55 = vmul.f32 1.442695, %v11145_v38 }
 0x5f4   :  { %v11146_v5 = vunpack.c.l.bf16 %v11129_v16  ;;  %v11147_v57 = vunpack.c.h.bf16 %v11129_v16 }
 0x5f5   :  { %13025 = vpow2.f32 %v11176_v13  ;;  %11763 = vmatpush.bf16.msrb.mxu0 %v12849_v35  ;;  %v10425_v13 = vperm.slane %v10420_v53, %v20524_v1  ;;  %v10434_v35 = vperm.slane %v10429_v23, %v20524_v1  ;;  %v11452_v53 = vunpack.c.l.bf16 %v20564_v14 }
 0x5f6   :  { %v11180_v63 = vmul.f32 1.442695, %v11146_v5  ;;  %13027 = vpow2.f32 %v11178_v55  ;;  %11816 = vmatpush.bf16.msrb.mxu1 %v12881_v15  ;;  %v20576_v5 = vpop.permute.xlu2 %10437  ;;  %v11451_v23 = vunpack.c.h.bf16 %v20560_v46 }
 0x5f7   :  { %v10558_v56 = vunpack.c.l.bf16 %v10425_v13  ;;  %v10559_v0 = vunpack.c.l.bf16 %v10434_v35 }
 0x5f8   :  { %13029 = vpow2.f32 %v11180_v63 }
 0x5f9   :  { %11764 = vmatpush.bf16.msrb.mxu0 %v12841_v6  ;;  %v10879_v55 = vpop.f32.mrf.mxu1  ;;  %v10928_v63 = vpop.f32.mrf.mxu2  ;;  %v13401_v6 = vmov 1065369472   ;;  %v10578_v12 = vmul.f32 %v20532_v58, %v10558_v56  ;;  %v10579_v8 = vmul.f32 %v20534_v40, %v10558_v56  ;;  %v10581_v27 = vmul.f32 %v20534_v40, %v10559_v0 }
 0x5fa   :  { %10857 = vmatmul.bf16.gmra.mxu0 %v19904_v4  ;;  %v20580_v52 = vpop.f32.mrf.mxu0  ;;  %v20582_v48 = vunpack.c.h.bf16 %v13401_v6  ;;  %v20584_v26 = vunpack.c.l.bf16 %v13401_v6 }
 0x5fb   :  { %10955 = vmatmul.bf16.gmra.mxu2 %v19904_v4  ;;  %v11182_v4 = vmul.f32 1.442695, %v11147_v57  ;;  %v13026_v43 = vpop.eup %13025 }
 0x5fd   :  { %13031 = vpow2.f32 %v11182_v4  ;;  %11765 = vmatpush.bf16.msrb.mxu0 %v12833_v32  ;;  %v10977_v4 = vpop.f32.mrf.mxu3 }
 0x5fe   :  { %v20588_v59 = vpop.permute.xlu2 %10464 }
 0x601   :  { %10906 = vmatmul.bf16.gmra.mxu1 %v19940_v24  ;;  %11766 = vmatpush.bf16.msrb.mxu0 %v12825_v39  ;;  %v20596_v39 = vpop.f32.mrf.mxu1  ;;  %v20599_v42 = vpop.f32.mrf.mxu2 }
 0x602   :  { %11004 = vmatmul.bf16.gmra.mxu3 %v19940_v24  ;;  %v13028_v24 = vpop.eup %13027 }
 0x603   :  { %v13030_v60 = vpop.eup %13029  ;;  %v11240_v19 = vpack.c.bf16 %v13028_v24, %v13026_v43  ;;  %v10580_v43 = vmul.f32 %v20532_v58, %v10559_v0 }
 0x604   :  { %v13032_v47 = vpop.eup %13031 }
 0x605   :  { %v11241_v50 = vpack.c.bf16 %v13032_v47, %v13030_v60  ;;  %v11256_v36 = vunpack.c.l.bf16 %v11240_v19  ;;  %v11257_v33 = vunpack.c.h.bf16 %v11240_v19  ;;  %11767 = vmatpush.bf16.msrb.mxu0 %v12817_v17  ;;  %v10608_v47 = vpack.c.bf16 %v10579_v8, %v10578_v12  ;;  %v10447_v19 = vpop.permute.xlu0 %10446  ;;  %v20601_v45 = vpop.f32.mrf.mxu3 }
 0x606   :  { %v10609_v18 = vpack.c.bf16 %v10581_v27, %v10580_v43  ;;  %v10443_v17 = vperm.slane %v20576_v5, %v20524_v1  ;;  %v10492_v5 = vpop.permute.xlu2 %10491 }
 0x607   :  { %v11258_v16 = vunpack.c.l.bf16 %v11241_v50  ;;  %v11259_v21 = vunpack.c.h.bf16 %v11241_v50  ;;  %v11288_v38 = vadd.f32 1.0, %v11256_v36  ;;  %v11289_v7 = vadd.f32 1.0, %v11257_v33 }
 0x608   :  { %v10976_v50 = vadd.f32 %v10975_v9, %v10926_v11  ;;  %v10878_v33 = vadd.f32 %v10877_v29, %v20572_v10  ;;  %v11453_v11 = vunpack.c.h.bf16 %v20564_v14  ;;  %v10880_v10 = vadd.f32 %v10879_v55, %v20574_v31 }
 0x609   :  { %v11290_v54 = vadd.f32 1.0, %v11258_v16  ;;  %v11291_v51 = vadd.f32 1.0, %v11259_v21  ;;  %v11320_v25 = vpack.c.bf16 %v11289_v7, %v11288_v38  ;;  %v11014_v16 = vunpack.c.l.bf16 %v10608_v47  ;;  %v20607_v38 = vpop.f32.mrf.mxu0  ;;  %v10884_v12 = vpop.f32.mrf.mxu1 }
 0x60a   :  { %v11015_v21 = vunpack.c.h.bf16 %v10608_v47  ;;  %v11016_v56 = vunpack.c.l.bf16 %v10609_v18  ;;  %v10470_v14 = vperm.slane %v20588_v59, %v20524_v1 }
 0x60b   :  { %v11321_v3 = vpack.c.bf16 %v11291_v51, %v11290_v54  ;;  %v11338_v22 = vunpack.c.h.bf16 %v11320_v25  ;;  %v11339_v57 = vunpack.c.l.bf16 %v11320_v25  ;;  %v10978_v54 = vadd.f32 %v10977_v4, %v10928_v63  ;;  %v20615_v63 = vpop.permute.xlu1 %10482 }
 0x60c   :  { %v11450_v51 = vunpack.c.l.bf16 %v20560_v46  ;;  %v11046_v4 = vadd.f32 %v11014_v16, %v10878_v33  ;;  %v11048_v8 = vadd.f32 %v11016_v56, %v10880_v10 }
 0x60d   :  { %v11345_v61 = vunpack.c.h.bf16 %v11321_v3  ;;  %v11346_v34 = vunpack.c.l.bf16 %v11321_v3  ;;  %13033 = vrcp.f32 %v11338_v22  ;;  %v11017_v3 = vunpack.c.h.bf16 %v10609_v18  ;;  %v20619_v6 = vpop.permute.xlu0 %10473 }
 0x60e   :  { %13035 = vrcp.f32 %v11339_v57  ;;  %v11047_v22 = vadd.f32 %v11015_v21, %v10976_v50  ;;  %v10560_v57 = vunpack.c.l.bf16 %v10443_v17  ;;  %v11084_v59 = vadd.f32 %v20553_v62, %v11046_v4  ;;  %v10519_v17 = vpop.permute.xlu2 %10518 }
 0x60f   :  { %13037 = vrcp.f32 %v11345_v61  ;;  %v10452_v61 = vperm.slane %v10447_v19, %v20524_v1  ;;  %v11049_v0 = vadd.f32 %v11017_v3, %v10978_v54  ;;  %v10461_v50 = vperm.slane %v20593_v20, %v20524_v1 }
 0x610   :  { %13039 = vrcp.f32 %v11346_v34  ;;  %v11085_v55 = vadd.f32 %v20548_v44, %v11047_v22  ;;  %v10582_v27 = vmul.f32 %v20532_v58, %v10560_v57  ;;  %v10981_v54 = vadd.f32 %v20601_v45, %v20599_v42 }
 0x611   :  { %v10561_v43 = vunpack.c.l.bf16 %v10452_v61  ;;  %v20627_v47 = vpop.f32.mrf.mxu0  ;;  %v20646_v3 = vpop.f32.mrf.mxu1  ;;  %v10562_v20 = vunpack.c.l.bf16 %v10461_v50  ;;  %v10488_v45 = vperm.slane %v20615_v63, %v20524_v1 }
 0x612   :  { %v20629_v19 = vpack.c.bf16 %v11085_v55, %v11084_v59 }
 0x613   :  { %v13034_v37 = vpop.eup %13033  ;;  %v10510_v21 = vpop.permute.xlu1 %10509  ;;  %v10565_v55 = vunpack.c.l.bf16 %v10488_v45 }
 0x614   :  { %v13036_v32 = vpop.eup %13035  ;;  %v11341_v24 = vmul.f32 %v13034_v37, %v20582_v48  ;;  %v10933_v37 = vpop.f32.mrf.mxu2 }
 0x615   :  { %v13038_v60 = vpop.eup %13037  ;;  %v11343_v41 = vmul.f32 %v13036_v32, %v20584_v26  ;;  %v10982_v32 = vpop.f32.mrf.mxu3 }
 0x616   :  { %v13040_v28 = vpop.eup %13039  ;;  %v11348_v30 = vmul.f32 %v13038_v60, %v20582_v48  ;;  %v11087_v60 = vadd.f32 %v20548_v44, %v11049_v0  ;;  %v10586_v0 = vmul.f32 %v20532_v58, %v10562_v20 }
 0x617   :  { %v11344_v2 = vpack.c.bf16 %v11341_v24, %v11343_v41  ;;  %v11350_v49 = vmul.f32 %v13040_v28, %v20584_v26  ;;  %v10583_v24 = vmul.f32 %v20534_v40, %v10560_v57  ;;  %v10563_v41 = vunpack.c.l.bf16 %v10470_v14 }
 0x618   :  { %v10497_v28 = vperm.slane %v10492_v5, %v20524_v1 }
 0x619   :  { %v11351_v36 = vpack.c.bf16 %v11348_v30, %v11350_v49  ;;  %v11482_v15 = vunpack.c.l.bf16 %v11344_v2  ;;  %v11483_v7 = vunpack.c.h.bf16 %v11344_v2  ;;  %v11086_v30 = vadd.f32 %v20553_v62, %v11048_v8  ;;  %v10840_v56 = vpop.f32.mrf.mxu0 }
 0x61a   :  { %v10584_v2 = vmul.f32 %v20532_v58, %v10561_v43  ;;  %v10585_v49 = vmul.f32 %v20534_v40, %v10561_v43  ;;  %v10610_v18 = vpack.c.bf16 %v10583_v24, %v10582_v27  ;;  %v10589_v33 = vmul.f32 %v20534_v40, %v10563_v41 }
 0x61b   :  { %v11484_v25 = vunpack.c.l.bf16 %v11351_v36  ;;  %v11485_v9 = vunpack.c.h.bf16 %v11351_v36  ;;  %v11514_v29 = vmul.f32 %v11482_v15, %v11450_v51  ;;  %v11515_v35 = vmul.f32 %v11483_v7, %v11451_v23 }
 0x61c   :  { %v20636_v36 = vpack.c.bf16 %v11087_v60, %v11086_v30  ;;  %v10588_v15 = vmul.f32 %v20532_v58, %v10563_v41  ;;  %v10566_v16 = vunpack.c.l.bf16 %v10497_v28  ;;  %v11130_v7 = vxor.u32 2147516416, %v20629_v19  ;;  %v10936_v5 = vpop.f32.mrf.mxu2  ;;  %v10537_v30 = vpop.permute.xlu1 %10536 }
 0x61d   :  { %v11516_v13 = vmul.f32 %v11484_v25, %v11452_v53  ;;  %v11517_v34 = vmul.f32 %v11485_v9, %v11453_v11  ;;  %v10524_v51 = vperm.slane %v10519_v17, %v20524_v1  ;;  %v10611_v53 = vpack.c.bf16 %v10585_v49, %v10584_v2  ;;  %v20644_v25 = vpop.permute.xlu0 %10500  ;;  %v10985_v22 = vpop.f32.mrf.mxu3 }
 0x61e   :  { %v11131_v23 = vxor.u32 2147516416, %v20636_v36  ;;  %v10883_v11 = vadd.f32 %v20596_v39, %v20580_v52  ;;  %v11019_v9 = vunpack.c.h.bf16 %v10610_v18  ;;  %v20651_v10 = vpack.c.bf16 %v10589_v33, %v10588_v15  ;;  %v10889_v33 = vpop.f32.mrf.mxu1 }
 0x61f   :  { %v11546_v46 = vpack.c.bf16 %v11516_v13, %v11514_v29  ;;  %v11547_v31 = vpack.c.bf16 %v11517_v34, %v11515_v35  ;;  %v10594_v42 = vmul.f32 %v20532_v58, %v10566_v16  ;;  %v10983_v29 = vadd.f32 %v10982_v32, %v10933_v37 }
 0x620   :  { %v10595_v13 = vmul.f32 %v20534_v40, %v10566_v16  ;;  %v11148_v57 = vunpack.c.l.bf16 %v11130_v7  ;;  %v11018_v61 = vunpack.c.l.bf16 %v10610_v18  ;;  %v11051_v35 = vadd.f32 %v11019_v9, %v10981_v54 }
 0x621   :  { %11768 = vmatmul.bf16.vlgmr.msrb.gmra.mxu0 %v11546_v46  ;;  %11866 = vmatmul.bf16.vlgmr.msrb.gmra.mxu2 %v11546_v46  ;;  %v10569_v34 = vunpack.c.l.bf16 %v10524_v51  ;;  %v11149_v4 = vunpack.c.h.bf16 %v11130_v7  ;;  %v10885_v52 = vadd.f32 %v10884_v12, %v20607_v38  ;;  %v11021_v39 = vunpack.c.h.bf16 %v10611_v53 }
 0x622   :  { %11817 = vmatmul.bf16.vlgmr.msrb.gmra.mxu1 %v11547_v31  ;;  %11915 = vmatmul.bf16.vlgmr.msrb.gmra.mxu3 %v11547_v31  ;;  %v10587_v46 = vmul.f32 %v20534_v40, %v10562_v20  ;;  %v11150_v14 = vunpack.c.l.bf16 %v11131_v23  ;;  %v11050_v31 = vadd.f32 %v11018_v61, %v10883_v11  ;;  %v11151_v63 = vunpack.c.h.bf16 %v11131_v23 }
 0x623   :  { %v11020_v8 = vunpack.c.l.bf16 %v10611_v53  ;;  %v11053_v37 = vadd.f32 %v11021_v39, %v10983_v29  ;;  %v20660_v32 = vpack.c.bf16 %v10595_v13, %v10594_v42  ;;  %v10479_v43 = vperm.slane %v20619_v6, %v20524_v1 }
 0x624   :  { %v11184_v27 = vmul.f32 1.442695, %v11148_v57  ;;  %v11089_v38 = vadd.f32 %v20548_v44, %v11051_v35  ;;  %v10600_v12 = vmul.f32 %v20532_v58, %v10569_v34  ;;  %v10515_v24 = vperm.slane %v10510_v21, %v20524_v1  ;;  %v10938_v54 = vpop.f32.mrf.mxu2 }
 0x625   :  { %v11186_v59 = vmul.f32 1.442695, %v11149_v4  ;;  %v11052_v60 = vadd.f32 %v11020_v8, %v10885_v52  ;;  %v10601_v41 = vmul.f32 %v20534_v40, %v10569_v34  ;;  %v10612_v28 = vpack.c.bf16 %v10587_v46, %v10586_v0  ;;  %v10528_v17 = vpop.permute.xlu0 %10527  ;;  %v10987_v51 = vpop.f32.mrf.mxu3 }
 0x626   :  { %v11188_v2 = vmul.f32 1.442695, %v11150_v14  ;;  %v11088_v49 = vadd.f32 %v20553_v62, %v11050_v31  ;;  %v10592_v18 = vmul.f32 %v20532_v58, %v10565_v55  ;;  %v10593_v6 = vmul.f32 %v20534_v40, %v10565_v55 }
 0x627   :  { %v11190_v50 = vmul.f32 1.442695, %v11151_v63  ;;  %v11091_v15 = vadd.f32 %v20548_v44, %v11053_v37  ;;  %v10564_v16 = vunpack.c.l.bf16 %v10479_v43  ;;  %v10506_v21 = vperm.slane %v20644_v25, %v20524_v1 }
 0x628   :  { %13041 = vpow2.f32 %v11184_v27  ;;  %v20674_v7 = vpack.c.bf16 %v11089_v38, %v11088_v49  ;;  %v10568_v53 = vunpack.c.l.bf16 %v10515_v24  ;;  %v11090_v20 = vadd.f32 %v20553_v62, %v11052_v60 }
 0x629   :  { %13043 = vpow2.f32 %v11186_v59  ;;  %v10986_v23 = vadd.f32 %v10985_v22, %v10936_v5  ;;  %v10542_v11 = vperm.slane %v10537_v30, %v20524_v1  ;;  %v10533_v9 = vperm.slane %v10528_v17, %v20524_v1 }
 0x62a   :  { %13045 = vpow2.f32 %v11188_v2  ;;  %v11023_v42 = vunpack.c.h.bf16 %v10612_v28  ;;  %v20679_v45 = vpack.c.bf16 %v11091_v15, %v11090_v20  ;;  %v10888_v25 = vadd.f32 %v20646_v3, %v20627_v47 }
 0x62b   :  { %13047 = vpow2.f32 %v11190_v50  ;;  %v10988_v29 = vadd.f32 %v10987_v51, %v10938_v54  ;;  %v10590_v57 = vmul.f32 %v20532_v58, %v10564_v16  ;;  %v10591_v61 = vmul.f32 %v20534_v40, %v10564_v16 }
 0x62c   :  { %v10567_v35 = vunpack.c.l.bf16 %v10506_v21  ;;  %v11132_v5 = vxor.u32 2147516416, %v20674_v7  ;;  %v11022_v22 = vunpack.c.l.bf16 %v10612_v28  ;;  %v11055_v34 = vadd.f32 %v11023_v42, %v10986_v23 }
 0x62d   :  { %v10890_v1 = vadd.f32 %v10889_v33, %v10840_v56  ;;  %v11025_v4 = vunpack.c.h.bf16 %v20651_v10  ;;  %v20687_v39 = vpack.c.bf16 %v10601_v41, %v10600_v12  ;;  %v20689_v0 = vpack.c.bf16 %v10593_v6, %v10592_v18 }
 0x62e   :  { %v13042_v52 = vpop.eup %13041  ;;  %v10571_v47 = vunpack.c.l.bf16 %v10542_v11  ;;  %v10570_v3 = vunpack.c.l.bf16 %v10533_v9  ;;  %v11133_v14 = vxor.u32 2147516416, %v20679_v45  ;;  %v11054_v31 = vadd.f32 %v11022_v22, %v10888_v25 }
 0x62f   :  { %v13044_v46 = vpop.eup %13043  ;;  %v11024_v55 = vunpack.c.l.bf16 %v20651_v10  ;;  %v11057_v63 = vadd.f32 %v11025_v4, %v10988_v29  ;;  %v10614_v37 = vpack.c.bf16 %v10591_v61, %v10590_v57  ;;  %v10598_v56 = vmul.f32 %v20532_v58, %v10568_v53 }
 0x630   :  { %v13046_v8 = vpop.eup %13045  ;;  %v10599_v43 = vmul.f32 %v20534_v40, %v10568_v53  ;;  %v11152_v27 = vunpack.c.l.bf16 %v11132_v5  ;;  %v10596_v12 = vmul.f32 %v20532_v58, %v10567_v35  ;;  %v10597_v24 = vmul.f32 %v20534_v40, %v10567_v35 }
 0x631   :  { %v13048_v38 = vpop.eup %13047  ;;  %v11093_v59 = vadd.f32 %v20548_v44, %v11055_v34  ;;  %v11056_v60 = vadd.f32 %v11024_v55, %v10890_v1  ;;  %v10604_v41 = vmul.f32 %v20532_v58, %v10571_v47  ;;  %v10605_v10 = vmul.f32 %v20534_v40, %v10571_v47 }
 0x632   :  { %v10602_v28 = vmul.f32 %v20532_v58, %v10570_v3  ;;  %v10603_v30 = vmul.f32 %v20534_v40, %v10570_v3  ;;  %v11153_v18 = vunpack.c.h.bf16 %v11132_v5  ;;  %v11154_v6 = vunpack.c.l.bf16 %v11133_v14 }
 0x633   :  { %v11092_v17 = vadd.f32 %v20553_v62, %v11054_v31  ;;  %v11095_v50 = vadd.f32 %v20548_v44, %v11057_v63  ;;  %v20704_v33 = vpack.c.bf16 %v10599_v43, %v10598_v56  ;;  %v11242_v16 = vpack.c.bf16 %v13044_v46, %v13042_v52 }
 0x634   :  { %v11243_v21 = vpack.c.bf16 %v13048_v38, %v13046_v8  ;;  %v11192_v54 = vmul.f32 1.442695, %v11152_v27  ;;  %v11155_v51 = vunpack.c.h.bf16 %v11133_v14  ;;  %v11094_v58 = vadd.f32 %v20553_v62, %v11056_v60 }
 0x635   :  { %v20706_v53 = vpack.c.bf16 %v11093_v59, %v11092_v17  ;;  %v20709_v20 = vpack.c.bf16 %v10597_v24, %v10596_v12  ;;  %v20711_v23 = vpack.c.bf16 %v10605_v10, %v10604_v41  ;;  %v20713_v11 = vpack.c.bf16 %v10603_v30, %v10602_v28 }
 0x636   :  { %v11026_v9 = vunpack.c.l.bf16 %v10614_v37  ;;  %v11194_v42 = vmul.f32 1.442695, %v11153_v18  ;;  %v11196_v25 = vmul.f32 1.442695, %v11154_v6  ;;  %v20715_v29 = vpack.c.bf16 %v11095_v50, %v11094_v58 }
 0x637   :  { %v11027_v57 = vunpack.c.h.bf16 %v10614_v37  ;;  %v11260_v61 = vunpack.c.l.bf16 %v11242_v16  ;;  %v11261_v35 = vunpack.c.h.bf16 %v11242_v16  ;;  %v11262_v5 = vunpack.c.l.bf16 %v11243_v21 }
 0x638   :  { %v11263_v22 = vunpack.c.h.bf16 %v11243_v21  ;;  %13049 = vpow2.f32 %v11192_v54  ;;  %v11198_v34 = vmul.f32 1.442695, %v11155_v51  ;;  %v11028_v55 = vunpack.c.l.bf16 %v20689_v0 }
 0x639   :  { %v11292_v46 = vadd.f32 1.0, %v11260_v61  ;;  %v11293_v14 = vadd.f32 1.0, %v11261_v35  ;;  %v11294_v31 = vadd.f32 1.0, %v11262_v5  ;;  %13051 = vpow2.f32 %v11194_v42 }
 0x63a   :  { %v11029_v63 = vunpack.c.h.bf16 %v20689_v0  ;;  %v11295_v8 = vadd.f32 1.0, %v11263_v22  ;;  %13053 = vpow2.f32 %v11196_v25  ;;  %v11135_v56 = vxor.u32 2147516416, %v20715_v29 }
 0x63b   :  { %v11322_v27 = vpack.c.bf16 %v11293_v14, %v11292_v46  ;;  %13055 = vpow2.f32 %v11198_v34  ;;  %v11031_v17 = vunpack.c.h.bf16 %v20660_v32  ;;  %v11032_v35 = vunpack.c.l.bf16 %v20709_v20 }
 0x63c   :  { %v11323_v24 = vpack.c.bf16 %v11295_v8, %v11294_v31  ;;  %v11158_v18 = vunpack.c.l.bf16 %v11135_v56  ;;  %v11159_v21 = vunpack.c.h.bf16 %v11135_v56  ;;  %v11037_v5 = vunpack.c.h.bf16 %v20687_v39 }
 0x63d   :  { %v11352_v41 = vunpack.c.h.bf16 %v11322_v27  ;;  %v11353_v10 = vunpack.c.l.bf16 %v11322_v27  ;;  %v11035_v8 = vunpack.c.h.bf16 %v20704_v33 }
 0x63e   :  { %v13050_v28 = vpop.eup %13049  ;;  %v11359_v0 = vunpack.c.h.bf16 %v11323_v24  ;;  %v11204_v22 = vmul.f32 1.442695, %v11158_v18 }
 0x63f   :  { %13057 = vrcp.f32 %v11352_v41  ;;  %v13052_v50 = vpop.eup %13051 }
 0x640   :  { %13059 = vrcp.f32 %v11353_v10  ;;  %v13054_v51 = vpop.eup %13053 }
 0x641   :  { %13061 = vrcp.f32 %v11359_v0 }
 0x647   :  { %v10843_v13 = vpop.f32.mrf.mxu0 }
 0x64e   :  { %v10892_v2 = vpop.f32.mrf.mxu1  ;;  %v10941_v49 = vpop.f32.mrf.mxu2 }
 0x64f   :  { %v10845_v15 = vpop.f32.mrf.mxu0  ;;  %v10893_v40 = vadd.f32 %v10892_v2, %v10843_v13  ;;  %v11134_v13 = vxor.u32 2147516416, %v20706_v53  ;;  %v11360_v2 = vunpack.c.l.bf16 %v11323_v24 }
 0x651   :  { %v11058_v1 = vadd.f32 %v11026_v9, %v10893_v40  ;;  %v11156_v38 = vunpack.c.l.bf16 %v11134_v13  ;;  %v11157_v30 = vunpack.c.h.bf16 %v11134_v13  ;;  %13063 = vrcp.f32 %v11360_v2 }
 0x653   :  { %v11096_v12 = vadd.f32 %v20553_v62, %v11058_v1  ;;  %v11200_v16 = vmul.f32 1.442695, %v11156_v38  ;;  %v11202_v61 = vmul.f32 1.442695, %v11157_v30  ;;  %v11033_v1 = vunpack.c.h.bf16 %v20709_v20 }
 0x655   :  { %v10990_v4 = vpop.f32.mrf.mxu3  ;;  %13065 = vpow2.f32 %v11200_v16 }
 0x656   :  { %v10991_v52 = vadd.f32 %v10990_v4, %v10941_v49  ;;  %v10894_v47 = vpop.f32.mrf.mxu1  ;;  %v10943_v3 = vpop.f32.mrf.mxu2  ;;  %v11030_v49 = vunpack.c.l.bf16 %v20660_v32  ;;  %v11206_v4 = vmul.f32 1.442695, %v11159_v21  ;;  %13067 = vpow2.f32 %v11202_v61 }
 0x657   :  { %v10848_v37 = vpop.f32.mrf.mxu0  ;;  %v10895_v60 = vadd.f32 %v10894_v47, %v10845_v15  ;;  %v11036_v15 = vunpack.c.l.bf16 %v20687_v39  ;;  %13069 = vpow2.f32 %v11204_v22  ;;  %v11454_v21 = vunpack.c.l.bf16 %v20629_v19 }
 0x658   :  { %v11059_v43 = vadd.f32 %v11027_v57, %v10991_v52  ;;  %v13056_v57 = vpop.eup %13055  ;;  %13071 = vpow2.f32 %v11206_v4 }
 0x659   :  { %v11060_v40 = vadd.f32 %v11028_v55, %v10895_v60  ;;  %v13058_v14 = vpop.eup %13057 }
 0x65a   :  { %v11097_v59 = vadd.f32 %v20548_v44, %v11059_v43  ;;  %v13060_v56 = vpop.eup %13059  ;;  %v11244_v43 = vpack.c.bf16 %v13052_v50, %v13050_v28 }
 0x65b   :  { %v11098_v31 = vadd.f32 %v20553_v62, %v11060_v40  ;;  %v13062_v27 = vpop.eup %13061 }
 0x65c   :  { %v20724_v6 = vpack.c.bf16 %v11097_v59, %v11096_v12  ;;  %v11357_v12 = vmul.f32 %v13060_v56, %v20584_v26  ;;  %v13064_v59 = vpop.eup %13063  ;;  %v11362_v10 = vmul.f32 %v13062_v27, %v20582_v48 }
 0x65d   :  { %v10992_v54 = vpop.f32.mrf.mxu3  ;;  %v11364_v2 = vmul.f32 %v13064_v59, %v20584_v26 }
 0x65e   :  { %v11136_v58 = vxor.u32 2147516416, %v20724_v6  ;;  %v10993_v9 = vadd.f32 %v10992_v54, %v10943_v3  ;;  %v10897_v42 = vpop.f32.mrf.mxu1  ;;  %v10946_v25 = vpop.f32.mrf.mxu2  ;;  %v11034_v3 = vunpack.c.l.bf16 %v20704_v33  ;;  %v11456_v54 = vunpack.c.l.bf16 %v20636_v36 }
 0x65f   :  { %v10898_v13 = vadd.f32 %v10897_v42, %v10848_v37  ;;  %v10850_v46 = vpop.f32.mrf.mxu0  ;;  %v11355_v37 = vmul.f32 %v13058_v14, %v20582_v48  ;;  %v11365_v40 = vpack.c.bf16 %v11362_v10, %v11364_v2  ;;  %v11460_v33 = vunpack.c.l.bf16 %v20679_v45 }
 0x660   :  { %v11061_v34 = vadd.f32 %v11029_v63, %v10993_v9  ;;  %v11160_v52 = vunpack.c.l.bf16 %v11136_v58  ;;  %v11161_v47 = vunpack.c.h.bf16 %v11136_v58  ;;  %v20736_v63 = vpack.c.bf16 %v13056_v57, %v13054_v51  ;;  %v13066_v58 = vpop.eup %13065 }
 0x661   :  { %v11062_v24 = vadd.f32 %v11030_v49, %v10898_v13  ;;  %v11358_v0 = vpack.c.bf16 %v11355_v37, %v11357_v12  ;;  %v11455_v49 = vunpack.c.h.bf16 %v20629_v19  ;;  %v11457_v51 = vunpack.c.h.bf16 %v20636_v36  ;;  %v13068_v61 = vpop.eup %13067 }
 0x662   :  { %v11099_v55 = vadd.f32 %v20548_v44, %v11061_v34  ;;  %v11208_v60 = vmul.f32 1.442695, %v11160_v52  ;;  %v11210_v41 = vmul.f32 1.442695, %v11161_v47  ;;  %v11264_v57 = vunpack.c.l.bf16 %v11244_v43  ;;  %v13070_v13 = vpop.eup %13069 }
 0x663   :  { %v11486_v9 = vunpack.c.l.bf16 %v11358_v0  ;;  %v11100_v42 = vadd.f32 %v20553_v62, %v11062_v24  ;;  %v11487_v22 = vunpack.c.h.bf16 %v11358_v0  ;;  %v11265_v34 = vunpack.c.h.bf16 %v11244_v43  ;;  %v13072_v47 = vpop.eup %13071 }
 0x664   :  { %v20739_v38 = vpack.c.bf16 %v11099_v55, %v11098_v31  ;;  %13073 = vpow2.f32 %v11208_v60  ;;  %v11488_v52 = vunpack.c.l.bf16 %v11365_v40  ;;  %v11489_v36 = vunpack.c.h.bf16 %v11365_v40 }
 0x665   :  { %v10995_v30 = vpop.f32.mrf.mxu3  ;;  %13075 = vpow2.f32 %v11210_v41  ;;  %v11266_v31 = vunpack.c.l.bf16 %v20736_v63  ;;  %v11267_v55 = vunpack.c.h.bf16 %v20736_v63  ;;  %v11518_v27 = vmul.f32 %v11486_v9, %v11454_v21 }
 0x666   :  { %v11137_v28 = vxor.u32 2147516416, %v20739_v38  ;;  %v10996_v18 = vadd.f32 %v10995_v30, %v10946_v25  ;;  %v10899_v50 = vpop.f32.mrf.mxu1  ;;  %v10948_v16 = vpop.f32.mrf.mxu2  ;;  %v11520_v12 = vmul.f32 %v11488_v52, %v11456_v54  ;;  %v11296_v32 = vadd.f32 1.0, %v11264_v57 }
 0x667   :  { %v10900_v19 = vadd.f32 %v10899_v50, %v10850_v46  ;;  %v10853_v56 = vpop.f32.mrf.mxu0  ;;  %v11521_v43 = vmul.f32 %v11489_v36, %v11457_v51  ;;  %v11297_v60 = vadd.f32 1.0, %v11265_v34  ;;  %v11298_v50 = vadd.f32 1.0, %v11266_v31 }
 0x668   :  { %v11063_v25 = vadd.f32 %v11031_v17, %v10996_v18  ;;  %v11162_v4 = vunpack.c.l.bf16 %v11137_v28  ;;  %v11163_v37 = vunpack.c.h.bf16 %v11137_v28  ;;  %v11519_v17 = vmul.f32 %v11487_v22, %v11455_v49 }
 0x669   :  { %v11548_v41 = vpack.c.bf16 %v11520_v12, %v11518_v27  ;;  %v11064_v10 = vadd.f32 %v11032_v35, %v10900_v19  ;;  %v11299_v21 = vadd.f32 1.0, %v11267_v55  ;;  %v11324_v51 = vpack.c.bf16 %v11297_v60, %v11296_v32 }
 0x66a   :  { %v11101_v14 = vadd.f32 %v20548_v44, %v11063_v25  ;;  %v11212_v46 = vmul.f32 1.442695, %v11162_v4  ;;  %v13074_v63 = vpop.eup %13073  ;;  %v11549_v18 = vpack.c.bf16 %v11521_v43, %v11519_v17  ;;  %v11038_v40 = vunpack.c.l.bf16 %v20713_v11 }
 0x66b   :  { %v13076_v54 = vpop.eup %13075  ;;  %11773 = vmatmul.bf16.gmra.mxu0 %v11548_v41  ;;  %11871 = vmatmul.bf16.gmra.mxu2 %v11548_v41  ;;  %v11039_v35 = vunpack.c.h.bf16 %v20713_v11  ;;  %v11214_v9 = vmul.f32 1.442695, %v11163_v37  ;;  %v11325_v57 = vpack.c.bf16 %v11299_v21, %v11298_v50  ;;  %v11102_v25 = vadd.f32 %v20553_v62, %v11064_v10 }
 0x66c   :  { %v20755_v24 = vpack.c.bf16 %v11101_v14, %v11100_v42  ;;  %11822 = vmatmul.bf16.gmra.mxu1 %v11549_v18  ;;  %11920 = vmatmul.bf16.gmra.mxu3 %v11549_v18  ;;  %v11366_v4 = vunpack.c.h.bf16 %v11324_v51  ;;  %v20766_v52 = vpack.c.bf16 %v13076_v54, %v13074_v63  ;;  %13077 = vpow2.f32 %v11212_v46 }
 0x66d   :  { %v10997_v59 = vpop.f32.mrf.mxu3  ;;  %v11247_v14 = vpack.c.bf16 %v13072_v47, %v13070_v13  ;;  %v11374_v31 = vunpack.c.l.bf16 %v11325_v57  ;;  %v11040_v37 = vunpack.c.l.bf16 %v20711_v23  ;;  %v11041_v46 = vunpack.c.h.bf16 %v20711_v23 }
 0x66e   :  { %v10998_v30 = vadd.f32 %v10997_v59, %v10948_v16  ;;  %v10902_v0 = vpop.f32.mrf.mxu1  ;;  %v10951_v2 = vpop.f32.mrf.mxu2  ;;  %v11138_v28 = vxor.u32 2147516416, %v20755_v24  ;;  %v11246_v16 = vpack.c.bf16 %v13068_v61, %v13066_v58  ;;  %13079 = vrcp.f32 %v11366_v4 }
 0x66f   :  { %v11373_v58 = vunpack.c.h.bf16 %v11325_v57  ;;  %v10903_v61 = vadd.f32 %v10902_v0, %v10853_v56  ;;  %v10855_v36 = vpop.f32.mrf.mxu0  ;;  %13081 = vpow2.f32 %v11214_v9  ;;  %v11272_v56 = vunpack.c.l.bf16 %v20766_v52 }
 0x670   :  { %v11065_v49 = vadd.f32 %v11033_v1, %v10998_v30  ;;  %v11164_v42 = vunpack.c.l.bf16 %v11138_v28  ;;  %v11165_v22 = vunpack.c.h.bf16 %v11138_v28  ;;  %v11367_v1 = vunpack.c.l.bf16 %v11324_v51 }
 0x671   :  { %v11066_v43 = vadd.f32 %v11034_v3, %v10903_v61  ;;  %v11268_v59 = vunpack.c.l.bf16 %v11246_v16  ;;  %v11269_v60 = vunpack.c.h.bf16 %v11246_v16  ;;  %v11273_v10 = vunpack.c.h.bf16 %v20766_v52 }
 0x672   :  { %v11103_v34 = vadd.f32 %v20548_v44, %v11065_v49  ;;  %v11216_v20 = vmul.f32 1.442695, %v11164_v42  ;;  %v11218_v27 = vmul.f32 1.442695, %v11165_v22  ;;  %v13078_v41 = vpop.eup %13077  ;;  %v11270_v0 = vunpack.c.l.bf16 %v11247_v14 }
 0x673   :  { %v11458_v3 = vunpack.c.l.bf16 %v20674_v7  ;;  %v11271_v63 = vunpack.c.h.bf16 %v11247_v14  ;;  %v11300_v18 = vadd.f32 1.0, %v11268_v59  ;;  %v11104_v21 = vadd.f32 %v20553_v62, %v11066_v43 }
 0x674   :  { %v20768_v19 = vpack.c.bf16 %v11103_v34, %v11102_v25  ;;  %13083 = vpow2.f32 %v11216_v20  ;;  %v11301_v49 = vadd.f32 1.0, %v11269_v60  ;;  %v11302_v25 = vadd.f32 1.0, %v11270_v0 }
 0x675   :  { %v11000_v55 = vpop.f32.mrf.mxu3  ;;  %13085 = vrcp.f32 %v11367_v1  ;;  %v11303_v34 = vadd.f32 1.0, %v11271_v63  ;;  %v11461_v61 = vunpack.c.h.bf16 %v20679_v45 }
 0x676   :  { %v11139_v12 = vxor.u32 2147516416, %v20768_v19  ;;  %v11001_v32 = vadd.f32 %v11000_v55, %v10951_v2  ;;  %v10904_v17 = vpop.f32.mrf.mxu1  ;;  %13087 = vrcp.f32 %v11373_v58  ;;  %v10953_v47 = vpop.f32.mrf.mxu2  ;;  %v11326_v4 = vpack.c.bf16 %v11301_v49, %v11300_v18 }
 0x677   :  { %v10905_v13 = vadd.f32 %v10904_v17, %v10855_v36  ;;  %13089 = vrcp.f32 %v11374_v31  ;;  %v13080_v2 = vpop.eup %13079  ;;  %v11459_v58 = vunpack.c.h.bf16 %v20674_v7  ;;  %v10858_v14 = vpop.f32.mrf.mxu0 }
 0x678   :  { %v11067_v30 = vadd.f32 %v11035_v8, %v11001_v32  ;;  %13091 = vpow2.f32 %v11218_v27  ;;  %v13082_v28 = vpop.eup %13081  ;;  %v11166_v50 = vunpack.c.l.bf16 %v11139_v12  ;;  %v11167_v16 = vunpack.c.h.bf16 %v11139_v12 }
 0x679   :  { %v11369_v9 = vmul.f32 %v13080_v2, %v20582_v48  ;;  %v11068_v8 = vadd.f32 %v11036_v15, %v10905_v13  ;;  %v20791_v27 = vpack.c.bf16 %v13082_v28, %v13078_v41  ;;  %v11380_v60 = vunpack.c.h.bf16 %v11326_v4 }
 0x67a   :  { %v11105_v54 = vadd.f32 %v20548_v44, %v11067_v30  ;;  %v13084_v51 = vpop.eup %13083  ;;  %v11220_v15 = vmul.f32 1.442695, %v11166_v50  ;;  %v11222_v45 = vmul.f32 1.442695, %v11167_v16  ;;  %v11327_v30 = vpack.c.bf16 %v11303_v34, %v11302_v25 }
 0x67b   :  { %v13086_v42 = vpop.eup %13085 }
 0x67c   :  { %v20786_v57 = vpack.c.bf16 %v11105_v54, %v11104_v21  ;;  %v13088_v20 = vpop.eup %13087  ;;  %v11371_v1 = vmul.f32 %v13086_v42, %v20584_v26  ;;  %13093 = vpow2.f32 %v11220_v15  ;;  %v11387_v16 = vunpack.c.h.bf16 %v11327_v30 }
 0x67d   :  { %v11002_v22 = vpop.f32.mrf.mxu3  ;;  %v13090_v55 = vpop.eup %13089  ;;  %v11376_v12 = vmul.f32 %v13088_v20, %v20582_v48  ;;  %13095 = vrcp.f32 %v11380_v60 }
 0x67e   :  { %v11003_v36 = vadd.f32 %v11002_v22, %v10953_v47  ;;  %v10907_v31 = vpop.f32.mrf.mxu1  ;;  %v11140_v32 = vxor.u32 2147516416, %v20786_v57  ;;  %v13092_v17 = vpop.eup %13091  ;;  %v11372_v43 = vpack.c.bf16 %v11369_v9, %v11371_v1  ;;  %v11378_v59 = vmul.f32 %v13090_v55, %v20584_v26 }
 0x67f   :  { %v11106_v47 = vadd.f32 %v20553_v62, %v11068_v8  ;;  %v10956_v18 = vpop.f32.mrf.mxu2  ;;  %v20800_v28 = vpack.c.bf16 %v13092_v17, %v13084_v51  ;;  %13097 = vpow2.f32 %v11222_v45  ;;  %v11388_v9 = vunpack.c.l.bf16 %v11327_v30  ;;  %v10860_v15 = vpop.f32.mrf.mxu0 }
 0x680   :  { %v11069_v7 = vadd.f32 %v11037_v5, %v11003_v36  ;;  %v11168_v13 = vunpack.c.l.bf16 %v11140_v32  ;;  %v11379_v41 = vpack.c.bf16 %v11376_v12, %v11378_v59  ;;  %v11490_v0 = vunpack.c.l.bf16 %v11372_v43 }
 0x681   :  { %v11491_v2 = vunpack.c.h.bf16 %v11372_v43  ;;  %v11169_v50 = vunpack.c.h.bf16 %v11140_v32  ;;  %v11381_v5 = vunpack.c.l.bf16 %v11326_v4  ;;  %v10908_v1 = vadd.f32 %v10907_v31, %v10858_v14 }
 0x682   :  { %v11107_v63 = vadd.f32 %v20548_v44, %v11069_v7  ;;  %v11224_v21 = vmul.f32 1.442695, %v11168_v13  ;;  %v11492_v54 = vunpack.c.l.bf16 %v11379_v41  ;;  %v11493_v39 = vunpack.c.h.bf16 %v11379_v41  ;;  %v13094_v32 = vpop.eup %13093 }
 0x683   :  { %v11522_v42 = vmul.f32 %v11490_v0, %v11458_v3  ;;  %v11523_v25 = vmul.f32 %v11491_v2, %v11459_v58  ;;  %v11226_v51 = vmul.f32 1.442695, %v11169_v50  ;;  %v11070_v3 = vadd.f32 %v11038_v40, %v10908_v1 }
 0x684   :  { %v20802_v49 = vpack.c.bf16 %v11107_v63, %v11106_v47  ;;  %v11524_v22 = vmul.f32 %v11492_v54, %v11460_v33  ;;  %v11525_v34 = vmul.f32 %v11493_v39, %v11461_v61  ;;  %13099 = vpow2.f32 %v11224_v21  ;;  %v13096_v33 = vpop.eup %13095 }
 0x685   :  { %v11005_v8 = vpop.f32.mrf.mxu3  ;;  %13101 = vrcp.f32 %v11381_v5  ;;  %v11462_v58 = vunpack.c.l.bf16 %v20706_v53  ;;  %v11464_v61 = vunpack.c.l.bf16 %v20715_v29  ;;  %v13098_v31 = vpop.eup %13097  ;;  %v11274_v45 = vunpack.c.l.bf16 %v20791_v27 }
 0x686   :  { %v11141_v20 = vxor.u32 2147516416, %v20802_v49  ;;  %v11550_v36 = vpack.c.bf16 %v11524_v22, %v11522_v42  ;;  %v11551_v55 = vpack.c.bf16 %v11525_v34, %v11523_v25  ;;  %v11006_v4 = vadd.f32 %v11005_v8, %v10956_v18  ;;  %v10909_v12 = vpop.f32.mrf.mxu1 }
 0x687   :  { %13103 = vrcp.f32 %v11387_v16  ;;  %v10910_v60 = vadd.f32 %v10909_v12, %v10860_v15  ;;  %v11108_v40 = vadd.f32 %v20553_v62, %v11070_v3  ;;  %v10958_v47 = vpop.f32.mrf.mxu2  ;;  %v11275_v30 = vunpack.c.h.bf16 %v20791_v27 }
 0x688   :  { %v11170_v17 = vunpack.c.l.bf16 %v11141_v20  ;;  %v11171_v43 = vunpack.c.h.bf16 %v11141_v20  ;;  %11778 = vmatmul.bf16.gmra.mxu0 %v11550_v36  ;;  %11827 = vmatmul.bf16.gmra.mxu1 %v11551_v55  ;;  %13105 = vrcp.f32 %v11388_v9  ;;  %v11071_v14 = vadd.f32 %v11039_v35, %v11006_v4 }
 0x689   :  { %11876 = vmatmul.bf16.gmra.mxu2 %v11550_v36  ;;  %11925 = vmatmul.bf16.gmra.mxu3 %v11551_v55  ;;  %v11304_v41 = vadd.f32 1.0, %v11272_v56  ;;  %v11276_v35 = vunpack.c.l.bf16 %v20800_v28  ;;  %13107 = vpow2.f32 %v11226_v51  ;;  %v11383_v0 = vmul.f32 %v13096_v33, %v20582_v48 }
 0x68a   :  { %v11228_v59 = vmul.f32 1.442695, %v11170_v17  ;;  %v11230_v7 = vmul.f32 1.442695, %v11171_v43  ;;  %v11109_v13 = vadd.f32 %v20548_v44, %v11071_v14  ;;  %v13100_v11 = vpop.eup %13099  ;;  %v11305_v63 = vadd.f32 1.0, %v11273_v10 }
 0x68b   :  { %v13102_v18 = vpop.eup %13101  ;;  %v20821_v50 = vpack.c.bf16 %v13098_v31, %v13094_v32  ;;  %v11306_v27 = vadd.f32 1.0, %v11274_v45  ;;  %v11307_v5 = vadd.f32 1.0, %v11275_v30  ;;  %v11072_v10 = vadd.f32 %v11040_v37, %v10910_v60 }
 0x68c   :  { %13109 = vpow2.f32 %v11228_v59  ;;  %v20823_v21 = vpack.c.bf16 %v11109_v13, %v11108_v40  ;;  %v11385_v56 = vmul.f32 %v13102_v18, %v20584_v26  ;;  %v11328_v16 = vpack.c.bf16 %v11305_v63, %v11304_v41 }
 0x68d   :  { %v11007_v2 = vpop.f32.mrf.mxu3  ;;  %v13104_v54 = vpop.eup %13103  ;;  %13111 = vpow2.f32 %v11230_v7  ;;  %v11277_v42 = vunpack.c.h.bf16 %v20800_v28  ;;  %v11278_v51 = vunpack.c.l.bf16 %v20821_v50  ;;  %v11463_v20 = vunpack.c.h.bf16 %v20706_v53 }
 0x68e   :  { %v11008_v39 = vadd.f32 %v11007_v2, %v10958_v47  ;;  %v13106_v9 = vpop.eup %13105  ;;  %v11390_v8 = vmul.f32 %v13104_v54, %v20582_v48  ;;  %v11142_v52 = vxor.u32 2147516416, %v20823_v21  ;;  %v11386_v22 = vpack.c.bf16 %v11383_v0, %v11385_v56 }
 0x68f   :  { %v11392_v25 = vmul.f32 %v13106_v9, %v20584_v26  ;;  %v11329_v1 = vpack.c.bf16 %v11307_v5, %v11306_v27  ;;  %v11394_v36 = vunpack.c.h.bf16 %v11328_v16  ;;  %v13108_v55 = vpop.eup %13107  ;;  %v11465_v28 = vunpack.c.h.bf16 %v20715_v29 }
 0x690   :  { %v11073_v34 = vadd.f32 %v11041_v46, %v11008_v39  ;;  %v11494_v15 = vunpack.c.l.bf16 %v11386_v22  ;;  %v11495_v12 = vunpack.c.h.bf16 %v11386_v22  ;;  %v11172_v17 = vunpack.c.l.bf16 %v11142_v52 }
 0x691   :  { %v11393_v4 = vpack.c.bf16 %v11390_v8, %v11392_v25  ;;  %v11173_v43 = vunpack.c.h.bf16 %v11142_v52  ;;  %v11110_v23 = vadd.f32 %v20553_v62, %v11072_v10  ;;  %v11395_v33 = vunpack.c.l.bf16 %v11328_v16 }
 0x692   :  { %v11111_v37 = vadd.f32 %v20548_v44, %v11073_v34  ;;  %v13110_v32 = vpop.eup %13109  ;;  %13113 = vrcp.f32 %v11394_v36  ;;  %v11279_v14 = vunpack.c.h.bf16 %v20821_v50  ;;  %v11526_v31 = vmul.f32 %v11494_v15, %v11462_v58 }
 0x693   :  { %v11496_v46 = vunpack.c.l.bf16 %v11393_v4  ;;  %v11497_v3 = vunpack.c.h.bf16 %v11393_v4  ;;  %v13112_v53 = vpop.eup %13111  ;;  %v11401_v7 = vunpack.c.h.bf16 %v11329_v1  ;;  %v11527_v44 = vmul.f32 %v11495_v12, %v11463_v20 }
 0x694   :  { %v20840_v59 = vpack.c.bf16 %v11111_v37, %v11110_v23  ;;  %v11402_v40 = vunpack.c.l.bf16 %v11329_v1  ;;  %v11252_v29 = vpack.c.bf16 %v13108_v55, %v13100_v11  ;;  %v11232_v13 = vmul.f32 1.442695, %v11172_v17 }
 0x695   :  { %v11528_v60 = vmul.f32 %v11496_v46, %v11464_v61  ;;  %v11529_v45 = vmul.f32 %v11497_v3, %v11465_v28  ;;  %v11234_v47 = vmul.f32 1.442695, %v11173_v43  ;;  %v11253_v30 = vpack.c.bf16 %v13112_v53, %v13110_v32 }
 0x696   :  { %v11143_v62 = vxor.u32 2147516416, %v20840_v59  ;;  %13115 = vrcp.f32 %v11395_v33  ;;  %v11308_v58 = vadd.f32 1.0, %v11276_v35  ;;  %v11309_v61 = vadd.f32 1.0, %v11277_v42 }
 0x697   :  { %v11552_v41 = vpack.c.bf16 %v11528_v60, %v11526_v31  ;;  %v11553_v0 = vpack.c.bf16 %v11529_v45, %v11527_v44  ;;  %13117 = vrcp.f32 %v11401_v7  ;;  %v11310_v50 = vadd.f32 1.0, %v11278_v51 }
 0x698   :  { %v11174_v2 = vunpack.c.l.bf16 %v11143_v62  ;;  %v11175_v63 = vunpack.c.h.bf16 %v11143_v62  ;;  %v13114_v18 = vpop.eup %13113  ;;  %13119 = vrcp.f32 %v11402_v40  ;;  %v11311_v54 = vadd.f32 1.0, %v11279_v14 }
 0x699   :  { %11783 = vmatmul.bf16.gmra.mxu0 %v11552_v41  ;;  %11832 = vmatmul.bf16.gmra.mxu1 %v11553_v0  ;;  %v11280_v56 = vunpack.c.l.bf16 %v11252_v29  ;;  %v11282_v39 = vunpack.c.l.bf16 %v11253_v30  ;;  %13121 = vpow2.f32 %v11232_v13  ;;  %v11330_v5 = vpack.c.bf16 %v11309_v61, %v11308_v58 }
 0x69a   :  { %11881 = vmatmul.bf16.gmra.mxu2 %v11552_v41  ;;  %11930 = vmatmul.bf16.gmra.mxu3 %v11553_v0  ;;  %v11236_v11 = vmul.f32 1.442695, %v11174_v2  ;;  %v11238_v27 = vmul.f32 1.442695, %v11175_v63  ;;  %v11283_v16 = vunpack.c.h.bf16 %v11253_v30  ;;  %13123 = vpow2.f32 %v11234_v47 }
 0x69b   :  { %v11397_v9 = vmul.f32 %v13114_v18, %v20582_v48  ;;  %v11331_v35 = vpack.c.bf16 %v11311_v54, %v11310_v50  ;;  %v11281_v52 = vunpack.c.h.bf16 %v11252_v29  ;;  %v11408_v10 = vunpack.c.h.bf16 %v11330_v5 }
 0x69c   :  { %v13116_v8 = vpop.eup %13115  ;;  %13125 = vpow2.f32 %v11236_v11  ;;  %v11409_v42 = vunpack.c.l.bf16 %v11330_v5  ;;  %v11314_v36 = vadd.f32 1.0, %v11282_v39  ;;  %v11315_v15 = vadd.f32 1.0, %v11283_v16 }
 0x69d   :  { %v13118_v22 = vpop.eup %13117  ;;  %13127 = vpow2.f32 %v11238_v27  ;;  %v11399_v25 = vmul.f32 %v13116_v8, %v20584_v26  ;;  %v11415_v34 = vunpack.c.h.bf16 %v11331_v35  ;;  %v11416_v51 = vunpack.c.l.bf16 %v11331_v35 }
 0x69e   :  { %v13120_v20 = vpop.eup %13119  ;;  %v11404_v1 = vmul.f32 %v13118_v22, %v20582_v48  ;;  %13129 = vrcp.f32 %v11408_v10  ;;  %v11312_v37 = vadd.f32 1.0, %v11280_v56  ;;  %v11313_v32 = vadd.f32 1.0, %v11281_v52 }
 0x69f   :  { %v11400_v55 = vpack.c.bf16 %v11397_v9, %v11399_v25  ;;  %v11406_v4 = vmul.f32 %v13120_v20, %v20584_v26  ;;  %13131 = vrcp.f32 %v11409_v42  ;;  %v13122_v12 = vpop.eup %13121  ;;  %v11466_v3 = vunpack.c.l.bf16 %v20724_v6 }
 0x6a0   :  { %13133 = vrcp.f32 %v11415_v34  ;;  %v13124_v28 = vpop.eup %13123  ;;  %v11468_v33 = vunpack.c.l.bf16 %v20739_v38  ;;  %v11333_v53 = vpack.c.bf16 %v11315_v15, %v11314_v36  ;;  %v11467_v7 = vunpack.c.h.bf16 %v20724_v6 }
 0x6a1   :  { %v11407_v17 = vpack.c.bf16 %v11404_v1, %v11406_v4  ;;  %v11498_v43 = vunpack.c.l.bf16 %v11400_v55  ;;  %v11499_v23 = vunpack.c.h.bf16 %v11400_v55  ;;  %13135 = vrcp.f32 %v11416_v51 }
 0x6a2   :  { %v13126_v46 = vpop.eup %13125  ;;  %v11469_v60 = vunpack.c.h.bf16 %v20739_v38  ;;  %v11332_v40 = vpack.c.bf16 %v11313_v32, %v11312_v37  ;;  %v11429_v63 = vunpack.c.h.bf16 %v11333_v53  ;;  %v11430_v58 = vunpack.c.l.bf16 %v11333_v53 }
 0x6a3   :  { %v13128_v14 = vpop.eup %13127  ;;  %v11500_v31 = vunpack.c.l.bf16 %v11407_v17  ;;  %v11501_v44 = vunpack.c.h.bf16 %v11407_v17  ;;  %v11530_v13 = vmul.f32 %v11498_v43, %v11466_v3  ;;  %v11531_v62 = vmul.f32 %v11499_v23, %v11467_v7 }
 0x6a4   :  { %v13130_v45 = vpop.eup %13129  ;;  %v11255_v0 = vpack.c.bf16 %v13128_v14, %v13126_v46  ;;  %v11254_v11 = vpack.c.bf16 %v13124_v28, %v13122_v12  ;;  %v11422_v54 = vunpack.c.h.bf16 %v11332_v40  ;;  %v11423_v56 = vunpack.c.l.bf16 %v11332_v40 }
 0x6a5   :  { %v13132_v29 = vpop.eup %13131  ;;  %v11532_v47 = vmul.f32 %v11500_v31, %v11468_v33  ;;  %v11533_v30 = vmul.f32 %v11501_v44, %v11469_v60  ;;  %v11411_v2 = vmul.f32 %v13130_v45, %v20582_v48  ;;  %13137 = vrcp.f32 %v11429_v63 }
 0x6a6   :  { %v13134_v41 = vpop.eup %13133  ;;  %v11413_v6 = vmul.f32 %v13132_v29, %v20584_v26  ;;  %v11286_v5 = vunpack.c.l.bf16 %v11255_v0  ;;  %v11287_v16 = vunpack.c.h.bf16 %v11255_v0  ;;  %13139 = vrcp.f32 %v11430_v58  ;;  %v11867_v0 = vpop.f32.mrf.mxu2 }
 0x6a7   :  { %v13136_v18 = vpop.eup %13135  ;;  %v11554_v61 = vpack.c.bf16 %v11532_v47, %v11530_v13  ;;  %v11555_v50 = vpack.c.bf16 %v11533_v30, %v11531_v62  ;;  %v11418_v38 = vmul.f32 %v13134_v41, %v20582_v48  ;;  %v11284_v35 = vunpack.c.l.bf16 %v11254_v11  ;;  %v11594_v13 = vld [vmem:[%s21241_s7] sm:$0x3]  ;;  %v11769_v47 = vpop.f32.mrf.mxu0 }
 0x6a8   :  { %v11420_v27 = vmul.f32 %v13136_v18, %v20584_v26  ;;  %v11414_v9 = vpack.c.bf16 %v11411_v2, %v11413_v6  ;;  %13141 = vrcp.f32 %v11422_v54  ;;  %v11285_v8 = vunpack.c.h.bf16 %v11254_v11  ;;  %v11818_v62 = vpop.f32.mrf.mxu1  ;;  %v11916_v2 = vpop.f32.mrf.mxu3 }
 0x6a9   :  { %11788 = vmatmul.bf16.gmra.mxu0 %v11554_v61  ;;  %11837 = vmatmul.bf16.gmra.mxu1 %v11555_v50  ;;  %13143 = vrcp.f32 %v11423_v56  ;;  %v11472_v42 = vunpack.c.l.bf16 %v20768_v19  ;;  %v11473_v22 = vunpack.c.h.bf16 %v20768_v19  ;;  %v11318_v51 = vadd.f32 1.0, %v11286_v5 }
 0x6aa   :  { %11886 = vmatmul.bf16.gmra.mxu2 %v11554_v61  ;;  %11935 = vmatmul.bf16.gmra.mxu3 %v11555_v50  ;;  %v11421_v39 = vpack.c.bf16 %v11418_v38, %v11420_v27  ;;  %v11502_v25 = vunpack.c.l.bf16 %v11414_v9  ;;  %v11503_v34 = vunpack.c.h.bf16 %v11414_v9  ;;  %v11319_v20 = vadd.f32 1.0, %v11287_v16 }
 0x6ab   :  { %v13138_v1 = vpop.eup %13137  ;;  %v11470_v36 = vunpack.c.l.bf16 %v20755_v24  ;;  %v11471_v55 = vunpack.c.h.bf16 %v20755_v24  ;;  %v11316_v37 = vadd.f32 1.0, %v11284_v35  ;;  %v11317_v32 = vadd.f32 1.0, %v11285_v8 }
 0x6ac   :  { %v11504_v52 = vunpack.c.l.bf16 %v11421_v39  ;;  %v11505_v10 = vunpack.c.h.bf16 %v11421_v39  ;;  %v13140_v4 = vpop.eup %13139  ;;  %v11335_v46 = vpack.c.bf16 %v11319_v20, %v11318_v51  ;;  %v11432_v19 = vmul.f32 %v13138_v1, %v20582_v48 }
 0x6ad   :  { %v11534_v43 = vmul.f32 %v11502_v25, %v11470_v36  ;;  %v11535_v23 = vmul.f32 %v11503_v34, %v11471_v55  ;;  %v11434_v3 = vmul.f32 %v13140_v4, %v20584_v26  ;;  %v11334_v14 = vpack.c.bf16 %v11317_v32, %v11316_v37 }
 0x6ae   :  { %v11536_v15 = vmul.f32 %v11504_v52, %v11472_v42  ;;  %v11537_v12 = vmul.f32 %v11505_v10, %v11473_v22  ;;  %v13142_v28 = vpop.eup %13141  ;;  %v11443_v7 = vunpack.c.h.bf16 %v11335_v46  ;;  %v11444_v44 = vunpack.c.l.bf16 %v11335_v46 }
 0x6af   :  { %v13144_v17 = vpop.eup %13143  ;;  %v11425_v31 = vmul.f32 %v13142_v28, %v20582_v48  ;;  %v11435_v60 = vpack.c.bf16 %v11432_v19, %v11434_v3  ;;  %v11436_v45 = vunpack.c.h.bf16 %v11334_v14  ;;  %v11437_v29 = vunpack.c.l.bf16 %v11334_v14  ;;  %v11771_v10 = vpop.f32.mrf.mxu0 }
 0x6b0   :  { %v11556_v33 = vpack.c.bf16 %v11536_v15, %v11534_v43  ;;  %v11557_v53 = vpack.c.bf16 %v11537_v12, %v11535_v23  ;;  %v11427_v24 = vmul.f32 %v13144_v17, %v20584_v26  ;;  %13145 = vrcp.f32 %v11443_v7  ;;  %v11820_v20 = vpop.f32.mrf.mxu1  ;;  %v11918_v15 = vpop.f32.mrf.mxu3 }
 0x6b1   :  { %v20866_v30 = vperm.slane %v11594_v13, 0  ;;  %v20868_v41 = vperm.slane %v11594_v13, 1  ;;  %v11508_v63 = vunpack.c.l.bf16 %v11435_v60  ;;  %13147 = vrcp.f32 %v11444_v44 }
 0x6b2   :  { %v11428_v40 = vpack.c.bf16 %v11425_v31, %v11427_v24  ;;  %v11509_v58 = vunpack.c.h.bf16 %v11435_v60  ;;  %13149 = vrcp.f32 %v11436_v45  ;;  %v11476_v50 = vunpack.c.l.bf16 %v20802_v49 }
 0x6b3   :  { %v11770_v18 = vadd.f32 %v11769_v47, %v20866_v30  ;;  %v11868_v61 = vadd.f32 %v11867_v0, %v20868_v41  ;;  %13151 = vrcp.f32 %v11437_v29  ;;  %v11477_v38 = vunpack.c.h.bf16 %v20802_v49  ;;  %v11869_v49 = vpop.f32.mrf.mxu2 }
 0x6b4   :  { %v11506_v6 = vunpack.c.l.bf16 %v11428_v40  ;;  %v11507_v11 = vunpack.c.h.bf16 %v11428_v40  ;;  %v11474_v56 = vunpack.c.l.bf16 %v20786_v57  ;;  %v11540_v39 = vmul.f32 %v11508_v63, %v11476_v50 }
 0x6b5   :  { %v11819_v27 = vadd.f32 %v11818_v62, %v11770_v18  ;;  %v11917_v54 = vadd.f32 %v11916_v2, %v11868_v61  ;;  %v11475_v16 = vunpack.c.h.bf16 %v20786_v57  ;;  %v11541_v9 = vmul.f32 %v11509_v58, %v11477_v38 }
 0x6b6   :  { %v13146_v5 = vpop.eup %13145  ;;  %v11538_v52 = vmul.f32 %v11506_v6, %v11474_v56  ;;  %v11772_v25 = vadd.f32 %v11771_v10, %v20866_v30  ;;  %v11870_v1 = vadd.f32 %v11869_v49, %v20868_v41  ;;  %v11480_v19 = vunpack.c.l.bf16 %v20840_v59 }
 0x6b7   :  { %v20876_v35 = vpack.c.bf16 %v11917_v54, %v11819_v27  ;;  %v13148_v8 = vpop.eup %13147  ;;  %v11539_v22 = vmul.f32 %v11507_v11, %v11475_v16  ;;  %v11446_v55 = vmul.f32 %v13146_v5, %v20582_v48  ;;  %v11478_v14 = vunpack.c.l.bf16 %v20823_v21 }
 0x6b8   :  { %v13150_v42 = vpop.eup %13149  ;;  %v11558_v51 = vpack.c.bf16 %v11540_v39, %v11538_v52  ;;  %v11448_v57 = vmul.f32 %v13148_v8, %v20584_v26  ;;  %v11821_v4 = vadd.f32 %v11820_v20, %v11772_v25  ;;  %v11919_v12 = vadd.f32 %v11918_v15, %v11870_v1 }
 0x6b9   :  { %11793 = vmatmul.bf16.gmra.mxu0 %v11556_v33  ;;  %11842 = vmatmul.bf16.gmra.mxu1 %v11557_v53  ;;  %v13152_v34 = vpop.eup %13151  ;;  %v11559_v36 = vpack.c.bf16 %v11541_v9, %v11539_v22  ;;  %v11439_v37 = vmul.f32 %v13150_v42, %v20582_v48  ;;  %v11479_v24 = vunpack.c.h.bf16 %v20823_v21 }
 0x6ba   :  { %11891 = vmatmul.bf16.gmra.mxu2 %v11556_v33  ;;  %11940 = vmatmul.bf16.gmra.mxu3 %v11557_v53  ;;  %v11441_v32 = vmul.f32 %v13152_v34, %v20584_v26  ;;  %v20884_v28 = vpack.c.bf16 %v11919_v12, %v11821_v4  ;;  %v11449_v17 = vpack.c.bf16 %v11446_v55, %v11448_v57  ;;  %v11481_v33 = vunpack.c.h.bf16 %v20840_v59 }
 0x6bc   :  { %v11442_v43 = vpack.c.bf16 %v11439_v37, %v11441_v32  ;;  %v11512_v23 = vunpack.c.l.bf16 %v11449_v17  ;;  %v11513_v46 = vunpack.c.h.bf16 %v11449_v17 }
 0x6be   :  { %v11510_v3 = vunpack.c.l.bf16 %v11442_v43  ;;  %v11511_v53 = vunpack.c.h.bf16 %v11442_v43  ;;  %v11544_v31 = vmul.f32 %v11512_v23, %v11480_v19  ;;  %v11545_v7 = vmul.f32 %v11513_v46, %v11481_v33 }
 0x6c0   :  { %v11542_v60 = vmul.f32 %v11510_v3, %v11478_v14  ;;  %v11543_v44 = vmul.f32 %v11511_v53, %v11479_v24  ;;  %v11972_v53 = vxor.u32 2147516416, %v20876_v35  ;;  %v11973_v24 = vxor.u32 2147516416, %v20884_v28 }
 0x6c2   :  { %v11560_v45 = vpack.c.bf16 %v11544_v31, %v11542_v60  ;;  %v11561_v40 = vpack.c.bf16 %v11545_v7, %v11543_v44 }
 0x6c9   :  { %11798 = vmatmul.bf16.gmra.mxu0 %v11558_v51  ;;  %11847 = vmatmul.bf16.gmra.mxu1 %v11559_v36 }
 0x6ca   :  { %11896 = vmatmul.bf16.gmra.mxu2 %v11558_v51  ;;  %11945 = vmatmul.bf16.gmra.mxu3 %v11559_v36 }
 0x6d9   :  { %11803 = vmatmul.bf16.gmra.mxu0 %v11560_v45  ;;  %11852 = vmatmul.bf16.gmra.mxu1 %v11561_v40 }
 0x6da   :  { %11901 = vmatmul.bf16.gmra.mxu2 %v11560_v45  ;;  %11950 = vmatmul.bf16.gmra.mxu3 %v11561_v40  ;;  %v11988_v45 = vunpack.c.l.bf16 %v11972_v53 }
 0x6e8   :  { %v11774_v29 = vpop.f32.mrf.mxu0 }
 0x6e9   :  { %v11775_v13 = vadd.f32 %v11774_v29, %v20866_v30  ;;  %v11823_v47 = vpop.f32.mrf.mxu1 }
 0x6eb   :  { %v11824_v59 = vadd.f32 %v11823_v47, %v11775_v13  ;;  %v11989_v47 = vunpack.c.h.bf16 %v11972_v53 }
 0x6ee   :  { %v11872_v62 = vpop.f32.mrf.mxu2 }
 0x6ef   :  { %v11873_v0 = vadd.f32 %v11872_v62, %v20868_v41  ;;  %v11921_v2 = vpop.f32.mrf.mxu3 }
 0x6f0   :  { %v11776_v63 = vpop.f32.mrf.mxu0 }
 0x6f1   :  { %v11922_v21 = vadd.f32 %v11921_v2, %v11873_v0  ;;  %v11777_v58 = vadd.f32 %v11776_v63, %v20866_v30  ;;  %v11825_v18 = vpop.f32.mrf.mxu1  ;;  %v11991_v63 = vunpack.c.h.bf16 %v11973_v24 }
 0x6f3   :  { %v20893_v61 = vpack.c.bf16 %v11922_v21, %v11824_v59  ;;  %v11826_v50 = vadd.f32 %v11825_v18, %v11777_v58  ;;  %v11990_v59 = vunpack.c.l.bf16 %v11973_v24  ;;  %v12020_v21 = vmul.f32 1.442695, %v11988_v45 }
 0x6f4   :  { %v12022_v18 = vmul.f32 1.442695, %v11989_v47 }
 0x6f5   :  { %v11974_v40 = vxor.u32 2147516416, %v20893_v61  ;;  %13153 = vpow2.f32 %v12020_v21 }
 0x6f6   :  { %v11874_v6 = vpop.f32.mrf.mxu2  ;;  %13155 = vpow2.f32 %v12022_v18 }
 0x6f7   :  { %v11875_v38 = vadd.f32 %v11874_v6, %v20868_v41  ;;  %v11923_v11 = vpop.f32.mrf.mxu3  ;;  %v11992_v58 = vunpack.c.l.bf16 %v11974_v40  ;;  %v12024_v6 = vmul.f32 1.442695, %v11990_v59 }
 0x6f9   :  { %v11924_v27 = vadd.f32 %v11923_v11, %v11875_v38  ;;  %13157 = vpow2.f32 %v12024_v6 }
 0x6fb   :  { %v20896_v54 = vpack.c.bf16 %v11924_v27, %v11826_v50  ;;  %v11993_v50 = vunpack.c.h.bf16 %v11974_v40 }
 0x6fd   :  { %v11975_v62 = vxor.u32 2147516416, %v20896_v54 }
 0x6ff   :  { %v11994_v38 = vunpack.c.l.bf16 %v11975_v62 }
 0x705   :  { %v11779_v56 = vpop.f32.mrf.mxu0  ;;  %v11828_v39 = vpop.f32.mrf.mxu1 }
 0x706   :  { %v11780_v5 = vadd.f32 %v11779_v56, %v20866_v30  ;;  %v12026_v56 = vmul.f32 1.442695, %v11991_v63 }
 0x708   :  { %v11829_v16 = vadd.f32 %v11828_v39, %v11780_v5  ;;  %v11995_v39 = vunpack.c.h.bf16 %v11975_v62  ;;  %13159 = vpow2.f32 %v12026_v56  ;;  %v12294_v56 = vunpack.c.l.bf16 %v20884_v28 }
 0x70c   :  { %v11877_v9 = vpop.f32.mrf.mxu2  ;;  %v11926_v8 = vpop.f32.mrf.mxu3 }
 0x70d   :  { %v11878_v52 = vadd.f32 %v11877_v9, %v20868_v41  ;;  %v11781_v10 = vpop.f32.mrf.mxu0  ;;  %v11830_v42 = vpop.f32.mrf.mxu1 }
 0x70e   :  { %v11782_v22 = vadd.f32 %v11781_v10, %v20866_v30 }
 0x70f   :  { %v11927_v25 = vadd.f32 %v11926_v8, %v11878_v52  ;;  %v12028_v8 = vmul.f32 1.442695, %v11992_v58 }
 0x710   :  { %v11831_v49 = vadd.f32 %v11830_v42, %v11782_v22  ;;  %v12030_v42 = vmul.f32 1.442695, %v11993_v50 }
 0x711   :  { %v20901_v34 = vpack.c.bf16 %v11927_v25, %v11829_v16  ;;  %v12032_v25 = vmul.f32 1.442695, %v11994_v38  ;;  %13161 = vpow2.f32 %v12028_v8  ;;  %v12292_v38 = vunpack.c.l.bf16 %v20876_v35 }
 0x712   :  { %13163 = vpow2.f32 %v12030_v42  ;;  %v12295_v8 = vunpack.c.h.bf16 %v20884_v28 }
 0x713   :  { %v11976_v52 = vxor.u32 2147516416, %v20901_v34  ;;  %13165 = vpow2.f32 %v12032_v25 }
 0x714   :  { %v11879_v51 = vpop.f32.mrf.mxu2  ;;  %v11928_v20 = vpop.f32.mrf.mxu3 }
 0x715   :  { %v11880_v1 = vadd.f32 %v11879_v51, %v20868_v41  ;;  %v12034_v51 = vmul.f32 1.442695, %v11995_v39 }
 0x716   :  { %v11784_v36 = vpop.f32.mrf.mxu0  ;;  %v11833_v55 = vpop.f32.mrf.mxu1 }
 0x717   :  { %v11929_v57 = vadd.f32 %v11928_v20, %v11880_v1  ;;  %v11785_v4 = vadd.f32 %v11784_v36, %v20866_v30  ;;  %v11996_v1 = vunpack.c.l.bf16 %v11976_v52  ;;  %v11997_v36 = vunpack.c.h.bf16 %v11976_v52 }
 0x718   :  { %13167 = vpow2.f32 %v12034_v51 }
 0x719   :  { %v20905_v15 = vpack.c.bf16 %v11929_v57, %v11831_v49  ;;  %v11834_v12 = vadd.f32 %v11833_v55, %v11785_v4  ;;  %v13154_v55 = vpop.eup %13153 }
 0x71b   :  { %v11977_v57 = vxor.u32 2147516416, %v20905_v15 }
 0x71d   :  { %v11882_v37 = vpop.f32.mrf.mxu2  ;;  %v11931_v32 = vpop.f32.mrf.mxu3  ;;  %v11998_v24 = vunpack.c.l.bf16 %v11977_v57 }
 0x71e   :  { %v11883_v17 = vadd.f32 %v11882_v37, %v20868_v41  ;;  %v11786_v43 = vpop.f32.mrf.mxu0  ;;  %v11835_v23 = vpop.f32.mrf.mxu1 }
 0x71f   :  { %v11787_v46 = vadd.f32 %v11786_v43, %v20866_v30  ;;  %v13156_v37 = vpop.eup %13155  ;;  %v12040_v59 = vmul.f32 1.442695, %v11998_v24 }
 0x720   :  { %v11932_v19 = vadd.f32 %v11931_v32, %v11883_v17 }
 0x721   :  { %v11836_v3 = vadd.f32 %v11835_v23, %v11787_v46  ;;  %v13158_v23 = vpop.eup %13157  ;;  %v12036_v46 = vmul.f32 1.442695, %v11996_v1 }
 0x722   :  { %v20909_v33 = vpack.c.bf16 %v11932_v19, %v11834_v12  ;;  %v13160_v19 = vpop.eup %13159 }
 0x723   :  { %v12085_v40 = vpack.c.bf16 %v13160_v19, %v13158_v23  ;;  %13169 = vpow2.f32 %v12036_v46 }
 0x724   :  { %v11978_v58 = vxor.u32 2147516416, %v20909_v33 }
 0x725   :  { %v11884_v14 = vpop.f32.mrf.mxu2  ;;  %v11933_v31 = vpop.f32.mrf.mxu3  ;;  %v12102_v50 = vunpack.c.l.bf16 %v12085_v40 }
 0x726   :  { %v11885_v7 = vadd.f32 %v11884_v14, %v20868_v41  ;;  %v11789_v60 = vpop.f32.mrf.mxu0  ;;  %v11838_v44 = vpop.f32.mrf.mxu1  ;;  %v12000_v42 = vunpack.c.l.bf16 %v11978_v58  ;;  %v12001_v1 = vunpack.c.h.bf16 %v11978_v58 }
 0x727   :  { %v11790_v13 = vadd.f32 %v11789_v60, %v20866_v30  ;;  %v13162_v14 = vpop.eup %13161  ;;  %v11999_v60 = vunpack.c.h.bf16 %v11977_v57  ;;  %v20942_v25 = vadd.f32 1.0, %v12102_v50 }
 0x728   :  { %v11934_v29 = vadd.f32 %v11933_v31, %v11885_v7  ;;  %v12084_v31 = vpack.c.bf16 %v13156_v37, %v13154_v55  ;;  %v13164_v7 = vpop.eup %13163 }
 0x729   :  { %v11839_v2 = vadd.f32 %v11838_v44, %v11790_v13  ;;  %v13166_v45 = vpop.eup %13165  ;;  %v12086_v63 = vpack.c.bf16 %v13164_v7, %v13162_v14  ;;  %v12042_v21 = vmul.f32 1.442695, %v11999_v60  ;;  %v12044_v14 = vmul.f32 1.442695, %v12000_v42 }
 0x72a   :  { %v20917_v0 = vpack.c.bf16 %v11934_v29, %v11836_v3  ;;  %v12038_v3 = vmul.f32 1.442695, %v11997_v36  ;;  %v13168_v29 = vpop.eup %13167  ;;  %v12100_v13 = vunpack.c.l.bf16 %v12084_v31  ;;  %v12101_v47 = vunpack.c.h.bf16 %v12084_v31 }
 0x72b   :  { %v12087_v6 = vpack.c.bf16 %v13168_v29, %v13166_v45  ;;  %v12046_v45 = vmul.f32 1.442695, %v12001_v1 }
 0x72c   :  { %13171 = vpow2.f32 %v12038_v3  ;;  %v11979_v23 = vxor.u32 2147516416, %v20917_v0 }
 0x72d   :  { %v11887_v11 = vpop.f32.mrf.mxu2  ;;  %v11936_v27 = vpop.f32.mrf.mxu3  ;;  %13173 = vpow2.f32 %v12040_v59  ;;  %v12106_v51 = vunpack.c.l.bf16 %v12087_v6  ;;  %v12107_v57 = vunpack.c.h.bf16 %v12087_v6 }
 0x72e   :  { %v11888_v5 = vadd.f32 %v11887_v11, %v20868_v41  ;;  %v11791_v16 = vpop.f32.mrf.mxu0  ;;  %v11840_v9 = vpop.f32.mrf.mxu1  ;;  %v12293_v11 = vunpack.c.h.bf16 %v20876_v35  ;;  %13175 = vpow2.f32 %v12042_v21  ;;  %v12002_v58 = vunpack.c.l.bf16 %v11979_v23 }
 0x72f   :  { %v11792_v10 = vadd.f32 %v11791_v16, %v20866_v30  ;;  %v20936_v16 = vadd.f32 1.0, %v12100_v13  ;;  %v20959_v13 = vadd.f32 1.0, %v12107_v57  ;;  %13177 = vpow2.f32 %v12044_v14 }
 0x730   :  { %v11937_v22 = vadd.f32 %v11936_v27, %v11888_v5  ;;  %v12103_v27 = vunpack.c.h.bf16 %v12085_v40  ;;  %v13170_v5 = vpop.eup %13169  ;;  %13179 = vpow2.f32 %v12046_v45 }
 0x731   :  { %v11841_v49 = vadd.f32 %v11840_v9, %v11792_v10  ;;  %v20938_v9 = vadd.f32 1.0, %v12101_v47  ;;  %v12104_v10 = vunpack.c.l.bf16 %v12086_v63 }
 0x732   :  { %v20922_v20 = vpack.c.bf16 %v11937_v22, %v11839_v2  ;;  %v13172_v52 = vpop.eup %13171  ;;  %v20944_v36 = vadd.f32 1.0, %v12103_v27 }
 0x733   :  { %v20951_v3 = vadd.f32 1.0, %v12104_v10  ;;  %v13174_v7 = vpop.eup %13173  ;;  %v12003_v10 = vunpack.c.h.bf16 %v11979_v23 }
 0x734   :  { %v11980_v40 = vxor.u32 2147516416, %v20922_v20  ;;  %v13176_v29 = vpop.eup %13175 }
 0x735   :  { %v11889_v4 = vpop.f32.mrf.mxu2  ;;  %v11938_v12 = vpop.f32.mrf.mxu3 }
 0x736   :  { %v11890_v32 = vadd.f32 %v11889_v4, %v20868_v41  ;;  %v11794_v17 = vpop.f32.mrf.mxu0  ;;  %v20926_v43 = vpop.f32.mrf.mxu1  ;;  %v12004_v42 = vunpack.c.l.bf16 %v11980_v40 }
 0x737   :  { %v11795_v4 = vadd.f32 %v11794_v17, %v20866_v30  ;;  %v20956_v17 = vadd.f32 1.0, %v12106_v51 }
 0x738   :  { %v11939_v53 = vadd.f32 %v11938_v12, %v11890_v32  ;;  %v12088_v32 = vpack.c.bf16 %v13172_v52, %v13170_v5  ;;  %v12089_v52 = vpack.c.bf16 %v13176_v29, %v13174_v7 }
 0x73a   :  { %v20928_v44 = vpack.c.bf16 %v11939_v53, %v11841_v49  ;;  %v12105_v49 = vunpack.c.h.bf16 %v12086_v63  ;;  %v12108_v63 = vunpack.c.l.bf16 %v12088_v32  ;;  %v12109_v50 = vunpack.c.h.bf16 %v12088_v32 }
 0x73b   :  { %v12005_v32 = vunpack.c.h.bf16 %v11980_v40 }
 0x73c   :  { %v20954_v60 = vadd.f32 1.0, %v12105_v49  ;;  %v20973_v1 = vadd.f32 1.0, %v12108_v63  ;;  %v13178_v63 = vpop.eup %13177 }
 0x73d   :  { %v11892_v62 = vpop.f32.mrf.mxu2  ;;  %v11941_v2 = vpop.f32.mrf.mxu3  ;;  %v12054_v59 = vmul.f32 1.442695, %v12005_v32 }
 0x73e   :  { %v11796_v18 = vpop.f32.mrf.mxu0  ;;  %v20934_v39 = vpop.f32.mrf.mxu1  ;;  %v11893_v22 = vadd.f32 %v11892_v62, %v20868_v41  ;;  %v11844_v62 = vadd.f32 %v20926_v43, %v11795_v4  ;;  %v11981_v43 = vxor.u32 2147516416, %v20928_v44  ;;  %v12048_v4 = vmul.f32 1.442695, %v12002_v58 }
 0x73f   :  { %v11797_v49 = vadd.f32 %v11796_v18, %v20866_v30  ;;  %v12050_v18 = vmul.f32 1.442695, %v12003_v10 }
 0x740   :  { %v11942_v31 = vadd.f32 %v11941_v2, %v11893_v22  ;;  %v12052_v22 = vmul.f32 1.442695, %v12004_v42  ;;  %v12006_v57 = vunpack.c.l.bf16 %v11981_v43  ;;  %v12111_v2 = vunpack.c.h.bf16 %v12089_v52 }
 0x741   :  { %v11846_v40 = vadd.f32 %v20934_v39, %v11797_v49  ;;  %13181 = vpow2.f32 %v12048_v4 }
 0x742   :  { %v20966_v6 = vpack.c.bf16 %v11942_v31, %v11844_v62  ;;  %v20976_v31 = vadd.f32 1.0, %v12109_v50  ;;  %v12110_v62 = vunpack.c.l.bf16 %v12089_v52  ;;  %v13180_v50 = vpop.eup %13179  ;;  %13183 = vpow2.f32 %v12050_v18 }
 0x743   :  { %v20989_v39 = vpack.c.bf16 %v13180_v50, %v13178_v63  ;;  %13185 = vpow2.f32 %v12052_v22 }
 0x744   :  { %v11982_v23 = vxor.u32 2147516416, %v20966_v6  ;;  %13187 = vpow2.f32 %v12054_v59 }
 0x745   :  { %v11894_v46 = vpop.f32.mrf.mxu2  ;;  %v11943_v19 = vpop.f32.mrf.mxu3  ;;  %v12112_v59 = vunpack.c.l.bf16 %v20989_v39 }
 0x746   :  { %v11799_v24 = vpop.f32.mrf.mxu0  ;;  %v11895_v27 = vadd.f32 %v11894_v46, %v20868_v41  ;;  %v11848_v5 = vpop.f32.mrf.mxu1 }
 0x747   :  { %v11800_v51 = vadd.f32 %v11799_v24, %v20866_v30  ;;  %v12164_v24 = vpack.c.bf16 %v20938_v9, %v20936_v16  ;;  %v13182_v18 = vpop.eup %13181 }
 0x748   :  { %v11944_v7 = vadd.f32 %v11943_v19, %v11895_v27  ;;  %v12007_v19 = vunpack.c.h.bf16 %v11981_v43  ;;  %v12008_v27 = vunpack.c.l.bf16 %v11982_v23  ;;  %v20992_v43 = vadd.f32 1.0, %v12110_v62 }
 0x749   :  { %v11849_v58 = vadd.f32 %v11848_v5, %v11800_v51  ;;  %v12180_v10 = vunpack.c.h.bf16 %v12164_v24  ;;  %v12181_v42 = vunpack.c.l.bf16 %v12164_v24  ;;  %v12056_v5 = vmul.f32 1.442695, %v12006_v57 }
 0x74a   :  { %v12058_v51 = vmul.f32 1.442695, %v12007_v19  ;;  %v12165_v57 = vpack.c.bf16 %v20944_v36, %v20942_v25  ;;  %v20999_v62 = vadd.f32 1.0, %v12111_v2 }
 0x74b   :  { %13189 = vrcp.f32 %v12180_v10 }
 0x74c   :  { %13191 = vrcp.f32 %v12181_v42  ;;  %v12188_v9 = vunpack.c.l.bf16 %v12165_v57 }
 0x74d   :  { %v11897_v46 = vpop.f32.mrf.mxu2  ;;  %v11946_v14 = vpop.f32.mrf.mxu3  ;;  %13193 = vpow2.f32 %v12056_v5  ;;  %v21006_v5 = vadd.f32 1.0, %v12112_v59 }
 0x74e   :  { %v11898_v45 = vadd.f32 %v11897_v46, %v20868_v41  ;;  %v11801_v29 = vpop.f32.mrf.mxu0  ;;  %v20983_v46 = vpack.c.bf16 %v11944_v7, %v11846_v40  ;;  %v11850_v49 = vpop.f32.mrf.mxu1  ;;  %13195 = vpow2.f32 %v12058_v51 }
 0x74f   :  { %v13184_v40 = vpop.eup %13183 }
 0x750   :  { %v11947_v21 = vadd.f32 %v11946_v14, %v11898_v45  ;;  %v12060_v14 = vmul.f32 1.442695, %v12008_v27  ;;  %v11983_v7 = vxor.u32 2147516416, %v20983_v46  ;;  %v12187_v27 = vunpack.c.h.bf16 %v12165_v57  ;;  %v13186_v10 = vpop.eup %13185 }
 0x751   :  { %v13188_v25 = vpop.eup %13187 }
 0x752   :  { %v20985_v47 = vpack.c.bf16 %v11947_v21, %v11849_v58  ;;  %v11802_v21 = vadd.f32 %v11801_v29, %v20866_v30  ;;  %v12009_v29 = vunpack.c.h.bf16 %v11982_v23  ;;  %13197 = vpow2.f32 %v12060_v14  ;;  %v13190_v23 = vpop.eup %13189 }
 0x753   :  { %13199 = vrcp.f32 %v12187_v27  ;;  %v12011_v51 = vunpack.c.h.bf16 %v11983_v7 }
 0x754   :  { %v11984_v52 = vxor.u32 2147516416, %v20985_v47  ;;  %v11851_v50 = vadd.f32 %v11850_v49, %v11802_v21 }
 0x755   :  { %v11899_v4 = vpop.f32.mrf.mxu2  ;;  %v11948_v32 = vpop.f32.mrf.mxu3 }
 0x756   :  { %v12012_v45 = vunpack.c.l.bf16 %v11984_v52  ;;  %v12013_v24 = vunpack.c.h.bf16 %v11984_v52  ;;  %v11900_v22 = vadd.f32 %v11899_v4, %v20868_v41  ;;  %v11804_v63 = vpop.f32.mrf.mxu0  ;;  %v12113_v52 = vunpack.c.h.bf16 %v20989_v39 }
 0x757   :  { %v12010_v4 = vunpack.c.l.bf16 %v11983_v7  ;;  %v11805_v42 = vadd.f32 %v11804_v63, %v20866_v30  ;;  %v12062_v39 = vmul.f32 1.442695, %v12009_v29  ;;  %v11853_v63 = vpop.f32.mrf.mxu1  ;;  %v12166_v7 = vpack.c.bf16 %v20954_v60, %v20951_v3 }
 0x758   :  { %v12068_v58 = vmul.f32 1.442695, %v12012_v45  ;;  %v11949_v19 = vadd.f32 %v11948_v32, %v11900_v22  ;;  %v12070_v36 = vmul.f32 1.442695, %v12013_v24  ;;  %v13192_v32 = vpop.eup %13191  ;;  %v12091_v22 = vpack.c.bf16 %v13184_v40, %v13182_v18 }
 0x759   :  { %v21011_v24 = vpop.eup %13193  ;;  %v12064_v57 = vmul.f32 1.442695, %v12010_v4  ;;  %v11854_v16 = vadd.f32 %v11853_v63, %v11805_v42  ;;  %v12185_v49 = vmul.f32 %v13192_v32, %v20584_v26  ;;  %v12066_v40 = vmul.f32 1.442695, %v12011_v51 }
 0x75a   :  { %v21003_v2 = vpack.c.bf16 %v11949_v19, %v11851_v50  ;;  %13201 = vpow2.f32 %v12068_v58  ;;  %v13196_v21 = vpop.eup %13195  ;;  %v12183_v58 = vmul.f32 %v13190_v23, %v20582_v48  ;;  %v12115_v3 = vunpack.c.h.bf16 %v12091_v22 }
 0x75b   :  { %13203 = vrcp.f32 %v12188_v9  ;;  %v21018_v18 = vpop.eup %13197  ;;  %v12195_v60 = vunpack.c.l.bf16 %v12166_v7 }
 0x75c   :  { %v11985_v45 = vxor.u32 2147516416, %v21003_v2  ;;  %13205 = vpow2.f32 %v12070_v36  ;;  %v13200_v36 = vpop.eup %13199 }
 0x75d   :  { %v11902_v14 = vpop.f32.mrf.mxu2  ;;  %v11951_v27 = vpop.f32.mrf.mxu3  ;;  %13207 = vpow2.f32 %v12062_v39  ;;  %v12186_v39 = vpack.c.bf16 %v12183_v58, %v12185_v49  ;;  %v12190_v51 = vmul.f32 %v13200_v36, %v20582_v48  ;;  %v12167_v49 = vpack.c.bf16 %v20959_v13, %v20956_v17 }
 0x75e   :  { %v11903_v59 = vadd.f32 %v11902_v14, %v20868_v41  ;;  %v12014_v50 = vunpack.c.l.bf16 %v11985_v45  ;;  %v12015_v19 = vunpack.c.h.bf16 %v11985_v45  ;;  %v21020_v14 = vadd.f32 1.0, %v12113_v52 }
 0x75f   :  { %13209 = vpow2.f32 %v12064_v57  ;;  %v12194_v45 = vunpack.c.h.bf16 %v12166_v7  ;;  %v21036_v17 = vpack.c.bf16 %v13196_v21, %v21011_v24  ;;  %v11855_v24 = vpop.f32.mrf.mxu1 }
 0x760   :  { %v11952_v29 = vadd.f32 %v11951_v27, %v11903_v59  ;;  %v12072_v4 = vmul.f32 1.442695, %v12014_v50  ;;  %v12074_v9 = vmul.f32 1.442695, %v12015_v19  ;;  %v13202_v63 = vpop.eup %13201  ;;  %v12114_v59 = vunpack.c.l.bf16 %v12091_v22 }
 0x761   :  { %v13204_v23 = vpop.eup %13203  ;;  %v12092_v19 = vpack.c.bf16 %v13188_v25, %v13186_v10  ;;  %v12201_v10 = vunpack.c.h.bf16 %v12167_v49  ;;  %v12202_v25 = vunpack.c.l.bf16 %v12167_v49 }
 0x762   :  { %v21022_v42 = vpack.c.bf16 %v11952_v29, %v11854_v16  ;;  %13211 = vpow2.f32 %v12072_v4  ;;  %v13206_v50 = vpop.eup %13205  ;;  %v12192_v16 = vmul.f32 %v13204_v23, %v20584_v26  ;;  %v21029_v7 = vadd.f32 1.0, %v12114_v59  ;;  %v11806_v59 = vpop.f32.mrf.mxu0 }
 0x763   :  { %13213 = vpow2.f32 %v12074_v9  ;;  %v13208_v29 = vpop.eup %13207  ;;  %v21031_v4 = vadd.f32 1.0, %v12115_v3  ;;  %v12096_v23 = vpack.c.bf16 %v13206_v50, %v13202_v63  ;;  %v12116_v53 = vunpack.c.l.bf16 %v12092_v19 }
 0x764   :  { %v11986_v32 = vxor.u32 2147516416, %v21022_v42  ;;  %13215 = vpow2.f32 %v12066_v40  ;;  %v12193_v57 = vpack.c.bf16 %v12190_v51, %v12192_v16  ;;  %v12324_v40 = vunpack.c.l.bf16 %v12186_v39 }
 0x765   :  { %13217 = vrcp.f32 %v12194_v45  ;;  %v13210_v58 = vpop.eup %13209  ;;  %v12117_v55 = vunpack.c.h.bf16 %v12092_v19  ;;  %v11807_v13 = vadd.f32 %v11806_v59, %v20866_v30  ;;  %v12124_v16 = vunpack.c.l.bf16 %v12096_v23  ;;  %v11953_v19 = vpop.f32.mrf.mxu3 }
 0x766   :  { %v12016_v27 = vunpack.c.l.bf16 %v11986_v32  ;;  %v12017_v22 = vunpack.c.h.bf16 %v11986_v32  ;;  %13219 = vrcp.f32 %v12195_v60  ;;  %v12325_v32 = vunpack.c.h.bf16 %v12186_v39  ;;  %v11904_v60 = vpop.f32.mrf.mxu2 }
 0x767   :  { %v12326_v3 = vunpack.c.l.bf16 %v12193_v57  ;;  %v12327_v12 = vunpack.c.h.bf16 %v12193_v57  ;;  %v11905_v63 = vadd.f32 %v11904_v60, %v20868_v41  ;;  %v21042_v39 = vmul.f32 %v12324_v40, %v12292_v38 }
 0x768   :  { %v12076_v9 = vmul.f32 1.442695, %v12016_v27  ;;  %v12078_v36 = vmul.f32 1.442695, %v12017_v22  ;;  %v13212_v52 = vpop.eup %13211  ;;  %v21050_v30 = vmul.f32 %v12325_v32, %v12293_v11  ;;  %v11856_v41 = vadd.f32 %v11855_v24, %v11807_v13 }
 0x769   :  { %v13214_v45 = vpop.eup %13213  ;;  %v21046_v50 = vmul.f32 %v12326_v3, %v12294_v56  ;;  %v11954_v27 = vadd.f32 %v11953_v19, %v11905_v63  ;;  %v21056_v22 = vmul.f32 %v12327_v12, %v12295_v8  ;;  %v21058_v56 = vadd.f32 1.0, %v12116_v53 }
 0x76a   :  { %13221 = vpow2.f32 %v12076_v9  ;;  %v13216_v37 = vpop.eup %13215  ;;  %v12097_v21 = vpack.c.bf16 %v13214_v45, %v13212_v52  ;;  %v12168_v52 = vpack.c.bf16 %v20976_v31, %v20973_v1  ;;  %v21064_v9 = vadd.f32 1.0, %v12117_v55 }
 0x76b   :  { %13223 = vpow2.f32 %v12078_v36  ;;  %v13218_v51 = vpop.eup %13217  ;;  %v12118_v36 = vunpack.c.l.bf16 %v21036_v17  ;;  %v21067_v40 = vpack.c.bf16 %v11954_v27, %v11856_v41  ;;  %v12094_v12 = vpack.c.bf16 %v13208_v29, %v21018_v18 }
 0x76c   :  { %13225 = vrcp.f32 %v12201_v10  ;;  %v13220_v57 = vpop.eup %13219  ;;  %v12197_v49 = vmul.f32 %v13218_v51, %v20582_v48  ;;  %v12125_v53 = vunpack.c.h.bf16 %v12096_v23  ;;  %v12126_v10 = vunpack.c.l.bf16 %v12097_v21 }
 0x76d   :  { %13227 = vrcp.f32 %v12202_v25  ;;  %v12199_v35 = vmul.f32 %v13220_v57, %v20584_v26  ;;  %v12208_v1 = vunpack.c.h.bf16 %v12168_v52  ;;  %v21072_v25 = vpack.c.bf16 %v13216_v37, %v13210_v58 }
 0x76e   :  { %v12156_v32 = vadd.f32 1.0, %v12124_v16  ;;  %v11987_v55 = vxor.u32 2147516416, %v21067_v40  ;;  %v12127_v3 = vunpack.c.h.bf16 %v12097_v21  ;;  %v12209_v13 = vunpack.c.l.bf16 %v12168_v52 }
 0x76f   :  { %v12200_v60 = vpack.c.bf16 %v12197_v49, %v12199_v35  ;;  %v12157_v29 = vadd.f32 1.0, %v12125_v53  ;;  %v12158_v23 = vadd.f32 1.0, %v12126_v10  ;;  %13229 = vrcp.f32 %v12208_v1 }
 0x770   :  { %v13222_v11 = vpop.eup %13221  ;;  %v12018_v24 = vunpack.c.l.bf16 %v11987_v55  ;;  %v12019_v18 = vunpack.c.h.bf16 %v11987_v55  ;;  %13231 = vrcp.f32 %v12209_v13  ;;  %v12159_v49 = vadd.f32 1.0, %v12127_v3 }
 0x771   :  { %v13224_v8 = vpop.eup %13223  ;;  %v12328_v21 = vunpack.c.l.bf16 %v12200_v60  ;;  %v12329_v52 = vunpack.c.h.bf16 %v12200_v60  ;;  %v12120_v53 = vunpack.c.l.bf16 %v12094_v12  ;;  %v12121_v1 = vunpack.c.h.bf16 %v12094_v12 }
 0x772   :  { %v13226_v31 = vpop.eup %13225  ;;  %v12098_v45 = vpack.c.bf16 %v13224_v8, %v13222_v11  ;;  %v12080_v19 = vmul.f32 1.442695, %v12018_v24  ;;  %v12082_v41 = vmul.f32 1.442695, %v12019_v18  ;;  %v12169_v11 = vpack.c.bf16 %v20999_v62, %v20992_v43 }
 0x773   :  { %v13228_v59 = vpop.eup %13227  ;;  %v12204_v51 = vmul.f32 %v13226_v31, %v20582_v48  ;;  %v12119_v8 = vunpack.c.h.bf16 %v21036_v17  ;;  %v12122_v13 = vunpack.c.l.bf16 %v21072_v25  ;;  %v22482_v60 = vunpack.c.l.bf16 %v20893_v61 }
 0x774   :  { %v12128_v63 = vunpack.c.l.bf16 %v12098_v45  ;;  %v12129_v57 = vunpack.c.h.bf16 %v12098_v45  ;;  %v12206_v37 = vmul.f32 %v13228_v59, %v20584_v26  ;;  %13233 = vpow2.f32 %v12080_v19 }
 0x775   :  { %13235 = vpow2.f32 %v12082_v41  ;;  %v13230_v59 = vpop.eup %13229  ;;  %v21083_v3 = vmul.f32 %v12328_v21, %v22482_v60  ;;  %v22484_v43 = vunpack.c.h.bf16 %v20893_v61  ;;  %v12176_v12 = vpack.c.bf16 %v12157_v29, %v12156_v32 }
 0x776   :  { %v12160_v58 = vadd.f32 1.0, %v12128_v63  ;;  %v12161_v16 = vadd.f32 1.0, %v12129_v57  ;;  %v12207_v27 = vpack.c.bf16 %v12204_v51, %v12206_v37  ;;  %v22483_v51 = vunpack.c.l.bf16 %v20896_v54  ;;  %v13232_v18 = vpop.eup %13231 }
 0x777   :  { %v21091_v62 = vmul.f32 %v12329_v52, %v22484_v43  ;;  %v12177_v57 = vpack.c.bf16 %v12159_v49, %v12158_v23  ;;  %v12215_v24 = vunpack.c.h.bf16 %v12169_v11  ;;  %v12216_v37 = vunpack.c.l.bf16 %v12169_v11 }
 0x778   :  { %v12178_v35 = vpack.c.bf16 %v12161_v16, %v12160_v58  ;;  %v12330_v10 = vunpack.c.l.bf16 %v12207_v27  ;;  %v12331_v55 = vunpack.c.h.bf16 %v12207_v27  ;;  %v22485_v16 = vunpack.c.h.bf16 %v20896_v54 }
 0x779   :  { %v12152_v27 = vadd.f32 1.0, %v12120_v53  ;;  %v12123_v61 = vunpack.c.h.bf16 %v21072_v25  ;;  %v12314_v21 = vunpack.c.l.bf16 %v20983_v46  ;;  %v12271_v52 = vunpack.c.h.bf16 %v12177_v57 }
 0x77a   :  { %v12278_v31 = vunpack.c.h.bf16 %v12178_v35  ;;  %v12279_v45 = vunpack.c.l.bf16 %v12178_v35  ;;  %v21087_v63 = vmul.f32 %v12330_v10, %v22483_v51  ;;  %v21097_v19 = vmul.f32 %v12331_v55, %v22485_v16  ;;  %v13234_v41 = vpop.eup %13233 }
 0x77b   :  { %v13236_v32 = vpop.eup %13235  ;;  %v12153_v29 = vadd.f32 1.0, %v12121_v1  ;;  %v12154_v23 = vadd.f32 1.0, %v12122_v13  ;;  %v12272_v49 = vunpack.c.l.bf16 %v12177_v57  ;;  %v12264_v10 = vunpack.c.h.bf16 %v12176_v12 }
 0x77c   :  { %13237 = vrcp.f32 %v12278_v31  ;;  %v12390_v58 = vpack.c.bf16 %v21087_v63, %v21083_v3  ;;  %v12099_v11 = vpack.c.bf16 %v13236_v32, %v13234_v41  ;;  %v12211_v54 = vmul.f32 %v13230_v59, %v20582_v48 }
 0x77d   :  { %13239 = vrcp.f32 %v12279_v45  ;;  %v12265_v31 = vunpack.c.l.bf16 %v12176_v12  ;;  %v21106_v53 = vpack.c.bf16 %v21020_v14, %v21006_v5  ;;  %v12213_v25 = vmul.f32 %v13232_v18, %v20584_v26 }
 0x77e   :  { %13241 = vrcp.f32 %v12215_v24  ;;  %v12155_v1 = vadd.f32 1.0, %v12123_v61  ;;  %v12130_v55 = vunpack.c.l.bf16 %v12099_v11  ;;  %v12131_v13 = vunpack.c.h.bf16 %v12099_v11 }
 0x77f   :  { %13243 = vrcp.f32 %v12216_v37  ;;  %v12150_v51 = vadd.f32 1.0, %v12118_v36  ;;  %v12151_v43 = vadd.f32 1.0, %v12119_v8  ;;  %v12315_v59 = vunpack.c.h.bf16 %v20983_v46 }
 0x780   :  { %13245 = vrcp.f32 %v12271_v52  ;;  %v12162_v12 = vadd.f32 1.0, %v12130_v55  ;;  %v12163_v57 = vadd.f32 1.0, %v12131_v13  ;;  %v12174_v5 = vpack.c.bf16 %v12153_v29, %v12152_v27 }
 0x781   :  { %13247 = vrcp.f32 %v12272_v49  ;;  %v12316_v14 = vunpack.c.l.bf16 %v20985_v47  ;;  %v12222_v24 = vunpack.c.h.bf16 %v21106_v53  ;;  %v21114_v18 = vpack.c.bf16 %v12211_v54, %v12213_v25 }
 0x782   :  { %v13238_v45 = vpop.eup %13237  ;;  %13249 = vrcp.f32 %v12264_v10  ;;  %v12179_v36 = vpack.c.bf16 %v12163_v57, %v12162_v12  ;;  %v12175_v8 = vpack.c.bf16 %v12155_v1, %v12154_v23  ;;  %v12318_v61 = vunpack.c.l.bf16 %v21003_v2 }
 0x783   :  { %v13240_v60 = vpop.eup %13239  ;;  %13251 = vrcp.f32 %v12265_v31  ;;  %v12281_v16 = vmul.f32 %v13238_v45, %v20582_v48  ;;  %v12319_v52 = vunpack.c.h.bf16 %v21003_v2  ;;  %v12320_v27 = vunpack.c.l.bf16 %v21022_v42 }
 0x784   :  { %v13242_v37 = vpop.eup %13241  ;;  %v12283_v17 = vmul.f32 %v13240_v60, %v20584_v26  ;;  %v12321_v32 = vunpack.c.h.bf16 %v21022_v42  ;;  %v12285_v49 = vunpack.c.h.bf16 %v12179_v36  ;;  %v12286_v11 = vunpack.c.l.bf16 %v12179_v36 }
 0x785   :  { %v13244_v41 = vpop.eup %13243  ;;  %v12322_v10 = vunpack.c.l.bf16 %v21067_v40  ;;  %v12250_v54 = vunpack.c.h.bf16 %v12174_v5  ;;  %v12323_v25 = vunpack.c.h.bf16 %v21067_v40  ;;  %v12251_v45 = vunpack.c.l.bf16 %v12174_v5 }
 0x786   :  { %v13246_v29 = vpop.eup %13245  ;;  %v12223_v23 = vunpack.c.l.bf16 %v21106_v53  ;;  %13253 = vrcp.f32 %v12222_v24  ;;  %v12284_v55 = vpack.c.bf16 %v12281_v16, %v12283_v17  ;;  %v12257_v13 = vunpack.c.h.bf16 %v12175_v8 }
 0x787   :  { %v13248_v31 = vpop.eup %13247  ;;  %13255 = vrcp.f32 %v12285_v49  ;;  %v12332_v60 = vunpack.c.l.bf16 %v21114_v18  ;;  %v12274_v57 = vmul.f32 %v13246_v29, %v20582_v48  ;;  %v12258_v36 = vunpack.c.l.bf16 %v12175_v8 }
 0x788   :  { %v13250_v1 = vpop.eup %13249  ;;  %13257 = vrcp.f32 %v12286_v11  ;;  %v12171_v28 = vpack.c.bf16 %v21031_v4, %v21029_v7  ;;  %v12276_v38 = vmul.f32 %v13248_v31, %v20584_v26  ;;  %v12172_v53 = vpack.c.bf16 %v21064_v9, %v21058_v56 }
 0x789   :  { %v13252_v12 = vpop.eup %13251  ;;  %13259 = vrcp.f32 %v12250_v54  ;;  %v12173_v5 = vpack.c.bf16 %v12151_v43, %v12150_v51  ;;  %v12218_v24 = vmul.f32 %v13242_v37, %v20582_v48  ;;  %v12220_v16 = vmul.f32 %v13244_v41, %v20584_v26 }
 0x78a   :  { %13261 = vrcp.f32 %v12251_v45  ;;  %v12333_v17 = vunpack.c.h.bf16 %v21114_v18  ;;  %v12267_v29 = vmul.f32 %v13250_v1, %v20582_v48  ;;  %v12269_v8 = vmul.f32 %v13252_v12, %v20584_v26 }
 0x78b   :  { %13263 = vrcp.f32 %v12257_v13  ;;  %v12236_v7 = vunpack.c.h.bf16 %v12172_v53  ;;  %v12352_v49 = vunpack.c.l.bf16 %v12284_v55  ;;  %v12237_v11 = vunpack.c.l.bf16 %v12172_v53 }
 0x78c   :  { %v13254_v4 = vpop.eup %13253  ;;  %13265 = vrcp.f32 %v12258_v36  ;;  %v12243_v54 = vunpack.c.h.bf16 %v12173_v5  ;;  %v12353_v9 = vunpack.c.h.bf16 %v12284_v55  ;;  %v21137_v51 = vpack.c.bf16 %v12274_v57, %v12276_v38 }
 0x78d   :  { %v13256_v56 = vpop.eup %13255  ;;  %13267 = vrcp.f32 %v12236_v7  ;;  %v12229_v43 = vunpack.c.h.bf16 %v12171_v28  ;;  %v12244_v41 = vunpack.c.l.bf16 %v12173_v5  ;;  %v12221_v31 = vpack.c.bf16 %v12218_v24, %v12220_v16 }
 0x78e   :  { %v13258_v37 = vpop.eup %13257  ;;  %v12288_v18 = vmul.f32 %v13256_v56, %v20582_v48  ;;  %13269 = vrcp.f32 %v12237_v11  ;;  %v12270_v13 = vpack.c.bf16 %v12267_v29, %v12269_v8  ;;  %v12230_v12 = vunpack.c.l.bf16 %v12171_v28 }
 0x78f   :  { %v13260_v45 = vpop.eup %13259  ;;  %v12290_v1 = vmul.f32 %v13258_v37, %v20584_v26  ;;  %13271 = vrcp.f32 %v12243_v54  ;;  %v12334_v53 = vunpack.c.l.bf16 %v12221_v31  ;;  %v22486_v38 = vunpack.c.l.bf16 %v20901_v34 }
 0x790   :  { %v13262_v36 = vpop.eup %13261  ;;  %13273 = vrcp.f32 %v12244_v41  ;;  %v12335_v57 = vunpack.c.h.bf16 %v12221_v31  ;;  %v12384_v35 = vmul.f32 %v12352_v49, %v12320_v27  ;;  %v22487_v5 = vunpack.c.h.bf16 %v20901_v34 }
 0x791   :  { %v21143_v55 = vmul.f32 %v12332_v60, %v22486_v38  ;;  %v13264_v7 = vpop.eup %13263  ;;  %v12291_v56 = vpack.c.bf16 %v12288_v18, %v12290_v1  ;;  %13275 = vrcp.f32 %v12223_v23  ;;  %v12385_v28 = vmul.f32 %v12353_v9, %v12321_v32 }
 0x792   :  { %v21147_v24 = vmul.f32 %v12333_v17, %v22487_v5  ;;  %v13266_v16 = vpop.eup %13265  ;;  %v12350_v29 = vunpack.c.l.bf16 %v21137_v51  ;;  %13277 = vrcp.f32 %v12229_v43  ;;  %v22488_v8 = vunpack.c.l.bf16 %v20905_v15 }
 0x793   :  { %v13268_v11 = vpop.eup %13267  ;;  %v12354_v54 = vunpack.c.l.bf16 %v12291_v56  ;;  %v12355_v27 = vunpack.c.h.bf16 %v12291_v56  ;;  %v12348_v49 = vunpack.c.l.bf16 %v12270_v13  ;;  %13279 = vrcp.f32 %v12230_v12 }
 0x794   :  { %v21154_v60 = vmul.f32 %v12334_v53, %v22488_v8  ;;  %v13270_v23 = vpop.eup %13269  ;;  %v12349_v34 = vunpack.c.h.bf16 %v12270_v13  ;;  %v12351_v17 = vunpack.c.h.bf16 %v21137_v51  ;;  %v12239_v37 = vmul.f32 %v13268_v11, %v20582_v48 }
 0x795   :  { %v22489_v42 = vunpack.c.h.bf16 %v20905_v15  ;;  %v13272_v9 = vpop.eup %13271  ;;  %v12386_v43 = vmul.f32 %v12354_v54, %v12322_v10  ;;  %v12387_v18 = vmul.f32 %v12355_v27, %v12323_v25  ;;  %v12241_v41 = vmul.f32 %v13270_v23, %v20584_v26 }
 0x796   :  { %v12392_v31 = vpack.c.bf16 %v21154_v60, %v21143_v55  ;;  %v13274_v1 = vpop.eup %13273  ;;  %v12382_v51 = vmul.f32 %v12350_v29, %v12318_v61  ;;  %v12260_v15 = vmul.f32 %v13264_v7, %v20582_v48  ;;  %v12262_v13 = vmul.f32 %v13266_v16, %v20584_v26 }
 0x797   :  { %v21160_v32 = vmul.f32 %v12335_v57, %v22489_v42  ;;  %v12225_v12 = vmul.f32 %v13254_v4, %v20582_v48  ;;  %v13276_v53 = vpop.eup %13275  ;;  %v12402_v10 = vpack.c.bf16 %v12386_v43, %v12384_v35  ;;  %v12403_v38 = vpack.c.bf16 %v12387_v18, %v12385_v28 }
 0x798   :  { %v12242_v40 = vpack.c.bf16 %v12239_v37, %v12241_v41  ;;  %v12246_v25 = vmul.f32 %v13272_v9, %v20582_v48  ;;  %v13278_v57 = vpop.eup %13277  ;;  %v12253_v56 = vmul.f32 %v13260_v45, %v20582_v48  ;;  %v12255_v5 = vmul.f32 %v13262_v36, %v20584_v26 }
 0x799   :  { %v12248_v8 = vmul.f32 %v13274_v1, %v20584_v26  ;;  %v12227_v61 = vmul.f32 %v13276_v53, %v20584_v26  ;;  %v13280_v7 = vpop.eup %13279  ;;  %v12317_v16 = vunpack.c.h.bf16 %v20985_v47  ;;  %12414 = vmatpush.bf16.xpose.msra.mxu0 %v12402_v10  ;;  %12427 = vmatpush.bf16.xpose.msra.mxu1 %v12403_v38  ;;  %v12383_v35 = vmul.f32 %v12351_v17, %v12319_v52 }
 0x79a   :  { %v12232_v4 = vmul.f32 %v13278_v57, %v20582_v48  ;;  %v12393_v28 = vpack.c.bf16 %v21160_v32, %v21147_v24  ;;  %v12340_v29 = vunpack.c.l.bf16 %v12242_v40  ;;  %v12341_v36 = vunpack.c.h.bf16 %v12242_v40 }
 0x79b   :  { %v12249_v45 = vpack.c.bf16 %v12246_v25, %v12248_v8  ;;  %v12228_v11 = vpack.c.bf16 %v12225_v12, %v12227_v61  ;;  %v12380_v54 = vmul.f32 %v12348_v49, %v12316_v14  ;;  %v12381_v27 = vmul.f32 %v12349_v34, %v12317_v16 }
 0x79c   :  { %v12263_v23 = vpack.c.bf16 %v12260_v15, %v12262_v13  ;;  %v12234_v37 = vmul.f32 %v13280_v7, %v20584_v26  ;;  %v12256_v42 = vpack.c.bf16 %v12253_v56, %v12255_v5  ;;  %v22490_v24 = vunpack.c.l.bf16 %v20922_v20 }
 0x79d   :  { %v12342_v9 = vunpack.c.l.bf16 %v12249_v45  ;;  %v12343_v2 = vunpack.c.h.bf16 %v12249_v45  ;;  %v12336_v52 = vunpack.c.l.bf16 %v12228_v11  ;;  %v12400_v17 = vpack.c.bf16 %v12382_v51, %v12380_v54 }
 0x79e   :  { %v12401_v48 = vpack.c.bf16 %v12383_v35, %v12381_v27  ;;  %v12235_v43 = vpack.c.bf16 %v12232_v4, %v12234_v37  ;;  %v12337_v18 = vunpack.c.h.bf16 %v12228_v11  ;;  %v12372_v32 = vmul.f32 %v12340_v29, %v22490_v24 }
 0x79f   :  { %v22491_v41 = vunpack.c.l.bf16 %v20928_v44  ;;  %v22492_v47 = vunpack.c.h.bf16 %v20922_v20  ;;  %v22493_v49 = vunpack.c.h.bf16 %v20928_v44  ;;  %v12346_v34 = vunpack.c.l.bf16 %v12263_v23 }
 0x7a0   :  { %v12347_v15 = vunpack.c.h.bf16 %v12263_v23  ;;  %v12338_v13 = vunpack.c.l.bf16 %v12235_v43  ;;  %v12339_v12 = vunpack.c.h.bf16 %v12235_v43  ;;  %v12344_v51 = vunpack.c.l.bf16 %v12256_v42 }
 0x7a1   :  { %v12374_v1 = vmul.f32 %v12342_v9, %v22491_v41  ;;  %v12373_v14 = vmul.f32 %v12341_v36, %v22492_v47  ;;  %v12375_v26 = vmul.f32 %v12343_v2, %v22493_v49  ;;  %v22494_v38 = vunpack.c.l.bf16 %v20909_v33  ;;  %12415 = vmatpush.bf16.xpose.msra.mxu0 %v12400_v17  ;;  %12428 = vmatpush.bf16.xpose.msra.mxu1 %v12401_v48 }
 0x7a2   :  { %v12345_v25 = vunpack.c.h.bf16 %v12256_v42  ;;  %v22495_v57 = vunpack.c.l.bf16 %v20917_v0  ;;  %v22496_v56 = vunpack.c.h.bf16 %v20909_v33  ;;  %v22497_v5 = vunpack.c.h.bf16 %v20917_v0  ;;  %v12440_v0 = vld [vmem:[#allocation8] sm:$0x3] }
 0x7a3   :  { %v12396_v53 = vpack.c.bf16 %v12374_v1, %v12372_v32  ;;  %v12397_v10 = vpack.c.bf16 %v12375_v26, %v12373_v14  ;;  %v12368_v40 = vmul.f32 %v12336_v52, %v22494_v38  ;;  %v12312_v61 = vunpack.c.l.bf16 %v20966_v6 }
 0x7a4   :  { %v12370_v20 = vmul.f32 %v12338_v13, %v22495_v57  ;;  %v12369_v44 = vmul.f32 %v12337_v18, %v22496_v56  ;;  %v12371_v8 = vmul.f32 %v12339_v12, %v22497_v5  ;;  %v12313_v7 = vunpack.c.h.bf16 %v20966_v6 }
 0x7a5   :  { %v12378_v16 = vmul.f32 %v12346_v34, %v12314_v21  ;;  %v12379_v35 = vmul.f32 %v12347_v15, %v12315_v59  ;;  %v12376_v29 = vmul.f32 %v12344_v51, %v12312_v61  ;;  %v12442_v54 = vperm.slane %v12440_v0, 0  ;;  %v12404_v21 = vld [vmem:[%s21242_s8] sm:$0x3] }
 0x7a6   :  { %v12394_v4 = vpack.c.bf16 %v12370_v20, %v12368_v40  ;;  %v12395_v45 = vpack.c.bf16 %v12371_v8, %v12369_v44  ;;  %v12377_v36 = vmul.f32 %v12345_v25, %v12313_v7  ;;  %v12443_v27 = vperm.slane %v12440_v0, 1 }
 0x7a7   :  { %v12398_v11 = vpack.c.bf16 %v12378_v16, %v12376_v29  ;;  %v12446_v6 = vpack.c.bf16 %v12442_v54, %v12442_v54  ;;  %v22498_v46 = vpack.c.bf16 %v21097_v19, %v21091_v62  ;;  %v12406_v59 = vperm.slane %v12404_v21, 0 }
 0x7a8   :  { %v12399_v33 = vpack.c.bf16 %v12379_v35, %v12377_v36  ;;  %v12447_v23 = vpack.c.bf16 %v12443_v27, %v12443_v27  ;;  %v12407_v37 = vperm.slane %v12404_v21, 1  ;;  %v22499_v42 = vpack.c.bf16 %v21046_v50, %v21042_v39 }
 0x7a9   :  { %12416 = vmatpush.bf16.xpose.msra.mxu0 %v12398_v11  ;;  %12456 = vmatmul.bf16.vlgmr.msra.gmra.mxu2 %v12446_v6  ;;  %v22500_v55 = vpack.c.bf16 %v21056_v22, %v21050_v30  ;;  %v12410_v3 = vpack.c.bf16 %v12406_v59, %v12406_v59 }
 0x7aa   :  { %12429 = vmatpush.bf16.xpose.msra.mxu1 %v12399_v33  ;;  %12469 = vmatmul.bf16.vlgmr.msra.gmra.mxu3 %v12447_v23  ;;  %v12411_v63 = vpack.c.bf16 %v12407_v37, %v12407_v37 }
 0x7b1   :  { %12417 = vmatpush.bf16.xpose.msra.mxu0 %v12396_v53 }
 0x7b2   :  { %12430 = vmatpush.bf16.xpose.msra.mxu1 %v12397_v10 }
 0x7b9   :  { %12418 = vmatpush.bf16.xpose.msra.mxu0 %v12394_v4 }
 0x7ba   :  { %12431 = vmatpush.bf16.xpose.msra.mxu1 %v12395_v45 }
 0x7c1   :  { %12419 = vmatpush.bf16.xpose.msra.mxu0 %v12392_v31 }
 0x7c2   :  { %12432 = vmatpush.bf16.xpose.msra.mxu1 %v12393_v28  ;;  %v12413_v28 = vstv %s21243_s9 }
 0x7c9   :  { %12420 = vmatpush.bf16.xpose.msra.mxu0 %v12390_v58 }
 0x7ca   :  { %12433 = vmatpush.bf16.xpose.msra.mxu1 %v22498_v46 }
 0x7d1   :  { %12421 = vmatpush.bf16.xpose.msra.mxu0 %v22499_v42 }
 0x7d2   :  { %12434 = vmatpush.bf16.xpose.msra.mxu1 %v22500_v55 }
 0x7d8   :  { %12422 = vmatmul.bf16.vlgmr.msra.gmra.mxu0 %v12410_v3 }
 0x7d9   :  { %12435 = vmatmul.bf16.vlgmr.msra.gmra.mxu1 %v12411_v63 }
 0x82c   :  { %v12457_v62 = vpop.f32.mrf.mxu2 }
 0x82d   :  { %v12470_v58 = vpop.f32.mrf.mxu3 }
 0x82e   :  { %v12471_v19 = vadd.f32 %v12470_v58, %v12457_v62 }
 0x830   :  { %12475 = vst [vmem:[#allocation9 + $0x1] sm:$0x1] %v12471_v19 }
 0x834   :  { %v12459_v60 = vpop.f32.mrf.mxu2 }
 0x835   :  { %v12472_v31 = vpop.f32.mrf.mxu3 }
 0x855   :  { %v12423_v39 = vpop.f32.mrf.mxu0 }
 0x856   :  { %v12436_v50 = vpop.f32.mrf.mxu1  ;;  %v12424_v30 = vadd.f32 %v12423_v39, %v12413_v28 }
 0x858   :  { %v12437_v22 = vadd.f32 %v12436_v50, %v12424_v30 }
 0x85a   :  { %12474 = vst [vmem:[#allocation9] sm:$0x1] %v12437_v22 }
 0x85b   :  { %12486 = dma.vmem_to_hbm [thread:$0]  %s12482_s26, 32, %s12484_s29, [#allocation5]  }
 0x85d   :  { %v12425_v9 = vpop.f32.mrf.mxu0 }
 0x85e   :  { %v12438_v2 = vpop.f32.mrf.mxu1 }
 0x85f   :  { %13386 = dma.done.wait [#allocation5], 32  }
 0x860   :  { %13387 = vsyncadd [#allocation5], 4294967264 }
 0x861   :  { %12491 = vsyncpa [#allocation4], 1 }
 0x862   :  { %12492 = vsyncpa [#allocation7], 1 }
 0x863   :  { %12493 = vsyncpa [#allocation5], 1 }

</bundles_post_ra>
